<compile_context>
chip_gen: v7x
topology: tpu7x:2x2x1
jax: 0.10.0
libtpu: 0.0.40
codegen_flags: <defaults>
</compile_context>

<pallas_src>
import math
from functools import partial

import jax
import jax.numpy as jnp
from jax import lax
from jax.experimental import pallas as pl
from jax.experimental.pallas import tpu as pltpu

_VMEM_LIMIT = 32 * 1024 * 1024  # safe on v5e/v6e/v7x


def _round_up(x, m):
    return (x + m - 1) // m * m


# ----------------------------- Pallas kernels ------------------------------

def _linear_kernel(x_ref, w_ref, b_ref, o_ref, acc_ref, *, act):
    @pl.when(pl.program_id(2) == 0)
    def _():
        acc_ref[...] = jnp.zeros_like(acc_ref)

    acc_ref[...] += jnp.dot(x_ref[...], w_ref[...],
                            preferred_element_type=jnp.float32)

    @pl.when(pl.program_id(2) == pl.num_programs(2) - 1)
    def _():
        r = acc_ref[...] + b_ref[...]
        if act == "sigmoid":
            r = jax.nn.sigmoid(r)
        o_ref[...] = r.astype(o_ref.dtype)


def _layernorm_kernel(x_ref, g_ref, b_ref, o_ref, *, eps):
    x = x_ref[...].astype(jnp.float32)
    mu = jnp.mean(x, axis=-1, keepdims=True)
    xc = x - mu
    var = jnp.mean(xc * xc, axis=-1, keepdims=True)
    o_ref[...] = (xc * lax.rsqrt(var + eps) * g_ref[...] + b_ref[...]).astype(o_ref.dtype)


def _dwconv3x3_silu_kernel(xp_ref, w_ref, b_ref, o_ref, *, H, W):
    # xp: (H+2, W+2, C) zero-padded input; w: (9, C); b: (1, C); o: (H, W, C)
    acc = jnp.zeros(o_ref.shape, jnp.float32) + b_ref[...].astype(jnp.float32)
    for dh in range(3):
        for dw in range(3):
            t = dh * 3 + dw
            tap = xp_ref[dh:dh + H, dw:dw + W, :].astype(jnp.float32)
            acc = acc + tap * w_ref[t:t + 1, :].astype(jnp.float32)
    o_ref[...] = (acc * jax.nn.sigmoid(acc)).astype(o_ref.dtype)   # SiLU


def _xproj_dt_kernel(xs_ref, xw_ref, dw_ref, dt_ref, bs_ref, cs_ref, *, R, N):
    # per direction k: xs (M, Din) bf16; xw (Din, R+2N) bf16; dw (R, Din) bf16
    xdbl = jnp.dot(xs_ref[...], xw_ref[...], preferred_element_type=jnp.float32)
    dt = jnp.dot(xdbl[:, :R], dw_ref[...].astype(jnp.float32),
                 preferred_element_type=jnp.float32)
    dt_ref[...] = dt.astype(dt_ref.dtype)
    bs_ref[...] = xdbl[:, R:R + N].astype(bs_ref.dtype)
    cs_ref[...] = xdbl[:, R + N:R + 2 * N].astype(cs_ref.dtype)


def _selective_scan_kernel(u_ref, dt_ref, bs_ref, cs_ref, A_ref, Dskip_ref, db_ref,
                           y_ref, *, Lc):
    # u, dt, y: (L, D); bs, cs: (L, N); A: (N, D); Dskip, db: (1, D)
    L, D = u_ref.shape
    N = A_ref.shape[0]
    A = A_ref[...].astype(jnp.float32)          # (N, D), already negative
    skip = Dskip_ref[...].astype(jnp.float32)   # (1, D)
    db = db_ref[...].astype(jnp.float32)        # (1, D)

    def chunk_body(c, h):
        base = pl.multiple_of(c * Lc, Lc)
        u_c = u_ref[pl.ds(base, Lc), :].astype(jnp.float32)                     # (Lc, D)
        dt_c = jax.nn.softplus(dt_ref[pl.ds(base, Lc), :].astype(jnp.float32) + db)
        B_c = bs_ref[pl.ds(base, Lc), :].astype(jnp.float32)                    # (Lc, N)
        C_c = cs_ref[pl.ds(base, Lc), :].astype(jnp.float32)                    # (Lc, N)
        dA = jnp.exp(dt_c[:, None, :] * A[None, :, :])                          # (Lc, N, D)
        dBu = B_c[:, :, None] * (dt_c * u_c)[:, None, :]                        # (Lc, N, D)
        hs = []
        for i in range(Lc):                      # recurrence; h stays in registers
            h = dA[i] * h + dBu[i]
            hs.append(h)
        h_all = jnp.stack(hs, axis=0)                                           # (Lc, N, D)
        y_c = jnp.sum(C_c[:, :, None] * h_all, axis=1) + skip * u_c             # (Lc, D)
        y_ref[pl.ds(base, Lc), :] = y_c.astype(y_ref.dtype)                     # lane-dense store
        return h

    lax.fori_loop(0, L // Lc, chunk_body, jnp.zeros((N, D), jnp.float32))


def _ln_gate_proj_kernel(y_ref, z_ref, g_ref, b_ref, w_ref, o_ref, *, eps):
    # fused out_norm LayerNorm + SiLU(z) gate + out_proj matmul
    y = y_ref[...].astype(jnp.float32)
    mu = jnp.mean(y, axis=-1, keepdims=True)
    yc = y - mu
    var = jnp.mean(yc * yc, axis=-1, keepdims=True)
    yn = yc * lax.rsqrt(var + eps) * g_ref[...] + b_ref[...]
    z = z_ref[...].astype(jnp.float32)
    gated = yn * (z * jax.nn.sigmoid(z))
    o_ref[...] = jnp.dot(gated.astype(jnp.bfloat16), w_ref[...],
                         preferred_element_type=jnp.float32).astype(o_ref.dtype)


def _vmrnn_gate_kernel(o_ref, cx_ref, ht_ref, ct_ref):
    o = o_ref[...].astype(jnp.float32)
    cx = cx_ref[...].astype(jnp.float32)
    f = jax.nn.sigmoid(o)
    cell = jnp.tanh(o)
    ct = f * (cx + cell)
    ht = f * jnp.tanh(ct)
    ht_ref[...] = ht.astype(ht_ref.dtype)
    ct_ref[...] = ct.astype(ct_ref.dtype)


# ----------------------------- kernel wrappers ------------------------------

def linear(x, weight, bias=None, act=None):
    """y = x @ weight.T + bias (nn.Linear convention), optional fused sigmoid epilogue.
    bf16 MXU inputs, f32 accumulation, tiled over (M, N, K) with lane-dense padded outputs."""
    lead = x.shape[:-1]
    K = x.shape[-1]
    N = weight.shape[0]
    M = int(math.prod(lead))

    xb = x.reshape(M, K).astype(jnp.bfloat16)
    wb = weight.T.astype(jnp.bfloat16)                                  # (K, N)
    b = jnp.zeros((N,), jnp.float32) if bias is None else bias.astype(jnp.float32)
    b = b.reshape(1, N)

    tm = min(256, _round_up(M, 8))
    tn = min(256, _round_up(N, 128))
    tk = min(512, _round_up(K, 128))
    Mp, Np, Kp = _round_up(M, tm), _round_up(N, tn), _round_up(K, tk)
    if (Mp, Kp) != (M, K):
        xb = jnp.pad(xb, ((0, Mp - M), (0, Kp - K)))
    if (Kp, Np) != (K, N):
        wb = jnp.pad(wb, ((0, Kp - K), (0, Np - N)))
    if Np != N:
        b = jnp.pad(b, ((0, 0), (0, Np - N)))

    out = pl.pallas_call(
        partial(_linear_kernel, act=act),
        out_shape=jax.ShapeDtypeStruct((Mp, Np), jnp.float32),
        grid=(Mp // tm, Np // tn, Kp // tk),
        in_specs=[pl.BlockSpec((tm, tk), lambda i, j, k: (i, k)),
                  pl.BlockSpec((tk, tn), lambda i, j, k: (k, j)),
                  pl.BlockSpec((1, tn), lambda i, j, k: (0, j))],
        out_specs=pl.BlockSpec((tm, tn), lambda i, j, k: (i, j)),
        scratch_shapes=[pltpu.VMEM((tm, tn), jnp.float32)],
        compiler_params=pltpu.CompilerParams(
            dimension_semantics=("parallel", "parallel", "arbitrary"),
            vmem_limit_bytes=_VMEM_LIMIT),
    )(xb, wb, b)
    if (Mp, Np) != (M, N):
        out = out[:M, :N]
    return out.reshape(*lead, N)


def layer_norm(x, gamma, beta, eps=1e-5):
    lead = x.shape[:-1]
    C = x.shape[-1]
    M = int(math.prod(lead))
    tm = min(512, _round_up(M, 8))
    Mp = _round_up(M, tm)
    xr = x.reshape(M, C).astype(jnp.float32)
    if Mp != M:
        xr = jnp.pad(xr, ((0, Mp - M), (0, 0)))
    out = pl.pallas_call(
        partial(_layernorm_kernel, eps=eps),
        out_shape=jax.ShapeDtypeStruct((Mp, C), jnp.float32),
        grid=(Mp // tm,),
        in_specs=[pl.BlockSpec((tm, C), lambda i: (i, 0)),
                  pl.BlockSpec((1, C), lambda i: (0, 0)),
                  pl.BlockSpec((1, C), lambda i: (0, 0))],
        out_specs=pl.BlockSpec((tm, C), lambda i: (i, 0)),
        compiler_params=pltpu.CompilerParams(dimension_semantics=("parallel",),
                                             vmem_limit_bytes=_VMEM_LIMIT),
    )(xr, gamma.reshape(1, C).astype(jnp.float32), beta.reshape(1, C).astype(jnp.float32))
    if Mp != M:
        out = out[:M]
    return out.reshape(*lead, C)


def dwconv3x3_silu(x, w, b):
    # x: (B, H, W, C); depthwise 3x3, padding=1, + SiLU.  Blocked over batch.
    B, H, W, C = x.shape
    xpad = jnp.pad(x, ((0, 0), (1, 1), (1, 1), (0, 0))).astype(jnp.float32)
    return pl.pallas_call(
        partial(_dwconv3x3_silu_kernel, H=H, W=W),
        out_shape=jax.ShapeDtypeStruct((B, H, W, C), jnp.float32),
        grid=(B,),
        in_specs=[pl.BlockSpec((None, H + 2, W + 2, C), lambda i: (i, 0, 0, 0)),
                  pl.BlockSpec((9, C), lambda i: (0, 0)),
                  pl.BlockSpec((1, C), lambda i: (0, 0))],
        out_specs=pl.BlockSpec((None, H, W, C), lambda i: (i, 0, 0, 0)),
        compiler_params=pltpu.CompilerParams(dimension_semantics=("parallel",),
                                             vmem_limit_bytes=_VMEM_LIMIT),
    )(xpad, w.astype(jnp.float32), b.reshape(1, C).astype(jnp.float32))


def xproj_dtproj(xs_k, x_proj_w, dt_projs_w):
    """Batched (over the 4 scan directions) x_proj and dt_proj.
    xs_k: (K, M, Din); x_proj_w: (K, R+2N, Din); dt_projs_w: (K, Din, R)."""
    K, M, Din = xs_k.shape
    C = x_proj_w.shape[1]
    R = dt_projs_w.shape[2]
    N = (C - R) // 2
    xw = jnp.transpose(x_proj_w, (0, 2, 1)).astype(jnp.bfloat16)    # (K, Din, R+2N)
    dw = jnp.transpose(dt_projs_w, (0, 2, 1)).astype(jnp.bfloat16)  # (K, R, Din)
    return pl.pallas_call(
        partial(_xproj_dt_kernel, R=R, N=N),
        out_shape=(jax.ShapeDtypeStruct((K, M, Din), jnp.float32),
                   jax.ShapeDtypeStruct((K, M, N), jnp.float32),
                   jax.ShapeDtypeStruct((K, M, N), jnp.float32)),
        grid=(K,),
        in_specs=[pl.BlockSpec((None, M, Din), lambda k: (k, 0, 0)),
                  pl.BlockSpec((None, Din, C), lambda k: (k, 0, 0)),
                  pl.BlockSpec((None, R, Din), lambda k: (k, 0, 0))],
        out_specs=(pl.BlockSpec((None, M, Din), lambda k: (k, 0, 0)),
                   pl.BlockSpec((None, M, N), lambda k: (k, 0, 0)),
                   pl.BlockSpec((None, M, N), lambda k: (k, 0, 0))),
        compiler_params=pltpu.CompilerParams(dimension_semantics=("parallel",),
                                             vmem_limit_bytes=_VMEM_LIMIT),
    )(xs_k.astype(jnp.bfloat16), xw, dw)


def selective_scan(u, dt, Bs, Cs, A_t, Dskip, db):
    """u, dt: (B, K, L, D); Bs, Cs: (B, K, L, N); A_t: (K, N, D); Dskip, db: (K, 1, D)."""
    Bb, K, L, D = u.shape
    N = A_t.shape[1]
    Lc = next(c for c in (16, 8, 4, 2, 1) if L % c == 0)
    ld = pl.BlockSpec((None, None, L, D), lambda b, k: (b, k, 0, 0))
    ln = pl.BlockSpec((None, None, L, N), lambda b, k: (b, k, 0, 0))
    nd = pl.BlockSpec((None, N, D), lambda b, k: (k, 0, 0))
    d1 = pl.BlockSpec((None, 1, D), lambda b, k: (k, 0, 0))
    return pl.pallas_call(
        partial(_selective_scan_kernel, Lc=Lc),
        out_shape=jax.ShapeDtypeStruct((Bb, K, L, D), jnp.float32),
        grid=(Bb, K),
        in_specs=[ld, ld, ln, ln, nd, d1, d1],
        out_specs=ld,
        compiler_params=pltpu.CompilerParams(
            dimension_semantics=("parallel", "parallel"),
            vmem_limit_bytes=_VMEM_LIMIT),
    )(u.astype(jnp.float32), dt.astype(jnp.float32),
      Bs.astype(jnp.float32), Cs.astype(jnp.float32),
      A_t.astype(jnp.float32), Dskip.astype(jnp.float32), db.astype(jnp.float32))


def ln_gate_out_proj(y, z, gamma, beta, w_out, eps=1e-5):
    # y, z: (B, L, Din); w_out: (dim_out, Din).  Fused LN + SiLU gate + out_proj.
    Bb, L, Din = y.shape
    Nout = w_out.shape[0]
    M = Bb * L
    tm = min(256, _round_up(M, 8))
    Mp = _round_up(M, tm)
    Np = _round_up(Nout, 128)
    yr = y.reshape(M, Din).astype(jnp.float32)
    zr = z.reshape(M, Din).astype(jnp.float32)
    if Mp != M:
        yr = jnp.pad(yr, ((0, Mp - M), (0, 0)))
        zr = jnp.pad(zr, ((0, Mp - M), (0, 0)))
    wb = w_out.T.astype(jnp.bfloat16)                                  # (Din, Nout)
    if Np != Nout:
        wb = jnp.pad(wb, ((0, 0), (0, Np - Nout)))
    out = pl.pallas_call(
        partial(_ln_gate_proj_kernel, eps=eps),
        out_shape=jax.ShapeDtypeStruct((Mp, Np), jnp.float32),
        grid=(Mp // tm,),
        in_specs=[pl.BlockSpec((tm, Din), lambda i: (i, 0)),
                  pl.BlockSpec((tm, Din), lambda i: (i, 0)),
                  pl.BlockSpec((1, Din), lambda i: (0, 0)),
                  pl.BlockSpec((1, Din), lambda i: (0, 0)),
                  pl.BlockSpec((Din, Np), lambda i: (0, 0))],
        out_specs=pl.BlockSpec((tm, Np), lambda i: (i, 0)),
        compiler_params=pltpu.CompilerParams(dimension_semantics=("parallel",),
                                             vmem_limit_bytes=_VMEM_LIMIT),
    )(yr, zr, gamma.reshape(1, Din).astype(jnp.float32),
      beta.reshape(1, Din).astype(jnp.float32), wb)
    out = out[:M, :Nout]
    return out.reshape(Bb, L, Nout)


def vmrnn_gate(o, cx):
    Bb, L, C = o.shape
    M = Bb * L
    tm = min(512, _round_up(M, 8))
    Mp = _round_up(M, tm)
    orr = o.reshape(M, C).astype(jnp.float32)
    cxr = cx.reshape(M, C).astype(jnp.float32)
    if Mp != M:
        orr = jnp.pad(orr, ((0, Mp - M), (0, 0)))
        cxr = jnp.pad(cxr, ((0, Mp - M), (0, 0)))
    ht, ct = pl.pallas_call(
        _vmrnn_gate_kernel,
        out_shape=(jax.ShapeDtypeStruct((Mp, C), jnp.float32),
                   jax.ShapeDtypeStruct((Mp, C), jnp.float32)),
        grid=(Mp // tm,),
        in_specs=[pl.BlockSpec((tm, C), lambda i: (i, 0)),
                  pl.BlockSpec((tm, C), lambda i: (i, 0))],
        out_specs=(pl.BlockSpec((tm, C), lambda i: (i, 0)),
                   pl.BlockSpec((tm, C), lambda i: (i, 0))),
        compiler_params=pltpu.CompilerParams(dimension_semantics=("parallel",),
                                             vmem_limit_bytes=_VMEM_LIMIT),
    )(orr, cxr)
    if Mp != M:
        ht, ct = ht[:M], ct[:M]
    return ht.reshape(Bb, L, C), ct.reshape(Bb, L, C)


# ----------------------------- model pieces ------------------------------

def patch_embed_forward(pe, x, patch_size):
    # x: (B, Cin, H, W) NCHW  ->  (B, L, embed_dim)
    B, Cin, H, W = x.shape
    p = patch_size
    Hg, Wg = H // p, W // p
    patches = (x.reshape(B, Cin, Hg, p, Wg, p)
                .transpose(0, 2, 4, 1, 3, 5)
                .reshape(B * Hg * Wg, Cin * p * p))
    out = linear(patches, pe['proj_w'], pe['proj_b']).reshape(B, Hg * Wg, -1)
    return layer_norm(out, pe['norm_g'], pe['norm_b'])


def ss2d_forward(p, x, H, W):
    # x: (B, H, W, d_model) -> (B, L, d_model)
    B = x.shape[0]
    d_inner = p['conv_b'].shape[0]
    d_state = p['A_logs'].shape[-1]
    K = 4
    L = H * W

    xz = linear(x, p['in_proj_w'])                          # (B,H,W,2*d_inner), bias=False
    xin, z = jnp.split(xz, 2, axis=-1)

    xconv = dwconv3x3_silu(xin, p['conv_w'], p['conv_b'])   # (B,H,W,d_inner)

    # 4 scan directions (hw, wh, and their reverses)
    x_chw = jnp.transpose(xconv, (0, 3, 1, 2))                                   # (B, D, H, W)
    x_hw = x_chw.reshape(B, d_inner, L)
    x_wh = jnp.transpose(x_chw, (0, 1, 3, 2)).reshape(B, d_inner, L)
    x_hwwh = jnp.stack([x_hw, x_wh], axis=1)                                     # (B, 2, D, L)
    xs = jnp.concatenate([x_hwwh, jnp.flip(x_hwwh, axis=-1)], axis=1)            # (B, 4, D, L)
    xs_ld = jnp.transpose(xs, (0, 1, 3, 2))                                      # (B, 4, L, D)

    # batched per-direction x_proj + dt_proj (single pallas_call, K grid axis)
    xs_k = jnp.transpose(xs_ld, (1, 0, 2, 3)).reshape(K, B * L, d_inner)
    dt_k, Bs_k, Cs_k = xproj_dtproj(xs_k, p['x_proj_w'], p['dt_projs_w'])
    dt_all = jnp.transpose(dt_k.reshape(K, B, L, d_inner), (1, 0, 2, 3))          # (B,K,L,D)
    Bs_all = jnp.transpose(Bs_k.reshape(K, B, L, d_state), (1, 0, 2, 3))          # (B,K,L,N)
    Cs_all = jnp.transpose(Cs_k.reshape(K, B, L, d_state), (1, 0, 2, 3))          # (B,K,L,N)

    A_t = jnp.transpose(-jnp.exp(p['A_logs']), (0, 2, 1))                         # (K, N, D)
    Dskip = p['Ds'][:, None, :]                                                   # (K, 1, D)
    db = p['dt_projs_b'][:, None, :]                                              # (K, 1, D)

    ys = selective_scan(xs_ld, dt_all, Bs_all, Cs_all, A_t, Dskip, db)            # (B,K,L,D)

    # merge the 4 directions back to hw token order (plain-JAX glue, fused under jit)
    y_hw = ys[:, 0]
    y_hw_inv = jnp.flip(ys[:, 2], axis=1)
    y_wh = jnp.transpose(ys[:, 1].reshape(B, W, H, d_inner), (0, 2, 1, 3)).reshape(B, L, d_inner)
    y_wh_inv = jnp.transpose(jnp.flip(ys[:, 3], axis=1).reshape(B, W, H, d_inner),
                             (0, 2, 1, 3)).reshape(B, L, d_inner)
    y = y_hw + y_hw_inv + y_wh + y_wh_inv                                         # (B, L, D)

    # fused out_norm + SiLU(z) gate + out_proj (bias=False); dropout = identity
    return ln_gate_out_proj(y, z.reshape(B, L, d_inner),
                            p['out_norm_g'], p['out_norm_b'], p['out_proj_w'])


def vsb_forward(p, x, hx, H, W):
    B, L, C = x.shape
    shortcut = x
    xn = layer_norm(x, p['ln1_g'], p['ln1_b'])
    if hx is not None:
        hxn = layer_norm(hx, p['ln1_g'], p['ln1_b'])
        xn = linear(jnp.concatenate([xn, hxn], axis=-1), p['linear_w'], p['linear_b'])
    attn = ss2d_forward(p['ss2d'], xn.reshape(B, H, W, C), H, W)    # drop_path = identity
    return shortcut + attn


def vmrnn_cell_forward(vsbs, xt, hidden_states, H, W):
    B, L, C = xt.shape
    if hidden_states is None:
        hx = jnp.zeros((B, L, C), xt.dtype)
        cx = jnp.zeros((B, L, C), xt.dtype)
    else:
        hx, cx = hidden_states
    out = xt
    for idx, p in enumerate(vsbs):
        out = vsb_forward(p, out, hx if idx == 0 else None, H, W)
    Ht, Ct = vmrnn_gate(out, cx)
    return Ht, (Ht, Ct)


def patch_merging_forward(pm, x, H, W):
    B, L, C = x.shape
    xg = x.reshape(B, H, W, C)
    x0 = xg[:, 0::2, 0::2, :]
    x1 = xg[:, 1::2, 0::2, :]
    x2 = xg[:, 0::2, 1::2, :]
    x3 = xg[:, 1::2, 1::2, :]
    xc = jnp.concatenate([x0, x1, x2, x3], axis=-1).reshape(B, (H // 2) * (W // 2), 4 * C)
    xc = layer_norm(xc, pm['norm_g'], pm['norm_b'])
    return linear(xc, pm['red_w'])                      # Linear(4C, 2C, bias=False)


def patch_expanding_forward(pe, x, H, W):
    # Linear(C, 2C, bias=False) + rearrange 'b h w (p1 p2 c) -> b (h p1) (w p2) c' + LayerNorm(C//2)
    B, L, C = x.shape
    x = linear(x, pe['expand_w'])                       # (B, L, 2C)
    c = (2 * C) // 4
    x = (x.reshape(B, H, W, 2, 2, c)
          .transpose(0, 1, 3, 2, 4, 5)
          .reshape(B, 4 * H * W, c))
    return layer_norm(x, pe['norm_g'], pe['norm_b'])


def patch_inflated_forward(pi, x, H, W):
    # ConvTranspose2d(C, in_chans, k=3, stride=2, padding=1, output_padding=1) + sigmoid.
    # Lowered to zero-insertion + 3x3 im2col (plain-JAX glue) and one MXU matmul Pallas call
    # with a fused sigmoid epilogue.
    B, L, C = x.shape
    Cin, Cout = pi['conv_w'].shape[0], pi['conv_w'].shape[1]
    Ho, Wo = 2 * H, 2 * W
    xg = x.reshape(B, H, W, C)
    xdp = jnp.zeros((B, Ho + 2, Wo + 2, C), x.dtype)
    xdp = xdp.at[:, 1:Ho:2, 1:Wo:2, :].set(xg)          # dilate (stride 2) + pad
    taps = [xdp[:, kh:kh + Ho, kw:kw + Wo, :] for kh in range(3) for kw in range(3)]
    cols = jnp.concatenate(taps, axis=-1).reshape(B * Ho * Wo, 9 * C)
    wflip = pi['conv_w'][:, :, ::-1, ::-1]                                     # (Cin, Cout, 3, 3)
    w_lin = jnp.transpose(wflip, (2, 3, 0, 1)).reshape(9 * Cin, Cout).T        # (Cout, 9*Cin)
    out = linear(cols, w_lin, pi['conv_b'], act="sigmoid")                     # (B*Ho*Wo, Cout)
    return jnp.transpose(out.reshape(B, Ho, Wo, Cout), (0, 3, 1, 2))           # NCHW


def downsample_forward(params, x, y, *, cfg):
    xt = patch_embed_forward(params['patch_embed'], x, cfg['patch_size'])
    Hp, Wp = cfg['patches_resolution']
    hidden_states_down = []
    for i, layer in enumerate(params['layers']):
        Hi, Wi = Hp // (2 ** i), Wp // (2 ** i)
        xt, hidden = vmrnn_cell_forward(layer['cell'], xt, y[i], Hi, Wi)
        xt = patch_merging_forward(layer['merge'], xt, Hi, Wi)
        hidden_states_down.append(hidden)
    return hidden_states_down, xt


def upsample_forward(params, x, y, *, cfg):
    Hp, Wp = cfg['patches_resolution']
    num_layers = len(params['layers'])
    hidden_states_up = []
    for i, layer in enumerate(params['layers']):
        Hi = Hp // (2 ** (num_layers - i))
        Wi = Wp // (2 ** (num_layers - i))
        x, hidden = vmrnn_cell_forward(layer['cell'], x, y[i], Hi, Wi)
        x = patch_expanding_forward(layer['expand'], x, Hi, Wi)
        hidden_states_up.append(hidden)
    out = patch_inflated_forward(params['unembed'], x, Hp, Wp)
    return hidden_states_up, out


def vmrnn_forward(params, x, states_down, states_up, *, cfg):
    states_down, xt = downsample_forward(params['down'], x, states_down, cfg=cfg)
    states_up, out = upsample_forward(params['up'], xt, states_up, cfg=cfg)
    return out, states_down, states_up


# ----------------------------- parameter init ------------------------------

def init_vmrnn_params(key, img_size, patch_size, in_chans, embed_dim,
                      depths_downsample, depths_upsample, d_state=16):
    # TODO(synk): PyTorch's exact init schemes (trunc-normal, dt_proj inverse-softplus init) are
    # replaced by deterministic scaled normals; forward-pass semantics are otherwise preserved.
    keys = iter(jax.random.split(key, 8192))

    def nrm(shape, scale=0.02):
        return (scale * jax.random.normal(next(keys), shape)).astype(jnp.float32)

    def make_vsb(dim):
        d_inner = 2 * dim                                 # SS2D expand = 2
        dt_rank = math.ceil(dim / 16)
        ss2d = dict(
            in_proj_w=nrm((2 * d_inner, dim)),
            conv_w=nrm((9, d_inner), 0.1),
            conv_b=jnp.zeros((d_inner,), jnp.float32),
            x_proj_w=nrm((4, dt_rank + 2 * d_state, d_inner)),
            dt_projs_w=nrm((4, d_inner, dt_rank), dt_rank ** -0.5),
            dt_projs_b=nrm((4, d_inner), 0.1),
            A_logs=jnp.broadcast_to(
                jnp.log(jnp.arange(1, d_state + 1, dtype=jnp.float32)),
                (4, d_inner, d_state)),
            Ds=jnp.ones((4, d_inner), jnp.float32),
            out_norm_g=jnp.ones((d_inner,), jnp.float32),
            out_norm_b=jnp.zeros((d_inner,), jnp.float32),
            out_proj_w=nrm((dim, d_inner)),
        )
        return dict(
            ln1_g=jnp.ones((dim,), jnp.float32),
            ln1_b=jnp.zeros((dim,), jnp.float32),
            linear_w=nrm((dim, 2 * dim)),
            linear_b=jnp.zeros((dim,), jnp.float32),
            ss2d=ss2d,
        )

    Hp = img_size // patch_size

    # DownSample
    down = {'patch_embed': dict(
        proj_w=nrm((embed_dim, in_chans * patch_size * patch_size)),
        proj_b=jnp.zeros((embed_dim,), jnp.float32),
        norm_g=jnp.ones((embed_dim,), jnp.float32),
        norm_b=jnp.zeros((embed_dim,), jnp.float32))}
    down_layers = []
    for i, depth in enumerate(depths_downsample):
        dim = embed_dim * (2 ** i)
        merge = dict(
            norm_g=jnp.ones((4 * dim,), jnp.float32),
            norm_b=jnp.zeros((4 * dim,), jnp.float32),
            red_w=nrm((2 * dim, 4 * dim)))
        down_layers.append(dict(cell=[make_vsb(dim) for _ in range(depth)], merge=merge))
    down['layers'] = down_layers

    # UpSample
    num_up = len(depths_upsample)
    up_layers = []
    for i in range(num_up):
        dim = embed_dim * (2 ** (num_up - i))
        depth = depths_upsample[num_up - 1 - i]
        expand = dict(
            expand_w=nrm((2 * dim, dim)),                 # Linear(dim, 2*dim, bias=False)
            norm_g=jnp.ones((dim // 2,), jnp.float32),
            norm_b=jnp.zeros((dim // 2,), jnp.float32))
        up_layers.append(dict(cell=[make_vsb(dim) for _ in range(depth)], expand=expand))
    up = dict(layers=up_layers,
              unembed=dict(conv_w=nrm((embed_dim, in_chans, 3, 3)),
                           conv_b=jnp.zeros((in_chans,), jnp.float32)))

    params = dict(down=down, up=up)
    cfg = dict(patch_size=patch_size, patches_resolution=(Hp, Hp))
    return params, cfg


# ----------------------------- main ------------------------------

if __name__ == "__main__":
    img_size, patch_size, in_chans, embed_dim = 16, 4, 1, 32
    depths_downsample = (2, 2)
    depths_upsample = (2, 2)
    B = 2

    key = jax.random.PRNGKey(0)
    kp, kx, kh, kc = jax.random.split(key, 4)
    params, cfg = init_vmrnn_params(kp, img_size, patch_size, in_chans, embed_dim,
                                    depths_downsample, depths_upsample)

    x = jax.random.normal(kx, (B, in_chans, img_size, img_size), jnp.float32)   # NCHW
    L0 = (img_size // patch_size) ** 2
    h0 = 0.1 * jax.random.normal(kh, (B, L0, embed_dim), jnp.float32)
    c0 = 0.1 * jax.random.normal(kc, (B, L0, embed_dim), jnp.float32)
    states_down = [(h0, c0), None]          # layer-1 of DownSample starts from zeros
    states_up = [None, None]                # UpSample starts from zeros

    fwd = jax.jit(partial(vmrnn_forward, cfg=cfg))
    out, sd, su = fwd(params, x, states_down, states_up)

    jax.block_until_ready(out)
    for Ht, Ct in list(sd) + list(su):
        jax.block_until_ready(Ht)
        jax.block_until_ready(Ct)

    Hp = img_size // patch_size
    assert out.shape == (B, in_chans, 2 * Hp, 2 * Hp)
    assert sd[0][0].shape == (B, L0, embed_dim)
    assert sd[1][0].shape == (B, L0 // 4, embed_dim * 2)
    assert su[0][0].shape == (B, 1, embed_dim * 4)
    assert su[1][0].shape == (B, L0 // 4, embed_dim * 2)
    print("KERNEL_OK")
</pallas_src>

<mosaic_0001>
module attributes {stable_mosaic.version = 11 : i64} {
  func.func @_linear_kernel(%arg0: i32, %arg1: i32, %arg2: i32, %arg3: memref<32x128xbf16, #tpu.memory_space<vmem>>, %arg4: memref<128x128xbf16, #tpu.memory_space<vmem>>, %arg5: memref<1x128xf32, #tpu.memory_space<vmem>>, %arg6: memref<32x128xf32, #tpu.memory_space<vmem>>, %arg7: memref<32x128xf32, #tpu.memory_space<vmem>>) attributes {dimension_semantics = [#tpu.dimension_semantics<parallel>, #tpu.dimension_semantics<parallel>, #tpu.dimension_semantics<arbitrary>], iteration_bounds = array<i64: 1, 1, 1>, scalar_prefetch = 0 : i64, scratch_operands = 1 : i64, tpu.core_type = #tpu.core_type<tc>, window_params = [{transform_indices = @transform_0, window_bounds = array<i64: 32, 128>}, {transform_indices = @transform_1, window_bounds = array<i64: 128, 128>}, {transform_indices = @transform_2, window_bounds = array<i64: 1, 128>}, {transform_indices = @transform_3, window_bounds = array<i64: 32, 128>}]} {
    %c0_i32 = arith.constant 0 : i32
    %0 = arith.cmpi eq, %arg2, %c0_i32 : i32
    %1 = arith.extui %0 : i1 to i32
    %c0_i32_0 = arith.constant 0 : i32
    %2 = arith.cmpi ne, %1, %c0_i32_0 : i32
    scf.if %2 {
      %cst_10 = arith.constant 0.000000e+00 : f32
      %12 = vector.broadcast %cst_10 : f32 to vector<32x128xf32>
      %c0_11 = arith.constant 0 : index
      %c0_12 = arith.constant 0 : index
      %13 = vector.load %arg7[%c0_11, %c0_12] : memref<32x128xf32, #tpu.memory_space<vmem>>, vector<32x128xf32>
      tpu.vector_store %arg7[%c0_11, %c0_12], %12 {strides = array<i32>} : memref<32x128xf32, #tpu.memory_space<vmem>>, vector<32x128xf32>,
    } else {
    }
    %c0 = arith.constant 0 : index
    %c0_1 = arith.constant 0 : index
    %3 = vector.load %arg7[%c0, %c0_1] : memref<32x128xf32, #tpu.memory_space<vmem>>, vector<32x128xf32>
    %c0_2 = arith.constant 0 : index
    %c0_3 = arith.constant 0 : index
    %4 = vector.load %arg3[%c0_2, %c0_3] : memref<32x128xbf16, #tpu.memory_space<vmem>>, vector<32x128xbf16>
    %c0_4 = arith.constant 0 : index
    %c0_5 = arith.constant 0 : index
    %5 = vector.load %arg4[%c0_4, %c0_5] : memref<128x128xbf16, #tpu.memory_space<vmem>>, vector<128x128xbf16>
    %cst = arith.constant dense<0.000000e+00> : vector<32x128xf32>
    %6 = tpu.matmul %4, %5, %cst {dimension_numbers = #tpu.dot_dimension_numbers<[1], [0], [0], [1], [0, 0, 1, 1], [], []>} : vector<32x128xbf16>, vector<128x128xbf16>, vector<32x128xf32> -> vector<32x128xf32>
    %7 = arith.addf %3, %6 : vector<32x128xf32>
    %c0_6 = arith.constant 0 : index
    %c0_7 = arith.constant 0 : index
    %8 = vector.load %arg7[%c0_6, %c0_7] : memref<32x128xf32, #tpu.memory_space<vmem>>, vector<32x128xf32>
    tpu.vector_store %arg7[%c0_6, %c0_7], %7 {strides = array<i32>} : memref<32x128xf32, #tpu.memory_space<vmem>>, vector<32x128xf32>,
    %c0_i32_8 = arith.constant 0 : i32
    %9 = arith.cmpi eq, %arg2, %c0_i32_8 : i32
    %10 = arith.extui %9 : i1 to i32
    %c0_i32_9 = arith.constant 0 : i32
    %11 = arith.cmpi ne, %10, %c0_i32_9 : i32
    scf.if %11 {
      %c0_10 = arith.constant 0 : index
      %c0_11 = arith.constant 0 : index
      %12 = vector.load %arg7[%c0_10, %c0_11] : memref<32x128xf32, #tpu.memory_space<vmem>>, vector<32x128xf32>
      %c0_12 = arith.constant 0 : index
      %c0_13 = arith.constant 0 : index
      %13 = vector.load %arg5[%c0_12, %c0_13] : memref<1x128xf32, #tpu.memory_space<vmem>>, vector<1x128xf32>
      %14 = vector.broadcast %13 : vector<1x128xf32> to vector<32x128xf32>
      %15 = arith.addf %12, %14 : vector<32x128xf32>
      %c0_14 = arith.constant 0 : index
      %c0_15 = arith.constant 0 : index
      %16 = vector.load %arg6[%c0_14, %c0_15] : memref<32x128xf32, #tpu.memory_space<vmem>>, vector<32x128xf32>
      tpu.vector_store %arg6[%c0_14, %c0_15], %15 {strides = array<i32>} : memref<32x128xf32, #tpu.memory_space<vmem>>, vector<32x128xf32>,
    } else {
    }
    return
  }
  func.func @transform_0(%arg0: i32, %arg1: i32, %arg2: i32) -> (i32, i32) {
    %c0_i32 = arith.constant 0 : i32
    return %arg0, %arg2 : i32, i32
  }
  func.func @transform_1(%arg0: i32, %arg1: i32, %arg2: i32) -> (i32, i32) {
    %c0_i32 = arith.constant 0 : i32
    return %arg2, %arg1 : i32, i32
  }
  func.func @transform_2(%arg0: i32, %arg1: i32, %arg2: i32) -> (i32, i32) {
    %c0_i32 = arith.constant 0 : i32
    %c0_i32_0 = arith.constant 0 : i32
    return %c0_i32, %arg1 : i32, i32
  }
  func.func @transform_3(%arg0: i32, %arg1: i32, %arg2: i32) -> (i32, i32) {
    %c0_i32 = arith.constant 0 : i32
    return %arg0, %arg1 : i32, i32
  }
}

module attributes {stable_mosaic.version = 11 : i64} {
  func.func @_layernorm_kernel(%arg0: i32, %arg1: memref<32x32xf32, #tpu.memory_space<vmem>>, %arg2: memref<1x32xf32, #tpu.memory_space<vmem>>, %arg3: memref<1x32xf32, #tpu.memory_space<vmem>>, %arg4: memref<32x32xf32, #tpu.memory_space<vmem>>) attributes {dimension_semantics = [#tpu.dimension_semantics<parallel>], iteration_bounds = array<i64: 1>, scalar_prefetch = 0 : i64, scratch_operands = 0 : i64, tpu.core_type = #tpu.core_type<tc>, window_params = [{transform_indices = @transform_0, window_bounds = array<i64: 32, 32>}, {pipeline_mode = #tpu.pipeline_mode<synchronous>, transform_indices = @transform_1, window_bounds = array<i64: 1, 32>}, {pipeline_mode = #tpu.pipeline_mode<synchronous>, transform_indices = @transform_2, window_bounds = array<i64: 1, 32>}, {transform_indices = @transform_3, window_bounds = array<i64: 32, 32>}]} {
    %c0 = arith.constant 0 : index
    %c0_0 = arith.constant 0 : index
    %0 = vector.load %arg1[%c0, %c0_0] : memref<32x32xf32, #tpu.memory_space<vmem>>, vector<32x32xf32>
    %cst = arith.constant dense<0.000000e+00> : vector<32xf32>
    %1 = vector.multi_reduction <add>, %0, %cst [1] : vector<32x32xf32> to vector<32xf32>
    %2 = vector.shape_cast %1 : vector<32xf32> to vector<32x1xf32>
    %cst_1 = arith.constant 3.200000e+01 : f32
    %3 = vector.broadcast %cst_1 : f32 to vector<32x1xf32>
    %4 = arith.divf %2, %3 : vector<32x1xf32>
    %5 = vector.broadcast %4 : vector<32x1xf32> to vector<32x32xf32>
    %6 = arith.subf %0, %5 : vector<32x32xf32>
    %7 = arith.mulf %6, %6 : vector<32x32xf32>
    %cst_2 = arith.constant dense<0.000000e+00> : vector<32xf32>
    %8 = vector.multi_reduction <add>, %7, %cst_2 [1] : vector<32x32xf32> to vector<32xf32>
    %9 = vector.shape_cast %8 : vector<32xf32> to vector<32x1xf32>
    %cst_3 = arith.constant 3.200000e+01 : f32
    %10 = vector.broadcast %cst_3 : f32 to vector<32x1xf32>
    %11 = arith.divf %9, %10 : vector<32x1xf32>
    %cst_4 = arith.constant 9.99999974E-6 : f32
    %12 = vector.broadcast %cst_4 : f32 to vector<32x1xf32>
    %13 = arith.addf %11, %12 : vector<32x1xf32>
    %14 = math.rsqrt %13 : vector<32x1xf32>
    %15 = vector.broadcast %14 : vector<32x1xf32> to vector<32x32xf32>
    %16 = arith.mulf %6, %15 : vector<32x32xf32>
    %c0_5 = arith.constant 0 : index
    %c0_6 = arith.constant 0 : index
    %17 = vector.load %arg2[%c0_5, %c0_6] : memref<1x32xf32, #tpu.memory_space<vmem>>, vector<1x32xf32>
    %18 = vector.broadcast %17 : vector<1x32xf32> to vector<32x32xf32>
    %19 = arith.mulf %16, %18 : vector<32x32xf32>
    %c0_7 = arith.constant 0 : index
    %c0_8 = arith.constant 0 : index
    %20 = vector.load %arg3[%c0_7, %c0_8] : memref<1x32xf32, #tpu.memory_space<vmem>>, vector<1x32xf32>
    %21 = vector.broadcast %20 : vector<1x32xf32> to vector<32x32xf32>
    %22 = arith.addf %19, %21 : vector<32x32xf32>
    %c0_9 = arith.constant 0 : index
    %c0_10 = arith.constant 0 : index
    %23 = vector.load %arg4[%c0_9, %c0_10] : memref<32x32xf32, #tpu.memory_space<vmem>>, vector<32x32xf32>
    tpu.vector_store %arg4[%c0_9, %c0_10], %22 {strides = array<i32>} : memref<32x32xf32, #tpu.memory_space<vmem>>, vector<32x32xf32>,
    return
  }
  func.func @transform_0(%arg0: i32) -> (i32, i32) {
    %c0_i32 = arith.constant 0 : i32
    %c0_i32_0 = arith.constant 0 : i32
    return %arg0, %c0_i32 : i32, i32
  }
  func.func @transform_1(%arg0: i32) -> (i32, i32) {
    %c0_i32 = arith.constant 0 : i32
    %c0_i32_0 = arith.constant 0 : i32
    %c0_i32_1 = arith.constant 0 : i32
    return %c0_i32, %c0_i32_0 : i32, i32
  }
  func.func @transform_2(%arg0: i32) -> (i32, i32) {
    %c0_i32 = arith.constant 0 : i32
    %c0_i32_0 = arith.constant 0 : i32
    %c0_i32_1 = arith.constant 0 : i32
    return %c0_i32, %c0_i32_0 : i32, i32
  }
  func.func @transform_3(%arg0: i32) -> (i32, i32) {
    %c0_i32 = arith.constant 0 : i32
    %c0_i32_0 = arith.constant 0 : i32
    return %arg0, %c0_i32 : i32, i32
  }
}

module attributes {stable_mosaic.version = 11 : i64} {
  func.func @_dwconv3x3_silu_kernel(%arg0: i32, %arg1: memref<1x6x6x64xf32, #tpu.memory_space<vmem>>, %arg2: memref<9x64xf32, #tpu.memory_space<vmem>>, %arg3: memref<1x64xf32, #tpu.memory_space<vmem>>, %arg4: memref<1x4x4x64xf32, #tpu.memory_space<vmem>>) attributes {dimension_semantics = [#tpu.dimension_semantics<parallel>], iteration_bounds = array<i64: 2>, scalar_prefetch = 0 : i64, scratch_operands = 0 : i64, tpu.core_type = #tpu.core_type<tc>, window_params = [{transform_indices = @transform_0, window_bounds = array<i64: 1, 6, 6, 64>}, {pipeline_mode = #tpu.pipeline_mode<synchronous>, transform_indices = @transform_1, window_bounds = array<i64: 9, 64>}, {pipeline_mode = #tpu.pipeline_mode<synchronous>, transform_indices = @transform_2, window_bounds = array<i64: 1, 64>}, {transform_indices = @transform_3, window_bounds = array<i64: 1, 4, 4, 64>}]} {
    %cst = arith.constant 0.000000e+00 : f32
    %0 = vector.broadcast %cst : f32 to vector<4x4x64xf32>
    %c0 = arith.constant 0 : index
    %c0_0 = arith.constant 0 : index
    %1 = vector.load %arg3[%c0, %c0_0] : memref<1x64xf32, #tpu.memory_space<vmem>>, vector<1x64xf32>
    %2 = vector.shape_cast %1 : vector<1x64xf32> to vector<1x1x64xf32>
    %3 = vector.broadcast %2 : vector<1x1x64xf32> to vector<4x4x64xf32>
    %4 = arith.addf %0, %3 : vector<4x4x64xf32>
    %c0_1 = arith.constant 0 : index
    %c0_2 = arith.constant 0 : index
    %c0_3 = arith.constant 0 : index
    %c0_4 = arith.constant 0 : index
    %5 = vector.load %arg1[%c0_1, %c0_2, %c0_3, %c0_4] : memref<1x6x6x64xf32, #tpu.memory_space<vmem>>, vector<1x4x4x64xf32>
    %6 = vector.shape_cast %5 : vector<1x4x4x64xf32> to vector<4x4x64xf32>
    %c0_5 = arith.constant 0 : index
    %c0_6 = arith.constant 0 : index
    %7 = vector.load %arg2[%c0_5, %c0_6] : memref<9x64xf32, #tpu.memory_space<vmem>>, vector<1x64xf32>
    %8 = vector.shape_cast %7 : vector<1x64xf32> to vector<1x1x64xf32>
    %9 = vector.broadcast %8 : vector<1x1x64xf32> to vector<4x4x64xf32>
    %10 = arith.mulf %6, %9 : vector<4x4x64xf32>
    %11 = arith.addf %4, %10 : vector<4x4x64xf32>
    %c0_7 = arith.constant 0 : index
    %c0_8 = arith.constant 0 : index
    %c1 = arith.constant 1 : index
    %c0_9 = arith.constant 0 : index
    %12 = vector.load %arg1[%c0_7, %c0_8, %c1, %c0_9] : memref<1x6x6x64xf32, #tpu.memory_space<vmem>>, vector<1x4x4x64xf32>
    %13 = vector.shape_cast %12 : vector<1x4x4x64xf32> to vector<4x4x64xf32>
    %c1_10 = arith.constant 1 : index
    %c0_11 = arith.constant 0 : index
    %14 = vector.load %arg2[%c1_10, %c0_11] : memref<9x64xf32, #tpu.memory_space<vmem>>, vector<1x64xf32>
    %15 = vector.shape_cast %14 : vector<1x64xf32> to vector<1x1x64xf32>
    %16 = vector.broadcast %15 : vector<1x1x64xf32> to vector<4x4x64xf32>
    %17 = arith.mulf %13, %16 : vector<4x4x64xf32>
    %18 = arith.addf %11, %17 : vector<4x4x64xf32>
    %c0_12 = arith.constant 0 : index
    %c0_13 = arith.constant 0 : index
    %c2 = arith.constant 2 : index
    %c0_14 = arith.constant 0 : index
    %19 = vector.load %arg1[%c0_12, %c0_13, %c2, %c0_14] : memref<1x6x6x64xf32, #tpu.memory_space<vmem>>, vector<1x4x4x64xf32>
    %20 = vector.shape_cast %19 : vector<1x4x4x64xf32> to vector<4x4x64xf32>
    %c2_15 = arith.constant 2 : index
    %c0_16 = arith.constant 0 : index
    %21 = vector.load %arg2[%c2_15, %c0_16] : memref<9x64xf32, #tpu.memory_space<vmem>>, vector<1x64xf32>
    %22 = vector.shape_cast %21 : vector<1x64xf32> to vector<1x1x64xf32>
    %23 = vector.broadcast %22 : vector<1x1x64xf32> to vector<4x4x64xf32>
    %24 = arith.mulf %20, %23 : vector<4x4x64xf32>
    %25 = arith.addf %18, %24 : vector<4x4x64xf32>
    %c0_17 = arith.constant 0 : index
    %c1_18 = arith.constant 1 : index
    %c0_19 = arith.constant 0 : index
    %c0_20 = arith.constant 0 : index
    %26 = vector.load %arg1[%c0_17, %c1_18, %c0_19, %c0_20] : memref<1x6x6x64xf32, #tpu.memory_space<vmem>>, vector<1x4x4x64xf32>
    %27 = vector.shape_cast %26 : vector<1x4x4x64xf32> to vector<4x4x64xf32>
    %c3 = arith.constant 3 : index
    %c0_21 = arith.constant 0 : index
    %28 = vector.load %arg2[%c3, %c0_21] : memref<9x64xf32, #tpu.memory_space<vmem>>, vector<1x64xf32>
    %29 = vector.shape_cast %28 : vector<1x64xf32> to vector<1x1x64xf32>
    %30 = vector.broadcast %29 : vector<1x1x64xf32> to vector<4x4x64xf32>
    %31 = arith.mulf %27, %30 : vector<4x4x64xf32>
    %32 = arith.addf %25, %31 : vector<4x4x64xf32>
    %c0_22 = arith.constant 0 : index
    %c1_23 = arith.constant 1 : index
    %c1_24 = arith.constant 1 : index
    %c0_25 = arith.constant 0 : index
    %33 = vector.load %arg1[%c0_22, %c1_23, %c1_24, %c0_25] : memref<1x6x6x64xf32, #tpu.memory_space<vmem>>, vector<1x4x4x64xf32>
    %34 = vector.shape_cast %33 : vector<1x4x4x64xf32> to vector<4x4x64xf32>
    %c4 = arith.constant 4 : index
    %c0_26 = arith.constant 0 : index
    %35 = vector.load %arg2[%c4, %c0_26] : memref<9x64xf32, #tpu.memory_space<vmem>>, vector<1x64xf32>
    %36 = vector.shape_cast %35 : vector<1x64xf32> to vector<1x1x64xf32>
    %37 = vector.broadcast %36 : vector<1x1x64xf32> to vector<4x4x64xf32>
    %38 = arith.mulf %34, %37 : vector<4x4x64xf32>
    %39 = arith.addf %32, %38 : vector<4x4x64xf32>
    %c0_27 = arith.constant 0 : index
    %c1_28 = arith.constant 1 : index
    %c2_29 = arith.constant 2 : index
    %c0_30 = arith.constant 0 : index
    %40 = vector.load %arg1[%c0_27, %c1_28, %c2_29, %c0_30] : memref<1x6x6x64xf32, #tpu.memory_space<vmem>>, vector<1x4x4x64xf32>
    %41 = vector.shape_cast %40 : vector<1x4x4x64xf32> to vector<4x4x64xf32>
    %c5 = arith.constant 5 : index
    %c0_31 = arith.constant 0 : index
    %42 = vector.load %arg2[%c5, %c0_31] : memref<9x64xf32, #tpu.memory_space<vmem>>, vector<1x64xf32>
    %43 = vector.shape_cast %42 : vector<1x64xf32> to vector<1x1x64xf32>
    %44 = vector.broadcast %43 : vector<1x1x64xf32> to vector<4x4x64xf32>
    %45 = arith.mulf %41, %44 : vector<4x4x64xf32>
    %46 = arith.addf %39, %45 : vector<4x4x64xf32>
    %c0_32 = arith.constant 0 : index
    %c2_33 = arith.constant 2 : index
    %c0_34 = arith.constant 0 : index
    %c0_35 = arith.constant 0 : index
    %47 = vector.load %arg1[%c0_32, %c2_33, %c0_34, %c0_35] : memref<1x6x6x64xf32, #tpu.memory_space<vmem>>, vector<1x4x4x64xf32>
    %48 = vector.shape_cast %47 : vector<1x4x4x64xf32> to vector<4x4x64xf32>
    %c6 = arith.constant 6 : index
    %c0_36 = arith.constant 0 : index
    %49 = vector.load %arg2[%c6, %c0_36] : memref<9x64xf32, #tpu.memory_space<vmem>>, vector<1x64xf32>
    %50 = vector.shape_cast %49 : vector<1x64xf32> to vector<1x1x64xf32>
    %51 = vector.broadcast %50 : vector<1x1x64xf32> to vector<4x4x64xf32>
    %52 = arith.mulf %48, %51 : vector<4x4x64xf32>
    %53 = arith.addf %46, %52 : vector<4x4x64xf32>
    %c0_37 = arith.constant 0 : index
    %c2_38 = arith.constant 2 : index
    %c1_39 = arith.constant 1 : index
    %c0_40 = arith.constant 0 : index
    %54 = vector.load %arg1[%c0_37, %c2_38, %c1_39, %c0_40] : memref<1x6x6x64xf32, #tpu.memory_space<vmem>>, vector<1x4x4x64xf32>
    %55 = vector.shape_cast %54 : vector<1x4x4x64xf32> to vector<4x4x64xf32>
    %c7 = arith.constant 7 : index
    %c0_41 = arith.constant 0 : index
    %56 = vector.load %arg2[%c7, %c0_41] : memref<9x64xf32, #tpu.memory_space<vmem>>, vector<1x64xf32>
    %57 = vector.shape_cast %56 : vector<1x64xf32> to vector<1x1x64xf32>
    %58 = vector.broadcast %57 : vector<1x1x64xf32> to vector<4x4x64xf32>
    %59 = arith.mulf %55, %58 : vector<4x4x64xf32>
    %60 = arith.addf %53, %59 : vector<4x4x64xf32>
    %c0_42 = arith.constant 0 : index
    %c2_43 = arith.constant 2 : index
    %c2_44 = arith.constant 2 : index
    %c0_45 = arith.constant 0 : index
    %61 = vector.load %arg1[%c0_42, %c2_43, %c2_44, %c0_45] : memref<1x6x6x64xf32, #tpu.memory_space<vmem>>, vector<1x4x4x64xf32>
    %62 = vector.shape_cast %61 : vector<1x4x4x64xf32> to vector<4x4x64xf32>
    %c8 = arith.constant 8 : index
    %c0_46 = arith.constant 0 : index
    %63 = vector.load %arg2[%c8, %c0_46] : memref<9x64xf32, #tpu.memory_space<vmem>>, vector<1x64xf32>
    %64 = vector.shape_cast %63 : vector<1x64xf32> to vector<1x1x64xf32>
    %65 = vector.broadcast %64 : vector<1x1x64xf32> to vector<4x4x64xf32>
    %66 = arith.mulf %62, %65 : vector<4x4x64xf32>
    %67 = arith.addf %60, %66 : vector<4x4x64xf32>
    %68 = arith.negf %67 : vector<4x4x64xf32>
    %69 = math.exp %68 : vector<4x4x64xf32>
    %cst_47 = arith.constant 1.000000e+00 : f32
    %70 = vector.broadcast %cst_47 : f32 to vector<4x4x64xf32>
    %71 = arith.addf %70, %69 : vector<4x4x64xf32>
    %72 = arith.divf %70, %71 : vector<4x4x64xf32>
    %73 = arith.mulf %67, %72 : vector<4x4x64xf32>
    %c0_48 = arith.constant 0 : index
    %c0_49 = arith.constant 0 : index
    %c0_50 = arith.constant 0 : index
    %c0_51 = arith.constant 0 : index
    %74 = vector.load %arg4[%c0_48, %c0_49, %c0_50, %c0_51] : memref<1x4x4x64xf32, #tpu.memory_space<vmem>>, vector<1x4x4x64xf32>
    %75 = vector.shape_cast %74 : vector<1x4x4x64xf32> to vector<4x4x64xf32>
    %76 = vector.shape_cast %73 : vector<4x4x64xf32> to vector<1x4x4x64xf32>
    tpu.vector_store %arg4[%c0_48, %c0_49, %c0_50, %c0_51], %76 {strides = array<i32>} : memref<1x4x4x64xf32, #tpu.memory_space<vmem>>, vector<1x4x4x64xf32>,
    return
  }
  func.func @transform_0(%arg0: i32) -> (i32, i32, i32, i32) {
    %c0_i32 = arith.constant 0 : i32
    %c0_i32_0 = arith.constant 0 : i32
    %c0_i32_1 = arith.constant 0 : i32
    %c0_i32_2 = arith.constant 0 : i32
    return %arg0, %c0_i32, %c0_i32_0, %c0_i32_1 : i32, i32, i32, i32
  }
  func.func @transform_1(%arg0: i32) -> (i32, i32) {
    %c0_i32 = arith.constant 0 : i32
    %c0_i32_0 = arith.constant 0 : i32
    %c0_i32_1 = arith.constant 0 : i32
    return %c0_i32, %c0_i32_0 : i32, i32
  }
  func.func @transform_2(%arg0: i32) -> (i32, i32) {
    %c0_i32 = arith.constant 0 : i32
    %c0_i32_0 = arith.constant 0 : i32
    %c0_i32_1 = arith.constant 0 : i32
    return %c0_i32, %c0_i32_0 : i32, i32
  }
  func.func @transform_3(%arg0: i32) -> (i32, i32, i32, i32) {
    %c0_i32 = arith.constant 0 : i32
    %c0_i32_0 = arith.constant 0 : i32
    %c0_i32_1 = arith.constant 0 : i32
    %c0_i32_2 = arith.constant 0 : i32
    return %arg0, %c0_i32, %c0_i32_0, %c0_i32_1 : i32, i32, i32, i32
  }
}

module attributes {stable_mosaic.version = 11 : i64} {
  func.func @_xproj_dt_kernel(%arg0: i32, %arg1: memref<1x32x64xbf16, #tpu.memory_space<vmem>>, %arg2: memref<1x64x34xbf16, #tpu.memory_space<vmem>>, %arg3: memref<1x2x64xbf16, #tpu.memory_space<vmem>>, %arg4: memref<1x32x64xf32, #tpu.memory_space<vmem>>, %arg5: memref<1x32x16xf32, #tpu.memory_space<vmem>>, %arg6: memref<1x32x16xf32, #tpu.memory_space<vmem>>) attributes {dimension_semantics = [#tpu.dimension_semantics<parallel>], iteration_bounds = array<i64: 4>, scalar_prefetch = 0 : i64, scratch_operands = 0 : i64, tpu.core_type = #tpu.core_type<tc>, window_params = [{transform_indices = @transform_0, window_bounds = array<i64: 1, 32, 64>}, {transform_indices = @transform_1, window_bounds = array<i64: 1, 64, 34>}, {transform_indices = @transform_2, window_bounds = array<i64: 1, 2, 64>}, {transform_indices = @transform_3, window_bounds = array<i64: 1, 32, 64>}, {transform_indices = @transform_4, window_bounds = array<i64: 1, 32, 16>}, {transform_indices = @transform_5, window_bounds = array<i64: 1, 32, 16>}]} {
    %c0 = arith.constant 0 : index
    %c0_0 = arith.constant 0 : index
    %c0_1 = arith.constant 0 : index
    %0 = vector.load %arg1[%c0, %c0_0, %c0_1] : memref<1x32x64xbf16, #tpu.memory_space<vmem>>, vector<1x32x64xbf16>
    %1 = vector.shape_cast %0 : vector<1x32x64xbf16> to vector<32x64xbf16>
    %c0_2 = arith.constant 0 : index
    %c0_3 = arith.constant 0 : index
    %c0_4 = arith.constant 0 : index
    %2 = vector.load %arg2[%c0_2, %c0_3, %c0_4] : memref<1x64x34xbf16, #tpu.memory_space<vmem>>, vector<1x64x34xbf16>
    %3 = vector.shape_cast %2 : vector<1x64x34xbf16> to vector<64x34xbf16>
    %cst = arith.constant dense<0.000000e+00> : vector<32x34xf32>
    %4 = tpu.matmul %1, %3, %cst {dimension_numbers = #tpu.dot_dimension_numbers<[1], [0], [0], [1], [0, 0, 1, 1], [], []>} : vector<32x64xbf16>, vector<64x34xbf16>, vector<32x34xf32> -> vector<32x34xf32>
    %5 = vector.extract_strided_slice %4 {offsets = [0, 0], sizes = [32, 2], strides = [1, 1]} : vector<32x34xf32> to vector<32x2xf32>
    %c0_5 = arith.constant 0 : index
    %c0_6 = arith.constant 0 : index
    %c0_7 = arith.constant 0 : index
    %6 = vector.load %arg3[%c0_5, %c0_6, %c0_7] : memref<1x2x64xbf16, #tpu.memory_space<vmem>>, vector<1x2x64xbf16>
    %7 = vector.shape_cast %6 : vector<1x2x64xbf16> to vector<2x64xbf16>
    %8 = arith.extf %7 : vector<2x64xbf16> to vector<2x64xf32>
    %cst_8 = arith.constant dense<0.000000e+00> : vector<32x64xf32>
    %9 = tpu.matmul %5, %8, %cst_8 {dimension_numbers = #tpu.dot_dimension_numbers<[1], [0], [0], [1], [0, 0, 1, 1], [], []>} : vector<32x2xf32>, vector<2x64xf32>, vector<32x64xf32> -> vector<32x64xf32>
    %c0_9 = arith.constant 0 : index
    %c0_10 = arith.constant 0 : index
    %c0_11 = arith.constant 0 : index
    %10 = vector.load %arg4[%c0_9, %c0_10, %c0_11] : memref<1x32x64xf32, #tpu.memory_space<vmem>>, vector<1x32x64xf32>
    %11 = vector.shape_cast %10 : vector<1x32x64xf32> to vector<32x64xf32>
    %12 = vector.shape_cast %9 : vector<32x64xf32> to vector<1x32x64xf32>
    tpu.vector_store %arg4[%c0_9, %c0_10, %c0_11], %12 {strides = array<i32>} : memref<1x32x64xf32, #tpu.memory_space<vmem>>, vector<1x32x64xf32>,
    %13 = vector.extract_strided_slice %4 {offsets = [0, 2], sizes = [32, 16], strides = [1, 1]} : vector<32x34xf32> to vector<32x16xf32>
    %c0_12 = arith.constant 0 : index
    %c0_13 = arith.constant 0 : index
    %c0_14 = arith.constant 0 : index
    %14 = vector.load %arg5[%c0_12, %c0_13, %c0_14] : memref<1x32x16xf32, #tpu.memory_space<vmem>>, vector<1x32x16xf32>
    %15 = vector.shape_cast %14 : vector<1x32x16xf32> to vector<32x16xf32>
    %16 = vector.shape_cast %13 : vector<32x16xf32> to vector<1x32x16xf32>
    tpu.vector_store %arg5[%c0_12, %c0_13, %c0_14], %16 {strides = array<i32>} : memref<1x32x16xf32, #tpu.memory_space<vmem>>, vector<1x32x16xf32>,
    %17 = vector.extract_strided_slice %4 {offsets = [0, 18], sizes = [32, 16], strides = [1, 1]} : vector<32x34xf32> to vector<32x16xf32>
    %c0_15 = arith.constant 0 : index
    %c0_16 = arith.constant 0 : index
    %c0_17 = arith.constant 0 : index
    %18 = vector.load %arg6[%c0_15, %c0_16, %c0_17] : memref<1x32x16xf32, #tpu.memory_space<vmem>>, vector<1x32x16xf32>
    %19 = vector.shape_cast %18 : vector<1x32x16xf32> to vector<32x16xf32>
    %20 = vector.shape_cast %17 : vector<32x16xf32> to vector<1x32x16xf32>
    tpu.vector_store %arg6[%c0_15, %c0_16, %c0_17], %20 {strides = array<i32>} : memref<1x32x16xf32, #tpu.memory_space<vmem>>, vector<1x32x16xf32>,
    return
  }
  func.func @transform_0(%arg0: i32) -> (i32, i32, i32) {
    %c0_i32 = arith.constant 0 : i32
    %c0_i32_0 = arith.constant 0 : i32
    %c0_i32_1 = arith.constant 0 : i32
    return %arg0, %c0_i32, %c0_i32_0 : i32, i32, i32
  }
  func.func @transform_1(%arg0: i32) -> (i32, i32, i32) {
    %c0_i32 = arith.constant 0 : i32
    %c0_i32_0 = arith.constant 0 : i32
    %c0_i32_1 = arith.constant 0 : i32
    return %arg0, %c0_i32, %c0_i32_0 : i32, i32, i32
  }
  func.func @transform_2(%arg0: i32) -> (i32, i32, i32) {
    %c0_i32 = arith.constant 0 : i32
    %c0_i32_0 = arith.constant 0 : i32
    %c0_i32_1 = arith.constant 0 : i32
    return %arg0, %c0_i32, %c0_i32_0 : i32, i32, i32
  }
  func.func @transform_3(%arg0: i32) -> (i32, i32, i32) {
    %c0_i32 = arith.constant 0 : i32
    %c0_i32_0 = arith.constant 0 : i32
    %c0_i32_1 = arith.constant 0 : i32
    return %arg0, %c0_i32, %c0_i32_0 : i32, i32, i32
  }
  func.func @transform_4(%arg0: i32) -> (i32, i32, i32) {
    %c0_i32 = arith.constant 0 : i32
    %c0_i32_0 = arith.constant 0 : i32
    %c0_i32_1 = arith.constant 0 : i32
    return %arg0, %c0_i32, %c0_i32_0 : i32, i32, i32
  }
  func.func @transform_5(%arg0: i32) -> (i32, i32, i32) {
    %c0_i32 = arith.constant 0 : i32
    %c0_i32_0 = arith.constant 0 : i32
    %c0_i32_1 = arith.constant 0 : i32
    return %arg0, %c0_i32, %c0_i32_0 : i32, i32, i32
  }
}

module attributes {stable_mosaic.version = 11 : i64} {
  func.func @_selective_scan_kernel(%arg0: i32, %arg1: i32, %arg2: memref<1x1x16x64xf32, #tpu.memory_space<vmem>>, %arg3: memref<1x1x16x64xf32, #tpu.memory_space<vmem>>, %arg4: memref<1x1x16x16xf32, #tpu.memory_space<vmem>>, %arg5: memref<1x1x16x16xf32, #tpu.memory_space<vmem>>, %arg6: memref<1x16x64xf32, #tpu.memory_space<vmem>>, %arg7: memref<1x1x64xf32, #tpu.memory_space<vmem>>, %arg8: memref<1x1x64xf32, #tpu.memory_space<vmem>>, %arg9: memref<1x1x16x64xf32, #tpu.memory_space<vmem>>) attributes {dimension_semantics = [#tpu.dimension_semantics<parallel>, #tpu.dimension_semantics<parallel>], iteration_bounds = array<i64: 2, 4>, scalar_prefetch = 0 : i64, scratch_operands = 0 : i64, tpu.core_type = #tpu.core_type<tc>, window_params = [{transform_indices = @transform_0, window_bounds = array<i64: 1, 1, 16, 64>}, {transform_indices = @transform_1, window_bounds = array<i64: 1, 1, 16, 64>}, {transform_indices = @transform_2, window_bounds = array<i64: 1, 1, 16, 16>}, {transform_indices = @transform_3, window_bounds = array<i64: 1, 1, 16, 16>}, {transform_indices = @transform_4, window_bounds = array<i64: 1, 16, 64>}, {transform_indices = @transform_5, window_bounds = array<i64: 1, 1, 64>}, {transform_indices = @transform_6, window_bounds = array<i64: 1, 1, 64>}, {transform_indices = @transform_7, window_bounds = array<i64: 1, 1, 16, 64>}]} {
    %c0 = arith.constant 0 : index
    %c0_0 = arith.constant 0 : index
    %c0_1 = arith.constant 0 : index
    %0 = vector.load %arg6[%c0, %c0_0, %c0_1] : memref<1x16x64xf32, #tpu.memory_space<vmem>>, vector<1x16x64xf32>
    %1 = vector.shape_cast %0 : vector<1x16x64xf32> to vector<16x64xf32>
    %c0_2 = arith.constant 0 : index
    %c0_3 = arith.constant 0 : index
    %c0_4 = arith.constant 0 : index
    %2 = vector.load %arg7[%c0_2, %c0_3, %c0_4] : memref<1x1x64xf32, #tpu.memory_space<vmem>>, vector<1x1x64xf32>
    %3 = vector.shape_cast %2 : vector<1x1x64xf32> to vector<1x64xf32>
    %c0_5 = arith.constant 0 : index
    %c0_6 = arith.constant 0 : index
    %c0_7 = arith.constant 0 : index
    %4 = vector.load %arg8[%c0_5, %c0_6, %c0_7] : memref<1x1x64xf32, #tpu.memory_space<vmem>>, vector<1x1x64xf32>
    %5 = vector.shape_cast %4 : vector<1x1x64xf32> to vector<1x64xf32>
    %cst = arith.constant 0.000000e+00 : f32
    %6 = vector.broadcast %cst : f32 to vector<16x64xf32>
    %c0_i32 = arith.constant 0 : i32
    %c16_i32 = arith.constant 16 : i32
    %7 = arith.muli %c0_i32, %c16_i32 : i32
    %8 = tpu.assume_multiple %7, 16 : i32
    %c0_8 = arith.constant 0 : index
    %c0_9 = arith.constant 0 : index
    %9 = arith.index_cast %8 : i32 to index
    %c0_10 = arith.constant 0 : index
    %10 = vector.load %arg2[%c0_8, %c0_9, %9, %c0_10] : memref<1x1x16x64xf32, #tpu.memory_space<vmem>>, vector<1x1x16x64xf32>
    %11 = vector.shape_cast %10 : vector<1x1x16x64xf32> to vector<16x64xf32>
    %c0_11 = arith.constant 0 : index
    %c0_12 = arith.constant 0 : index
    %12 = arith.index_cast %8 : i32 to index
    %c0_13 = arith.constant 0 : index
    %13 = vector.load %arg3[%c0_11, %c0_12, %12, %c0_13] : memref<1x1x16x64xf32, #tpu.memory_space<vmem>>, vector<1x1x16x64xf32>
    %14 = vector.shape_cast %13 : vector<1x1x16x64xf32> to vector<16x64xf32>
    %15 = vector.broadcast %5 : vector<1x64xf32> to vector<16x64xf32>
    %16 = arith.addf %14, %15 : vector<16x64xf32>
    %cst_14 = arith.constant 0.000000e+00 : f32
    %17 = vector.broadcast %cst_14 : f32 to vector<16x64xf32>
    %18 = arith.maximumf %16, %17 : vector<16x64xf32>
    %19 = vector.broadcast %cst_14 : f32 to vector<16x64xf32>
    %20 = arith.subf %16, %19 : vector<16x64xf32>
    %21 = arith.cmpf one, %20, %20 : vector<16x64xf32>
    %22 = vector.broadcast %cst_14 : f32 to vector<16x64xf32>
    %23 = arith.addf %16, %22 : vector<16x64xf32>
    %24 = math.absf %20 : vector<16x64xf32>
    %cst_15 = arith.constant 0.000000e+00 : f32
    %25 = vector.broadcast %cst_15 : f32 to vector<16x64xf32>
    %26 = arith.subf %25, %24 : vector<16x64xf32>
    %27 = math.exp %26 : vector<16x64xf32>
    %28 = math.log1p %27 : vector<16x64xf32>
    %29 = arith.addf %18, %28 : vector<16x64xf32>
    %30 = arith.select %21, %23, %29 : vector<16x64xi1>, vector<16x64xf32>
    %c0_16 = arith.constant 0 : index
    %c0_17 = arith.constant 0 : index
    %31 = arith.index_cast %8 : i32 to index
    %c0_18 = arith.constant 0 : index
    %32 = vector.load %arg4[%c0_16, %c0_17, %31, %c0_18] : memref<1x1x16x16xf32, #tpu.memory_space<vmem>>, vector<1x1x16x16xf32>
    %33 = vector.shape_cast %32 : vector<1x1x16x16xf32> to vector<16x16xf32>
    %c0_19 = arith.constant 0 : index
    %c0_20 = arith.constant 0 : index
    %34 = arith.index_cast %8 : i32 to index
    %c0_21 = arith.constant 0 : index
    %35 = vector.load %arg5[%c0_19, %c0_20, %34, %c0_21] : memref<1x1x16x16xf32, #tpu.memory_space<vmem>>, vector<1x1x16x16xf32>
    %36 = vector.shape_cast %35 : vector<1x1x16x16xf32> to vector<16x16xf32>
    %37 = vector.shape_cast %30 : vector<16x64xf32> to vector<16x1x64xf32>
    %38 = vector.shape_cast %1 : vector<16x64xf32> to vector<1x16x64xf32>
    %39 = vector.broadcast %37 : vector<16x1x64xf32> to vector<16x16x64xf32>
    %40 = vector.broadcast %38 : vector<1x16x64xf32> to vector<16x16x64xf32>
    %41 = arith.mulf %39, %40 : vector<16x16x64xf32>
    %42 = math.exp %41 : vector<16x16x64xf32>
    %43 = vector.shape_cast %33 : vector<16x16xf32> to vector<16x16x1xf32>
    %44 = arith.mulf %30, %11 : vector<16x64xf32>
    %45 = vector.shape_cast %44 : vector<16x64xf32> to vector<16x1x64xf32>
    %46 = vector.broadcast %43 : vector<16x16x1xf32> to vector<16x16x64xf32>
    %47 = vector.broadcast %45 : vector<16x1x64xf32> to vector<16x16x64xf32>
    %48 = arith.mulf %46, %47 : vector<16x16x64xf32>
    %49 = vector.extract_strided_slice %42 {offsets = [0, 0, 0], sizes = [1, 16, 64], strides = [1, 1, 1]} : vector<16x16x64xf32> to vector<1x16x64xf32>
    %50 = vector.shape_cast %49 : vector<1x16x64xf32> to vector<16x64xf32>
    %51 = arith.mulf %50, %6 : vector<16x64xf32>
    %52 = vector.extract_strided_slice %48 {offsets = [0, 0, 0], sizes = [1, 16, 64], strides = [1, 1, 1]} : vector<16x16x64xf32> to vector<1x16x64xf32>
    %53 = vector.shape_cast %52 : vector<1x16x64xf32> to vector<16x64xf32>
    %54 = arith.addf %51, %53 : vector<16x64xf32>
    %55 = vector.extract_strided_slice %42 {offsets = [1, 0, 0], sizes = [1, 16, 64], strides = [1, 1, 1]} : vector<16x16x64xf32> to vector<1x16x64xf32>
    %56 = vector.shape_cast %55 : vector<1x16x64xf32> to vector<16x64xf32>
    %57 = arith.mulf %56, %54 : vector<16x64xf32>
    %58 = vector.extract_strided_slice %48 {offsets = [1, 0, 0], sizes = [1, 16, 64], strides = [1, 1, 1]} : vector<16x16x64xf32> to vector<1x16x64xf32>
    %59 = vector.shape_cast %58 : vector<1x16x64xf32> to vector<16x64xf32>
    %60 = arith.addf %57, %59 : vector<16x64xf32>
    %61 = vector.extract_strided_slice %42 {offsets = [2, 0, 0], sizes = [1, 16, 64], strides = [1, 1, 1]} : vector<16x16x64xf32> to vector<1x16x64xf32>
    %62 = vector.shape_cast %61 : vector<1x16x64xf32> to vector<16x64xf32>
    %63 = arith.mulf %62, %60 : vector<16x64xf32>
    %64 = vector.extract_strided_slice %48 {offsets = [2, 0, 0], sizes = [1, 16, 64], strides = [1, 1, 1]} : vector<16x16x64xf32> to vector<1x16x64xf32>
    %65 = vector.shape_cast %64 : vector<1x16x64xf32> to vector<16x64xf32>
    %66 = arith.addf %63, %65 : vector<16x64xf32>
    %67 = vector.extract_strided_slice %42 {offsets = [3, 0, 0], sizes = [1, 16, 64], strides = [1, 1, 1]} : vector<16x16x64xf32> to vector<1x16x64xf32>
    %68 = vector.shape_cast %67 : vector<1x16x64xf32> to vector<16x64xf32>
    %69 = arith.mulf %68, %66 : vector<16x64xf32>
    %70 = vector.extract_strided_slice %48 {offsets = [3, 0, 0], sizes = [1, 16, 64], strides = [1, 1, 1]} : vector<16x16x64xf32> to vector<1x16x64xf32>
    %71 = vector.shape_cast %70 : vector<1x16x64xf32> to vector<16x64xf32>
    %72 = arith.addf %69, %71 : vector<16x64xf32>
    %73 = vector.extract_strided_slice %42 {offsets = [4, 0, 0], sizes = [1, 16, 64], strides = [1, 1, 1]} : vector<16x16x64xf32> to vector<1x16x64xf32>
    %74 = vector.shape_cast %73 : vector<1x16x64xf32> to vector<16x64xf32>
    %75 = arith.mulf %74, %72 : vector<16x64xf32>
    %76 = vector.extract_strided_slice %48 {offsets = [4, 0, 0], sizes = [1, 16, 64], strides = [1, 1, 1]} : vector<16x16x64xf32> to vector<1x16x64xf32>
    %77 = vector.shape_cast %76 : vector<1x16x64xf32> to vector<16x64xf32>
    %78 = arith.addf %75, %77 : vector<16x64xf32>
    %79 = vector.extract_strided_slice %42 {offsets = [5, 0, 0], sizes = [1, 16, 64], strides = [1, 1, 1]} : vector<16x16x64xf32> to vector<1x16x64xf32>
    %80 = vector.shape_cast %79 : vector<1x16x64xf32> to vector<16x64xf32>
    %81 = arith.mulf %80, %78 : vector<16x64xf32>
    %82 = vector.extract_strided_slice %48 {offsets = [5, 0, 0], sizes = [1, 16, 64], strides = [1, 1, 1]} : vector<16x16x64xf32> to vector<1x16x64xf32>
    %83 = vector.shape_cast %82 : vector<1x16x64xf32> to vector<16x64xf32>
    %84 = arith.addf %81, %83 : vector<16x64xf32>
    %85 = vector.extract_strided_slice %42 {offsets = [6, 0, 0], sizes = [1, 16, 64], strides = [1, 1, 1]} : vector<16x16x64xf32> to vector<1x16x64xf32>
    %86 = vector.shape_cast %85 : vector<1x16x64xf32> to vector<16x64xf32>
    %87 = arith.mulf %86, %84 : vector<16x64xf32>
    %88 = vector.extract_strided_slice %48 {offsets = [6, 0, 0], sizes = [1, 16, 64], strides = [1, 1, 1]} : vector<16x16x64xf32> to vector<1x16x64xf32>
    %89 = vector.shape_cast %88 : vector<1x16x64xf32> to vector<16x64xf32>
    %90 = arith.addf %87, %89 : vector<16x64xf32>
    %91 = vector.extract_strided_slice %42 {offsets = [7, 0, 0], sizes = [1, 16, 64], strides = [1, 1, 1]} : vector<16x16x64xf32> to vector<1x16x64xf32>
    %92 = vector.shape_cast %91 : vector<1x16x64xf32> to vector<16x64xf32>
    %93 = arith.mulf %92, %90 : vector<16x64xf32>
    %94 = vector.extract_strided_slice %48 {offsets = [7, 0, 0], sizes = [1, 16, 64], strides = [1, 1, 1]} : vector<16x16x64xf32> to vector<1x16x64xf32>
    %95 = vector.shape_cast %94 : vector<1x16x64xf32> to vector<16x64xf32>
    %96 = arith.addf %93, %95 : vector<16x64xf32>
    %97 = vector.extract_strided_slice %42 {offsets = [8, 0, 0], sizes = [1, 16, 64], strides = [1, 1, 1]} : vector<16x16x64xf32> to vector<1x16x64xf32>
    %98 = vector.shape_cast %97 : vector<1x16x64xf32> to vector<16x64xf32>
    %99 = arith.mulf %98, %96 : vector<16x64xf32>
    %100 = vector.extract_strided_slice %48 {offsets = [8, 0, 0], sizes = [1, 16, 64], strides = [1, 1, 1]} : vector<16x16x64xf32> to vector<1x16x64xf32>
    %101 = vector.shape_cast %100 : vector<1x16x64xf32> to vector<16x64xf32>
    %102 = arith.addf %99, %101 : vector<16x64xf32>
    %103 = vector.extract_strided_slice %42 {offsets = [9, 0, 0], sizes = [1, 16, 64], strides = [1, 1, 1]} : vector<16x16x64xf32> to vector<1x16x64xf32>
    %104 = vector.shape_cast %103 : vector<1x16x64xf32> to vector<16x64xf32>
    %105 = arith.mulf %104, %102 : vector<16x64xf32>
    %106 = vector.extract_strided_slice %48 {offsets = [9, 0, 0], sizes = [1, 16, 64], strides = [1, 1, 1]} : vector<16x16x64xf32> to vector<1x16x64xf32>
    %107 = vector.shape_cast %106 : vector<1x16x64xf32> to vector<16x64xf32>
    %108 = arith.addf %105, %107 : vector<16x64xf32>
    %109 = vector.extract_strided_slice %42 {offsets = [10, 0, 0], sizes = [1, 16, 64], strides = [1, 1, 1]} : vector<16x16x64xf32> to vector<1x16x64xf32>
    %110 = vector.shape_cast %109 : vector<1x16x64xf32> to vector<16x64xf32>
    %111 = arith.mulf %110, %108 : vector<16x64xf32>
    %112 = vector.extract_strided_slice %48 {offsets = [10, 0, 0], sizes = [1, 16, 64], strides = [1, 1, 1]} : vector<16x16x64xf32> to vector<1x16x64xf32>
    %113 = vector.shape_cast %112 : vector<1x16x64xf32> to vector<16x64xf32>
    %114 = arith.addf %111, %113 : vector<16x64xf32>
    %115 = vector.extract_strided_slice %42 {offsets = [11, 0, 0], sizes = [1, 16, 64], strides = [1, 1, 1]} : vector<16x16x64xf32> to vector<1x16x64xf32>
    %116 = vector.shape_cast %115 : vector<1x16x64xf32> to vector<16x64xf32>
    %117 = arith.mulf %116, %114 : vector<16x64xf32>
    %118 = vector.extract_strided_slice %48 {offsets = [11, 0, 0], sizes = [1, 16, 64], strides = [1, 1, 1]} : vector<16x16x64xf32> to vector<1x16x64xf32>
    %119 = vector.shape_cast %118 : vector<1x16x64xf32> to vector<16x64xf32>
    %120 = arith.addf %117, %119 : vector<16x64xf32>
    %121 = vector.extract_strided_slice %42 {offsets = [12, 0, 0], sizes = [1, 16, 64], strides = [1, 1, 1]} : vector<16x16x64xf32> to vector<1x16x64xf32>
    %122 = vector.shape_cast %121 : vector<1x16x64xf32> to vector<16x64xf32>
    %123 = arith.mulf %122, %120 : vector<16x64xf32>
    %124 = vector.extract_strided_slice %48 {offsets = [12, 0, 0], sizes = [1, 16, 64], strides = [1, 1, 1]} : vector<16x16x64xf32> to vector<1x16x64xf32>
    %125 = vector.shape_cast %124 : vector<1x16x64xf32> to vector<16x64xf32>
    %126 = arith.addf %123, %125 : vector<16x64xf32>
    %127 = vector.extract_strided_slice %42 {offsets = [13, 0, 0], sizes = [1, 16, 64], strides = [1, 1, 1]} : vector<16x16x64xf32> to vector<1x16x64xf32>
    %128 = vector.shape_cast %127 : vector<1x16x64xf32> to vector<16x64xf32>
    %129 = arith.mulf %128, %126 : vector<16x64xf32>
    %130 = vector.extract_strided_slice %48 {offsets = [13, 0, 0], sizes = [1, 16, 64], strides = [1, 1, 1]} : vector<16x16x64xf32> to vector<1x16x64xf32>
    %131 = vector.shape_cast %130 : vector<1x16x64xf32> to vector<16x64xf32>
    %132 = arith.addf %129, %131 : vector<16x64xf32>
    %133 = vector.extract_strided_slice %42 {offsets = [14, 0, 0], sizes = [1, 16, 64], strides = [1, 1, 1]} : vector<16x16x64xf32> to vector<1x16x64xf32>
    %134 = vector.shape_cast %133 : vector<1x16x64xf32> to vector<16x64xf32>
    %135 = arith.mulf %134, %132 : vector<16x64xf32>
    %136 = vector.extract_strided_slice %48 {offsets = [14, 0, 0], sizes = [1, 16, 64], strides = [1, 1, 1]} : vector<16x16x64xf32> to vector<1x16x64xf32>
    %137 = vector.shape_cast %136 : vector<1x16x64xf32> to vector<16x64xf32>
    %138 = arith.addf %135, %137 : vector<16x64xf32>
    %139 = vector.extract_strided_slice %42 {offsets = [15, 0, 0], sizes = [1, 16, 64], strides = [1, 1, 1]} : vector<16x16x64xf32> to vector<1x16x64xf32>
    %140 = vector.shape_cast %139 : vector<1x16x64xf32> to vector<16x64xf32>
    %141 = arith.mulf %140, %138 : vector<16x64xf32>
    %142 = vector.extract_strided_slice %48 {offsets = [15, 0, 0], sizes = [1, 16, 64], strides = [1, 1, 1]} : vector<16x16x64xf32> to vector<1x16x64xf32>
    %143 = vector.shape_cast %142 : vector<1x16x64xf32> to vector<16x64xf32>
    %144 = arith.addf %141, %143 : vector<16x64xf32>
    %145 = vector.shape_cast %54 : vector<16x64xf32> to vector<1x16x64xf32>
    %146 = vector.shape_cast %60 : vector<16x64xf32> to vector<1x16x64xf32>
    %147 = vector.shape_cast %66 : vector<16x64xf32> to vector<1x16x64xf32>
    %148 = vector.shape_cast %72 : vector<16x64xf32> to vector<1x16x64xf32>
    %149 = vector.shape_cast %78 : vector<16x64xf32> to vector<1x16x64xf32>
    %150 = vector.shape_cast %84 : vector<16x64xf32> to vector<1x16x64xf32>
    %151 = vector.shape_cast %90 : vector<16x64xf32> to vector<1x16x64xf32>
    %152 = vector.shape_cast %96 : vector<16x64xf32> to vector<1x16x64xf32>
    %153 = vector.shape_cast %102 : vector<16x64xf32> to vector<1x16x64xf32>
    %154 = vector.shape_cast %108 : vector<16x64xf32> to vector<1x16x64xf32>
    %155 = vector.shape_cast %114 : vector<16x64xf32> to vector<1x16x64xf32>
    %156 = vector.shape_cast %120 : vector<16x64xf32> to vector<1x16x64xf32>
    %157 = vector.shape_cast %126 : vector<16x64xf32> to vector<1x16x64xf32>
    %158 = vector.shape_cast %132 : vector<16x64xf32> to vector<1x16x64xf32>
    %159 = vector.shape_cast %138 : vector<16x64xf32> to vector<1x16x64xf32>
    %160 = vector.shape_cast %144 : vector<16x64xf32> to vector<1x16x64xf32>
    %161 = tpu.concatenate %145, %146, %147, %148, %149, %150, %151, %152, %153, %154, %155, %156, %157, %158, %159, %160 in 0 : vector<1x16x64xf32>, vector<1x16x64xf32>, vector<1x16x64xf32>, vector<1x16x64xf32>, vector<1x16x64xf32>, vector<1x16x64xf32>, vector<1x16x64xf32>, vector<1x16x64xf32>, vector<1x16x64xf32>, vector<1x16x64xf32>, vector<1x16x64xf32>, vector<1x16x64xf32>, vector<1x16x64xf32>, vector<1x16x64xf32>, vector<1x16x64xf32>, vector<1x16x64xf32> -> vector<16x16x64xf32>
    %162 = vector.shape_cast %36 : vector<16x16xf32> to vector<16x16x1xf32>
    %163 = vector.broadcast %162 : vector<16x16x1xf32> to vector<16x16x64xf32>
    %164 = arith.mulf %163, %161 : vector<16x16x64xf32>
    %cst_22 = arith.constant dense<0.000000e+00> : vector<16x64xf32>
    %165 = vector.multi_reduction <add>, %164, %cst_22 [1] : vector<16x16x64xf32> to vector<16x64xf32>
    %166 = vector.broadcast %3 : vector<1x64xf32> to vector<16x64xf32>
    %167 = arith.mulf %166, %11 : vector<16x64xf32>
    %168 = arith.addf %165, %167 : vector<16x64xf32>
    %c0_23 = arith.constant 0 : index
    %c0_24 = arith.constant 0 : index
    %169 = arith.index_cast %8 : i32 to index
    %c0_25 = arith.constant 0 : index
    %170 = vector.load %arg9[%c0_23, %c0_24, %169, %c0_25] : memref<1x1x16x64xf32, #tpu.memory_space<vmem>>, vector<1x1x16x64xf32>
    %171 = vector.shape_cast %170 : vector<1x1x16x64xf32> to vector<16x64xf32>
    %172 = vector.shape_cast %168 : vector<16x64xf32> to vector<1x1x16x64xf32>
    tpu.vector_store %arg9[%c0_23, %c0_24, %169, %c0_25], %172 {strides = array<i32>} : memref<1x1x16x64xf32, #tpu.memory_space<vmem>>, vector<1x1x16x64xf32>,
    %c1_i32 = arith.constant 1 : i32
    return
  }
  func.func @transform_0(%arg0: i32, %arg1: i32) -> (i32, i32, i32, i32) {
    %c0_i32 = arith.constant 0 : i32
    %c0_i32_0 = arith.constant 0 : i32
    %c0_i32_1 = arith.constant 0 : i32
    return %arg0, %arg1, %c0_i32, %c0_i32_0 : i32, i32, i32, i32
  }
  func.func @transform_1(%arg0: i32, %arg1: i32) -> (i32, i32, i32, i32) {
    %c0_i32 = arith.constant 0 : i32
    %c0_i32_0 = arith.constant 0 : i32
    %c0_i32_1 = arith.constant 0 : i32
    return %arg0, %arg1, %c0_i32, %c0_i32_0 : i32, i32, i32, i32
  }
  func.func @transform_2(%arg0: i32, %arg1: i32) -> (i32, i32, i32, i32) {
    %c0_i32 = arith.constant 0 : i32
    %c0_i32_0 = arith.constant 0 : i32
    %c0_i32_1 = arith.constant 0 : i32
    return %arg0, %arg1, %c0_i32, %c0_i32_0 : i32, i32, i32, i32
  }
  func.func @transform_3(%arg0: i32, %arg1: i32) -> (i32, i32, i32, i32) {
    %c0_i32 = arith.constant 0 : i32
    %c0_i32_0 = arith.constant 0 : i32
    %c0_i32_1 = arith.constant 0 : i32
    return %arg0, %arg1, %c0_i32, %c0_i32_0 : i32, i32, i32, i32
  }
  func.func @transform_4(%arg0: i32, %arg1: i32) -> (i32, i32, i32) {
    %c0_i32 = arith.constant 0 : i32
    %c0_i32_0 = arith.constant 0 : i32
    %c0_i32_1 = arith.constant 0 : i32
    return %arg1, %c0_i32, %c0_i32_0 : i32, i32, i32
  }
  func.func @transform_5(%arg0: i32, %arg1: i32) -> (i32, i32, i32) {
    %c0_i32 = arith.constant 0 : i32
    %c0_i32_0 = arith.constant 0 : i32
    %c0_i32_1 = arith.constant 0 : i32
    return %arg1, %c0_i32, %c0_i32_0 : i32, i32, i32
  }
  func.func @transform_6(%arg0: i32, %arg1: i32) -> (i32, i32, i32) {
    %c0_i32 = arith.constant 0 : i32
    %c0_i32_0 = arith.constant 0 : i32
    %c0_i32_1 = arith.constant 0 : i32
    return %arg1, %c0_i32, %c0_i32_0 : i32, i32, i32
  }
  func.func @transform_7(%arg0: i32, %arg1: i32) -> (i32, i32, i32, i32) {
    %c0_i32 = arith.constant 0 : i32
    %c0_i32_0 = arith.constant 0 : i32
    %c0_i32_1 = arith.constant 0 : i32
    return %arg0, %arg1, %c0_i32, %c0_i32_0 : i32, i32, i32, i32
  }
}

module attributes {stable_mosaic.version = 11 : i64} {
  func.func @_ln_gate_proj_kernel(%arg0: i32, %arg1: memref<32x64xf32, #tpu.memory_space<vmem>>, %arg2: memref<32x64xf32, #tpu.memory_space<vmem>>, %arg3: memref<1x64xf32, #tpu.memory_space<vmem>>, %arg4: memref<1x64xf32, #tpu.memory_space<vmem>>, %arg5: memref<64x128xbf16, #tpu.memory_space<vmem>>, %arg6: memref<32x128xf32, #tpu.memory_space<vmem>>) attributes {dimension_semantics = [#tpu.dimension_semantics<parallel>], iteration_bounds = array<i64: 1>, scalar_prefetch = 0 : i64, scratch_operands = 0 : i64, tpu.core_type = #tpu.core_type<tc>, window_params = [{transform_indices = @transform_0, window_bounds = array<i64: 32, 64>}, {transform_indices = @transform_1, window_bounds = array<i64: 32, 64>}, {pipeline_mode = #tpu.pipeline_mode<synchronous>, transform_indices = @transform_2, window_bounds = array<i64: 1, 64>}, {pipeline_mode = #tpu.pipeline_mode<synchronous>, transform_indices = @transform_3, window_bounds = array<i64: 1, 64>}, {pipeline_mode = #tpu.pipeline_mode<synchronous>, transform_indices = @transform_4, window_bounds = array<i64: 64, 128>}, {transform_indices = @transform_5, window_bounds = array<i64: 32, 128>}]} {
    %c0 = arith.constant 0 : index
    %c0_0 = arith.constant 0 : index
    %0 = vector.load %arg1[%c0, %c0_0] : memref<32x64xf32, #tpu.memory_space<vmem>>, vector<32x64xf32>
    %cst = arith.constant dense<0.000000e+00> : vector<32xf32>
    %1 = vector.multi_reduction <add>, %0, %cst [1] : vector<32x64xf32> to vector<32xf32>
    %2 = vector.shape_cast %1 : vector<32xf32> to vector<32x1xf32>
    %cst_1 = arith.constant 6.400000e+01 : f32
    %3 = vector.broadcast %cst_1 : f32 to vector<32x1xf32>
    %4 = arith.divf %2, %3 : vector<32x1xf32>
    %5 = vector.broadcast %4 : vector<32x1xf32> to vector<32x64xf32>
    %6 = arith.subf %0, %5 : vector<32x64xf32>
    %7 = arith.mulf %6, %6 : vector<32x64xf32>
    %cst_2 = arith.constant dense<0.000000e+00> : vector<32xf32>
    %8 = vector.multi_reduction <add>, %7, %cst_2 [1] : vector<32x64xf32> to vector<32xf32>
    %9 = vector.shape_cast %8 : vector<32xf32> to vector<32x1xf32>
    %cst_3 = arith.constant 6.400000e+01 : f32
    %10 = vector.broadcast %cst_3 : f32 to vector<32x1xf32>
    %11 = arith.divf %9, %10 : vector<32x1xf32>
    %cst_4 = arith.constant 9.99999974E-6 : f32
    %12 = vector.broadcast %cst_4 : f32 to vector<32x1xf32>
    %13 = arith.addf %11, %12 : vector<32x1xf32>
    %14 = math.rsqrt %13 : vector<32x1xf32>
    %15 = vector.broadcast %14 : vector<32x1xf32> to vector<32x64xf32>
    %16 = arith.mulf %6, %15 : vector<32x64xf32>
    %c0_5 = arith.constant 0 : index
    %c0_6 = arith.constant 0 : index
    %17 = vector.load %arg3[%c0_5, %c0_6] : memref<1x64xf32, #tpu.memory_space<vmem>>, vector<1x64xf32>
    %18 = vector.broadcast %17 : vector<1x64xf32> to vector<32x64xf32>
    %19 = arith.mulf %16, %18 : vector<32x64xf32>
    %c0_7 = arith.constant 0 : index
    %c0_8 = arith.constant 0 : index
    %20 = vector.load %arg4[%c0_7, %c0_8] : memref<1x64xf32, #tpu.memory_space<vmem>>, vector<1x64xf32>
    %21 = vector.broadcast %20 : vector<1x64xf32> to vector<32x64xf32>
    %22 = arith.addf %19, %21 : vector<32x64xf32>
    %c0_9 = arith.constant 0 : index
    %c0_10 = arith.constant 0 : index
    %23 = vector.load %arg2[%c0_9, %c0_10] : memref<32x64xf32, #tpu.memory_space<vmem>>, vector<32x64xf32>
    %24 = arith.negf %23 : vector<32x64xf32>
    %25 = math.exp %24 : vector<32x64xf32>
    %cst_11 = arith.constant 1.000000e+00 : f32
    %26 = vector.broadcast %cst_11 : f32 to vector<32x64xf32>
    %27 = arith.addf %26, %25 : vector<32x64xf32>
    %28 = arith.divf %26, %27 : vector<32x64xf32>
    %29 = arith.mulf %23, %28 : vector<32x64xf32>
    %30 = arith.mulf %22, %29 : vector<32x64xf32>
    %31 = arith.truncf %30 : vector<32x64xf32> to vector<32x64xbf16>
    %c0_12 = arith.constant 0 : index
    %c0_13 = arith.constant 0 : index
    %32 = vector.load %arg5[%c0_12, %c0_13] : memref<64x128xbf16, #tpu.memory_space<vmem>>, vector<64x128xbf16>
    %cst_14 = arith.constant dense<0.000000e+00> : vector<32x128xf32>
    %33 = tpu.matmul %31, %32, %cst_14 {dimension_numbers = #tpu.dot_dimension_numbers<[1], [0], [0], [1], [0, 0, 1, 1], [], []>} : vector<32x64xbf16>, vector<64x128xbf16>, vector<32x128xf32> -> vector<32x128xf32>
    %c0_15 = arith.constant 0 : index
    %c0_16 = arith.constant 0 : index
    %34 = vector.load %arg6[%c0_15, %c0_16] : memref<32x128xf32, #tpu.memory_space<vmem>>, vector<32x128xf32>
    tpu.vector_store %arg6[%c0_15, %c0_16], %33 {strides = array<i32>} : memref<32x128xf32, #tpu.memory_space<vmem>>, vector<32x128xf32>,
    return
  }
  func.func @transform_0(%arg0: i32) -> (i32, i32) {
    %c0_i32 = arith.constant 0 : i32
    %c0_i32_0 = arith.constant 0 : i32
    return %arg0, %c0_i32 : i32, i32
  }
  func.func @transform_1(%arg0: i32) -> (i32, i32) {
    %c0_i32 = arith.constant 0 : i32
    %c0_i32_0 = arith.constant 0 : i32
    return %arg0, %c0_i32 : i32, i32
  }
  func.func @transform_2(%arg0: i32) -> (i32, i32) {
    %c0_i32 = arith.constant 0 : i32
    %c0_i32_0 = arith.constant 0 : i32
    %c0_i32_1 = arith.constant 0 : i32
    return %c0_i32, %c0_i32_0 : i32, i32
  }
  func.func @transform_3(%arg0: i32) -> (i32, i32) {
    %c0_i32 = arith.constant 0 : i32
    %c0_i32_0 = arith.constant 0 : i32
    %c0_i32_1 = arith.constant 0 : i32
    return %c0_i32, %c0_i32_0 : i32, i32
  }
  func.func @transform_4(%arg0: i32) -> (i32, i32) {
    %c0_i32 = arith.constant 0 : i32
    %c0_i32_0 = arith.constant 0 : i32
    %c0_i32_1 = arith.constant 0 : i32
    return %c0_i32, %c0_i32_0 : i32, i32
  }
  func.func @transform_5(%arg0: i32) -> (i32, i32) {
    %c0_i32 = arith.constant 0 : i32
    %c0_i32_0 = arith.constant 0 : i32
    return %arg0, %c0_i32 : i32, i32
  }
}

module attributes {stable_mosaic.version = 11 : i64} {
  func.func @_vmrnn_gate_kernel(%arg0: i32, %arg1: memref<32x32xf32, #tpu.memory_space<vmem>>, %arg2: memref<32x32xf32, #tpu.memory_space<vmem>>, %arg3: memref<32x32xf32, #tpu.memory_space<vmem>>, %arg4: memref<32x32xf32, #tpu.memory_space<vmem>>) attributes {dimension_semantics = [#tpu.dimension_semantics<parallel>], iteration_bounds = array<i64: 1>, scalar_prefetch = 0 : i64, scratch_operands = 0 : i64, tpu.core_type = #tpu.core_type<tc>, window_params = [{transform_indices = @transform_0, window_bounds = array<i64: 32, 32>}, {transform_indices = @transform_1, window_bounds = array<i64: 32, 32>}, {transform_indices = @transform_2, window_bounds = array<i64: 32, 32>}, {transform_indices = @transform_3, window_bounds = array<i64: 32, 32>}]} {
    %c0 = arith.constant 0 : index
    %c0_0 = arith.constant 0 : index
    %0 = vector.load %arg1[%c0, %c0_0] : memref<32x32xf32, #tpu.memory_space<vmem>>, vector<32x32xf32>
    %c0_1 = arith.constant 0 : index
    %c0_2 = arith.constant 0 : index
    %1 = vector.load %arg2[%c0_1, %c0_2] : memref<32x32xf32, #tpu.memory_space<vmem>>, vector<32x32xf32>
    %2 = arith.negf %0 : vector<32x32xf32>
    %3 = math.exp %2 : vector<32x32xf32>
    %cst = arith.constant 1.000000e+00 : f32
    %4 = vector.broadcast %cst : f32 to vector<32x32xf32>
    %5 = arith.addf %4, %3 : vector<32x32xf32>
    %6 = arith.divf %4, %5 : vector<32x32xf32>
    %7 = math.tanh %0 : vector<32x32xf32>
    %8 = arith.addf %1, %7 : vector<32x32xf32>
    %9 = arith.mulf %6, %8 : vector<32x32xf32>
    %10 = math.tanh %9 : vector<32x32xf32>
    %11 = arith.mulf %6, %10 : vector<32x32xf32>
    %c0_3 = arith.constant 0 : index
    %c0_4 = arith.constant 0 : index
    %12 = vector.load %arg3[%c0_3, %c0_4] : memref<32x32xf32, #tpu.memory_space<vmem>>, vector<32x32xf32>
    tpu.vector_store %arg3[%c0_3, %c0_4], %11 {strides = array<i32>} : memref<32x32xf32, #tpu.memory_space<vmem>>, vector<32x32xf32>,
    %c0_5 = arith.constant 0 : index
    %c0_6 = arith.constant 0 : index
    %13 = vector.load %arg4[%c0_5, %c0_6] : memref<32x32xf32, #tpu.memory_space<vmem>>, vector<32x32xf32>
    tpu.vector_store %arg4[%c0_5, %c0_6], %9 {strides = array<i32>} : memref<32x32xf32, #tpu.memory_space<vmem>>, vector<32x32xf32>,
    return
  }
  func.func @transform_0(%arg0: i32) -> (i32, i32) {
    %c0_i32 = arith.constant 0 : i32
    %c0_i32_0 = arith.constant 0 : i32
    return %arg0, %c0_i32 : i32, i32
  }
  func.func @transform_1(%arg0: i32) -> (i32, i32) {
    %c0_i32 = arith.constant 0 : i32
    %c0_i32_0 = arith.constant 0 : i32
    return %arg0, %c0_i32 : i32, i32
  }
  func.func @transform_2(%arg0: i32) -> (i32, i32) {
    %c0_i32 = arith.constant 0 : i32
    %c0_i32_0 = arith.constant 0 : i32
    return %arg0, %c0_i32 : i32, i32
  }
  func.func @transform_3(%arg0: i32) -> (i32, i32) {
    %c0_i32 = arith.constant 0 : i32
    %c0_i32_0 = arith.constant 0 : i32
    return %arg0, %c0_i32 : i32, i32
  }
}

module attributes {stable_mosaic.version = 11 : i64} {
  func.func @_layernorm_kernel(%arg0: i32, %arg1: memref<8x64xf32, #tpu.memory_space<vmem>>, %arg2: memref<1x64xf32, #tpu.memory_space<vmem>>, %arg3: memref<1x64xf32, #tpu.memory_space<vmem>>, %arg4: memref<8x64xf32, #tpu.memory_space<vmem>>) attributes {dimension_semantics = [#tpu.dimension_semantics<parallel>], iteration_bounds = array<i64: 1>, scalar_prefetch = 0 : i64, scratch_operands = 0 : i64, tpu.core_type = #tpu.core_type<tc>, window_params = [{transform_indices = @transform_0, window_bounds = array<i64: 8, 64>}, {pipeline_mode = #tpu.pipeline_mode<synchronous>, transform_indices = @transform_1, window_bounds = array<i64: 1, 64>}, {pipeline_mode = #tpu.pipeline_mode<synchronous>, transform_indices = @transform_2, window_bounds = array<i64: 1, 64>}, {transform_indices = @transform_3, window_bounds = array<i64: 8, 64>}]} {
    %c0 = arith.constant 0 : index
    %c0_0 = arith.constant 0 : index
    %0 = vector.load %arg1[%c0, %c0_0] : memref<8x64xf32, #tpu.memory_space<vmem>>, vector<8x64xf32>
    %cst = arith.constant dense<0.000000e+00> : vector<8xf32>
    %1 = vector.multi_reduction <add>, %0, %cst [1] : vector<8x64xf32> to vector<8xf32>
    %2 = vector.shape_cast %1 : vector<8xf32> to vector<8x1xf32>
    %cst_1 = arith.constant 6.400000e+01 : f32
    %3 = vector.broadcast %cst_1 : f32 to vector<8x1xf32>
    %4 = arith.divf %2, %3 : vector<8x1xf32>
    %5 = vector.broadcast %4 : vector<8x1xf32> to vector<8x64xf32>
    %6 = arith.subf %0, %5 : vector<8x64xf32>
    %7 = arith.mulf %6, %6 : vector<8x64xf32>
    %cst_2 = arith.constant dense<0.000000e+00> : vector<8xf32>
    %8 = vector.multi_reduction <add>, %7, %cst_2 [1] : vector<8x64xf32> to vector<8xf32>
    %9 = vector.shape_cast %8 : vector<8xf32> to vector<8x1xf32>
    %cst_3 = arith.constant 6.400000e+01 : f32
    %10 = vector.broadcast %cst_3 : f32 to vector<8x1xf32>
    %11 = arith.divf %9, %10 : vector<8x1xf32>
    %cst_4 = arith.constant 9.99999974E-6 : f32
    %12 = vector.broadcast %cst_4 : f32 to vector<8x1xf32>
    %13 = arith.addf %11, %12 : vector<8x1xf32>
    %14 = math.rsqrt %13 : vector<8x1xf32>
    %15 = vector.broadcast %14 : vector<8x1xf32> to vector<8x64xf32>
    %16 = arith.mulf %6, %15 : vector<8x64xf32>
    %c0_5 = arith.constant 0 : index
    %c0_6 = arith.constant 0 : index
    %17 = vector.load %arg2[%c0_5, %c0_6] : memref<1x64xf32, #tpu.memory_space<vmem>>, vector<1x64xf32>
    %18 = vector.broadcast %17 : vector<1x64xf32> to vector<8x64xf32>
    %19 = arith.mulf %16, %18 : vector<8x64xf32>
    %c0_7 = arith.constant 0 : index
    %c0_8 = arith.constant 0 : index
    %20 = vector.load %arg3[%c0_7, %c0_8] : memref<1x64xf32, #tpu.memory_space<vmem>>, vector<1x64xf32>
    %21 = vector.broadcast %20 : vector<1x64xf32> to vector<8x64xf32>
    %22 = arith.addf %19, %21 : vector<8x64xf32>
    %c0_9 = arith.constant 0 : index
    %c0_10 = arith.constant 0 : index
    %23 = vector.load %arg4[%c0_9, %c0_10] : memref<8x64xf32, #tpu.memory_space<vmem>>, vector<8x64xf32>
    tpu.vector_store %arg4[%c0_9, %c0_10], %22 {strides = array<i32>} : memref<8x64xf32, #tpu.memory_space<vmem>>, vector<8x64xf32>,
    return
  }
  func.func @transform_0(%arg0: i32) -> (i32, i32) {
    %c0_i32 = arith.constant 0 : i32
    %c0_i32_0 = arith.constant 0 : i32
    return %arg0, %c0_i32 : i32, i32
  }
  func.func @transform_1(%arg0: i32) -> (i32, i32) {
    %c0_i32 = arith.constant 0 : i32
    %c0_i32_0 = arith.constant 0 : i32
    %c0_i32_1 = arith.constant 0 : i32
    return %c0_i32, %c0_i32_0 : i32, i32
  }
  func.func @transform_2(%arg0: i32) -> (i32, i32) {
    %c0_i32 = arith.constant 0 : i32
    %c0_i32_0 = arith.constant 0 : i32
    %c0_i32_1 = arith.constant 0 : i32
    return %c0_i32, %c0_i32_0 : i32, i32
  }
  func.func @transform_3(%arg0: i32) -> (i32, i32) {
    %c0_i32 = arith.constant 0 : i32
    %c0_i32_0 = arith.constant 0 : i32
    return %arg0, %c0_i32 : i32, i32
  }
}

module attributes {stable_mosaic.version = 11 : i64} {
  func.func @_layernorm_kernel(%arg0: i32, %arg1: memref<8x128xf32, #tpu.memory_space<vmem>>, %arg2: memref<1x128xf32, #tpu.memory_space<vmem>>, %arg3: memref<1x128xf32, #tpu.memory_space<vmem>>, %arg4: memref<8x128xf32, #tpu.memory_space<vmem>>) attributes {dimension_semantics = [#tpu.dimension_semantics<parallel>], iteration_bounds = array<i64: 1>, scalar_prefetch = 0 : i64, scratch_operands = 0 : i64, tpu.core_type = #tpu.core_type<tc>, window_params = [{transform_indices = @transform_0, window_bounds = array<i64: 8, 128>}, {pipeline_mode = #tpu.pipeline_mode<synchronous>, transform_indices = @transform_1, window_bounds = array<i64: 1, 128>}, {pipeline_mode = #tpu.pipeline_mode<synchronous>, transform_indices = @transform_2, window_bounds = array<i64: 1, 128>}, {transform_indices = @transform_3, window_bounds = array<i64: 8, 128>}]} {
    %c0 = arith.constant 0 : index
    %c0_0 = arith.constant 0 : index
    %0 = vector.load %arg1[%c0, %c0_0] : memref<8x128xf32, #tpu.memory_space<vmem>>, vector<8x128xf32>
    %cst = arith.constant dense<0.000000e+00> : vector<8xf32>
    %1 = vector.multi_reduction <add>, %0, %cst [1] : vector<8x128xf32> to vector<8xf32>
    %2 = vector.shape_cast %1 : vector<8xf32> to vector<8x1xf32>
    %cst_1 = arith.constant 1.280000e+02 : f32
    %3 = vector.broadcast %cst_1 : f32 to vector<8x1xf32>
    %4 = arith.divf %2, %3 : vector<8x1xf32>
    %5 = vector.broadcast %4 : vector<8x1xf32> to vector<8x128xf32>
    %6 = arith.subf %0, %5 : vector<8x128xf32>
    %7 = arith.mulf %6, %6 : vector<8x128xf32>
    %cst_2 = arith.constant dense<0.000000e+00> : vector<8xf32>
    %8 = vector.multi_reduction <add>, %7, %cst_2 [1] : vector<8x128xf32> to vector<8xf32>
    %9 = vector.shape_cast %8 : vector<8xf32> to vector<8x1xf32>
    %cst_3 = arith.constant 1.280000e+02 : f32
    %10 = vector.broadcast %cst_3 : f32 to vector<8x1xf32>
    %11 = arith.divf %9, %10 : vector<8x1xf32>
    %cst_4 = arith.constant 9.99999974E-6 : f32
    %12 = vector.broadcast %cst_4 : f32 to vector<8x1xf32>
    %13 = arith.addf %11, %12 : vector<8x1xf32>
    %14 = math.rsqrt %13 : vector<8x1xf32>
    %15 = vector.broadcast %14 : vector<8x1xf32> to vector<8x128xf32>
    %16 = arith.mulf %6, %15 : vector<8x128xf32>
    %c0_5 = arith.constant 0 : index
    %c0_6 = arith.constant 0 : index
    %17 = vector.load %arg2[%c0_5, %c0_6] : memref<1x128xf32, #tpu.memory_space<vmem>>, vector<1x128xf32>
    %18 = vector.broadcast %17 : vector<1x128xf32> to vector<8x128xf32>
    %19 = arith.mulf %16, %18 : vector<8x128xf32>
    %c0_7 = arith.constant 0 : index
    %c0_8 = arith.constant 0 : index
    %20 = vector.load %arg3[%c0_7, %c0_8] : memref<1x128xf32, #tpu.memory_space<vmem>>, vector<1x128xf32>
    %21 = vector.broadcast %20 : vector<1x128xf32> to vector<8x128xf32>
    %22 = arith.addf %19, %21 : vector<8x128xf32>
    %c0_9 = arith.constant 0 : index
    %c0_10 = arith.constant 0 : index
    %23 = vector.load %arg4[%c0_9, %c0_10] : memref<8x128xf32, #tpu.memory_space<vmem>>, vector<8x128xf32>
    tpu.vector_store %arg4[%c0_9, %c0_10], %22 {strides = array<i32>} : memref<8x128xf32, #tpu.memory_space<vmem>>, vector<8x128xf32>,
    return
  }
  func.func @transform_0(%arg0: i32) -> (i32, i32) {
    %c0_i32 = arith.constant 0 : i32
    %c0_i32_0 = arith.constant 0 : i32
    return %arg0, %c0_i32 : i32, i32
  }
  func.func @transform_1(%arg0: i32) -> (i32, i32) {
    %c0_i32 = arith.constant 0 : i32
    %c0_i32_0 = arith.constant 0 : i32
    %c0_i32_1 = arith.constant 0 : i32
    return %c0_i32, %c0_i32_0 : i32, i32
  }
  func.func @transform_2(%arg0: i32) -> (i32, i32) {
    %c0_i32 = arith.constant 0 : i32
    %c0_i32_0 = arith.constant 0 : i32
    %c0_i32_1 = arith.constant 0 : i32
    return %c0_i32, %c0_i32_0 : i32, i32
  }
  func.func @transform_3(%arg0: i32) -> (i32, i32) {
    %c0_i32 = arith.constant 0 : i32
    %c0_i32_0 = arith.constant 0 : i32
    return %arg0, %c0_i32 : i32, i32
  }
}

module attributes {stable_mosaic.version = 11 : i64} {
  func.func @_linear_kernel(%arg0: i32, %arg1: i32, %arg2: i32, %arg3: memref<8x128xbf16, #tpu.memory_space<vmem>>, %arg4: memref<128x128xbf16, #tpu.memory_space<vmem>>, %arg5: memref<1x128xf32, #tpu.memory_space<vmem>>, %arg6: memref<8x128xf32, #tpu.memory_space<vmem>>, %arg7: memref<8x128xf32, #tpu.memory_space<vmem>>) attributes {dimension_semantics = [#tpu.dimension_semantics<parallel>, #tpu.dimension_semantics<parallel>, #tpu.dimension_semantics<arbitrary>], iteration_bounds = array<i64: 1, 1, 1>, scalar_prefetch = 0 : i64, scratch_operands = 1 : i64, tpu.core_type = #tpu.core_type<tc>, window_params = [{transform_indices = @transform_0, window_bounds = array<i64: 8, 128>}, {transform_indices = @transform_1, window_bounds = array<i64: 128, 128>}, {transform_indices = @transform_2, window_bounds = array<i64: 1, 128>}, {transform_indices = @transform_3, window_bounds = array<i64: 8, 128>}]} {
    %c0_i32 = arith.constant 0 : i32
    %0 = arith.cmpi eq, %arg2, %c0_i32 : i32
    %1 = arith.extui %0 : i1 to i32
    %c0_i32_0 = arith.constant 0 : i32
    %2 = arith.cmpi ne, %1, %c0_i32_0 : i32
    scf.if %2 {
      %cst_10 = arith.constant 0.000000e+00 : f32
      %12 = vector.broadcast %cst_10 : f32 to vector<8x128xf32>
      %c0_11 = arith.constant 0 : index
      %c0_12 = arith.constant 0 : index
      %13 = vector.load %arg7[%c0_11, %c0_12] : memref<8x128xf32, #tpu.memory_space<vmem>>, vector<8x128xf32>
      tpu.vector_store %arg7[%c0_11, %c0_12], %12 {strides = array<i32>} : memref<8x128xf32, #tpu.memory_space<vmem>>, vector<8x128xf32>,
    } else {
    }
    %c0 = arith.constant 0 : index
    %c0_1 = arith.constant 0 : index
    %3 = vector.load %arg7[%c0, %c0_1] : memref<8x128xf32, #tpu.memory_space<vmem>>, vector<8x128xf32>
    %c0_2 = arith.constant 0 : index
    %c0_3 = arith.constant 0 : index
    %4 = vector.load %arg3[%c0_2, %c0_3] : memref<8x128xbf16, #tpu.memory_space<vmem>>, vector<8x128xbf16>
    %c0_4 = arith.constant 0 : index
    %c0_5 = arith.constant 0 : index
    %5 = vector.load %arg4[%c0_4, %c0_5] : memref<128x128xbf16, #tpu.memory_space<vmem>>, vector<128x128xbf16>
    %cst = arith.constant dense<0.000000e+00> : vector<8x128xf32>
    %6 = tpu.matmul %4, %5, %cst {dimension_numbers = #tpu.dot_dimension_numbers<[1], [0], [0], [1], [0, 0, 1, 1], [], []>} : vector<8x128xbf16>, vector<128x128xbf16>, vector<8x128xf32> -> vector<8x128xf32>
    %7 = arith.addf %3, %6 : vector<8x128xf32>
    %c0_6 = arith.constant 0 : index
    %c0_7 = arith.constant 0 : index
    %8 = vector.load %arg7[%c0_6, %c0_7] : memref<8x128xf32, #tpu.memory_space<vmem>>, vector<8x128xf32>
    tpu.vector_store %arg7[%c0_6, %c0_7], %7 {strides = array<i32>} : memref<8x128xf32, #tpu.memory_space<vmem>>, vector<8x128xf32>,
    %c0_i32_8 = arith.constant 0 : i32
    %9 = arith.cmpi eq, %arg2, %c0_i32_8 : i32
    %10 = arith.extui %9 : i1 to i32
    %c0_i32_9 = arith.constant 0 : i32
    %11 = arith.cmpi ne, %10, %c0_i32_9 : i32
    scf.if %11 {
      %c0_10 = arith.constant 0 : index
      %c0_11 = arith.constant 0 : index
      %12 = vector.load %arg7[%c0_10, %c0_11] : memref<8x128xf32, #tpu.memory_space<vmem>>, vector<8x128xf32>
      %c0_12 = arith.constant 0 : index
      %c0_13 = arith.constant 0 : index
      %13 = vector.load %arg5[%c0_12, %c0_13] : memref<1x128xf32, #tpu.memory_space<vmem>>, vector<1x128xf32>
      %14 = vector.broadcast %13 : vector<1x128xf32> to vector<8x128xf32>
      %15 = arith.addf %12, %14 : vector<8x128xf32>
      %c0_14 = arith.constant 0 : index
      %c0_15 = arith.constant 0 : index
      %16 = vector.load %arg6[%c0_14, %c0_15] : memref<8x128xf32, #tpu.memory_space<vmem>>, vector<8x128xf32>
      tpu.vector_store %arg6[%c0_14, %c0_15], %15 {strides = array<i32>} : memref<8x128xf32, #tpu.memory_space<vmem>>, vector<8x128xf32>,
    } else {
    }
    return
  }
  func.func @transform_0(%arg0: i32, %arg1: i32, %arg2: i32) -> (i32, i32) {
    %c0_i32 = arith.constant 0 : i32
    return %arg0, %arg2 : i32, i32
  }
  func.func @transform_1(%arg0: i32, %arg1: i32, %arg2: i32) -> (i32, i32) {
    %c0_i32 = arith.constant 0 : i32
    return %arg2, %arg1 : i32, i32
  }
  func.func @transform_2(%arg0: i32, %arg1: i32, %arg2: i32) -> (i32, i32) {
    %c0_i32 = arith.constant 0 : i32
    %c0_i32_0 = arith.constant 0 : i32
    return %c0_i32, %arg1 : i32, i32
  }
  func.func @transform_3(%arg0: i32, %arg1: i32, %arg2: i32) -> (i32, i32) {
    %c0_i32 = arith.constant 0 : i32
    return %arg0, %arg1 : i32, i32
  }
}

module attributes {stable_mosaic.version = 11 : i64} {
  func.func @_linear_kernel(%arg0: i32, %arg1: i32, %arg2: i32, %arg3: memref<8x128xbf16, #tpu.memory_space<vmem>>, %arg4: memref<128x256xbf16, #tpu.memory_space<vmem>>, %arg5: memref<1x256xf32, #tpu.memory_space<vmem>>, %arg6: memref<8x256xf32, #tpu.memory_space<vmem>>, %arg7: memref<8x256xf32, #tpu.memory_space<vmem>>) attributes {dimension_semantics = [#tpu.dimension_semantics<parallel>, #tpu.dimension_semantics<parallel>, #tpu.dimension_semantics<arbitrary>], iteration_bounds = array<i64: 1, 1, 1>, scalar_prefetch = 0 : i64, scratch_operands = 1 : i64, tpu.core_type = #tpu.core_type<tc>, window_params = [{transform_indices = @transform_0, window_bounds = array<i64: 8, 128>}, {transform_indices = @transform_1, window_bounds = array<i64: 128, 256>}, {transform_indices = @transform_2, window_bounds = array<i64: 1, 256>}, {transform_indices = @transform_3, window_bounds = array<i64: 8, 256>}]} {
    %c0_i32 = arith.constant 0 : i32
    %0 = arith.cmpi eq, %arg2, %c0_i32 : i32
    %1 = arith.extui %0 : i1 to i32
    %c0_i32_0 = arith.constant 0 : i32
    %2 = arith.cmpi ne, %1, %c0_i32_0 : i32
    scf.if %2 {
      %cst_10 = arith.constant 0.000000e+00 : f32
      %12 = vector.broadcast %cst_10 : f32 to vector<8x256xf32>
      %c0_11 = arith.constant 0 : index
      %c0_12 = arith.constant 0 : index
      %13 = vector.load %arg7[%c0_11, %c0_12] : memref<8x256xf32, #tpu.memory_space<vmem>>, vector<8x256xf32>
      tpu.vector_store %arg7[%c0_11, %c0_12], %12 {strides = array<i32>} : memref<8x256xf32, #tpu.memory_space<vmem>>, vector<8x256xf32>,
    } else {
    }
    %c0 = arith.constant 0 : index
    %c0_1 = arith.constant 0 : index
    %3 = vector.load %arg7[%c0, %c0_1] : memref<8x256xf32, #tpu.memory_space<vmem>>, vector<8x256xf32>
    %c0_2 = arith.constant 0 : index
    %c0_3 = arith.constant 0 : index
    %4 = vector.load %arg3[%c0_2, %c0_3] : memref<8x128xbf16, #tpu.memory_space<vmem>>, vector<8x128xbf16>
    %c0_4 = arith.constant 0 : index
    %c0_5 = arith.constant 0 : index
    %5 = vector.load %arg4[%c0_4, %c0_5] : memref<128x256xbf16, #tpu.memory_space<vmem>>, vector<128x256xbf16>
    %cst = arith.constant dense<0.000000e+00> : vector<8x256xf32>
    %6 = tpu.matmul %4, %5, %cst {dimension_numbers = #tpu.dot_dimension_numbers<[1], [0], [0], [1], [0, 0, 1, 1], [], []>} : vector<8x128xbf16>, vector<128x256xbf16>, vector<8x256xf32> -> vector<8x256xf32>
    %7 = arith.addf %3, %6 : vector<8x256xf32>
    %c0_6 = arith.constant 0 : index
    %c0_7 = arith.constant 0 : index
    %8 = vector.load %arg7[%c0_6, %c0_7] : memref<8x256xf32, #tpu.memory_space<vmem>>, vector<8x256xf32>
    tpu.vector_store %arg7[%c0_6, %c0_7], %7 {strides = array<i32>} : memref<8x256xf32, #tpu.memory_space<vmem>>, vector<8x256xf32>,
    %c0_i32_8 = arith.constant 0 : i32
    %9 = arith.cmpi eq, %arg2, %c0_i32_8 : i32
    %10 = arith.extui %9 : i1 to i32
    %c0_i32_9 = arith.constant 0 : i32
    %11 = arith.cmpi ne, %10, %c0_i32_9 : i32
    scf.if %11 {
      %c0_10 = arith.constant 0 : index
      %c0_11 = arith.constant 0 : index
      %12 = vector.load %arg7[%c0_10, %c0_11] : memref<8x256xf32, #tpu.memory_space<vmem>>, vector<8x256xf32>
      %c0_12 = arith.constant 0 : index
      %c0_13 = arith.constant 0 : index
      %13 = vector.load %arg5[%c0_12, %c0_13] : memref<1x256xf32, #tpu.memory_space<vmem>>, vector<1x256xf32>
      %14 = vector.broadcast %13 : vector<1x256xf32> to vector<8x256xf32>
      %15 = arith.addf %12, %14 : vector<8x256xf32>
      %c0_14 = arith.constant 0 : index
      %c0_15 = arith.constant 0 : index
      %16 = vector.load %arg6[%c0_14, %c0_15] : memref<8x256xf32, #tpu.memory_space<vmem>>, vector<8x256xf32>
      tpu.vector_store %arg6[%c0_14, %c0_15], %15 {strides = array<i32>} : memref<8x256xf32, #tpu.memory_space<vmem>>, vector<8x256xf32>,
    } else {
    }
    return
  }
  func.func @transform_0(%arg0: i32, %arg1: i32, %arg2: i32) -> (i32, i32) {
    %c0_i32 = arith.constant 0 : i32
    return %arg0, %arg2 : i32, i32
  }
  func.func @transform_1(%arg0: i32, %arg1: i32, %arg2: i32) -> (i32, i32) {
    %c0_i32 = arith.constant 0 : i32
    return %arg2, %arg1 : i32, i32
  }
  func.func @transform_2(%arg0: i32, %arg1: i32, %arg2: i32) -> (i32, i32) {
    %c0_i32 = arith.constant 0 : i32
    %c0_i32_0 = arith.constant 0 : i32
    return %c0_i32, %arg1 : i32, i32
  }
  func.func @transform_3(%arg0: i32, %arg1: i32, %arg2: i32) -> (i32, i32) {
    %c0_i32 = arith.constant 0 : i32
    return %arg0, %arg1 : i32, i32
  }
}

module attributes {stable_mosaic.version = 11 : i64} {
  func.func @_dwconv3x3_silu_kernel(%arg0: i32, %arg1: memref<1x4x4x128xf32, #tpu.memory_space<vmem>>, %arg2: memref<9x128xf32, #tpu.memory_space<vmem>>, %arg3: memref<1x128xf32, #tpu.memory_space<vmem>>, %arg4: memref<1x2x2x128xf32, #tpu.memory_space<vmem>>) attributes {dimension_semantics = [#tpu.dimension_semantics<parallel>], iteration_bounds = array<i64: 2>, scalar_prefetch = 0 : i64, scratch_operands = 0 : i64, tpu.core_type = #tpu.core_type<tc>, window_params = [{transform_indices = @transform_0, window_bounds = array<i64: 1, 4, 4, 128>}, {pipeline_mode = #tpu.pipeline_mode<synchronous>, transform_indices = @transform_1, window_bounds = array<i64: 9, 128>}, {pipeline_mode = #tpu.pipeline_mode<synchronous>, transform_indices = @transform_2, window_bounds = array<i64: 1, 128>}, {transform_indices = @transform_3, window_bounds = array<i64: 1, 2, 2, 128>}]} {
    %cst = arith.constant 0.000000e+00 : f32
    %0 = vector.broadcast %cst : f32 to vector<2x2x128xf32>
    %c0 = arith.constant 0 : index
    %c0_0 = arith.constant 0 : index
    %1 = vector.load %arg3[%c0, %c0_0] : memref<1x128xf32, #tpu.memory_space<vmem>>, vector<1x128xf32>
    %2 = vector.shape_cast %1 : vector<1x128xf32> to vector<1x1x128xf32>
    %3 = vector.broadcast %2 : vector<1x1x128xf32> to vector<2x2x128xf32>
    %4 = arith.addf %0, %3 : vector<2x2x128xf32>
    %c0_1 = arith.constant 0 : index
    %c0_2 = arith.constant 0 : index
    %c0_3 = arith.constant 0 : index
    %c0_4 = arith.constant 0 : index
    %5 = vector.load %arg1[%c0_1, %c0_2, %c0_3, %c0_4] : memref<1x4x4x128xf32, #tpu.memory_space<vmem>>, vector<1x2x2x128xf32>
    %6 = vector.shape_cast %5 : vector<1x2x2x128xf32> to vector<2x2x128xf32>
    %c0_5 = arith.constant 0 : index
    %c0_6 = arith.constant 0 : index
    %7 = vector.load %arg2[%c0_5, %c0_6] : memref<9x128xf32, #tpu.memory_space<vmem>>, vector<1x128xf32>
    %8 = vector.shape_cast %7 : vector<1x128xf32> to vector<1x1x128xf32>
    %9 = vector.broadcast %8 : vector<1x1x128xf32> to vector<2x2x128xf32>
    %10 = arith.mulf %6, %9 : vector<2x2x128xf32>
    %11 = arith.addf %4, %10 : vector<2x2x128xf32>
    %c0_7 = arith.constant 0 : index
    %c0_8 = arith.constant 0 : index
    %c1 = arith.constant 1 : index
    %c0_9 = arith.constant 0 : index
    %12 = vector.load %arg1[%c0_7, %c0_8, %c1, %c0_9] : memref<1x4x4x128xf32, #tpu.memory_space<vmem>>, vector<1x2x2x128xf32>
    %13 = vector.shape_cast %12 : vector<1x2x2x128xf32> to vector<2x2x128xf32>
    %c1_10 = arith.constant 1 : index
    %c0_11 = arith.constant 0 : index
    %14 = vector.load %arg2[%c1_10, %c0_11] : memref<9x128xf32, #tpu.memory_space<vmem>>, vector<1x128xf32>
    %15 = vector.shape_cast %14 : vector<1x128xf32> to vector<1x1x128xf32>
    %16 = vector.broadcast %15 : vector<1x1x128xf32> to vector<2x2x128xf32>
    %17 = arith.mulf %13, %16 : vector<2x2x128xf32>
    %18 = arith.addf %11, %17 : vector<2x2x128xf32>
    %c0_12 = arith.constant 0 : index
    %c0_13 = arith.constant 0 : index
    %c2 = arith.constant 2 : index
    %c0_14 = arith.constant 0 : index
    %19 = vector.load %arg1[%c0_12, %c0_13, %c2, %c0_14] : memref<1x4x4x128xf32, #tpu.memory_space<vmem>>, vector<1x2x2x128xf32>
    %20 = vector.shape_cast %19 : vector<1x2x2x128xf32> to vector<2x2x128xf32>
    %c2_15 = arith.constant 2 : index
    %c0_16 = arith.constant 0 : index
    %21 = vector.load %arg2[%c2_15, %c0_16] : memref<9x128xf32, #tpu.memory_space<vmem>>, vector<1x128xf32>
    %22 = vector.shape_cast %21 : vector<1x128xf32> to vector<1x1x128xf32>
    %23 = vector.broadcast %22 : vector<1x1x128xf32> to vector<2x2x128xf32>
    %24 = arith.mulf %20, %23 : vector<2x2x128xf32>
    %25 = arith.addf %18, %24 : vector<2x2x128xf32>
    %c0_17 = arith.constant 0 : index
    %c1_18 = arith.constant 1 : index
    %c0_19 = arith.constant 0 : index
    %c0_20 = arith.constant 0 : index
    %26 = vector.load %arg1[%c0_17, %c1_18, %c0_19, %c0_20] : memref<1x4x4x128xf32, #tpu.memory_space<vmem>>, vector<1x2x2x128xf32>
    %27 = vector.shape_cast %26 : vector<1x2x2x128xf32> to vector<2x2x128xf32>
    %c3 = arith.constant 3 : index
    %c0_21 = arith.constant 0 : index
    %28 = vector.load %arg2[%c3, %c0_21] : memref<9x128xf32, #tpu.memory_space<vmem>>, vector<1x128xf32>
    %29 = vector.shape_cast %28 : vector<1x128xf32> to vector<1x1x128xf32>
    %30 = vector.broadcast %29 : vector<1x1x128xf32> to vector<2x2x128xf32>
    %31 = arith.mulf %27, %30 : vector<2x2x128xf32>
    %32 = arith.addf %25, %31 : vector<2x2x128xf32>
    %c0_22 = arith.constant 0 : index
    %c1_23 = arith.constant 1 : index
    %c1_24 = arith.constant 1 : index
    %c0_25 = arith.constant 0 : index
    %33 = vector.load %arg1[%c0_22, %c1_23, %c1_24, %c0_25] : memref<1x4x4x128xf32, #tpu.memory_space<vmem>>, vector<1x2x2x128xf32>
    %34 = vector.shape_cast %33 : vector<1x2x2x128xf32> to vector<2x2x128xf32>
    %c4 = arith.constant 4 : index
    %c0_26 = arith.constant 0 : index
    %35 = vector.load %arg2[%c4, %c0_26] : memref<9x128xf32, #tpu.memory_space<vmem>>, vector<1x128xf32>
    %36 = vector.shape_cast %35 : vector<1x128xf32> to vector<1x1x128xf32>
    %37 = vector.broadcast %36 : vector<1x1x128xf32> to vector<2x2x128xf32>
    %38 = arith.mulf %34, %37 : vector<2x2x128xf32>
    %39 = arith.addf %32, %38 : vector<2x2x128xf32>
    %c0_27 = arith.constant 0 : index
    %c1_28 = arith.constant 1 : index
    %c2_29 = arith.constant 2 : index
    %c0_30 = arith.constant 0 : index
    %40 = vector.load %arg1[%c0_27, %c1_28, %c2_29, %c0_30] : memref<1x4x4x128xf32, #tpu.memory_space<vmem>>, vector<1x2x2x128xf32>
    %41 = vector.shape_cast %40 : vector<1x2x2x128xf32> to vector<2x2x128xf32>
    %c5 = arith.constant 5 : index
    %c0_31 = arith.constant 0 : index
    %42 = vector.load %arg2[%c5, %c0_31] : memref<9x128xf32, #tpu.memory_space<vmem>>, vector<1x128xf32>
    %43 = vector.shape_cast %42 : vector<1x128xf32> to vector<1x1x128xf32>
    %44 = vector.broadcast %43 : vector<1x1x128xf32> to vector<2x2x128xf32>
    %45 = arith.mulf %41, %44 : vector<2x2x128xf32>
    %46 = arith.addf %39, %45 : vector<2x2x128xf32>
    %c0_32 = arith.constant 0 : index
    %c2_33 = arith.constant 2 : index
    %c0_34 = arith.constant 0 : index
    %c0_35 = arith.constant 0 : index
    %47 = vector.load %arg1[%c0_32, %c2_33, %c0_34, %c0_35] : memref<1x4x4x128xf32, #tpu.memory_space<vmem>>, vector<1x2x2x128xf32>
    %48 = vector.shape_cast %47 : vector<1x2x2x128xf32> to vector<2x2x128xf32>
    %c6 = arith.constant 6 : index
    %c0_36 = arith.constant 0 : index
    %49 = vector.load %arg2[%c6, %c0_36] : memref<9x128xf32, #tpu.memory_space<vmem>>, vector<1x128xf32>
    %50 = vector.shape_cast %49 : vector<1x128xf32> to vector<1x1x128xf32>
    %51 = vector.broadcast %50 : vector<1x1x128xf32> to vector<2x2x128xf32>
    %52 = arith.mulf %48, %51 : vector<2x2x128xf32>
    %53 = arith.addf %46, %52 : vector<2x2x128xf32>
    %c0_37 = arith.constant 0 : index
    %c2_38 = arith.constant 2 : index
    %c1_39 = arith.constant 1 : index
    %c0_40 = arith.constant 0 : index
    %54 = vector.load %arg1[%c0_37, %c2_38, %c1_39, %c0_40] : memref<1x4x4x128xf32, #tpu.memory_space<vmem>>, vector<1x2x2x128xf32>
    %55 = vector.shape_cast %54 : vector<1x2x2x128xf32> to vector<2x2x128xf32>
    %c7 = arith.constant 7 : index
    %c0_41 = arith.constant 0 : index
    %56 = vector.load %arg2[%c7, %c0_41] : memref<9x128xf32, #tpu.memory_space<vmem>>, vector<1x128xf32>
    %57 = vector.shape_cast %56 : vector<1x128xf32> to vector<1x1x128xf32>
    %58 = vector.broadcast %57 : vector<1x1x128xf32> to vector<2x2x128xf32>
    %59 = arith.mulf %55, %58 : vector<2x2x128xf32>
    %60 = arith.addf %53, %59 : vector<2x2x128xf32>
    %c0_42 = arith.constant 0 : index
    %c2_43 = arith.constant 2 : index
    %c2_44 = arith.constant 2 : index
    %c0_45 = arith.constant 0 : index
    %61 = vector.load %arg1[%c0_42, %c2_43, %c2_44, %c0_45] : memref<1x4x4x128xf32, #tpu.memory_space<vmem>>, vector<1x2x2x128xf32>
    %62 = vector.shape_cast %61 : vector<1x2x2x128xf32> to vector<2x2x128xf32>
    %c8 = arith.constant 8 : index
    %c0_46 = arith.constant 0 : index
    %63 = vector.load %arg2[%c8, %c0_46] : memref<9x128xf32, #tpu.memory_space<vmem>>, vector<1x128xf32>
    %64 = vector.shape_cast %63 : vector<1x128xf32> to vector<1x1x128xf32>
    %65 = vector.broadcast %64 : vector<1x1x128xf32> to vector<2x2x128xf32>
    %66 = arith.mulf %62, %65 : vector<2x2x128xf32>
    %67 = arith.addf %60, %66 : vector<2x2x128xf32>
    %68 = arith.negf %67 : vector<2x2x128xf32>
    %69 = math.exp %68 : vector<2x2x128xf32>
    %cst_47 = arith.constant 1.000000e+00 : f32
    %70 = vector.broadcast %cst_47 : f32 to vector<2x2x128xf32>
    %71 = arith.addf %70, %69 : vector<2x2x128xf32>
    %72 = arith.divf %70, %71 : vector<2x2x128xf32>
    %73 = arith.mulf %67, %72 : vector<2x2x128xf32>
    %c0_48 = arith.constant 0 : index
    %c0_49 = arith.constant 0 : index
    %c0_50 = arith.constant 0 : index
    %c0_51 = arith.constant 0 : index
    %74 = vector.load %arg4[%c0_48, %c0_49, %c0_50, %c0_51] : memref<1x2x2x128xf32, #tpu.memory_space<vmem>>, vector<1x2x2x128xf32>
    %75 = vector.shape_cast %74 : vector<1x2x2x128xf32> to vector<2x2x128xf32>
    %76 = vector.shape_cast %73 : vector<2x2x128xf32> to vector<1x2x2x128xf32>
    tpu.vector_store %arg4[%c0_48, %c0_49, %c0_50, %c0_51], %76 {strides = array<i32>} : memref<1x2x2x128xf32, #tpu.memory_space<vmem>>, vector<1x2x2x128xf32>,
    return
  }
  func.func @transform_0(%arg0: i32) -> (i32, i32, i32, i32) {
    %c0_i32 = arith.constant 0 : i32
    %c0_i32_0 = arith.constant 0 : i32
    %c0_i32_1 = arith.constant 0 : i32
    %c0_i32_2 = arith.constant 0 : i32
    return %arg0, %c0_i32, %c0_i32_0, %c0_i32_1 : i32, i32, i32, i32
  }
  func.func @transform_1(%arg0: i32) -> (i32, i32) {
    %c0_i32 = arith.constant 0 : i32
    %c0_i32_0 = arith.constant 0 : i32
    %c0_i32_1 = arith.constant 0 : i32
    return %c0_i32, %c0_i32_0 : i32, i32
  }
  func.func @transform_2(%arg0: i32) -> (i32, i32) {
    %c0_i32 = arith.constant 0 : i32
    %c0_i32_0 = arith.constant 0 : i32
    %c0_i32_1 = arith.constant 0 : i32
    return %c0_i32, %c0_i32_0 : i32, i32
  }
  func.func @transform_3(%arg0: i32) -> (i32, i32, i32, i32) {
    %c0_i32 = arith.constant 0 : i32
    %c0_i32_0 = arith.constant 0 : i32
    %c0_i32_1 = arith.constant 0 : i32
    %c0_i32_2 = arith.constant 0 : i32
    return %arg0, %c0_i32, %c0_i32_0, %c0_i32_1 : i32, i32, i32, i32
  }
}

module attributes {stable_mosaic.version = 11 : i64} {
  func.func @_xproj_dt_kernel(%arg0: i32, %arg1: memref<1x8x128xbf16, #tpu.memory_space<vmem>>, %arg2: memref<1x128x36xbf16, #tpu.memory_space<vmem>>, %arg3: memref<1x4x128xbf16, #tpu.memory_space<vmem>>, %arg4: memref<1x8x128xf32, #tpu.memory_space<vmem>>, %arg5: memref<1x8x16xf32, #tpu.memory_space<vmem>>, %arg6: memref<1x8x16xf32, #tpu.memory_space<vmem>>) attributes {dimension_semantics = [#tpu.dimension_semantics<parallel>], iteration_bounds = array<i64: 4>, scalar_prefetch = 0 : i64, scratch_operands = 0 : i64, tpu.core_type = #tpu.core_type<tc>, window_params = [{transform_indices = @transform_0, window_bounds = array<i64: 1, 8, 128>}, {transform_indices = @transform_1, window_bounds = array<i64: 1, 128, 36>}, {transform_indices = @transform_2, window_bounds = array<i64: 1, 4, 128>}, {transform_indices = @transform_3, window_bounds = array<i64: 1, 8, 128>}, {transform_indices = @transform_4, window_bounds = array<i64: 1, 8, 16>}, {transform_indices = @transform_5, window_bounds = array<i64: 1, 8, 16>}]} {
    %c0 = arith.constant 0 : index
    %c0_0 = arith.constant 0 : index
    %c0_1 = arith.constant 0 : index
    %0 = vector.load %arg1[%c0, %c0_0, %c0_1] : memref<1x8x128xbf16, #tpu.memory_space<vmem>>, vector<1x8x128xbf16>
    %1 = vector.shape_cast %0 : vector<1x8x128xbf16> to vector<8x128xbf16>
    %c0_2 = arith.constant 0 : index
    %c0_3 = arith.constant 0 : index
    %c0_4 = arith.constant 0 : index
    %2 = vector.load %arg2[%c0_2, %c0_3, %c0_4] : memref<1x128x36xbf16, #tpu.memory_space<vmem>>, vector<1x128x36xbf16>
    %3 = vector.shape_cast %2 : vector<1x128x36xbf16> to vector<128x36xbf16>
    %cst = arith.constant dense<0.000000e+00> : vector<8x36xf32>
    %4 = tpu.matmul %1, %3, %cst {dimension_numbers = #tpu.dot_dimension_numbers<[1], [0], [0], [1], [0, 0, 1, 1], [], []>} : vector<8x128xbf16>, vector<128x36xbf16>, vector<8x36xf32> -> vector<8x36xf32>
    %5 = vector.extract_strided_slice %4 {offsets = [0, 0], sizes = [8, 4], strides = [1, 1]} : vector<8x36xf32> to vector<8x4xf32>
    %c0_5 = arith.constant 0 : index
    %c0_6 = arith.constant 0 : index
    %c0_7 = arith.constant 0 : index
    %6 = vector.load %arg3[%c0_5, %c0_6, %c0_7] : memref<1x4x128xbf16, #tpu.memory_space<vmem>>, vector<1x4x128xbf16>
    %7 = vector.shape_cast %6 : vector<1x4x128xbf16> to vector<4x128xbf16>
    %8 = arith.extf %7 : vector<4x128xbf16> to vector<4x128xf32>
    %cst_8 = arith.constant dense<0.000000e+00> : vector<8x128xf32>
    %9 = tpu.matmul %5, %8, %cst_8 {dimension_numbers = #tpu.dot_dimension_numbers<[1], [0], [0], [1], [0, 0, 1, 1], [], []>} : vector<8x4xf32>, vector<4x128xf32>, vector<8x128xf32> -> vector<8x128xf32>
    %c0_9 = arith.constant 0 : index
    %c0_10 = arith.constant 0 : index
    %c0_11 = arith.constant 0 : index
    %10 = vector.load %arg4[%c0_9, %c0_10, %c0_11] : memref<1x8x128xf32, #tpu.memory_space<vmem>>, vector<1x8x128xf32>
    %11 = vector.shape_cast %10 : vector<1x8x128xf32> to vector<8x128xf32>
    %12 = vector.shape_cast %9 : vector<8x128xf32> to vector<1x8x128xf32>
    tpu.vector_store %arg4[%c0_9, %c0_10, %c0_11], %12 {strides = array<i32>} : memref<1x8x128xf32, #tpu.memory_space<vmem>>, vector<1x8x128xf32>,
    %13 = vector.extract_strided_slice %4 {offsets = [0, 4], sizes = [8, 16], strides = [1, 1]} : vector<8x36xf32> to vector<8x16xf32>
    %c0_12 = arith.constant 0 : index
    %c0_13 = arith.constant 0 : index
    %c0_14 = arith.constant 0 : index
    %14 = vector.load %arg5[%c0_12, %c0_13, %c0_14] : memref<1x8x16xf32, #tpu.memory_space<vmem>>, vector<1x8x16xf32>
    %15 = vector.shape_cast %14 : vector<1x8x16xf32> to vector<8x16xf32>
    %16 = vector.shape_cast %13 : vector<8x16xf32> to vector<1x8x16xf32>
    tpu.vector_store %arg5[%c0_12, %c0_13, %c0_14], %16 {strides = array<i32>} : memref<1x8x16xf32, #tpu.memory_space<vmem>>, vector<1x8x16xf32>,
    %17 = vector.extract_strided_slice %4 {offsets = [0, 20], sizes = [8, 16], strides = [1, 1]} : vector<8x36xf32> to vector<8x16xf32>
    %c0_15 = arith.constant 0 : index
    %c0_16 = arith.constant 0 : index
    %c0_17 = arith.constant 0 : index
    %18 = vector.load %arg6[%c0_15, %c0_16, %c0_17] : memref<1x8x16xf32, #tpu.memory_space<vmem>>, vector<1x8x16xf32>
    %19 = vector.shape_cast %18 : vector<1x8x16xf32> to vector<8x16xf32>
    %20 = vector.shape_cast %17 : vector<8x16xf32> to vector<1x8x16xf32>
    tpu.vector_store %arg6[%c0_15, %c0_16, %c0_17], %20 {strides = array<i32>} : memref<1x8x16xf32, #tpu.memory_space<vmem>>, vector<1x8x16xf32>,
    return
  }
  func.func @transform_0(%arg0: i32) -> (i32, i32, i32) {
    %c0_i32 = arith.constant 0 : i32
    %c0_i32_0 = arith.constant 0 : i32
    %c0_i32_1 = arith.constant 0 : i32
    return %arg0, %c0_i32, %c0_i32_0 : i32, i32, i32
  }
  func.func @transform_1(%arg0: i32) -> (i32, i32, i32) {
    %c0_i32 = arith.constant 0 : i32
    %c0_i32_0 = arith.constant 0 : i32
    %c0_i32_1 = arith.constant 0 : i32
    return %arg0, %c0_i32, %c0_i32_0 : i32, i32, i32
  }
  func.func @transform_2(%arg0: i32) -> (i32, i32, i32) {
    %c0_i32 = arith.constant 0 : i32
    %c0_i32_0 = arith.constant 0 : i32
    %c0_i32_1 = arith.constant 0 : i32
    return %arg0, %c0_i32, %c0_i32_0 : i32, i32, i32
  }
  func.func @transform_3(%arg0: i32) -> (i32, i32, i32) {
    %c0_i32 = arith.constant 0 : i32
    %c0_i32_0 = arith.constant 0 : i32
    %c0_i32_1 = arith.constant 0 : i32
    return %arg0, %c0_i32, %c0_i32_0 : i32, i32, i32
  }
  func.func @transform_4(%arg0: i32) -> (i32, i32, i32) {
    %c0_i32 = arith.constant 0 : i32
    %c0_i32_0 = arith.constant 0 : i32
    %c0_i32_1 = arith.constant 0 : i32
    return %arg0, %c0_i32, %c0_i32_0 : i32, i32, i32
  }
  func.func @transform_5(%arg0: i32) -> (i32, i32, i32) {
    %c0_i32 = arith.constant 0 : i32
    %c0_i32_0 = arith.constant 0 : i32
    %c0_i32_1 = arith.constant 0 : i32
    return %arg0, %c0_i32, %c0_i32_0 : i32, i32, i32
  }
}

module attributes {stable_mosaic.version = 11 : i64} {
  func.func @_selective_scan_kernel(%arg0: i32, %arg1: i32, %arg2: memref<1x1x4x128xf32, #tpu.memory_space<vmem>>, %arg3: memref<1x1x4x128xf32, #tpu.memory_space<vmem>>, %arg4: memref<1x1x4x16xf32, #tpu.memory_space<vmem>>, %arg5: memref<1x1x4x16xf32, #tpu.memory_space<vmem>>, %arg6: memref<1x16x128xf32, #tpu.memory_space<vmem>>, %arg7: memref<1x1x128xf32, #tpu.memory_space<vmem>>, %arg8: memref<1x1x128xf32, #tpu.memory_space<vmem>>, %arg9: memref<1x1x4x128xf32, #tpu.memory_space<vmem>>) attributes {dimension_semantics = [#tpu.dimension_semantics<parallel>, #tpu.dimension_semantics<parallel>], iteration_bounds = array<i64: 2, 4>, scalar_prefetch = 0 : i64, scratch_operands = 0 : i64, tpu.core_type = #tpu.core_type<tc>, window_params = [{transform_indices = @transform_0, window_bounds = array<i64: 1, 1, 4, 128>}, {transform_indices = @transform_1, window_bounds = array<i64: 1, 1, 4, 128>}, {transform_indices = @transform_2, window_bounds = array<i64: 1, 1, 4, 16>}, {transform_indices = @transform_3, window_bounds = array<i64: 1, 1, 4, 16>}, {transform_indices = @transform_4, window_bounds = array<i64: 1, 16, 128>}, {transform_indices = @transform_5, window_bounds = array<i64: 1, 1, 128>}, {transform_indices = @transform_6, window_bounds = array<i64: 1, 1, 128>}, {transform_indices = @transform_7, window_bounds = array<i64: 1, 1, 4, 128>}]} {
    %c0 = arith.constant 0 : index
    %c0_0 = arith.constant 0 : index
    %c0_1 = arith.constant 0 : index
    %0 = vector.load %arg6[%c0, %c0_0, %c0_1] : memref<1x16x128xf32, #tpu.memory_space<vmem>>, vector<1x16x128xf32>
    %1 = vector.shape_cast %0 : vector<1x16x128xf32> to vector<16x128xf32>
    %c0_2 = arith.constant 0 : index
    %c0_3 = arith.constant 0 : index
    %c0_4 = arith.constant 0 : index
    %2 = vector.load %arg7[%c0_2, %c0_3, %c0_4] : memref<1x1x128xf32, #tpu.memory_space<vmem>>, vector<1x1x128xf32>
    %3 = vector.shape_cast %2 : vector<1x1x128xf32> to vector<1x128xf32>
    %c0_5 = arith.constant 0 : index
    %c0_6 = arith.constant 0 : index
    %c0_7 = arith.constant 0 : index
    %4 = vector.load %arg8[%c0_5, %c0_6, %c0_7] : memref<1x1x128xf32, #tpu.memory_space<vmem>>, vector<1x1x128xf32>
    %5 = vector.shape_cast %4 : vector<1x1x128xf32> to vector<1x128xf32>
    %cst = arith.constant 0.000000e+00 : f32
    %6 = vector.broadcast %cst : f32 to vector<16x128xf32>
    %c0_i32 = arith.constant 0 : i32
    %c4_i32 = arith.constant 4 : i32
    %7 = arith.muli %c0_i32, %c4_i32 : i32
    %8 = tpu.assume_multiple %7, 4 : i32
    %c0_8 = arith.constant 0 : index
    %c0_9 = arith.constant 0 : index
    %9 = arith.index_cast %8 : i32 to index
    %c0_10 = arith.constant 0 : index
    %10 = vector.load %arg2[%c0_8, %c0_9, %9, %c0_10] : memref<1x1x4x128xf32, #tpu.memory_space<vmem>>, vector<1x1x4x128xf32>
    %11 = vector.shape_cast %10 : vector<1x1x4x128xf32> to vector<4x128xf32>
    %c0_11 = arith.constant 0 : index
    %c0_12 = arith.constant 0 : index
    %12 = arith.index_cast %8 : i32 to index
    %c0_13 = arith.constant 0 : index
    %13 = vector.load %arg3[%c0_11, %c0_12, %12, %c0_13] : memref<1x1x4x128xf32, #tpu.memory_space<vmem>>, vector<1x1x4x128xf32>
    %14 = vector.shape_cast %13 : vector<1x1x4x128xf32> to vector<4x128xf32>
    %15 = vector.broadcast %5 : vector<1x128xf32> to vector<4x128xf32>
    %16 = arith.addf %14, %15 : vector<4x128xf32>
    %cst_14 = arith.constant 0.000000e+00 : f32
    %17 = vector.broadcast %cst_14 : f32 to vector<4x128xf32>
    %18 = arith.maximumf %16, %17 : vector<4x128xf32>
    %19 = vector.broadcast %cst_14 : f32 to vector<4x128xf32>
    %20 = arith.subf %16, %19 : vector<4x128xf32>
    %21 = arith.cmpf one, %20, %20 : vector<4x128xf32>
    %22 = vector.broadcast %cst_14 : f32 to vector<4x128xf32>
    %23 = arith.addf %16, %22 : vector<4x128xf32>
    %24 = math.absf %20 : vector<4x128xf32>
    %cst_15 = arith.constant 0.000000e+00 : f32
    %25 = vector.broadcast %cst_15 : f32 to vector<4x128xf32>
    %26 = arith.subf %25, %24 : vector<4x128xf32>
    %27 = math.exp %26 : vector<4x128xf32>
    %28 = math.log1p %27 : vector<4x128xf32>
    %29 = arith.addf %18, %28 : vector<4x128xf32>
    %30 = arith.select %21, %23, %29 : vector<4x128xi1>, vector<4x128xf32>
    %c0_16 = arith.constant 0 : index
    %c0_17 = arith.constant 0 : index
    %31 = arith.index_cast %8 : i32 to index
    %c0_18 = arith.constant 0 : index
    %32 = vector.load %arg4[%c0_16, %c0_17, %31, %c0_18] : memref<1x1x4x16xf32, #tpu.memory_space<vmem>>, vector<1x1x4x16xf32>
    %33 = vector.shape_cast %32 : vector<1x1x4x16xf32> to vector<4x16xf32>
    %c0_19 = arith.constant 0 : index
    %c0_20 = arith.constant 0 : index
    %34 = arith.index_cast %8 : i32 to index
    %c0_21 = arith.constant 0 : index
    %35 = vector.load %arg5[%c0_19, %c0_20, %34, %c0_21] : memref<1x1x4x16xf32, #tpu.memory_space<vmem>>, vector<1x1x4x16xf32>
    %36 = vector.shape_cast %35 : vector<1x1x4x16xf32> to vector<4x16xf32>
    %37 = vector.shape_cast %30 : vector<4x128xf32> to vector<4x1x128xf32>
    %38 = vector.shape_cast %1 : vector<16x128xf32> to vector<1x16x128xf32>
    %39 = vector.broadcast %37 : vector<4x1x128xf32> to vector<4x16x128xf32>
    %40 = vector.broadcast %38 : vector<1x16x128xf32> to vector<4x16x128xf32>
    %41 = arith.mulf %39, %40 : vector<4x16x128xf32>
    %42 = math.exp %41 : vector<4x16x128xf32>
    %43 = vector.shape_cast %33 : vector<4x16xf32> to vector<4x16x1xf32>
    %44 = arith.mulf %30, %11 : vector<4x128xf32>
    %45 = vector.shape_cast %44 : vector<4x128xf32> to vector<4x1x128xf32>
    %46 = vector.broadcast %43 : vector<4x16x1xf32> to vector<4x16x128xf32>
    %47 = vector.broadcast %45 : vector<4x1x128xf32> to vector<4x16x128xf32>
    %48 = arith.mulf %46, %47 : vector<4x16x128xf32>
    %49 = vector.extract_strided_slice %42 {offsets = [0, 0, 0], sizes = [1, 16, 128], strides = [1, 1, 1]} : vector<4x16x128xf32> to vector<1x16x128xf32>
    %50 = vector.shape_cast %49 : vector<1x16x128xf32> to vector<16x128xf32>
    %51 = arith.mulf %50, %6 : vector<16x128xf32>
    %52 = vector.extract_strided_slice %48 {offsets = [0, 0, 0], sizes = [1, 16, 128], strides = [1, 1, 1]} : vector<4x16x128xf32> to vector<1x16x128xf32>
    %53 = vector.shape_cast %52 : vector<1x16x128xf32> to vector<16x128xf32>
    %54 = arith.addf %51, %53 : vector<16x128xf32>
    %55 = vector.extract_strided_slice %42 {offsets = [1, 0, 0], sizes = [1, 16, 128], strides = [1, 1, 1]} : vector<4x16x128xf32> to vector<1x16x128xf32>
    %56 = vector.shape_cast %55 : vector<1x16x128xf32> to vector<16x128xf32>
    %57 = arith.mulf %56, %54 : vector<16x128xf32>
    %58 = vector.extract_strided_slice %48 {offsets = [1, 0, 0], sizes = [1, 16, 128], strides = [1, 1, 1]} : vector<4x16x128xf32> to vector<1x16x128xf32>
    %59 = vector.shape_cast %58 : vector<1x16x128xf32> to vector<16x128xf32>
    %60 = arith.addf %57, %59 : vector<16x128xf32>
    %61 = vector.extract_strided_slice %42 {offsets = [2, 0, 0], sizes = [1, 16, 128], strides = [1, 1, 1]} : vector<4x16x128xf32> to vector<1x16x128xf32>
    %62 = vector.shape_cast %61 : vector<1x16x128xf32> to vector<16x128xf32>
    %63 = arith.mulf %62, %60 : vector<16x128xf32>
    %64 = vector.extract_strided_slice %48 {offsets = [2, 0, 0], sizes = [1, 16, 128], strides = [1, 1, 1]} : vector<4x16x128xf32> to vector<1x16x128xf32>
    %65 = vector.shape_cast %64 : vector<1x16x128xf32> to vector<16x128xf32>
    %66 = arith.addf %63, %65 : vector<16x128xf32>
    %67 = vector.extract_strided_slice %42 {offsets = [3, 0, 0], sizes = [1, 16, 128], strides = [1, 1, 1]} : vector<4x16x128xf32> to vector<1x16x128xf32>
    %68 = vector.shape_cast %67 : vector<1x16x128xf32> to vector<16x128xf32>
    %69 = arith.mulf %68, %66 : vector<16x128xf32>
    %70 = vector.extract_strided_slice %48 {offsets = [3, 0, 0], sizes = [1, 16, 128], strides = [1, 1, 1]} : vector<4x16x128xf32> to vector<1x16x128xf32>
    %71 = vector.shape_cast %70 : vector<1x16x128xf32> to vector<16x128xf32>
    %72 = arith.addf %69, %71 : vector<16x128xf32>
    %73 = vector.shape_cast %54 : vector<16x128xf32> to vector<1x16x128xf32>
    %74 = vector.shape_cast %60 : vector<16x128xf32> to vector<1x16x128xf32>
    %75 = vector.shape_cast %66 : vector<16x128xf32> to vector<1x16x128xf32>
    %76 = vector.shape_cast %72 : vector<16x128xf32> to vector<1x16x128xf32>
    %77 = tpu.concatenate %73, %74, %75, %76 in 0 : vector<1x16x128xf32>, vector<1x16x128xf32>, vector<1x16x128xf32>, vector<1x16x128xf32> -> vector<4x16x128xf32>
    %78 = vector.shape_cast %36 : vector<4x16xf32> to vector<4x16x1xf32>
    %79 = vector.broadcast %78 : vector<4x16x1xf32> to vector<4x16x128xf32>
    %80 = arith.mulf %79, %77 : vector<4x16x128xf32>
    %cst_22 = arith.constant dense<0.000000e+00> : vector<4x128xf32>
    %81 = vector.multi_reduction <add>, %80, %cst_22 [1] : vector<4x16x128xf32> to vector<4x128xf32>
    %82 = vector.broadcast %3 : vector<1x128xf32> to vector<4x128xf32>
    %83 = arith.mulf %82, %11 : vector<4x128xf32>
    %84 = arith.addf %81, %83 : vector<4x128xf32>
    %c0_23 = arith.constant 0 : index
    %c0_24 = arith.constant 0 : index
    %85 = arith.index_cast %8 : i32 to index
    %c0_25 = arith.constant 0 : index
    %86 = vector.load %arg9[%c0_23, %c0_24, %85, %c0_25] : memref<1x1x4x128xf32, #tpu.memory_space<vmem>>, vector<1x1x4x128xf32>
    %87 = vector.shape_cast %86 : vector<1x1x4x128xf32> to vector<4x128xf32>
    %88 = vector.shape_cast %84 : vector<4x128xf32> to vector<1x1x4x128xf32>
    tpu.vector_store %arg9[%c0_23, %c0_24, %85, %c0_25], %88 {strides = array<i32>} : memref<1x1x4x128xf32, #tpu.memory_space<vmem>>, vector<1x1x4x128xf32>,
    %c1_i32 = arith.constant 1 : i32
    return
  }
  func.func @transform_0(%arg0: i32, %arg1: i32) -> (i32, i32, i32, i32) {
    %c0_i32 = arith.constant 0 : i32
    %c0_i32_0 = arith.constant 0 : i32
    %c0_i32_1 = arith.constant 0 : i32
    return %arg0, %arg1, %c0_i32, %c0_i32_0 : i32, i32, i32, i32
  }
  func.func @transform_1(%arg0: i32, %arg1: i32) -> (i32, i32, i32, i32) {
    %c0_i32 = arith.constant 0 : i32
    %c0_i32_0 = arith.constant 0 : i32
    %c0_i32_1 = arith.constant 0 : i32
    return %arg0, %arg1, %c0_i32, %c0_i32_0 : i32, i32, i32, i32
  }
  func.func @transform_2(%arg0: i32, %arg1: i32) -> (i32, i32, i32, i32) {
    %c0_i32 = arith.constant 0 : i32
    %c0_i32_0 = arith.constant 0 : i32
    %c0_i32_1 = arith.constant 0 : i32
    return %arg0, %arg1, %c0_i32, %c0_i32_0 : i32, i32, i32, i32
  }
  func.func @transform_3(%arg0: i32, %arg1: i32) -> (i32, i32, i32, i32) {
    %c0_i32 = arith.constant 0 : i32
    %c0_i32_0 = arith.constant 0 : i32
    %c0_i32_1 = arith.constant 0 : i32
    return %arg0, %arg1, %c0_i32, %c0_i32_0 : i32, i32, i32, i32
  }
  func.func @transform_4(%arg0: i32, %arg1: i32) -> (i32, i32, i32) {
    %c0_i32 = arith.constant 0 : i32
    %c0_i32_0 = arith.constant 0 : i32
    %c0_i32_1 = arith.constant 0 : i32
    return %arg1, %c0_i32, %c0_i32_0 : i32, i32, i32
  }
  func.func @transform_5(%arg0: i32, %arg1: i32) -> (i32, i32, i32) {
    %c0_i32 = arith.constant 0 : i32
    %c0_i32_0 = arith.constant 0 : i32
    %c0_i32_1 = arith.constant 0 : i32
    return %arg1, %c0_i32, %c0_i32_0 : i32, i32, i32
  }
  func.func @transform_6(%arg0: i32, %arg1: i32) -> (i32, i32, i32) {
    %c0_i32 = arith.constant 0 : i32
    %c0_i32_0 = arith.constant 0 : i32
    %c0_i32_1 = arith.constant 0 : i32
    return %arg1, %c0_i32, %c0_i32_0 : i32, i32, i32
  }
  func.func @transform_7(%arg0: i32, %arg1: i32) -> (i32, i32, i32, i32) {
    %c0_i32 = arith.constant 0 : i32
    %c0_i32_0 = arith.constant 0 : i32
    %c0_i32_1 = arith.constant 0 : i32
    return %arg0, %arg1, %c0_i32, %c0_i32_0 : i32, i32, i32, i32
  }
}

module attributes {stable_mosaic.version = 11 : i64} {
  func.func @_ln_gate_proj_kernel(%arg0: i32, %arg1: memref<8x128xf32, #tpu.memory_space<vmem>>, %arg2: memref<8x128xf32, #tpu.memory_space<vmem>>, %arg3: memref<1x128xf32, #tpu.memory_space<vmem>>, %arg4: memref<1x128xf32, #tpu.memory_space<vmem>>, %arg5: memref<128x128xbf16, #tpu.memory_space<vmem>>, %arg6: memref<8x128xf32, #tpu.memory_space<vmem>>) attributes {dimension_semantics = [#tpu.dimension_semantics<parallel>], iteration_bounds = array<i64: 1>, scalar_prefetch = 0 : i64, scratch_operands = 0 : i64, tpu.core_type = #tpu.core_type<tc>, window_params = [{transform_indices = @transform_0, window_bounds = array<i64: 8, 128>}, {transform_indices = @transform_1, window_bounds = array<i64: 8, 128>}, {pipeline_mode = #tpu.pipeline_mode<synchronous>, transform_indices = @transform_2, window_bounds = array<i64: 1, 128>}, {pipeline_mode = #tpu.pipeline_mode<synchronous>, transform_indices = @transform_3, window_bounds = array<i64: 1, 128>}, {pipeline_mode = #tpu.pipeline_mode<synchronous>, transform_indices = @transform_4, window_bounds = array<i64: 128, 128>}, {transform_indices = @transform_5, window_bounds = array<i64: 8, 128>}]} {
    %c0 = arith.constant 0 : index
    %c0_0 = arith.constant 0 : index
    %0 = vector.load %arg1[%c0, %c0_0] : memref<8x128xf32, #tpu.memory_space<vmem>>, vector<8x128xf32>
    %cst = arith.constant dense<0.000000e+00> : vector<8xf32>
    %1 = vector.multi_reduction <add>, %0, %cst [1] : vector<8x128xf32> to vector<8xf32>
    %2 = vector.shape_cast %1 : vector<8xf32> to vector<8x1xf32>
    %cst_1 = arith.constant 1.280000e+02 : f32
    %3 = vector.broadcast %cst_1 : f32 to vector<8x1xf32>
    %4 = arith.divf %2, %3 : vector<8x1xf32>
    %5 = vector.broadcast %4 : vector<8x1xf32> to vector<8x128xf32>
    %6 = arith.subf %0, %5 : vector<8x128xf32>
    %7 = arith.mulf %6, %6 : vector<8x128xf32>
    %cst_2 = arith.constant dense<0.000000e+00> : vector<8xf32>
    %8 = vector.multi_reduction <add>, %7, %cst_2 [1] : vector<8x128xf32> to vector<8xf32>
    %9 = vector.shape_cast %8 : vector<8xf32> to vector<8x1xf32>
    %cst_3 = arith.constant 1.280000e+02 : f32
    %10 = vector.broadcast %cst_3 : f32 to vector<8x1xf32>
    %11 = arith.divf %9, %10 : vector<8x1xf32>
    %cst_4 = arith.constant 9.99999974E-6 : f32
    %12 = vector.broadcast %cst_4 : f32 to vector<8x1xf32>
    %13 = arith.addf %11, %12 : vector<8x1xf32>
    %14 = math.rsqrt %13 : vector<8x1xf32>
    %15 = vector.broadcast %14 : vector<8x1xf32> to vector<8x128xf32>
    %16 = arith.mulf %6, %15 : vector<8x128xf32>
    %c0_5 = arith.constant 0 : index
    %c0_6 = arith.constant 0 : index
    %17 = vector.load %arg3[%c0_5, %c0_6] : memref<1x128xf32, #tpu.memory_space<vmem>>, vector<1x128xf32>
    %18 = vector.broadcast %17 : vector<1x128xf32> to vector<8x128xf32>
    %19 = arith.mulf %16, %18 : vector<8x128xf32>
    %c0_7 = arith.constant 0 : index
    %c0_8 = arith.constant 0 : index
    %20 = vector.load %arg4[%c0_7, %c0_8] : memref<1x128xf32, #tpu.memory_space<vmem>>, vector<1x128xf32>
    %21 = vector.broadcast %20 : vector<1x128xf32> to vector<8x128xf32>
    %22 = arith.addf %19, %21 : vector<8x128xf32>
    %c0_9 = arith.constant 0 : index
    %c0_10 = arith.constant 0 : index
    %23 = vector.load %arg2[%c0_9, %c0_10] : memref<8x128xf32, #tpu.memory_space<vmem>>, vector<8x128xf32>
    %24 = arith.negf %23 : vector<8x128xf32>
    %25 = math.exp %24 : vector<8x128xf32>
    %cst_11 = arith.constant 1.000000e+00 : f32
    %26 = vector.broadcast %cst_11 : f32 to vector<8x128xf32>
    %27 = arith.addf %26, %25 : vector<8x128xf32>
    %28 = arith.divf %26, %27 : vector<8x128xf32>
    %29 = arith.mulf %23, %28 : vector<8x128xf32>
    %30 = arith.mulf %22, %29 : vector<8x128xf32>
    %31 = arith.truncf %30 : vector<8x128xf32> to vector<8x128xbf16>
    %c0_12 = arith.constant 0 : index
    %c0_13 = arith.constant 0 : index
    %32 = vector.load %arg5[%c0_12, %c0_13] : memref<128x128xbf16, #tpu.memory_space<vmem>>, vector<128x128xbf16>
    %cst_14 = arith.constant dense<0.000000e+00> : vector<8x128xf32>
    %33 = tpu.matmul %31, %32, %cst_14 {dimension_numbers = #tpu.dot_dimension_numbers<[1], [0], [0], [1], [0, 0, 1, 1], [], []>} : vector<8x128xbf16>, vector<128x128xbf16>, vector<8x128xf32> -> vector<8x128xf32>
    %c0_15 = arith.constant 0 : index
    %c0_16 = arith.constant 0 : index
    %34 = vector.load %arg6[%c0_15, %c0_16] : memref<8x128xf32, #tpu.memory_space<vmem>>, vector<8x128xf32>
    tpu.vector_store %arg6[%c0_15, %c0_16], %33 {strides = array<i32>} : memref<8x128xf32, #tpu.memory_space<vmem>>, vector<8x128xf32>,
    return
  }
  func.func @transform_0(%arg0: i32) -> (i32, i32) {
    %c0_i32 = arith.constant 0 : i32
    %c0_i32_0 = arith.constant 0 : i32
    return %arg0, %c0_i32 : i32, i32
  }
  func.func @transform_1(%arg0: i32) -> (i32, i32) {
    %c0_i32 = arith.constant 0 : i32
    %c0_i32_0 = arith.constant 0 : i32
    return %arg0, %c0_i32 : i32, i32
  }
  func.func @transform_2(%arg0: i32) -> (i32, i32) {
    %c0_i32 = arith.constant 0 : i32
    %c0_i32_0 = arith.constant 0 : i32
    %c0_i32_1 = arith.constant 0 : i32
    return %c0_i32, %c0_i32_0 : i32, i32
  }
  func.func @transform_3(%arg0: i32) -> (i32, i32) {
    %c0_i32 = arith.constant 0 : i32
    %c0_i32_0 = arith.constant 0 : i32
    %c0_i32_1 = arith.constant 0 : i32
    return %c0_i32, %c0_i32_0 : i32, i32
  }
  func.func @transform_4(%arg0: i32) -> (i32, i32) {
    %c0_i32 = arith.constant 0 : i32
    %c0_i32_0 = arith.constant 0 : i32
    %c0_i32_1 = arith.constant 0 : i32
    return %c0_i32, %c0_i32_0 : i32, i32
  }
  func.func @transform_5(%arg0: i32) -> (i32, i32) {
    %c0_i32 = arith.constant 0 : i32
    %c0_i32_0 = arith.constant 0 : i32
    return %arg0, %c0_i32 : i32, i32
  }
}

module attributes {stable_mosaic.version = 11 : i64} {
  func.func @_vmrnn_gate_kernel(%arg0: i32, %arg1: memref<8x64xf32, #tpu.memory_space<vmem>>, %arg2: memref<8x64xf32, #tpu.memory_space<vmem>>, %arg3: memref<8x64xf32, #tpu.memory_space<vmem>>, %arg4: memref<8x64xf32, #tpu.memory_space<vmem>>) attributes {dimension_semantics = [#tpu.dimension_semantics<parallel>], iteration_bounds = array<i64: 1>, scalar_prefetch = 0 : i64, scratch_operands = 0 : i64, tpu.core_type = #tpu.core_type<tc>, window_params = [{transform_indices = @transform_0, window_bounds = array<i64: 8, 64>}, {transform_indices = @transform_1, window_bounds = array<i64: 8, 64>}, {transform_indices = @transform_2, window_bounds = array<i64: 8, 64>}, {transform_indices = @transform_3, window_bounds = array<i64: 8, 64>}]} {
    %c0 = arith.constant 0 : index
    %c0_0 = arith.constant 0 : index
    %0 = vector.load %arg1[%c0, %c0_0] : memref<8x64xf32, #tpu.memory_space<vmem>>, vector<8x64xf32>
    %c0_1 = arith.constant 0 : index
    %c0_2 = arith.constant 0 : index
    %1 = vector.load %arg2[%c0_1, %c0_2] : memref<8x64xf32, #tpu.memory_space<vmem>>, vector<8x64xf32>
    %2 = arith.negf %0 : vector<8x64xf32>
    %3 = math.exp %2 : vector<8x64xf32>
    %cst = arith.constant 1.000000e+00 : f32
    %4 = vector.broadcast %cst : f32 to vector<8x64xf32>
    %5 = arith.addf %4, %3 : vector<8x64xf32>
    %6 = arith.divf %4, %5 : vector<8x64xf32>
    %7 = math.tanh %0 : vector<8x64xf32>
    %8 = arith.addf %1, %7 : vector<8x64xf32>
    %9 = arith.mulf %6, %8 : vector<8x64xf32>
    %10 = math.tanh %9 : vector<8x64xf32>
    %11 = arith.mulf %6, %10 : vector<8x64xf32>
    %c0_3 = arith.constant 0 : index
    %c0_4 = arith.constant 0 : index
    %12 = vector.load %arg3[%c0_3, %c0_4] : memref<8x64xf32, #tpu.memory_space<vmem>>, vector<8x64xf32>
    tpu.vector_store %arg3[%c0_3, %c0_4], %11 {strides = array<i32>} : memref<8x64xf32, #tpu.memory_space<vmem>>, vector<8x64xf32>,
    %c0_5 = arith.constant 0 : index
    %c0_6 = arith.constant 0 : index
    %13 = vector.load %arg4[%c0_5, %c0_6] : memref<8x64xf32, #tpu.memory_space<vmem>>, vector<8x64xf32>
    tpu.vector_store %arg4[%c0_5, %c0_6], %9 {strides = array<i32>} : memref<8x64xf32, #tpu.memory_space<vmem>>, vector<8x64xf32>,
    return
  }
  func.func @transform_0(%arg0: i32) -> (i32, i32) {
    %c0_i32 = arith.constant 0 : i32
    %c0_i32_0 = arith.constant 0 : i32
    return %arg0, %c0_i32 : i32, i32
  }
  func.func @transform_1(%arg0: i32) -> (i32, i32) {
    %c0_i32 = arith.constant 0 : i32
    %c0_i32_0 = arith.constant 0 : i32
    return %arg0, %c0_i32 : i32, i32
  }
  func.func @transform_2(%arg0: i32) -> (i32, i32) {
    %c0_i32 = arith.constant 0 : i32
    %c0_i32_0 = arith.constant 0 : i32
    return %arg0, %c0_i32 : i32, i32
  }
  func.func @transform_3(%arg0: i32) -> (i32, i32) {
    %c0_i32 = arith.constant 0 : i32
    %c0_i32_0 = arith.constant 0 : i32
    return %arg0, %c0_i32 : i32, i32
  }
}

module attributes {stable_mosaic.version = 11 : i64} {
  func.func @_layernorm_kernel(%arg0: i32, %arg1: memref<8x256xf32, #tpu.memory_space<vmem>>, %arg2: memref<1x256xf32, #tpu.memory_space<vmem>>, %arg3: memref<1x256xf32, #tpu.memory_space<vmem>>, %arg4: memref<8x256xf32, #tpu.memory_space<vmem>>) attributes {dimension_semantics = [#tpu.dimension_semantics<parallel>], iteration_bounds = array<i64: 1>, scalar_prefetch = 0 : i64, scratch_operands = 0 : i64, tpu.core_type = #tpu.core_type<tc>, window_params = [{transform_indices = @transform_0, window_bounds = array<i64: 8, 256>}, {pipeline_mode = #tpu.pipeline_mode<synchronous>, transform_indices = @transform_1, window_bounds = array<i64: 1, 256>}, {pipeline_mode = #tpu.pipeline_mode<synchronous>, transform_indices = @transform_2, window_bounds = array<i64: 1, 256>}, {transform_indices = @transform_3, window_bounds = array<i64: 8, 256>}]} {
    %c0 = arith.constant 0 : index
    %c0_0 = arith.constant 0 : index
    %0 = vector.load %arg1[%c0, %c0_0] : memref<8x256xf32, #tpu.memory_space<vmem>>, vector<8x256xf32>
    %cst = arith.constant dense<0.000000e+00> : vector<8xf32>
    %1 = vector.multi_reduction <add>, %0, %cst [1] : vector<8x256xf32> to vector<8xf32>
    %2 = vector.shape_cast %1 : vector<8xf32> to vector<8x1xf32>
    %cst_1 = arith.constant 2.560000e+02 : f32
    %3 = vector.broadcast %cst_1 : f32 to vector<8x1xf32>
    %4 = arith.divf %2, %3 : vector<8x1xf32>
    %5 = vector.broadcast %4 : vector<8x1xf32> to vector<8x256xf32>
    %6 = arith.subf %0, %5 : vector<8x256xf32>
    %7 = arith.mulf %6, %6 : vector<8x256xf32>
    %cst_2 = arith.constant dense<0.000000e+00> : vector<8xf32>
    %8 = vector.multi_reduction <add>, %7, %cst_2 [1] : vector<8x256xf32> to vector<8xf32>
    %9 = vector.shape_cast %8 : vector<8xf32> to vector<8x1xf32>
    %cst_3 = arith.constant 2.560000e+02 : f32
    %10 = vector.broadcast %cst_3 : f32 to vector<8x1xf32>
    %11 = arith.divf %9, %10 : vector<8x1xf32>
    %cst_4 = arith.constant 9.99999974E-6 : f32
    %12 = vector.broadcast %cst_4 : f32 to vector<8x1xf32>
    %13 = arith.addf %11, %12 : vector<8x1xf32>
    %14 = math.rsqrt %13 : vector<8x1xf32>
    %15 = vector.broadcast %14 : vector<8x1xf32> to vector<8x256xf32>
    %16 = arith.mulf %6, %15 : vector<8x256xf32>
    %c0_5 = arith.constant 0 : index
    %c0_6 = arith.constant 0 : index
    %17 = vector.load %arg2[%c0_5, %c0_6] : memref<1x256xf32, #tpu.memory_space<vmem>>, vector<1x256xf32>
    %18 = vector.broadcast %17 : vector<1x256xf32> to vector<8x256xf32>
    %19 = arith.mulf %16, %18 : vector<8x256xf32>
    %c0_7 = arith.constant 0 : index
    %c0_8 = arith.constant 0 : index
    %20 = vector.load %arg3[%c0_7, %c0_8] : memref<1x256xf32, #tpu.memory_space<vmem>>, vector<1x256xf32>
    %21 = vector.broadcast %20 : vector<1x256xf32> to vector<8x256xf32>
    %22 = arith.addf %19, %21 : vector<8x256xf32>
    %c0_9 = arith.constant 0 : index
    %c0_10 = arith.constant 0 : index
    %23 = vector.load %arg4[%c0_9, %c0_10] : memref<8x256xf32, #tpu.memory_space<vmem>>, vector<8x256xf32>
    tpu.vector_store %arg4[%c0_9, %c0_10], %22 {strides = array<i32>} : memref<8x256xf32, #tpu.memory_space<vmem>>, vector<8x256xf32>,
    return
  }
  func.func @transform_0(%arg0: i32) -> (i32, i32) {
    %c0_i32 = arith.constant 0 : i32
    %c0_i32_0 = arith.constant 0 : i32
    return %arg0, %c0_i32 : i32, i32
  }
  func.func @transform_1(%arg0: i32) -> (i32, i32) {
    %c0_i32 = arith.constant 0 : i32
    %c0_i32_0 = arith.constant 0 : i32
    %c0_i32_1 = arith.constant 0 : i32
    return %c0_i32, %c0_i32_0 : i32, i32
  }
  func.func @transform_2(%arg0: i32) -> (i32, i32) {
    %c0_i32 = arith.constant 0 : i32
    %c0_i32_0 = arith.constant 0 : i32
    %c0_i32_1 = arith.constant 0 : i32
    return %c0_i32, %c0_i32_0 : i32, i32
  }
  func.func @transform_3(%arg0: i32) -> (i32, i32) {
    %c0_i32 = arith.constant 0 : i32
    %c0_i32_0 = arith.constant 0 : i32
    return %arg0, %c0_i32 : i32, i32
  }
}

module attributes {stable_mosaic.version = 11 : i64} {
  func.func @_linear_kernel(%arg0: i32, %arg1: i32, %arg2: i32, %arg3: memref<8x256xbf16, #tpu.memory_space<vmem>>, %arg4: memref<256x128xbf16, #tpu.memory_space<vmem>>, %arg5: memref<1x128xf32, #tpu.memory_space<vmem>>, %arg6: memref<8x128xf32, #tpu.memory_space<vmem>>, %arg7: memref<8x128xf32, #tpu.memory_space<vmem>>) attributes {dimension_semantics = [#tpu.dimension_semantics<parallel>, #tpu.dimension_semantics<parallel>, #tpu.dimension_semantics<arbitrary>], iteration_bounds = array<i64: 1, 1, 1>, scalar_prefetch = 0 : i64, scratch_operands = 1 : i64, tpu.core_type = #tpu.core_type<tc>, window_params = [{transform_indices = @transform_0, window_bounds = array<i64: 8, 256>}, {transform_indices = @transform_1, window_bounds = array<i64: 256, 128>}, {transform_indices = @transform_2, window_bounds = array<i64: 1, 128>}, {transform_indices = @transform_3, window_bounds = array<i64: 8, 128>}]} {
    %c0_i32 = arith.constant 0 : i32
    %0 = arith.cmpi eq, %arg2, %c0_i32 : i32
    %1 = arith.extui %0 : i1 to i32
    %c0_i32_0 = arith.constant 0 : i32
    %2 = arith.cmpi ne, %1, %c0_i32_0 : i32
    scf.if %2 {
      %cst_10 = arith.constant 0.000000e+00 : f32
      %12 = vector.broadcast %cst_10 : f32 to vector<8x128xf32>
      %c0_11 = arith.constant 0 : index
      %c0_12 = arith.constant 0 : index
      %13 = vector.load %arg7[%c0_11, %c0_12] : memref<8x128xf32, #tpu.memory_space<vmem>>, vector<8x128xf32>
      tpu.vector_store %arg7[%c0_11, %c0_12], %12 {strides = array<i32>} : memref<8x128xf32, #tpu.memory_space<vmem>>, vector<8x128xf32>,
    } else {
    }
    %c0 = arith.constant 0 : index
    %c0_1 = arith.constant 0 : index
    %3 = vector.load %arg7[%c0, %c0_1] : memref<8x128xf32, #tpu.memory_space<vmem>>, vector<8x128xf32>
    %c0_2 = arith.constant 0 : index
    %c0_3 = arith.constant 0 : index
    %4 = vector.load %arg3[%c0_2, %c0_3] : memref<8x256xbf16, #tpu.memory_space<vmem>>, vector<8x256xbf16>
    %c0_4 = arith.constant 0 : index
    %c0_5 = arith.constant 0 : index
    %5 = vector.load %arg4[%c0_4, %c0_5] : memref<256x128xbf16, #tpu.memory_space<vmem>>, vector<256x128xbf16>
    %cst = arith.constant dense<0.000000e+00> : vector<8x128xf32>
    %6 = tpu.matmul %4, %5, %cst {dimension_numbers = #tpu.dot_dimension_numbers<[1], [0], [0], [1], [0, 0, 1, 1], [], []>} : vector<8x256xbf16>, vector<256x128xbf16>, vector<8x128xf32> -> vector<8x128xf32>
    %7 = arith.addf %3, %6 : vector<8x128xf32>
    %c0_6 = arith.constant 0 : index
    %c0_7 = arith.constant 0 : index
    %8 = vector.load %arg7[%c0_6, %c0_7] : memref<8x128xf32, #tpu.memory_space<vmem>>, vector<8x128xf32>
    tpu.vector_store %arg7[%c0_6, %c0_7], %7 {strides = array<i32>} : memref<8x128xf32, #tpu.memory_space<vmem>>, vector<8x128xf32>,
    %c0_i32_8 = arith.constant 0 : i32
    %9 = arith.cmpi eq, %arg2, %c0_i32_8 : i32
    %10 = arith.extui %9 : i1 to i32
    %c0_i32_9 = arith.constant 0 : i32
    %11 = arith.cmpi ne, %10, %c0_i32_9 : i32
    scf.if %11 {
      %c0_10 = arith.constant 0 : index
      %c0_11 = arith.constant 0 : index
      %12 = vector.load %arg7[%c0_10, %c0_11] : memref<8x128xf32, #tpu.memory_space<vmem>>, vector<8x128xf32>
      %c0_12 = arith.constant 0 : index
      %c0_13 = arith.constant 0 : index
      %13 = vector.load %arg5[%c0_12, %c0_13] : memref<1x128xf32, #tpu.memory_space<vmem>>, vector<1x128xf32>
      %14 = vector.broadcast %13 : vector<1x128xf32> to vector<8x128xf32>
      %15 = arith.addf %12, %14 : vector<8x128xf32>
      %c0_14 = arith.constant 0 : index
      %c0_15 = arith.constant 0 : index
      %16 = vector.load %arg6[%c0_14, %c0_15] : memref<8x128xf32, #tpu.memory_space<vmem>>, vector<8x128xf32>
      tpu.vector_store %arg6[%c0_14, %c0_15], %15 {strides = array<i32>} : memref<8x128xf32, #tpu.memory_space<vmem>>, vector<8x128xf32>,
    } else {
    }
    return
  }
  func.func @transform_0(%arg0: i32, %arg1: i32, %arg2: i32) -> (i32, i32) {
    %c0_i32 = arith.constant 0 : i32
    return %arg0, %arg2 : i32, i32
  }
  func.func @transform_1(%arg0: i32, %arg1: i32, %arg2: i32) -> (i32, i32) {
    %c0_i32 = arith.constant 0 : i32
    return %arg2, %arg1 : i32, i32
  }
  func.func @transform_2(%arg0: i32, %arg1: i32, %arg2: i32) -> (i32, i32) {
    %c0_i32 = arith.constant 0 : i32
    %c0_i32_0 = arith.constant 0 : i32
    return %c0_i32, %arg1 : i32, i32
  }
  func.func @transform_3(%arg0: i32, %arg1: i32, %arg2: i32) -> (i32, i32) {
    %c0_i32 = arith.constant 0 : i32
    return %arg0, %arg1 : i32, i32
  }
}

module attributes {stable_mosaic.version = 11 : i64} {
  func.func @_linear_kernel(%arg0: i32, %arg1: i32, %arg2: i32, %arg3: memref<8x128xbf16, #tpu.memory_space<vmem>>, %arg4: memref<128x256xbf16, #tpu.memory_space<vmem>>, %arg5: memref<1x256xf32, #tpu.memory_space<vmem>>, %arg6: memref<8x256xf32, #tpu.memory_space<vmem>>, %arg7: memref<8x256xf32, #tpu.memory_space<vmem>>) attributes {dimension_semantics = [#tpu.dimension_semantics<parallel>, #tpu.dimension_semantics<parallel>, #tpu.dimension_semantics<arbitrary>], iteration_bounds = array<i64: 1, 2, 1>, scalar_prefetch = 0 : i64, scratch_operands = 1 : i64, tpu.core_type = #tpu.core_type<tc>, window_params = [{transform_indices = @transform_0, window_bounds = array<i64: 8, 128>}, {transform_indices = @transform_1, window_bounds = array<i64: 128, 256>}, {transform_indices = @transform_2, window_bounds = array<i64: 1, 256>}, {transform_indices = @transform_3, window_bounds = array<i64: 8, 256>}]} {
    %c0_i32 = arith.constant 0 : i32
    %0 = arith.cmpi eq, %arg2, %c0_i32 : i32
    %1 = arith.extui %0 : i1 to i32
    %c0_i32_0 = arith.constant 0 : i32
    %2 = arith.cmpi ne, %1, %c0_i32_0 : i32
    scf.if %2 {
      %cst_10 = arith.constant 0.000000e+00 : f32
      %12 = vector.broadcast %cst_10 : f32 to vector<8x256xf32>
      %c0_11 = arith.constant 0 : index
      %c0_12 = arith.constant 0 : index
      %13 = vector.load %arg7[%c0_11, %c0_12] : memref<8x256xf32, #tpu.memory_space<vmem>>, vector<8x256xf32>
      tpu.vector_store %arg7[%c0_11, %c0_12], %12 {strides = array<i32>} : memref<8x256xf32, #tpu.memory_space<vmem>>, vector<8x256xf32>,
    } else {
    }
    %c0 = arith.constant 0 : index
    %c0_1 = arith.constant 0 : index
    %3 = vector.load %arg7[%c0, %c0_1] : memref<8x256xf32, #tpu.memory_space<vmem>>, vector<8x256xf32>
    %c0_2 = arith.constant 0 : index
    %c0_3 = arith.constant 0 : index
    %4 = vector.load %arg3[%c0_2, %c0_3] : memref<8x128xbf16, #tpu.memory_space<vmem>>, vector<8x128xbf16>
    %c0_4 = arith.constant 0 : index
    %c0_5 = arith.constant 0 : index
    %5 = vector.load %arg4[%c0_4, %c0_5] : memref<128x256xbf16, #tpu.memory_space<vmem>>, vector<128x256xbf16>
    %cst = arith.constant dense<0.000000e+00> : vector<8x256xf32>
    %6 = tpu.matmul %4, %5, %cst {dimension_numbers = #tpu.dot_dimension_numbers<[1], [0], [0], [1], [0, 0, 1, 1], [], []>} : vector<8x128xbf16>, vector<128x256xbf16>, vector<8x256xf32> -> vector<8x256xf32>
    %7 = arith.addf %3, %6 : vector<8x256xf32>
    %c0_6 = arith.constant 0 : index
    %c0_7 = arith.constant 0 : index
    %8 = vector.load %arg7[%c0_6, %c0_7] : memref<8x256xf32, #tpu.memory_space<vmem>>, vector<8x256xf32>
    tpu.vector_store %arg7[%c0_6, %c0_7], %7 {strides = array<i32>} : memref<8x256xf32, #tpu.memory_space<vmem>>, vector<8x256xf32>,
    %c0_i32_8 = arith.constant 0 : i32
    %9 = arith.cmpi eq, %arg2, %c0_i32_8 : i32
    %10 = arith.extui %9 : i1 to i32
    %c0_i32_9 = arith.constant 0 : i32
    %11 = arith.cmpi ne, %10, %c0_i32_9 : i32
    scf.if %11 {
      %c0_10 = arith.constant 0 : index
      %c0_11 = arith.constant 0 : index
      %12 = vector.load %arg7[%c0_10, %c0_11] : memref<8x256xf32, #tpu.memory_space<vmem>>, vector<8x256xf32>
      %c0_12 = arith.constant 0 : index
      %c0_13 = arith.constant 0 : index
      %13 = vector.load %arg5[%c0_12, %c0_13] : memref<1x256xf32, #tpu.memory_space<vmem>>, vector<1x256xf32>
      %14 = vector.broadcast %13 : vector<1x256xf32> to vector<8x256xf32>
      %15 = arith.addf %12, %14 : vector<8x256xf32>
      %c0_14 = arith.constant 0 : index
      %c0_15 = arith.constant 0 : index
      %16 = vector.load %arg6[%c0_14, %c0_15] : memref<8x256xf32, #tpu.memory_space<vmem>>, vector<8x256xf32>
      tpu.vector_store %arg6[%c0_14, %c0_15], %15 {strides = array<i32>} : memref<8x256xf32, #tpu.memory_space<vmem>>, vector<8x256xf32>,
    } else {
    }
    return
  }
  func.func @transform_0(%arg0: i32, %arg1: i32, %arg2: i32) -> (i32, i32) {
    %c0_i32 = arith.constant 0 : i32
    return %arg0, %arg2 : i32, i32
  }
  func.func @transform_1(%arg0: i32, %arg1: i32, %arg2: i32) -> (i32, i32) {
    %c0_i32 = arith.constant 0 : i32
    return %arg2, %arg1 : i32, i32
  }
  func.func @transform_2(%arg0: i32, %arg1: i32, %arg2: i32) -> (i32, i32) {
    %c0_i32 = arith.constant 0 : i32
    %c0_i32_0 = arith.constant 0 : i32
    return %c0_i32, %arg1 : i32, i32
  }
  func.func @transform_3(%arg0: i32, %arg1: i32, %arg2: i32) -> (i32, i32) {
    %c0_i32 = arith.constant 0 : i32
    return %arg0, %arg1 : i32, i32
  }
}

module attributes {stable_mosaic.version = 11 : i64} {
  func.func @_dwconv3x3_silu_kernel(%arg0: i32, %arg1: memref<1x3x3x256xf32, #tpu.memory_space<vmem>>, %arg2: memref<9x256xf32, #tpu.memory_space<vmem>>, %arg3: memref<1x256xf32, #tpu.memory_space<vmem>>, %arg4: memref<1x1x1x256xf32, #tpu.memory_space<vmem>>) attributes {dimension_semantics = [#tpu.dimension_semantics<parallel>], iteration_bounds = array<i64: 2>, scalar_prefetch = 0 : i64, scratch_operands = 0 : i64, tpu.core_type = #tpu.core_type<tc>, window_params = [{transform_indices = @transform_0, window_bounds = array<i64: 1, 3, 3, 256>}, {pipeline_mode = #tpu.pipeline_mode<synchronous>, transform_indices = @transform_1, window_bounds = array<i64: 9, 256>}, {pipeline_mode = #tpu.pipeline_mode<synchronous>, transform_indices = @transform_2, window_bounds = array<i64: 1, 256>}, {transform_indices = @transform_3, window_bounds = array<i64: 1, 1, 1, 256>}]} {
    %cst = arith.constant 0.000000e+00 : f32
    %0 = vector.broadcast %cst : f32 to vector<1x1x256xf32>
    %c0 = arith.constant 0 : index
    %c0_0 = arith.constant 0 : index
    %1 = vector.load %arg3[%c0, %c0_0] : memref<1x256xf32, #tpu.memory_space<vmem>>, vector<1x256xf32>
    %2 = vector.shape_cast %1 : vector<1x256xf32> to vector<1x1x256xf32>
    %3 = arith.addf %0, %2 : vector<1x1x256xf32>
    %c0_1 = arith.constant 0 : index
    %c0_2 = arith.constant 0 : index
    %c0_3 = arith.constant 0 : index
    %c0_4 = arith.constant 0 : index
    %4 = vector.load %arg1[%c0_1, %c0_2, %c0_3, %c0_4] : memref<1x3x3x256xf32, #tpu.memory_space<vmem>>, vector<1x1x1x256xf32>
    %5 = vector.shape_cast %4 : vector<1x1x1x256xf32> to vector<1x1x256xf32>
    %c0_5 = arith.constant 0 : index
    %c0_6 = arith.constant 0 : index
    %6 = vector.load %arg2[%c0_5, %c0_6] : memref<9x256xf32, #tpu.memory_space<vmem>>, vector<1x256xf32>
    %7 = vector.shape_cast %6 : vector<1x256xf32> to vector<1x1x256xf32>
    %8 = arith.mulf %5, %7 : vector<1x1x256xf32>
    %9 = arith.addf %3, %8 : vector<1x1x256xf32>
    %c0_7 = arith.constant 0 : index
    %c0_8 = arith.constant 0 : index
    %c1 = arith.constant 1 : index
    %c0_9 = arith.constant 0 : index
    %10 = vector.load %arg1[%c0_7, %c0_8, %c1, %c0_9] : memref<1x3x3x256xf32, #tpu.memory_space<vmem>>, vector<1x1x1x256xf32>
    %11 = vector.shape_cast %10 : vector<1x1x1x256xf32> to vector<1x1x256xf32>
    %c1_10 = arith.constant 1 : index
    %c0_11 = arith.constant 0 : index
    %12 = vector.load %arg2[%c1_10, %c0_11] : memref<9x256xf32, #tpu.memory_space<vmem>>, vector<1x256xf32>
    %13 = vector.shape_cast %12 : vector<1x256xf32> to vector<1x1x256xf32>
    %14 = arith.mulf %11, %13 : vector<1x1x256xf32>
    %15 = arith.addf %9, %14 : vector<1x1x256xf32>
    %c0_12 = arith.constant 0 : index
    %c0_13 = arith.constant 0 : index
    %c2 = arith.constant 2 : index
    %c0_14 = arith.constant 0 : index
    %16 = vector.load %arg1[%c0_12, %c0_13, %c2, %c0_14] : memref<1x3x3x256xf32, #tpu.memory_space<vmem>>, vector<1x1x1x256xf32>
    %17 = vector.shape_cast %16 : vector<1x1x1x256xf32> to vector<1x1x256xf32>
    %c2_15 = arith.constant 2 : index
    %c0_16 = arith.constant 0 : index
    %18 = vector.load %arg2[%c2_15, %c0_16] : memref<9x256xf32, #tpu.memory_space<vmem>>, vector<1x256xf32>
    %19 = vector.shape_cast %18 : vector<1x256xf32> to vector<1x1x256xf32>
    %20 = arith.mulf %17, %19 : vector<1x1x256xf32>
    %21 = arith.addf %15, %20 : vector<1x1x256xf32>
    %c0_17 = arith.constant 0 : index
    %c1_18 = arith.constant 1 : index
    %c0_19 = arith.constant 0 : index
    %c0_20 = arith.constant 0 : index
    %22 = vector.load %arg1[%c0_17, %c1_18, %c0_19, %c0_20] : memref<1x3x3x256xf32, #tpu.memory_space<vmem>>, vector<1x1x1x256xf32>
    %23 = vector.shape_cast %22 : vector<1x1x1x256xf32> to vector<1x1x256xf32>
    %c3 = arith.constant 3 : index
    %c0_21 = arith.constant 0 : index
    %24 = vector.load %arg2[%c3, %c0_21] : memref<9x256xf32, #tpu.memory_space<vmem>>, vector<1x256xf32>
    %25 = vector.shape_cast %24 : vector<1x256xf32> to vector<1x1x256xf32>
    %26 = arith.mulf %23, %25 : vector<1x1x256xf32>
    %27 = arith.addf %21, %26 : vector<1x1x256xf32>
    %c0_22 = arith.constant 0 : index
    %c1_23 = arith.constant 1 : index
    %c1_24 = arith.constant 1 : index
    %c0_25 = arith.constant 0 : index
    %28 = vector.load %arg1[%c0_22, %c1_23, %c1_24, %c0_25] : memref<1x3x3x256xf32, #tpu.memory_space<vmem>>, vector<1x1x1x256xf32>
    %29 = vector.shape_cast %28 : vector<1x1x1x256xf32> to vector<1x1x256xf32>
    %c4 = arith.constant 4 : index
    %c0_26 = arith.constant 0 : index
    %30 = vector.load %arg2[%c4, %c0_26] : memref<9x256xf32, #tpu.memory_space<vmem>>, vector<1x256xf32>
    %31 = vector.shape_cast %30 : vector<1x256xf32> to vector<1x1x256xf32>
    %32 = arith.mulf %29, %31 : vector<1x1x256xf32>
    %33 = arith.addf %27, %32 : vector<1x1x256xf32>
    %c0_27 = arith.constant 0 : index
    %c1_28 = arith.constant 1 : index
    %c2_29 = arith.constant 2 : index
    %c0_30 = arith.constant 0 : index
    %34 = vector.load %arg1[%c0_27, %c1_28, %c2_29, %c0_30] : memref<1x3x3x256xf32, #tpu.memory_space<vmem>>, vector<1x1x1x256xf32>
    %35 = vector.shape_cast %34 : vector<1x1x1x256xf32> to vector<1x1x256xf32>
    %c5 = arith.constant 5 : index
    %c0_31 = arith.constant 0 : index
    %36 = vector.load %arg2[%c5, %c0_31] : memref<9x256xf32, #tpu.memory_space<vmem>>, vector<1x256xf32>
    %37 = vector.shape_cast %36 : vector<1x256xf32> to vector<1x1x256xf32>
    %38 = arith.mulf %35, %37 : vector<1x1x256xf32>
    %39 = arith.addf %33, %38 : vector<1x1x256xf32>
    %c0_32 = arith.constant 0 : index
    %c2_33 = arith.constant 2 : index
    %c0_34 = arith.constant 0 : index
    %c0_35 = arith.constant 0 : index
    %40 = vector.load %arg1[%c0_32, %c2_33, %c0_34, %c0_35] : memref<1x3x3x256xf32, #tpu.memory_space<vmem>>, vector<1x1x1x256xf32>
    %41 = vector.shape_cast %40 : vector<1x1x1x256xf32> to vector<1x1x256xf32>
    %c6 = arith.constant 6 : index
    %c0_36 = arith.constant 0 : index
    %42 = vector.load %arg2[%c6, %c0_36] : memref<9x256xf32, #tpu.memory_space<vmem>>, vector<1x256xf32>
    %43 = vector.shape_cast %42 : vector<1x256xf32> to vector<1x1x256xf32>
    %44 = arith.mulf %41, %43 : vector<1x1x256xf32>
    %45 = arith.addf %39, %44 : vector<1x1x256xf32>
    %c0_37 = arith.constant 0 : index
    %c2_38 = arith.constant 2 : index
    %c1_39 = arith.constant 1 : index
    %c0_40 = arith.constant 0 : index
    %46 = vector.load %arg1[%c0_37, %c2_38, %c1_39, %c0_40] : memref<1x3x3x256xf32, #tpu.memory_space<vmem>>, vector<1x1x1x256xf32>
    %47 = vector.shape_cast %46 : vector<1x1x1x256xf32> to vector<1x1x256xf32>
    %c7 = arith.constant 7 : index
    %c0_41 = arith.constant 0 : index
    %48 = vector.load %arg2[%c7, %c0_41] : memref<9x256xf32, #tpu.memory_space<vmem>>, vector<1x256xf32>
    %49 = vector.shape_cast %48 : vector<1x256xf32> to vector<1x1x256xf32>
    %50 = arith.mulf %47, %49 : vector<1x1x256xf32>
    %51 = arith.addf %45, %50 : vector<1x1x256xf32>
    %c0_42 = arith.constant 0 : index
    %c2_43 = arith.constant 2 : index
    %c2_44 = arith.constant 2 : index
    %c0_45 = arith.constant 0 : index
    %52 = vector.load %arg1[%c0_42, %c2_43, %c2_44, %c0_45] : memref<1x3x3x256xf32, #tpu.memory_space<vmem>>, vector<1x1x1x256xf32>
    %53 = vector.shape_cast %52 : vector<1x1x1x256xf32> to vector<1x1x256xf32>
    %c8 = arith.constant 8 : index
    %c0_46 = arith.constant 0 : index
    %54 = vector.load %arg2[%c8, %c0_46] : memref<9x256xf32, #tpu.memory_space<vmem>>, vector<1x256xf32>
    %55 = vector.shape_cast %54 : vector<1x256xf32> to vector<1x1x256xf32>
    %56 = arith.mulf %53, %55 : vector<1x1x256xf32>
    %57 = arith.addf %51, %56 : vector<1x1x256xf32>
    %58 = arith.negf %57 : vector<1x1x256xf32>
    %59 = math.exp %58 : vector<1x1x256xf32>
    %cst_47 = arith.constant 1.000000e+00 : f32
    %60 = vector.broadcast %cst_47 : f32 to vector<1x1x256xf32>
    %61 = arith.addf %60, %59 : vector<1x1x256xf32>
    %62 = arith.divf %60, %61 : vector<1x1x256xf32>
    %63 = arith.mulf %57, %62 : vector<1x1x256xf32>
    %c0_48 = arith.constant 0 : index
    %c0_49 = arith.constant 0 : index
    %c0_50 = arith.constant 0 : index
    %c0_51 = arith.constant 0 : index
    %64 = vector.load %arg4[%c0_48, %c0_49, %c0_50, %c0_51] : memref<1x1x1x256xf32, #tpu.memory_space<vmem>>, vector<1x1x1x256xf32>
    %65 = vector.shape_cast %64 : vector<1x1x1x256xf32> to vector<1x1x256xf32>
    %66 = vector.shape_cast %63 : vector<1x1x256xf32> to vector<1x1x1x256xf32>
    tpu.vector_store %arg4[%c0_48, %c0_49, %c0_50, %c0_51], %66 {strides = array<i32>} : memref<1x1x1x256xf32, #tpu.memory_space<vmem>>, vector<1x1x1x256xf32>,
    return
  }
  func.func @transform_0(%arg0: i32) -> (i32, i32, i32, i32) {
    %c0_i32 = arith.constant 0 : i32
    %c0_i32_0 = arith.constant 0 : i32
    %c0_i32_1 = arith.constant 0 : i32
    %c0_i32_2 = arith.constant 0 : i32
    return %arg0, %c0_i32, %c0_i32_0, %c0_i32_1 : i32, i32, i32, i32
  }
  func.func @transform_1(%arg0: i32) -> (i32, i32) {
    %c0_i32 = arith.constant 0 : i32
    %c0_i32_0 = arith.constant 0 : i32
    %c0_i32_1 = arith.constant 0 : i32
    return %c0_i32, %c0_i32_0 : i32, i32
  }
  func.func @transform_2(%arg0: i32) -> (i32, i32) {
    %c0_i32 = arith.constant 0 : i32
    %c0_i32_0 = arith.constant 0 : i32
    %c0_i32_1 = arith.constant 0 : i32
    return %c0_i32, %c0_i32_0 : i32, i32
  }
  func.func @transform_3(%arg0: i32) -> (i32, i32, i32, i32) {
    %c0_i32 = arith.constant 0 : i32
    %c0_i32_0 = arith.constant 0 : i32
    %c0_i32_1 = arith.constant 0 : i32
    %c0_i32_2 = arith.constant 0 : i32
    return %arg0, %c0_i32, %c0_i32_0, %c0_i32_1 : i32, i32, i32, i32
  }
}

module attributes {stable_mosaic.version = 11 : i64} {
  func.func @_xproj_dt_kernel(%arg0: i32, %arg1: memref<1x2x256xbf16, #tpu.memory_space<vmem>>, %arg2: memref<1x256x40xbf16, #tpu.memory_space<vmem>>, %arg3: memref<1x8x256xbf16, #tpu.memory_space<vmem>>, %arg4: memref<1x2x256xf32, #tpu.memory_space<vmem>>, %arg5: memref<1x2x16xf32, #tpu.memory_space<vmem>>, %arg6: memref<1x2x16xf32, #tpu.memory_space<vmem>>) attributes {dimension_semantics = [#tpu.dimension_semantics<parallel>], iteration_bounds = array<i64: 4>, scalar_prefetch = 0 : i64, scratch_operands = 0 : i64, tpu.core_type = #tpu.core_type<tc>, window_params = [{transform_indices = @transform_0, window_bounds = array<i64: 1, 2, 256>}, {transform_indices = @transform_1, window_bounds = array<i64: 1, 256, 40>}, {transform_indices = @transform_2, window_bounds = array<i64: 1, 8, 256>}, {transform_indices = @transform_3, window_bounds = array<i64: 1, 2, 256>}, {transform_indices = @transform_4, window_bounds = array<i64: 1, 2, 16>}, {transform_indices = @transform_5, window_bounds = array<i64: 1, 2, 16>}]} {
    %c0 = arith.constant 0 : index
    %c0_0 = arith.constant 0 : index
    %c0_1 = arith.constant 0 : index
    %0 = vector.load %arg1[%c0, %c0_0, %c0_1] : memref<1x2x256xbf16, #tpu.memory_space<vmem>>, vector<1x2x256xbf16>
    %1 = vector.shape_cast %0 : vector<1x2x256xbf16> to vector<2x256xbf16>
    %c0_2 = arith.constant 0 : index
    %c0_3 = arith.constant 0 : index
    %c0_4 = arith.constant 0 : index
    %2 = vector.load %arg2[%c0_2, %c0_3, %c0_4] : memref<1x256x40xbf16, #tpu.memory_space<vmem>>, vector<1x256x40xbf16>
    %3 = vector.shape_cast %2 : vector<1x256x40xbf16> to vector<256x40xbf16>
    %cst = arith.constant dense<0.000000e+00> : vector<2x40xf32>
    %4 = tpu.matmul %1, %3, %cst {dimension_numbers = #tpu.dot_dimension_numbers<[1], [0], [0], [1], [0, 0, 1, 1], [], []>} : vector<2x256xbf16>, vector<256x40xbf16>, vector<2x40xf32> -> vector<2x40xf32>
    %5 = vector.extract_strided_slice %4 {offsets = [0, 0], sizes = [2, 8], strides = [1, 1]} : vector<2x40xf32> to vector<2x8xf32>
    %c0_5 = arith.constant 0 : index
    %c0_6 = arith.constant 0 : index
    %c0_7 = arith.constant 0 : index
    %6 = vector.load %arg3[%c0_5, %c0_6, %c0_7] : memref<1x8x256xbf16, #tpu.memory_space<vmem>>, vector<1x8x256xbf16>
    %7 = vector.shape_cast %6 : vector<1x8x256xbf16> to vector<8x256xbf16>
    %8 = arith.extf %7 : vector<8x256xbf16> to vector<8x256xf32>
    %cst_8 = arith.constant dense<0.000000e+00> : vector<2x256xf32>
    %9 = tpu.matmul %5, %8, %cst_8 {dimension_numbers = #tpu.dot_dimension_numbers<[1], [0], [0], [1], [0, 0, 1, 1], [], []>} : vector<2x8xf32>, vector<8x256xf32>, vector<2x256xf32> -> vector<2x256xf32>
    %c0_9 = arith.constant 0 : index
    %c0_10 = arith.constant 0 : index
    %c0_11 = arith.constant 0 : index
    %10 = vector.load %arg4[%c0_9, %c0_10, %c0_11] : memref<1x2x256xf32, #tpu.memory_space<vmem>>, vector<1x2x256xf32>
    %11 = vector.shape_cast %10 : vector<1x2x256xf32> to vector<2x256xf32>
    %12 = vector.shape_cast %9 : vector<2x256xf32> to vector<1x2x256xf32>
    tpu.vector_store %arg4[%c0_9, %c0_10, %c0_11], %12 {strides = array<i32>} : memref<1x2x256xf32, #tpu.memory_space<vmem>>, vector<1x2x256xf32>,
    %13 = vector.extract_strided_slice %4 {offsets = [0, 8], sizes = [2, 16], strides = [1, 1]} : vector<2x40xf32> to vector<2x16xf32>
    %c0_12 = arith.constant 0 : index
    %c0_13 = arith.constant 0 : index
    %c0_14 = arith.constant 0 : index
    %14 = vector.load %arg5[%c0_12, %c0_13, %c0_14] : memref<1x2x16xf32, #tpu.memory_space<vmem>>, vector<1x2x16xf32>
    %15 = vector.shape_cast %14 : vector<1x2x16xf32> to vector<2x16xf32>
    %16 = vector.shape_cast %13 : vector<2x16xf32> to vector<1x2x16xf32>
    tpu.vector_store %arg5[%c0_12, %c0_13, %c0_14], %16 {strides = array<i32>} : memref<1x2x16xf32, #tpu.memory_space<vmem>>, vector<1x2x16xf32>,
    %17 = vector.extract_strided_slice %4 {offsets = [0, 24], sizes = [2, 16], strides = [1, 1]} : vector<2x40xf32> to vector<2x16xf32>
    %c0_15 = arith.constant 0 : index
    %c0_16 = arith.constant 0 : index
    %c0_17 = arith.constant 0 : index
    %18 = vector.load %arg6[%c0_15, %c0_16, %c0_17] : memref<1x2x16xf32, #tpu.memory_space<vmem>>, vector<1x2x16xf32>
    %19 = vector.shape_cast %18 : vector<1x2x16xf32> to vector<2x16xf32>
    %20 = vector.shape_cast %17 : vector<2x16xf32> to vector<1x2x16xf32>
    tpu.vector_store %arg6[%c0_15, %c0_16, %c0_17], %20 {strides = array<i32>} : memref<1x2x16xf32, #tpu.memory_space<vmem>>, vector<1x2x16xf32>,
    return
  }
  func.func @transform_0(%arg0: i32) -> (i32, i32, i32) {
    %c0_i32 = arith.constant 0 : i32
    %c0_i32_0 = arith.constant 0 : i32
    %c0_i32_1 = arith.constant 0 : i32
    return %arg0, %c0_i32, %c0_i32_0 : i32, i32, i32
  }
  func.func @transform_1(%arg0: i32) -> (i32, i32, i32) {
    %c0_i32 = arith.constant 0 : i32
    %c0_i32_0 = arith.constant 0 : i32
    %c0_i32_1 = arith.constant 0 : i32
    return %arg0, %c0_i32, %c0_i32_0 : i32, i32, i32
  }
  func.func @transform_2(%arg0: i32) -> (i32, i32, i32) {
    %c0_i32 = arith.constant 0 : i32
    %c0_i32_0 = arith.constant 0 : i32
    %c0_i32_1 = arith.constant 0 : i32
    return %arg0, %c0_i32, %c0_i32_0 : i32, i32, i32
  }
  func.func @transform_3(%arg0: i32) -> (i32, i32, i32) {
    %c0_i32 = arith.constant 0 : i32
    %c0_i32_0 = arith.constant 0 : i32
    %c0_i32_1 = arith.constant 0 : i32
    return %arg0, %c0_i32, %c0_i32_0 : i32, i32, i32
  }
  func.func @transform_4(%arg0: i32) -> (i32, i32, i32) {
    %c0_i32 = arith.constant 0 : i32
    %c0_i32_0 = arith.constant 0 : i32
    %c0_i32_1 = arith.constant 0 : i32
    return %arg0, %c0_i32, %c0_i32_0 : i32, i32, i32
  }
  func.func @transform_5(%arg0: i32) -> (i32, i32, i32) {
    %c0_i32 = arith.constant 0 : i32
    %c0_i32_0 = arith.constant 0 : i32
    %c0_i32_1 = arith.constant 0 : i32
    return %arg0, %c0_i32, %c0_i32_0 : i32, i32, i32
  }
}

module attributes {stable_mosaic.version = 11 : i64} {
  func.func @_ln_gate_proj_kernel(%arg0: i32, %arg1: memref<8x256xf32, #tpu.memory_space<vmem>>, %arg2: memref<8x256xf32, #tpu.memory_space<vmem>>, %arg3: memref<1x256xf32, #tpu.memory_space<vmem>>, %arg4: memref<1x256xf32, #tpu.memory_space<vmem>>, %arg5: memref<256x128xbf16, #tpu.memory_space<vmem>>, %arg6: memref<8x128xf32, #tpu.memory_space<vmem>>) attributes {dimension_semantics = [#tpu.dimension_semantics<parallel>], iteration_bounds = array<i64: 1>, scalar_prefetch = 0 : i64, scratch_operands = 0 : i64, tpu.core_type = #tpu.core_type<tc>, window_params = [{transform_indices = @transform_0, window_bounds = array<i64: 8, 256>}, {transform_indices = @transform_1, window_bounds = array<i64: 8, 256>}, {pipeline_mode = #tpu.pipeline_mode<synchronous>, transform_indices = @transform_2, window_bounds = array<i64: 1, 256>}, {pipeline_mode = #tpu.pipeline_mode<synchronous>, transform_indices = @transform_3, window_bounds = array<i64: 1, 256>}, {pipeline_mode = #tpu.pipeline_mode<synchronous>, transform_indices = @transform_4, window_bounds = array<i64: 256, 128>}, {transform_indices = @transform_5, window_bounds = array<i64: 8, 128>}]} {
    %c0 = arith.constant 0 : index
    %c0_0 = arith.constant 0 : index
    %0 = vector.load %arg1[%c0, %c0_0] : memref<8x256xf32, #tpu.memory_space<vmem>>, vector<8x256xf32>
    %cst = arith.constant dense<0.000000e+00> : vector<8xf32>
    %1 = vector.multi_reduction <add>, %0, %cst [1] : vector<8x256xf32> to vector<8xf32>
    %2 = vector.shape_cast %1 : vector<8xf32> to vector<8x1xf32>
    %cst_1 = arith.constant 2.560000e+02 : f32
    %3 = vector.broadcast %cst_1 : f32 to vector<8x1xf32>
    %4 = arith.divf %2, %3 : vector<8x1xf32>
    %5 = vector.broadcast %4 : vector<8x1xf32> to vector<8x256xf32>
    %6 = arith.subf %0, %5 : vector<8x256xf32>
    %7 = arith.mulf %6, %6 : vector<8x256xf32>
    %cst_2 = arith.constant dense<0.000000e+00> : vector<8xf32>
    %8 = vector.multi_reduction <add>, %7, %cst_2 [1] : vector<8x256xf32> to vector<8xf32>
    %9 = vector.shape_cast %8 : vector<8xf32> to vector<8x1xf32>
    %cst_3 = arith.constant 2.560000e+02 : f32
    %10 = vector.broadcast %cst_3 : f32 to vector<8x1xf32>
    %11 = arith.divf %9, %10 : vector<8x1xf32>
    %cst_4 = arith.constant 9.99999974E-6 : f32
    %12 = vector.broadcast %cst_4 : f32 to vector<8x1xf32>
    %13 = arith.addf %11, %12 : vector<8x1xf32>
    %14 = math.rsqrt %13 : vector<8x1xf32>
    %15 = vector.broadcast %14 : vector<8x1xf32> to vector<8x256xf32>
    %16 = arith.mulf %6, %15 : vector<8x256xf32>
    %c0_5 = arith.constant 0 : index
    %c0_6 = arith.constant 0 : index
    %17 = vector.load %arg3[%c0_5, %c0_6] : memref<1x256xf32, #tpu.memory_space<vmem>>, vector<1x256xf32>
    %18 = vector.broadcast %17 : vector<1x256xf32> to vector<8x256xf32>
    %19 = arith.mulf %16, %18 : vector<8x256xf32>
    %c0_7 = arith.constant 0 : index
    %c0_8 = arith.constant 0 : index
    %20 = vector.load %arg4[%c0_7, %c0_8] : memref<1x256xf32, #tpu.memory_space<vmem>>, vector<1x256xf32>
    %21 = vector.broadcast %20 : vector<1x256xf32> to vector<8x256xf32>
    %22 = arith.addf %19, %21 : vector<8x256xf32>
    %c0_9 = arith.constant 0 : index
    %c0_10 = arith.constant 0 : index
    %23 = vector.load %arg2[%c0_9, %c0_10] : memref<8x256xf32, #tpu.memory_space<vmem>>, vector<8x256xf32>
    %24 = arith.negf %23 : vector<8x256xf32>
    %25 = math.exp %24 : vector<8x256xf32>
    %cst_11 = arith.constant 1.000000e+00 : f32
    %26 = vector.broadcast %cst_11 : f32 to vector<8x256xf32>
    %27 = arith.addf %26, %25 : vector<8x256xf32>
    %28 = arith.divf %26, %27 : vector<8x256xf32>
    %29 = arith.mulf %23, %28 : vector<8x256xf32>
    %30 = arith.mulf %22, %29 : vector<8x256xf32>
    %31 = arith.truncf %30 : vector<8x256xf32> to vector<8x256xbf16>
    %c0_12 = arith.constant 0 : index
    %c0_13 = arith.constant 0 : index
    %32 = vector.load %arg5[%c0_12, %c0_13] : memref<256x128xbf16, #tpu.memory_space<vmem>>, vector<256x128xbf16>
    %cst_14 = arith.constant dense<0.000000e+00> : vector<8x128xf32>
    %33 = tpu.matmul %31, %32, %cst_14 {dimension_numbers = #tpu.dot_dimension_numbers<[1], [0], [0], [1], [0, 0, 1, 1], [], []>} : vector<8x256xbf16>, vector<256x128xbf16>, vector<8x128xf32> -> vector<8x128xf32>
    %c0_15 = arith.constant 0 : index
    %c0_16 = arith.constant 0 : index
    %34 = vector.load %arg6[%c0_15, %c0_16] : memref<8x128xf32, #tpu.memory_space<vmem>>, vector<8x128xf32>
    tpu.vector_store %arg6[%c0_15, %c0_16], %33 {strides = array<i32>} : memref<8x128xf32, #tpu.memory_space<vmem>>, vector<8x128xf32>,
    return
  }
  func.func @transform_0(%arg0: i32) -> (i32, i32) {
    %c0_i32 = arith.constant 0 : i32
    %c0_i32_0 = arith.constant 0 : i32
    return %arg0, %c0_i32 : i32, i32
  }
  func.func @transform_1(%arg0: i32) -> (i32, i32) {
    %c0_i32 = arith.constant 0 : i32
    %c0_i32_0 = arith.constant 0 : i32
    return %arg0, %c0_i32 : i32, i32
  }
  func.func @transform_2(%arg0: i32) -> (i32, i32) {
    %c0_i32 = arith.constant 0 : i32
    %c0_i32_0 = arith.constant 0 : i32
    %c0_i32_1 = arith.constant 0 : i32
    return %c0_i32, %c0_i32_0 : i32, i32
  }
  func.func @transform_3(%arg0: i32) -> (i32, i32) {
    %c0_i32 = arith.constant 0 : i32
    %c0_i32_0 = arith.constant 0 : i32
    %c0_i32_1 = arith.constant 0 : i32
    return %c0_i32, %c0_i32_0 : i32, i32
  }
  func.func @transform_4(%arg0: i32) -> (i32, i32) {
    %c0_i32 = arith.constant 0 : i32
    %c0_i32_0 = arith.constant 0 : i32
    %c0_i32_1 = arith.constant 0 : i32
    return %c0_i32, %c0_i32_0 : i32, i32
  }
  func.func @transform_5(%arg0: i32) -> (i32, i32) {
    %c0_i32 = arith.constant 0 : i32
    %c0_i32_0 = arith.constant 0 : i32
    return %arg0, %c0_i32 : i32, i32
  }
}

module attributes {stable_mosaic.version = 11 : i64} {
  func.func @_selective_scan_kernel(%arg0: i32, %arg1: i32, %arg2: memref<1x1x1x256xf32, #tpu.memory_space<vmem>>, %arg3: memref<1x1x1x256xf32, #tpu.memory_space<vmem>>, %arg4: memref<1x1x1x16xf32, #tpu.memory_space<vmem>>, %arg5: memref<1x1x1x16xf32, #tpu.memory_space<vmem>>, %arg6: memref<1x16x256xf32, #tpu.memory_space<vmem>>, %arg7: memref<1x1x256xf32, #tpu.memory_space<vmem>>, %arg8: memref<1x1x256xf32, #tpu.memory_space<vmem>>, %arg9: memref<1x1x1x256xf32, #tpu.memory_space<vmem>>) attributes {dimension_semantics = [#tpu.dimension_semantics<parallel>, #tpu.dimension_semantics<parallel>], iteration_bounds = array<i64: 2, 4>, scalar_prefetch = 0 : i64, scratch_operands = 0 : i64, tpu.core_type = #tpu.core_type<tc>, window_params = [{transform_indices = @transform_0, window_bounds = array<i64: 1, 1, 1, 256>}, {transform_indices = @transform_1, window_bounds = array<i64: 1, 1, 1, 256>}, {transform_indices = @transform_2, window_bounds = array<i64: 1, 1, 1, 16>}, {transform_indices = @transform_3, window_bounds = array<i64: 1, 1, 1, 16>}, {transform_indices = @transform_4, window_bounds = array<i64: 1, 16, 256>}, {transform_indices = @transform_5, window_bounds = array<i64: 1, 1, 256>}, {transform_indices = @transform_6, window_bounds = array<i64: 1, 1, 256>}, {transform_indices = @transform_7, window_bounds = array<i64: 1, 1, 1, 256>}]} {
    %c0 = arith.constant 0 : index
    %c0_0 = arith.constant 0 : index
    %c0_1 = arith.constant 0 : index
    %0 = vector.load %arg6[%c0, %c0_0, %c0_1] : memref<1x16x256xf32, #tpu.memory_space<vmem>>, vector<1x16x256xf32>
    %1 = vector.shape_cast %0 : vector<1x16x256xf32> to vector<16x256xf32>
    %c0_2 = arith.constant 0 : index
    %c0_3 = arith.constant 0 : index
    %c0_4 = arith.constant 0 : index
    %2 = vector.load %arg7[%c0_2, %c0_3, %c0_4] : memref<1x1x256xf32, #tpu.memory_space<vmem>>, vector<1x1x256xf32>
    %3 = vector.shape_cast %2 : vector<1x1x256xf32> to vector<1x256xf32>
    %c0_5 = arith.constant 0 : index
    %c0_6 = arith.constant 0 : index
    %c0_7 = arith.constant 0 : index
    %4 = vector.load %arg8[%c0_5, %c0_6, %c0_7] : memref<1x1x256xf32, #tpu.memory_space<vmem>>, vector<1x1x256xf32>
    %5 = vector.shape_cast %4 : vector<1x1x256xf32> to vector<1x256xf32>
    %cst = arith.constant 0.000000e+00 : f32
    %6 = vector.broadcast %cst : f32 to vector<16x256xf32>
    %c0_i32 = arith.constant 0 : i32
    %c1_i32 = arith.constant 1 : i32
    %7 = arith.muli %c0_i32, %c1_i32 : i32
    %8 = tpu.assume_multiple %7, 1 : i32
    %c0_8 = arith.constant 0 : index
    %c0_9 = arith.constant 0 : index
    %9 = arith.index_cast %8 : i32 to index
    %c0_10 = arith.constant 0 : index
    %10 = vector.load %arg2[%c0_8, %c0_9, %9, %c0_10] : memref<1x1x1x256xf32, #tpu.memory_space<vmem>>, vector<1x1x1x256xf32>
    %11 = vector.shape_cast %10 : vector<1x1x1x256xf32> to vector<1x256xf32>
    %c0_11 = arith.constant 0 : index
    %c0_12 = arith.constant 0 : index
    %12 = arith.index_cast %8 : i32 to index
    %c0_13 = arith.constant 0 : index
    %13 = vector.load %arg3[%c0_11, %c0_12, %12, %c0_13] : memref<1x1x1x256xf32, #tpu.memory_space<vmem>>, vector<1x1x1x256xf32>
    %14 = vector.shape_cast %13 : vector<1x1x1x256xf32> to vector<1x256xf32>
    %15 = arith.addf %14, %5 : vector<1x256xf32>
    %cst_14 = arith.constant 0.000000e+00 : f32
    %16 = vector.broadcast %cst_14 : f32 to vector<1x256xf32>
    %17 = arith.maximumf %15, %16 : vector<1x256xf32>
    %18 = vector.broadcast %cst_14 : f32 to vector<1x256xf32>
    %19 = arith.subf %15, %18 : vector<1x256xf32>
    %20 = arith.cmpf one, %19, %19 : vector<1x256xf32>
    %21 = vector.broadcast %cst_14 : f32 to vector<1x256xf32>
    %22 = arith.addf %15, %21 : vector<1x256xf32>
    %23 = math.absf %19 : vector<1x256xf32>
    %cst_15 = arith.constant 0.000000e+00 : f32
    %24 = vector.broadcast %cst_15 : f32 to vector<1x256xf32>
    %25 = arith.subf %24, %23 : vector<1x256xf32>
    %26 = math.exp %25 : vector<1x256xf32>
    %27 = math.log1p %26 : vector<1x256xf32>
    %28 = arith.addf %17, %27 : vector<1x256xf32>
    %29 = arith.select %20, %22, %28 : vector<1x256xi1>, vector<1x256xf32>
    %c0_16 = arith.constant 0 : index
    %c0_17 = arith.constant 0 : index
    %30 = arith.index_cast %8 : i32 to index
    %c0_18 = arith.constant 0 : index
    %31 = vector.load %arg4[%c0_16, %c0_17, %30, %c0_18] : memref<1x1x1x16xf32, #tpu.memory_space<vmem>>, vector<1x1x1x16xf32>
    %32 = vector.shape_cast %31 : vector<1x1x1x16xf32> to vector<1x16xf32>
    %c0_19 = arith.constant 0 : index
    %c0_20 = arith.constant 0 : index
    %33 = arith.index_cast %8 : i32 to index
    %c0_21 = arith.constant 0 : index
    %34 = vector.load %arg5[%c0_19, %c0_20, %33, %c0_21] : memref<1x1x1x16xf32, #tpu.memory_space<vmem>>, vector<1x1x1x16xf32>
    %35 = vector.shape_cast %34 : vector<1x1x1x16xf32> to vector<1x16xf32>
    %36 = vector.shape_cast %29 : vector<1x256xf32> to vector<1x1x256xf32>
    %37 = vector.shape_cast %1 : vector<16x256xf32> to vector<1x16x256xf32>
    %38 = vector.broadcast %36 : vector<1x1x256xf32> to vector<1x16x256xf32>
    %39 = arith.mulf %38, %37 : vector<1x16x256xf32>
    %40 = math.exp %39 : vector<1x16x256xf32>
    %41 = vector.shape_cast %32 : vector<1x16xf32> to vector<1x16x1xf32>
    %42 = arith.mulf %29, %11 : vector<1x256xf32>
    %43 = vector.shape_cast %42 : vector<1x256xf32> to vector<1x1x256xf32>
    %44 = vector.broadcast %41 : vector<1x16x1xf32> to vector<1x16x256xf32>
    %45 = vector.broadcast %43 : vector<1x1x256xf32> to vector<1x16x256xf32>
    %46 = arith.mulf %44, %45 : vector<1x16x256xf32>
    %47 = vector.shape_cast %40 : vector<1x16x256xf32> to vector<16x256xf32>
    %48 = arith.mulf %47, %6 : vector<16x256xf32>
    %49 = vector.shape_cast %46 : vector<1x16x256xf32> to vector<16x256xf32>
    %50 = arith.addf %48, %49 : vector<16x256xf32>
    %51 = vector.shape_cast %50 : vector<16x256xf32> to vector<1x16x256xf32>
    %52 = vector.shape_cast %35 : vector<1x16xf32> to vector<1x16x1xf32>
    %53 = vector.broadcast %52 : vector<1x16x1xf32> to vector<1x16x256xf32>
    %54 = arith.mulf %53, %51 : vector<1x16x256xf32>
    %cst_22 = arith.constant dense<0.000000e+00> : vector<1x256xf32>
    %55 = vector.multi_reduction <add>, %54, %cst_22 [1] : vector<1x16x256xf32> to vector<1x256xf32>
    %56 = arith.mulf %3, %11 : vector<1x256xf32>
    %57 = arith.addf %55, %56 : vector<1x256xf32>
    %c0_23 = arith.constant 0 : index
    %c0_24 = arith.constant 0 : index
    %58 = arith.index_cast %8 : i32 to index
    %c0_25 = arith.constant 0 : index
    %59 = vector.load %arg9[%c0_23, %c0_24, %58, %c0_25] : memref<1x1x1x256xf32, #tpu.memory_space<vmem>>, vector<1x1x1x256xf32>
    %60 = vector.shape_cast %59 : vector<1x1x1x256xf32> to vector<1x256xf32>
    %61 = vector.shape_cast %57 : vector<1x256xf32> to vector<1x1x1x256xf32>
    tpu.vector_store %arg9[%c0_23, %c0_24, %58, %c0_25], %61 {strides = array<i32>} : memref<1x1x1x256xf32, #tpu.memory_space<vmem>>, vector<1x1x1x256xf32>,
    %c1_i32_26 = arith.constant 1 : i32
    return
  }
  func.func @transform_0(%arg0: i32, %arg1: i32) -> (i32, i32, i32, i32) {
    %c0_i32 = arith.constant 0 : i32
    %c0_i32_0 = arith.constant 0 : i32
    %c0_i32_1 = arith.constant 0 : i32
    return %arg0, %arg1, %c0_i32, %c0_i32_0 : i32, i32, i32, i32
  }
  func.func @transform_1(%arg0: i32, %arg1: i32) -> (i32, i32, i32, i32) {
    %c0_i32 = arith.constant 0 : i32
    %c0_i32_0 = arith.constant 0 : i32
    %c0_i32_1 = arith.constant 0 : i32
    return %arg0, %arg1, %c0_i32, %c0_i32_0 : i32, i32, i32, i32
  }
  func.func @transform_2(%arg0: i32, %arg1: i32) -> (i32, i32, i32, i32) {
    %c0_i32 = arith.constant 0 : i32
    %c0_i32_0 = arith.constant 0 : i32
    %c0_i32_1 = arith.constant 0 : i32
    return %arg0, %arg1, %c0_i32, %c0_i32_0 : i32, i32, i32, i32
  }
  func.func @transform_3(%arg0: i32, %arg1: i32) -> (i32, i32, i32, i32) {
    %c0_i32 = arith.constant 0 : i32
    %c0_i32_0 = arith.constant 0 : i32
    %c0_i32_1 = arith.constant 0 : i32
    return %arg0, %arg1, %c0_i32, %c0_i32_0 : i32, i32, i32, i32
  }
  func.func @transform_4(%arg0: i32, %arg1: i32) -> (i32, i32, i32) {
    %c0_i32 = arith.constant 0 : i32
    %c0_i32_0 = arith.constant 0 : i32
    %c0_i32_1 = arith.constant 0 : i32
    return %arg1, %c0_i32, %c0_i32_0 : i32, i32, i32
  }
  func.func @transform_5(%arg0: i32, %arg1: i32) -> (i32, i32, i32) {
    %c0_i32 = arith.constant 0 : i32
    %c0_i32_0 = arith.constant 0 : i32
    %c0_i32_1 = arith.constant 0 : i32
    return %arg1, %c0_i32, %c0_i32_0 : i32, i32, i32
  }
  func.func @transform_6(%arg0: i32, %arg1: i32) -> (i32, i32, i32) {
    %c0_i32 = arith.constant 0 : i32
    %c0_i32_0 = arith.constant 0 : i32
    %c0_i32_1 = arith.constant 0 : i32
    return %arg1, %c0_i32, %c0_i32_0 : i32, i32, i32
  }
  func.func @transform_7(%arg0: i32, %arg1: i32) -> (i32, i32, i32, i32) {
    %c0_i32 = arith.constant 0 : i32
    %c0_i32_0 = arith.constant 0 : i32
    %c0_i32_1 = arith.constant 0 : i32
    return %arg0, %arg1, %c0_i32, %c0_i32_0 : i32, i32, i32, i32
  }
}

module attributes {stable_mosaic.version = 11 : i64} {
  func.func @_vmrnn_gate_kernel(%arg0: i32, %arg1: memref<8x128xf32, #tpu.memory_space<vmem>>, %arg2: memref<8x128xf32, #tpu.memory_space<vmem>>, %arg3: memref<8x128xf32, #tpu.memory_space<vmem>>, %arg4: memref<8x128xf32, #tpu.memory_space<vmem>>) attributes {dimension_semantics = [#tpu.dimension_semantics<parallel>], iteration_bounds = array<i64: 1>, scalar_prefetch = 0 : i64, scratch_operands = 0 : i64, tpu.core_type = #tpu.core_type<tc>, window_params = [{transform_indices = @transform_0, window_bounds = array<i64: 8, 128>}, {transform_indices = @transform_1, window_bounds = array<i64: 8, 128>}, {transform_indices = @transform_2, window_bounds = array<i64: 8, 128>}, {transform_indices = @transform_3, window_bounds = array<i64: 8, 128>}]} {
    %c0 = arith.constant 0 : index
    %c0_0 = arith.constant 0 : index
    %0 = vector.load %arg1[%c0, %c0_0] : memref<8x128xf32, #tpu.memory_space<vmem>>, vector<8x128xf32>
    %c0_1 = arith.constant 0 : index
    %c0_2 = arith.constant 0 : index
    %1 = vector.load %arg2[%c0_1, %c0_2] : memref<8x128xf32, #tpu.memory_space<vmem>>, vector<8x128xf32>
    %2 = arith.negf %0 : vector<8x128xf32>
    %3 = math.exp %2 : vector<8x128xf32>
    %cst = arith.constant 1.000000e+00 : f32
    %4 = vector.broadcast %cst : f32 to vector<8x128xf32>
    %5 = arith.addf %4, %3 : vector<8x128xf32>
    %6 = arith.divf %4, %5 : vector<8x128xf32>
    %7 = math.tanh %0 : vector<8x128xf32>
    %8 = arith.addf %1, %7 : vector<8x128xf32>
    %9 = arith.mulf %6, %8 : vector<8x128xf32>
    %10 = math.tanh %9 : vector<8x128xf32>
    %11 = arith.mulf %6, %10 : vector<8x128xf32>
    %c0_3 = arith.constant 0 : index
    %c0_4 = arith.constant 0 : index
    %12 = vector.load %arg3[%c0_3, %c0_4] : memref<8x128xf32, #tpu.memory_space<vmem>>, vector<8x128xf32>
    tpu.vector_store %arg3[%c0_3, %c0_4], %11 {strides = array<i32>} : memref<8x128xf32, #tpu.memory_space<vmem>>, vector<8x128xf32>,
    %c0_5 = arith.constant 0 : index
    %c0_6 = arith.constant 0 : index
    %13 = vector.load %arg4[%c0_5, %c0_6] : memref<8x128xf32, #tpu.memory_space<vmem>>, vector<8x128xf32>
    tpu.vector_store %arg4[%c0_5, %c0_6], %9 {strides = array<i32>} : memref<8x128xf32, #tpu.memory_space<vmem>>, vector<8x128xf32>,
    return
  }
  func.func @transform_0(%arg0: i32) -> (i32, i32) {
    %c0_i32 = arith.constant 0 : i32
    %c0_i32_0 = arith.constant 0 : i32
    return %arg0, %c0_i32 : i32, i32
  }
  func.func @transform_1(%arg0: i32) -> (i32, i32) {
    %c0_i32 = arith.constant 0 : i32
    %c0_i32_0 = arith.constant 0 : i32
    return %arg0, %c0_i32 : i32, i32
  }
  func.func @transform_2(%arg0: i32) -> (i32, i32) {
    %c0_i32 = arith.constant 0 : i32
    %c0_i32_0 = arith.constant 0 : i32
    return %arg0, %c0_i32 : i32, i32
  }
  func.func @transform_3(%arg0: i32) -> (i32, i32) {
    %c0_i32 = arith.constant 0 : i32
    %c0_i32_0 = arith.constant 0 : i32
    return %arg0, %c0_i32 : i32, i32
  }
}

module attributes {stable_mosaic.version = 11 : i64} {
  func.func @_linear_kernel(%arg0: i32, %arg1: i32, %arg2: i32, %arg3: memref<128x384xbf16, #tpu.memory_space<vmem>>, %arg4: memref<384x128xbf16, #tpu.memory_space<vmem>>, %arg5: memref<1x128xf32, #tpu.memory_space<vmem>>, %arg6: memref<128x128xf32, #tpu.memory_space<vmem>>, %arg7: memref<128x128xf32, #tpu.memory_space<vmem>>) attributes {dimension_semantics = [#tpu.dimension_semantics<parallel>, #tpu.dimension_semantics<parallel>, #tpu.dimension_semantics<arbitrary>], iteration_bounds = array<i64: 1, 1, 1>, scalar_prefetch = 0 : i64, scratch_operands = 1 : i64, tpu.core_type = #tpu.core_type<tc>, window_params = [{transform_indices = @transform_0, window_bounds = array<i64: 128, 384>}, {transform_indices = @transform_1, window_bounds = array<i64: 384, 128>}, {transform_indices = @transform_2, window_bounds = array<i64: 1, 128>}, {transform_indices = @transform_3, window_bounds = array<i64: 128, 128>}]} {
    %c0_i32 = arith.constant 0 : i32
    %0 = arith.cmpi eq, %arg2, %c0_i32 : i32
    %1 = arith.extui %0 : i1 to i32
    %c0_i32_0 = arith.constant 0 : i32
    %2 = arith.cmpi ne, %1, %c0_i32_0 : i32
    scf.if %2 {
      %cst_10 = arith.constant 0.000000e+00 : f32
      %12 = vector.broadcast %cst_10 : f32 to vector<128x128xf32>
      %c0_11 = arith.constant 0 : index
      %c0_12 = arith.constant 0 : index
      %13 = vector.load %arg7[%c0_11, %c0_12] : memref<128x128xf32, #tpu.memory_space<vmem>>, vector<128x128xf32>
      tpu.vector_store %arg7[%c0_11, %c0_12], %12 {strides = array<i32>} : memref<128x128xf32, #tpu.memory_space<vmem>>, vector<128x128xf32>,
    } else {
    }
    %c0 = arith.constant 0 : index
    %c0_1 = arith.constant 0 : index
    %3 = vector.load %arg7[%c0, %c0_1] : memref<128x128xf32, #tpu.memory_space<vmem>>, vector<128x128xf32>
    %c0_2 = arith.constant 0 : index
    %c0_3 = arith.constant 0 : index
    %4 = vector.load %arg3[%c0_2, %c0_3] : memref<128x384xbf16, #tpu.memory_space<vmem>>, vector<128x384xbf16>
    %c0_4 = arith.constant 0 : index
    %c0_5 = arith.constant 0 : index
    %5 = vector.load %arg4[%c0_4, %c0_5] : memref<384x128xbf16, #tpu.memory_space<vmem>>, vector<384x128xbf16>
    %cst = arith.constant dense<0.000000e+00> : vector<128x128xf32>
    %6 = tpu.matmul %4, %5, %cst {dimension_numbers = #tpu.dot_dimension_numbers<[1], [0], [0], [1], [0, 0, 1, 1], [], []>} : vector<128x384xbf16>, vector<384x128xbf16>, vector<128x128xf32> -> vector<128x128xf32>
    %7 = arith.addf %3, %6 : vector<128x128xf32>
    %c0_6 = arith.constant 0 : index
    %c0_7 = arith.constant 0 : index
    %8 = vector.load %arg7[%c0_6, %c0_7] : memref<128x128xf32, #tpu.memory_space<vmem>>, vector<128x128xf32>
    tpu.vector_store %arg7[%c0_6, %c0_7], %7 {strides = array<i32>} : memref<128x128xf32, #tpu.memory_space<vmem>>, vector<128x128xf32>,
    %c0_i32_8 = arith.constant 0 : i32
    %9 = arith.cmpi eq, %arg2, %c0_i32_8 : i32
    %10 = arith.extui %9 : i1 to i32
    %c0_i32_9 = arith.constant 0 : i32
    %11 = arith.cmpi ne, %10, %c0_i32_9 : i32
    scf.if %11 {
      %c0_10 = arith.constant 0 : index
      %c0_11 = arith.constant 0 : index
      %12 = vector.load %arg7[%c0_10, %c0_11] : memref<128x128xf32, #tpu.memory_space<vmem>>, vector<128x128xf32>
      %c0_12 = arith.constant 0 : index
      %c0_13 = arith.constant 0 : index
      %13 = vector.load %arg5[%c0_12, %c0_13] : memref<1x128xf32, #tpu.memory_space<vmem>>, vector<1x128xf32>
      %14 = vector.broadcast %13 : vector<1x128xf32> to vector<128x128xf32>
      %15 = arith.addf %12, %14 : vector<128x128xf32>
      %16 = arith.negf %15 : vector<128x128xf32>
      %17 = math.exp %16 : vector<128x128xf32>
      %cst_14 = arith.constant 1.000000e+00 : f32
      %18 = vector.broadcast %cst_14 : f32 to vector<128x128xf32>
      %19 = arith.addf %18, %17 : vector<128x128xf32>
      %20 = arith.divf %18, %19 : vector<128x128xf32>
      %c0_15 = arith.constant 0 : index
      %c0_16 = arith.constant 0 : index
      %21 = vector.load %arg6[%c0_15, %c0_16] : memref<128x128xf32, #tpu.memory_space<vmem>>, vector<128x128xf32>
      tpu.vector_store %arg6[%c0_15, %c0_16], %20 {strides = array<i32>} : memref<128x128xf32, #tpu.memory_space<vmem>>, vector<128x128xf32>,
    } else {
    }
    return
  }
  func.func @transform_0(%arg0: i32, %arg1: i32, %arg2: i32) -> (i32, i32) {
    %c0_i32 = arith.constant 0 : i32
    return %arg0, %arg2 : i32, i32
  }
  func.func @transform_1(%arg0: i32, %arg1: i32, %arg2: i32) -> (i32, i32) {
    %c0_i32 = arith.constant 0 : i32
    return %arg2, %arg1 : i32, i32
  }
  func.func @transform_2(%arg0: i32, %arg1: i32, %arg2: i32) -> (i32, i32) {
    %c0_i32 = arith.constant 0 : i32
    %c0_i32_0 = arith.constant 0 : i32
    return %c0_i32, %arg1 : i32, i32
  }
  func.func @transform_3(%arg0: i32, %arg1: i32, %arg2: i32) -> (i32, i32) {
    %c0_i32 = arith.constant 0 : i32
    return %arg0, %arg1 : i32, i32
  }
}

</mosaic_0001>

<bundles_post_ra>
// kernel: vmrnn_forward.72
= control target key start
LH: loop header
LB: loop body
LE: loop exit
PB: predicated region body
PF: predicated region fallthrough
CT: control target
= control target key end

     0   :  { %vm18_vm0 = vcmask 261120   ;;  %s174_s0 = inlined_call_operand.vmem [shape: f32[32,32], index: 0, kind: input, shape index: {}]   ;;  %s175_s1 = inlined_call_operand.vmem [shape: f32[1,32], index: 1, kind: input, shape index: {}]   ;;  %s176_s2 = inlined_call_operand.vmem [shape: f32[1,32], index: 2, kind: input, shape index: {}]   ;;  %s177_s3 = inlined_call_operand.vmem [shape: f32[32,32], index: 3, kind: output, shape index: {}]  }
   0x1   :  { %v14_v0 = vld [vmem:[%s174_s0] sm:$0xff]  ;;  %v16_v1 = vld [vmem:[%s174_s0 + $0x10] sm:$0xff]  ;;  %v15_v2 = vld [vmem:[%s174_s0 + $0x8] sm:$0xff] }
   0x2   :  { %v19_v3 = vsel %vm18_vm0, %v14_v0, 0.0  ;;  %v25_v4 = vsel %vm18_vm0, %v16_v1, 0.0  ;;  %v17_v5 = vld [vmem:[%s174_s0 + $0x18] sm:$0xff]  ;;  %v22_v6 = vsel %vm18_vm0, %v15_v2, 0.0  ;;  %v102_v41 = vld [vmem:[%s175_s1] ss:$0 sm:$0xff] }
   0x3   :  { %20 = vadd.xlane.f32.xlu0 %v19_v3  ;;  %26 = vadd.xlane.f32.xlu1 %v25_v4  ;;  %v28_v7 = vsel %vm18_vm0, %v17_v5, 0.0  ;;  %v103_v43 = vld [vmem:[%s176_s2] ss:$0 sm:$0xff] }
   0x7   :  { %23 = vadd.xlane.f32.xlu0 %v22_v6  ;;  %29 = vadd.xlane.f32.xlu1 %v28_v7 }
  0x90   :  { %v21_v8 = vpop.xlane.xlu0 %20  ;;  %v27_v9 = vpop.xlane.xlu1 %26 }
  0x91   :  { %v32_v10 = vmul.f32 0.03125, %v21_v8  ;;  %v34_v11 = vmul.f32 0.03125, %v27_v9 }
  0x93   :  { %v36_v12 = vsub.f32 %v14_v0, %v32_v10  ;;  %v38_v13 = vsub.f32 %v16_v1, %v34_v11 }
  0x94   :  { %v24_v14 = vpop.xlane.xlu0 %23  ;;  %v30_v15 = vpop.xlane.xlu1 %29 }
  0x95   :  { %v33_v16 = vmul.f32 0.03125, %v24_v14  ;;  %v35_v17 = vmul.f32 0.03125, %v30_v15  ;;  %v40_v18 = vmul.f32 %v36_v12, %v36_v12  ;;  %v42_v19 = vmul.f32 %v38_v13, %v38_v13 }
  0x97   :  { %v37_v20 = vsub.f32 %v15_v2, %v33_v16  ;;  %v39_v21 = vsub.f32 %v17_v5, %v35_v17  ;;  %v44_v22 = vsel %vm18_vm0, %v40_v18, 0.0  ;;  %v50_v23 = vsel %vm18_vm0, %v42_v19, 0.0 }
  0x98   :  { %45 = vadd.xlane.f32.xlu0 %v44_v22 }
  0x99   :  { %v41_v24 = vmul.f32 %v37_v20, %v37_v20  ;;  %v43_v25 = vmul.f32 %v39_v21, %v39_v21 }
  0x9b   :  { %v47_v26 = vsel %vm18_vm0, %v41_v24, 0.0  ;;  %v53_v27 = vsel %vm18_vm0, %v43_v25, 0.0 }
  0x9c   :  { %51 = vadd.xlane.f32.xlu0 %v50_v23  ;;  %48 = vadd.xlane.f32.xlu1 %v47_v26 }
  0xa0   :  { %54 = vadd.xlane.f32.xlu1 %v53_v27 }
 0x125   :  { %v46_v28 = vpop.xlane.xlu0 %45 }
 0x126   :  { %v56_v29 = vmul.f32 0.03125, %v46_v28 }
 0x128   :  { %v60_v30 = vadd.f32 1e-05, %v56_v29 }
 0x129   :  { %v49_v31 = vpop.xlane.xlu1 %48  ;;  %v52_v32 = vpop.xlane.xlu0 %51 }
 0x12a   :  { %104 = vrsqrt.f32 %v60_v30  ;;  %v57_v33 = vmul.f32 0.03125, %v49_v31  ;;  %v58_v34 = vmul.f32 0.03125, %v52_v32 }
 0x12c   :  { %v61_v35 = vadd.f32 1e-05, %v57_v33  ;;  %v62_v36 = vadd.f32 1e-05, %v58_v34 }
 0x12d   :  { %v55_v37 = vpop.xlane.xlu1 %54 }
 0x12e   :  { %106 = vrsqrt.f32 %v61_v35  ;;  %v59_v38 = vmul.f32 0.03125, %v55_v37 }
 0x12f   :  { %108 = vrsqrt.f32 %v62_v36 }
 0x130   :  { %v63_v39 = vadd.f32 1e-05, %v59_v38 }
 0x132   :  { %110 = vrsqrt.f32 %v63_v39 }
 0x134   :  { %v105_v40 = vpop.eup %104 }
 0x135   :  { %v68_v42 = vmul.f32 %v105_v40, %v36_v12 }
 0x137   :  { %v79_v44 = vmul.f32 %v102_v41, %v68_v42 }
 0x138   :  { %v107_v45 = vpop.eup %106 }
 0x139   :  { %v109_v46 = vpop.eup %108  ;;  %v90_v47 = vadd.f32 %v103_v43, %v79_v44  ;;  %v69_v48 = vmul.f32 %v107_v45, %v37_v20 }
 0x13a   :  { %v70_v49 = vmul.f32 %v109_v46, %v38_v13 }
 0x13b   :  { %94 = vst.msk [vmem:[%s177_s3] sm:$0xff] %vm18_vm0, %v90_v47  ;;  %v80_v50 = vmul.f32 %v102_v41, %v69_v48 }
 0x13c   :  { %v111_v51 = vpop.eup %110  ;;  %v81_v52 = vmul.f32 %v102_v41, %v70_v49 }
 0x13d   :  { %v91_v53 = vadd.f32 %v103_v43, %v80_v50  ;;  %v71_v54 = vmul.f32 %v111_v51, %v39_v21 }
 0x13e   :  { %v92_v55 = vadd.f32 %v103_v43, %v81_v52 }
 0x13f   :  { %95 = vst.msk [vmem:[%s177_s3 + $0x8] sm:$0xff] %vm18_vm0, %v91_v53  ;;  %v82_v56 = vmul.f32 %v102_v41, %v71_v54 }
 0x140   :  { %96 = vst.msk [vmem:[%s177_s3 + $0x10] sm:$0xff] %vm18_vm0, %v92_v55 }
 0x141   :  { %v93_v57 = vadd.f32 %v103_v43, %v82_v56 }
 0x143   :  { %97 = vst.msk [vmem:[%s177_s3 + $0x18] sm:$0xff] %vm18_vm0, %v93_v57 }

// kernel: vmrnn_forward.71
= control target key start
LH: loop header
LB: loop body
LE: loop exit
PB: predicated region body
PF: predicated region fallthrough
CT: control target
= control target key end

     0   :  { %s306_s1 = inlined_call_operand.vmem [shape: bf16[128,128], index: 1, kind: input, shape index: {}]   ;;  %s307_s0 = inlined_call_operand.vmem [shape: bf16[32,128], index: 0, kind: input, shape index: {}]   ;;  %s308_s2 = inlined_call_operand.vmem [shape: f32[1,128], index: 2, kind: input, shape index: {}]   ;;  %s309_s3 = inlined_call_operand.vmem [shape: f32[32,128], index: 3, kind: output, shape index: {}]  }
   0x1   :  { %v231_v0 = vld [vmem:[%s306_s1] sm:$0xff]   ;;  %v232_v1 = vld [vmem:[%s306_s1 + $0x8] sm:$0xff]   ;;  %v233_v2 = vld [vmem:[%s306_s1 + $0x10] sm:$0xff]  }
   0x2   :  { %211 = vmatprep.subr.bf16.mxu0 %v231_v0  ;;  %v234_v3 = vld [vmem:[%s306_s1 + $0x18] sm:$0xff]   ;;  %v239_v4 = vld [vmem:[%s307_s0] sm:$0xff]   ;;  %v236_v6 = vld [vmem:[%s306_s1 + $0x28] sm:$0xff]  }
   0x3   :  { %212 = vmatpush3.bf16.msra.mxu0 %v231_v0  ;;  %227 = vmatprep.mubr.bf16.mxu0 %v239_v4  ;;  %v235_v5 = vld [vmem:[%s306_s1 + $0x20] sm:$0xff]   ;;  %v237_v7 = vld [vmem:[%s306_s1 + $0x30] sm:$0xff]   ;;  %v238_v8 = vld [vmem:[%s306_s1 + $0x38] sm:$0xff]  }
   0x4   :  { %213 = vmatprep.subr.bf16.mxu0 %v232_v1  ;;  %v240_v9 = vld [vmem:[%s307_s0 + $0x8] sm:$0xff]   ;;  %v200_v10 = vld [vmem:[%s308_s2] ss:$0 sm:$0xff] }
   0x7   :  { %214 = vmatpush3.bf16.msra.mxu0 %v232_v1 }
   0x8   :  { %215 = vmatprep.subr.bf16.mxu0 %v233_v2 }
   0xb   :  { %216 = vmatpush3.bf16.msra.mxu0 %v233_v2 }
   0xc   :  { %217 = vmatprep.subr.bf16.mxu0 %v234_v3 }
   0xf   :  { %218 = vmatpush3.bf16.msra.mxu0 %v234_v3 }
  0x10   :  { %219 = vmatprep.subr.bf16.mxu0 %v235_v5 }
  0x13   :  { %220 = vmatpush3.bf16.msra.mxu0 %v235_v5 }
  0x14   :  { %221 = vmatprep.subr.bf16.mxu0 %v236_v6 }
  0x17   :  { %222 = vmatpush3.bf16.msra.mxu0 %v236_v6 }
  0x18   :  { %223 = vmatprep.subr.bf16.mxu0 %v237_v7 }
  0x1b   :  { %224 = vmatpush3.bf16.msra.mxu0 %v237_v7 }
  0x1c   :  { %225 = vmatprep.subr.bf16.mxu0 %v238_v8 }
  0x1f   :  { %226 = vmatpush3.bf16.msra.mxu0 %v238_v8 }
  0x22   :  { %228 = vmatmul.mubr.bf16.vlgmr.msra.gmra.mrb[0].mxu0 %v240_v9 }
  0xf5   :  { %v229_v11 = vpop.f32.mrb[0].mxu0 }
  0xf6   :  { %v180_v12 = vadd.f32 %v229_v11, %v200_v10  ;;  %v141_v13 = vpop.f32.mrb[1].mxu0 }
  0xf7   :  { %v178_v14 = vadd.f32 %v200_v10, %v141_v13  ;;  %v230_v15 = vpop.f32.mrb[2].mxu0 }
  0xf8   :  { %184 = vst [vmem:[%s309_s3 + $0x10] sm:$0xff] %v180_v12  ;;  %v181_v16 = vadd.f32 %v230_v15, %v200_v10  ;;  %v144_v17 = vpop.f32.mrb[3].mxu0 }
  0xf9   :  { %182 = vst [vmem:[%s309_s3] sm:$0xff] %v178_v14  ;;  %v179_v18 = vadd.f32 %v200_v10, %v144_v17 }
  0xfa   :  { %185 = vst [vmem:[%s309_s3 + $0x18] sm:$0xff] %v181_v16 }
  0xfb   :  { %183 = vst [vmem:[%s309_s3 + $0x8] sm:$0xff] %v179_v18 }

// kernel: vmrnn_forward.77
= control target key start
LH: loop header
LB: loop body
LE: loop exit
PB: predicated region body
PF: predicated region fallthrough
CT: control target
= control target key end

     0   :  { %s524_s12 = smov 0   ;;  %s655_s0 = inlined_call_operand.vmem [shape: f32[2,6,6,64], index: 0, kind: input, shape index: {}]   ;;  %s656_s1 = inlined_call_operand.vmem [shape: f32[9,64], index: 1, kind: input, shape index: {}]   ;;  %s657_s2 = inlined_call_operand.vmem [shape: f32[1,64], index: 2, kind: input, shape index: {}]   ;;  %s658_s3 = inlined_call_operand.vmem [shape: f32[2,4,4,64], index: 3, kind: output, shape index: {}]  }
   0x1 LB: > { %s422_s13 = sadd.s32 4294967295, %s502_s12   ;;  %p426_p0 = scmp.ge.s32.totalorder %s502_s12, 1  ;;  %s502_s12 = sphi %s524_s12, %s13_s12  }
   0x2   : > { %p137_p1 = scmp.lt.s32.totalorder %s502_s12, 3 }
   0x4   : > { %p138_p2 = pnand %p426_p0, %p137_p1 }
   0x5   : > { %p161_p3 = scmp.lt.s32.totalorder (!%p138_p2), %s422_s13, 1  ;;  %v431_v0 = vld [vmem:[%s656_s1] ss:$0 sm:$0xff] (!%p138_p2)  ;;  %v432_v1 = vld [vmem:[%s656_s1 + $0x1] ss:$0 sm:$0xff] (!%p138_p2)  ;;  %vm362_vm0 = vcmask (!%p138_p2), 519168  }
   0x6   : > { %141 = sbr.rel (%p138_p2) target bundleno = 72 (0x48), region = 32  ;;  %v549_v2 = vld [vmem:[%s657_s2] ss:$0 sm:$0xff] (!%p138_p2)  ;;  %v554_v3 = vld [vmem:[%s656_s1 + $0x2] ss:$0 sm:$0xff] (!%p138_p2) }
   0x7   : > { %v563_v10 = vld [vmem:[%s656_s1 + $0x3] ss:$0 sm:$0xff] (!%p138_p2)  ;;  %v574_v17 = vld [vmem:[%s656_s1 + $0x4] ss:$0 sm:$0xff] (!%p138_p2)  ;;  %v581_v23 = vld [vmem:[%s656_s1 + $0x5] ss:$0 sm:$0xff] (!%p138_p2) }
   0x8   : > { %v593_v32 = vld [vmem:[%s656_s1 + $0x6] ss:$0 sm:$0xff] (!%p138_p2)  ;;  %v610_v49 = vld [vmem:[%s656_s1 + $0x7] ss:$0 sm:$0xff] (!%p138_p2)  ;;  %v463_v62 = vld [vmem:[%s656_s1 + $0x8] ss:$0 sm:$0xff] (!%p138_p2) }
   0xd   : > { %s660_s13 = smov (!%p161_p3, %s422_s13), 1 }
   0xe   : > { %s471_s14 = smul.u32 48, %s660_s13  ;;  %s470_s11 = sshll.u32 %s660_s13, 4 }
   0xf   : > { %s170_s16 = scalar_lea.vmem %s658_s3, %s470_s11 }
  0x10   : > { %s544_s21 = scalar_lea.vmem %s655_s0, %s471_s14 }
  0x11   : > { %v179_v4 = vld [vmem:[%s544_s21] sm:$0xf]  ;;  %v434_v9 = vld [vmem:[%s544_s21 + $0x8] sm:$0xf]  ;;  %v435_v24 = vld [vmem:[%s544_s21 + $0x10] sm:$0xf] }
  0x12   : > { %v196_v5 = vld [vmem:[%s544_s21 + $0x1] sm:$0xf]  ;;  %v188_v7 = vmul.f32 %v431_v0, %v179_v4  ;;  %v180_v13 = vld [vmem:[%s544_s21 + $0x8] sm:$0xf]  ;;  %v240_v21 = vmul.f32 %v563_v10, %v434_v9  ;;  %v181_v27 = vld [vmem:[%s544_s21 + $0x10] sm:$0xf]  ;;  %v241_v38 = vmul.f32 %v563_v10, %v435_v24 }
  0x13   : > { %v213_v6 = vld [vmem:[%s544_s21 + $0x2] sm:$0xf]  ;;  %v205_v8 = vmul.f32 %v432_v1, %v196_v5  ;;  %v197_v14 = vld [vmem:[%s544_s21 + $0x9] sm:$0xf]  ;;  %v189_v18 = vmul.f32 %v431_v0, %v180_v13  ;;  %v198_v28 = vld [vmem:[%s544_s21 + $0x11] sm:$0xf]  ;;  %v190_v34 = vmul.f32 %v431_v0, %v181_v27 }
  0x14   : > { %v192_v11 = vadd.f32 %v549_v2, %v188_v7  ;;  %v222_v12 = vmul.f32 %v554_v3, %v213_v6  ;;  %v214_v15 = vld [vmem:[%s544_s21 + $0xa] sm:$0xf]  ;;  %v206_v19 = vmul.f32 %v432_v1, %v197_v14  ;;  %v215_v29 = vld [vmem:[%s544_s21 + $0x12] sm:$0xf]  ;;  %v207_v35 = vmul.f32 %v432_v1, %v198_v28  ;;  %v436_v40 = vld [vmem:[%s544_s21 + $0x18] sm:$0xf] }
  0x15   : > { %v439_v16 = vld [vmem:[%s544_s21 + $0x9] sm:$0xf]  ;;  %v193_v25 = vadd.f32 %v549_v2, %v189_v18  ;;  %v223_v26 = vmul.f32 %v554_v3, %v214_v15  ;;  %v440_v33 = vld [vmem:[%s544_s21 + $0x11] sm:$0xf]  ;;  %v194_v43 = vadd.f32 %v549_v2, %v190_v34  ;;  %v224_v44 = vmul.f32 %v554_v3, %v215_v29  ;;  %v182_v45 = vld [vmem:[%s544_s21 + $0x18] sm:$0xf] }
  0x16   : > { %v209_v20 = vadd.f32 %v205_v8, %v192_v11  ;;  %v444_v22 = vld [vmem:[%s544_s21 + $0xa] sm:$0xf]  ;;  %v257_v31 = vmul.f32 %v574_v17, %v439_v16  ;;  %v449_v36 = vld [vmem:[%s544_s21 + $0x10] sm:$0xf]  ;;  %v199_v46 = vld [vmem:[%s544_s21 + $0x19] sm:$0xf]  ;;  %v258_v51 = vmul.f32 %v574_v17, %v440_v33  ;;  %v191_v53 = vmul.f32 %v431_v0, %v182_v45 }
  0x17   : > { %v210_v37 = vadd.f32 %v206_v19, %v193_v25  ;;  %v445_v39 = vld [vmem:[%s544_s21 + $0x12] sm:$0xf]  ;;  %v274_v42 = vmul.f32 %v581_v23, %v444_v22  ;;  %v216_v47 = vld [vmem:[%s544_s21 + $0x1a] sm:$0xf]  ;;  %v208_v54 = vmul.f32 %v432_v1, %v199_v46  ;;  %v292_v56 = vmul.f32 %v593_v32, %v449_v36  ;;  %v437_v60 = vld [vmem:[%s544_s21 + $0x20] sm:$0xf] }
  0x18   : > { %v226_v30 = vadd.f32 %v222_v12, %v209_v20  ;;  %v454_v48 = vld [vmem:[%s544_s21 + $0x11] sm:$0xf]  ;;  %v441_v52 = vld [vmem:[%s544_s21 + $0x19] sm:$0xf]  ;;  %v211_v58 = vadd.f32 %v207_v35, %v194_v43  ;;  %v242_v59 = vmul.f32 %v563_v10, %v436_v40  ;;  %v275_v0 = vmul.f32 %v581_v23, %v445_v39  ;;  %v442_v12 = vld [vmem:[%s544_s21 + $0x21] sm:$0xf] }
  0x19   : > { %v227_v50 = vadd.f32 %v223_v26, %v210_v37  ;;  %v450_v57 = vld [vmem:[%s544_s21 + $0x18] sm:$0xf]  ;;  %v459_v61 = vld [vmem:[%s544_s21 + $0x12] sm:$0xf]  ;;  %v195_v4 = vadd.f32 %v549_v2, %v191_v53  ;;  %v225_v5 = vmul.f32 %v554_v3, %v216_v47  ;;  %v309_v7 = vmul.f32 %v610_v49, %v454_v48  ;;  %v451_v15 = vld [vmem:[%s544_s21 + $0x20] sm:$0xf] }
  0x1a   : > { %v244_v41 = vadd.f32 %v240_v21, %v226_v30  ;;  %v446_v1 = vld [vmem:[%s544_s21 + $0x1a] sm:$0xf]  ;;  %v228_v9 = vadd.f32 %v224_v44, %v211_v58  ;;  %v259_v11 = vmul.f32 %v574_v17, %v441_v52  ;;  %v293_v14 = vmul.f32 %v593_v32, %v450_v57  ;;  %v447_v22 = vld [vmem:[%s544_s21 + $0x22] sm:$0xf]  ;;  %v462_v47 = vld [vmem:[%s544_s21 + $0x2a] sm:$0xf] }
  0x1b   : > { %v245_v63 = vadd.f32 %v241_v38, %v227_v50  ;;  %v455_v8 = vld [vmem:[%s544_s21 + $0x19] sm:$0xf]  ;;  %v212_v16 = vadd.f32 %v208_v54, %v195_v4  ;;  %v243_v2 = vmul.f32 %v563_v10, %v437_v60  ;;  %v326_v3 = vmul.f32 %v463_v62, %v459_v61  ;;  %v456_v26 = vld [vmem:[%s544_s21 + $0x21] sm:$0xf] }
  0x1c   : > { %v261_v55 = vadd.f32 %v257_v31, %v244_v41  ;;  %v460_v19 = vld [vmem:[%s544_s21 + $0x1a] sm:$0xf]  ;;  %v246_v20 = vadd.f32 %v242_v59, %v228_v9  ;;  %v276_v21 = vmul.f32 %v581_v23, %v446_v1  ;;  %v310_v25 = vmul.f32 %v610_v49, %v455_v8  ;;  %v452_v31 = vld [vmem:[%s544_s21 + $0x28] sm:$0xf]  ;;  %v461_v35 = vld [vmem:[%s544_s21 + $0x22] sm:$0xf] }
  0x1d   : > { %v262_v13 = vadd.f32 %v258_v51, %v245_v63  ;;  %v229_v27 = vadd.f32 %v225_v5, %v212_v16  ;;  %v260_v28 = vmul.f32 %v574_v17, %v442_v12  ;;  %v294_v10 = vmul.f32 %v593_v32, %v451_v15  ;;  %v457_v41 = vld [vmem:[%s544_s21 + $0x29] sm:$0xf] }
  0x1e   : > { %v278_v6 = vadd.f32 %v274_v42, %v261_v55  ;;  %v263_v30 = vadd.f32 %v259_v11, %v246_v20  ;;  %v327_v34 = vmul.f32 %v463_v62, %v460_v19  ;;  %v277_v37 = vmul.f32 %v581_v23, %v447_v22 }
  0x1f   : > { %v279_v24 = vadd.f32 %v275_v0, %v262_v13  ;;  %v247_v36 = vadd.f32 %v243_v2, %v229_v27  ;;  %v311_v40 = vmul.f32 %v610_v49, %v456_v26  ;;  %v295_v17 = vmul.f32 %v593_v32, %v452_v31 }
  0x20   : > { %v296_v18 = vadd.f32 %v292_v56, %v278_v6  ;;  %v280_v39 = vadd.f32 %v276_v21, %v263_v30  ;;  %v328_v46 = vmul.f32 %v463_v62, %v461_v35  ;;  %v312_v51 = vmul.f32 %v610_v49, %v457_v41 }
  0x21   : > { %v297_v33 = vadd.f32 %v293_v14, %v279_v24  ;;  %v264_v43 = vadd.f32 %v260_v28, %v247_v36  ;;  %v329_v54 = vmul.f32 %v463_v62, %v462_v47 }
  0x22   : > { %v313_v29 = vadd.f32 %v309_v7, %v296_v18  ;;  %v298_v45 = vadd.f32 %v294_v10, %v280_v39 }
  0x23   : > { %v314_v42 = vadd.f32 %v310_v25, %v297_v33  ;;  %v281_v50 = vadd.f32 %v277_v37, %v264_v43 }
  0x24   : > { %v330_v38 = vadd.f32 %v326_v3, %v313_v29  ;;  %v315_v52 = vadd.f32 %v311_v40, %v298_v45 }
  0x25   : > { %v331_v48 = vadd.f32 %v327_v34, %v314_v42  ;;  %v299_v53 = vadd.f32 %v295_v17, %v281_v50 }
  0x26   : > { %v464_v44 = vmul.f32 -1.442695, %v330_v38  ;;  %v332_v55 = vadd.f32 %v328_v46, %v315_v52 }
  0x27   : > { %v465_v23 = vmul.f32 -1.442695, %v331_v48  ;;  %v316_v56 = vadd.f32 %v312_v51, %v299_v53 }
  0x28   : > { %480 = vpow2.f32 %v464_v44  ;;  %v466_v57 = vmul.f32 -1.442695, %v332_v55 }
  0x29   : > { %482 = vpow2.f32 %v465_v23  ;;  %v333_v58 = vadd.f32 %v329_v54, %v316_v56 }
  0x2a   : > { %484 = vpow2.f32 %v466_v57 }
  0x2b   : > { %v467_v32 = vmul.f32 -1.442695, %v333_v58 }
  0x2d   : > { %486 = vpow2.f32 %v467_v32 }
  0x32   : > { %v481_v59 = vpop.eup %480 }
  0x33   : > { %v346_v60 = vadd.f32 1.0, %v481_v59  ;;  %v483_v61 = vpop.eup %482 }
  0x34   : > { %v347_v63 = vadd.f32 1.0, %v483_v61  ;;  %v485_v49 = vpop.eup %484 }
  0x35   : > { %488 = vrcp.f32 %v346_v60  ;;  %v348_v0 = vadd.f32 1.0, %v485_v49 }
  0x36   : > { %490 = vrcp.f32 %v347_v63 }
  0x37   : > { %v487_v1 = vpop.eup %486  ;;  %492 = vrcp.f32 %v348_v0 }
  0x38   : > { %v349_v62 = vadd.f32 1.0, %v487_v1 }
  0x3a   : > { %494 = vrcp.f32 %v349_v62 }
  0x3f   : > { %v489_v4 = vpop.eup %488 }
  0x40   : > { %v358_v5 = vmul.f32 %v489_v4, %v330_v38  ;;  %v491_v6 = vpop.eup %490 }
  0x41   : > { %v359_v7 = vmul.f32 %v491_v6, %v331_v48  ;;  %v493_v8 = vpop.eup %492 }
  0x42   : > { %363 = vst.msk [vmem:[%s170_s16] sm:$0xf] %vm362_vm0, %v358_v5  ;;  %v360_v9 = vmul.f32 %v493_v8, %v332_v55 }
  0x43   : > { %364 = vst.msk [vmem:[%s170_s16 + $0x4] sm:$0xf] %vm362_vm0, %v359_v7 }
  0x44   : > { %v495_v11 = vpop.eup %494  ;;  %365 = vst.msk [vmem:[%s170_s16 + $0x8] sm:$0xf] %vm362_vm0, %v360_v9 }
  0x45   : > { %v361_v12 = vmul.f32 %v495_v11, %v333_v58 }
  0x47   : > { %366 = vst.msk [vmem:[%s170_s16 + $0xc] sm:$0xf] %vm362_vm0, %v361_v12 }
  0x48 PF: > { %s13_s12 = sadd.s32 1, %s502_s12  }
  0x49   : > { %p10_p4 = scmp.ge.s32.totalorder %s13_s12, 4  }
  0x4b   :  { %12 = sbr.rel (!%p10_p4) target bundleno = 1 (0x1), region = 64 }

// kernel: vmrnn_forward.78
= control target key start
LH: loop header
LB: loop body
LE: loop exit
PB: predicated region body
PF: predicated region fallthrough
CT: control target
= control target key end

     0   :  { %s792_s18 = smov 0   ;;  %s841_s0 = inlined_call_operand.vmem [shape: bf16[4,32,64], index: 0, kind: input, shape index: {}]   ;;  %s842_s1 = inlined_call_operand.vmem [shape: bf16[4,64,34], index: 1, kind: input, shape index: {}]   ;;  %s843_s2 = inlined_call_operand.vmem [shape: bf16[4,2,64], index: 2, kind: input, shape index: {}]   ;;  %s844_s3 = inlined_call_operand.vmem [shape: f32[4,32,64], index: 3, kind: output, shape index: {0}]   ;;  %s845_s4 = inlined_call_operand.vmem [shape: f32[4,32,16], index: 4, kind: output, shape index: {1}]   ;;  %s846_s5 = inlined_call_operand.vmem [shape: f32[4,32,16], index: 5, kind: output, shape index: {2}]  }
   0x1 LB: > { %s670_s19 = sadd.s32 4294967295, %s758_s18   ;;  %p674_p0 = scmp.ge.s32.totalorder %s758_s18, 1  ;;  %s758_s18 = sphi %s792_s18, %s16_s18  }
   0x2   : > { %p210_p1 = scmp.lt.s32.totalorder %s758_s18, 5 }
   0x4   : > { %p211_p2 = pnand %p674_p0, %p210_p1 }
   0x5   : > { %p256_p3 = scmp.lt.s32.totalorder (!%p211_p2), %s670_s19, 3  ;;  %vm331_vm0 = vcmask (!%p211_p2), 523264   ;;  %vm402_vm1 = vcmask (!%p211_p2), 1041408   ;;  %vm389_vm2 = vcmask (!%p211_p2), 15360   ;;  %s760_s6 = smov (!%p211_p2), 126   ;;  %vm507_vm3 = vcmask (!%p211_p2), 130048  }
   0x6   : > { %214 = sbr.rel (%p211_p2) target bundleno = 466 (0x1d2), region = 32  ;;  %s761_s7 = smov (!%p211_p2), 110  }
   0xd   : > { %s848_s19 = smov (!%p256_p3, %s670_s19), 3 }
   0xe   : > { %s800_s20 = sshll.u32 %s848_s19, 5  ;;  %s700_s21 = sshll.u32 %s848_s19, 4 }
   0xf   : > { %s265_s24 = scalar_lea.vmem %s842_s1, %s800_s20  ;;  %s260_s27 = scalar_lea.vmem %s841_s0, %s700_s21 }
  0x10   : > { %v746_v0 = vld [vmem:[%s265_s24] sm:$0xff]   ;;  %v747_v1 = vld [vmem:[%s265_s24 + $0x8] sm:$0xff]   ;;  %v748_v2 = vld [vmem:[%s265_s24 + $0x10] sm:$0xff]   ;;  %s268_s30 = scalar_lea.vmem %s843_s2, %s848_s19  ;;  %s278_s10 = scalar_lea.vmem %s845_s4, %s800_s20 }
  0x11   : > { %716 = vmatprep.subr.bf16.mxu0 %v746_v0  ;;  %v750_v3 = vld [vmem:[%s260_s27] sm:$0xff]   ;;  %v749_v4 = vld [vmem:[%s265_s24 + $0x18] sm:$0xff]   ;;  %v751_v5 = vld [vmem:[%s260_s27 + $0x8] sm:$0xff]   ;;  %s283_s13 = scalar_lea.vmem %s846_s5, %s800_s20  ;;  %s273_s16 = scalar_lea.vmem %s844_s3, %s800_s20 }
  0x12   : > { %717 = vmatpush3.bf16.msra.mxu0 %v746_v0  ;;  %724 = vmatprep.mubr.msk.bf16.mxu0 %vm331_vm0, %v750_v3  ;;  %v387_v6 = vld [vmem:[%s268_s30] sm:$0x1] }
  0x13   : > { %718 = vmatprep.subr.bf16.mxu0 %v747_v1  ;;  %v388_v7 = vunpack.c.l.bf16 %v387_v6 }
  0x15   : > { %728 = vmatprep.subr.msk.mxu1 %vm402_vm1, %v388_v7 }
  0x16   : > { %719 = vmatpush3.bf16.msra.mxu0 %v747_v1  ;;  %729 = vmatpush3.msk.msra.mxu1 %vm402_vm1, %v388_v7 }
  0x17   : > { %720 = vmatprep.subr.bf16.mxu0 %v748_v2 }
  0x1a   : > { %721 = vmatpush3.bf16.msra.mxu0 %v748_v2 }
  0x1b   : > { %722 = vmatprep.subr.bf16.mxu0 %v749_v4 }
  0x1e   : > { %723 = vmatpush3.bf16.msra.mxu0 %v749_v4 }
  0x21   : > { %725 = vmatmul.mubr.msk.bf16.vlgmr.msra.gmra.mrb[0].mxu0 %vm331_vm0, %v751_v5 }
  0xf4   : > { %v726_v8 = vpop.f32.mrb[0].mxu0 }
  0xf5   : > { %499 = vrot.lane.b32.xlu1 %v726_v8, %s760_s6  ;;  %v372_v9 = vpop.f32.mrb[1].mxu0 }
  0xf6   : > { %495 = vrot.lane.b32.xlu0 %v372_v9, %s760_s6  ;;  %v727_v10 = vpop.f32.mrb[2].mxu0  ;;  %730 = vmatprep.mubr.msk.f32.mxu1 %vm389_vm2, %v372_v9 }
  0xf7   : > { %v375_v11 = vpop.f32.mrb[3].mxu0 }
  0xf8   : > { %731 = vmatmul.mubr.msk.f32.vlgmr.msra.gmra.mrb[0].mxu1 %vm389_vm2, %v375_v11 }
  0xf9   : > { %501 = vrot.lane.b32.xlu1 %v727_v10, %s760_s6  ;;  %733 = vmatprep.mubr.msk.f32.mxu1 %vm389_vm2, %v726_v8 }
  0xfa   : > { %512 = vrot.lane.b32.xlu0 %v372_v9, %s761_s7 }
  0xfc   : > { %734 = vmatmul.mubr.msk.f32.gmra.mrb[2].mxu1 %vm389_vm2, %v727_v10 }
  0xfd   : > { %514 = vrot.lane.b32.xlu1 %v375_v11, %s761_s7 }
  0xfe   : > { %497 = vrot.lane.b32.xlu0 %v375_v11, %s760_s6 }
 0x101   : > { %518 = vrot.lane.b32.xlu1 %v727_v10, %s761_s7 }
 0x102   : > { %516 = vrot.lane.b32.xlu0 %v726_v8, %s761_s7 }
 0x167   : > { %v500_v12 = vpop.permute.xlu1 %499 }
 0x168   : > { %510 = vst.msk [vmem:[%s278_s10 + $0x10] sm:$0xff] %vm507_vm3, %v500_v12  ;;  %v496_v13 = vpop.permute.xlu0 %495 }
 0x169   : > { %508 = vst.msk [vmem:[%s278_s10] sm:$0xff] %vm507_vm3, %v496_v13 }
 0x16b   : > { %v502_v14 = vpop.permute.xlu1 %501 }
 0x16c   : > { %511 = vst.msk [vmem:[%s278_s10 + $0x18] sm:$0xff] %vm507_vm3, %v502_v14  ;;  %v513_v15 = vpop.permute.xlu0 %512 }
 0x16d   : > { %524 = vst.msk [vmem:[%s283_s13] sm:$0xff] %vm507_vm3, %v513_v15 }
 0x16f   : > { %v515_v16 = vpop.permute.xlu1 %514 }
 0x170   : > { %525 = vst.msk [vmem:[%s283_s13 + $0x8] sm:$0xff] %vm507_vm3, %v515_v16  ;;  %v498_v17 = vpop.permute.xlu0 %497 }
 0x171   : > { %509 = vst.msk [vmem:[%s278_s10 + $0x8] sm:$0xff] %vm507_vm3, %v498_v17 }
 0x173   : > { %v519_v18 = vpop.permute.xlu1 %518 }
 0x174   : > { %527 = vst.msk [vmem:[%s283_s13 + $0x18] sm:$0xff] %vm507_vm3, %v519_v18  ;;  %v517_v19 = vpop.permute.xlu0 %516 }
 0x175   : > { %526 = vst.msk [vmem:[%s283_s13 + $0x10] sm:$0xff] %vm507_vm3, %v517_v19 }
 0x1cb   : > { %v732_v20 = vpop.f32.mrb[0].mxu1 }
 0x1cc   : > { %492 = vst.msk [vmem:[%s273_s16 + $0x8] sm:$0xff] %vm331_vm0, %v732_v20  ;;  %v472_v21 = vpop.f32.mrb[1].mxu1 }
 0x1cd   : > { %491 = vst.msk [vmem:[%s273_s16] sm:$0xff] %vm331_vm0, %v472_v21 }
 0x1cf   : > { %v735_v22 = vpop.f32.mrb[2].mxu1 }
 0x1d0   : > { %494 = vst.msk [vmem:[%s273_s16 + $0x18] sm:$0xff] %vm331_vm0, %v735_v22  ;;  %v482_v23 = vpop.f32.mrb[3].mxu1 }
 0x1d1   : > { %493 = vst.msk [vmem:[%s273_s16 + $0x10] sm:$0xff] %vm331_vm0, %v482_v23 }
 0x1d2 PF: > { %s16_s18 = sadd.s32 1, %s758_s18  }
 0x1d3   : > { %p13_p4 = scmp.ge.s32.totalorder %s16_s18, 6  }
 0x1d5   :  { %15 = sbr.rel (!%p13_p4) target bundleno = 1 (0x1), region = 92 }

// kernel: vmrnn_forward.80
= control target key start
LH: loop header
LB: loop body
LE: loop exit
PB: predicated region body
PF: predicated region fallthrough
CT: control target
= control target key end

     0   :  { %vm25_vm0 = vcmask 523264   ;;  %s406_s0 = inlined_call_operand.vmem [shape: f32[32,64], index: 0, kind: input, shape index: {}]   ;;  %s407_s4 = inlined_call_operand.vmem [shape: bf16[64,128], index: 4, kind: input, shape index: {}]   ;;  %s408_s1 = inlined_call_operand.vmem [shape: f32[32,64], index: 1, kind: input, shape index: {}]   ;;  %s409_s2 = inlined_call_operand.vmem [shape: f32[1,64], index: 2, kind: input, shape index: {}]   ;;  %s410_s3 = inlined_call_operand.vmem [shape: f32[1,64], index: 3, kind: input, shape index: {}]   ;;  %s411_s5 = inlined_call_operand.vmem [shape: f32[32,128], index: 5, kind: output, shape index: {}]  }
   0x1   :  { %v21_v0 = vld [vmem:[%s406_s0] sm:$0xff]  ;;  %v23_v1 = vld [vmem:[%s406_s0 + $0x10] sm:$0xff]  ;;  %v22_v2 = vld [vmem:[%s406_s0 + $0x8] sm:$0xff] }
   0x2   :  { %v26_v3 = vsel %vm25_vm0, %v21_v0, 0.0  ;;  %v32_v4 = vsel %vm25_vm0, %v23_v1, 0.0  ;;  %v24_v5 = vld [vmem:[%s406_s0 + $0x18] sm:$0xff]  ;;  %v29_v6 = vsel %vm25_vm0, %v22_v2, 0.0  ;;  %v264_v28 = vld [vmem:[%s407_s4] sm:$0xff]   ;;  %v265_v29 = vld [vmem:[%s407_s4 + $0x8] sm:$0xff]  }
   0x3   :  { %27 = vadd.xlane.f32.xlu0 %v26_v3  ;;  %33 = vadd.xlane.f32.xlu1 %v32_v4  ;;  %v35_v7 = vsel %vm25_vm0, %v24_v5, 0.0  ;;  %v266_v30 = vld [vmem:[%s407_s4 + $0x10] sm:$0xff]   ;;  %v267_v31 = vld [vmem:[%s407_s4 + $0x18] sm:$0xff]   ;;  %v101_v32 = vld [vmem:[%s408_s1] sm:$0xff] }
   0x4   :  { %252 = vmatprep.subr.bf16.mxu0 %v264_v28  ;;  %v102_v33 = vld [vmem:[%s408_s1 + $0x8] sm:$0xff]  ;;  %v236_v34 = vmul.f32 -1.442695, %v101_v32  ;;  %v103_v36 = vld [vmem:[%s408_s1 + $0x10] sm:$0xff]  ;;  %v104_v37 = vld [vmem:[%s408_s1 + $0x18] sm:$0xff] }
   0x5   :  { %253 = vmatpush3.bf16.msra.mxu0 %v264_v28  ;;  %v237_v35 = vmul.f32 -1.442695, %v102_v33  ;;  %v238_v38 = vmul.f32 -1.442695, %v103_v36  ;;  %v239_v39 = vmul.f32 -1.442695, %v104_v37 }
   0x6   :  { %254 = vmatprep.subr.bf16.mxu0 %v265_v29  ;;  %268 = vpow2.f32 %v236_v34  ;;  %v234_v61 = vld [vmem:[%s409_s2] ss:$0 sm:$0xff] }
   0x7   :  { %30 = vadd.xlane.f32.xlu0 %v29_v6  ;;  %36 = vadd.xlane.f32.xlu1 %v35_v7  ;;  %270 = vpow2.f32 %v237_v35  ;;  %v235_v3 = vld [vmem:[%s410_s3] ss:$0 sm:$0xff] }
   0x8   :  { %272 = vpow2.f32 %v238_v38 }
   0x9   :  { %255 = vmatpush3.bf16.msra.mxu0 %v265_v29  ;;  %274 = vpow2.f32 %v239_v39 }
   0xa   :  { %256 = vmatprep.subr.bf16.mxu0 %v266_v30 }
   0xd   :  { %257 = vmatpush3.bf16.msra.mxu0 %v266_v30 }
   0xe   :  { %258 = vmatprep.subr.bf16.mxu0 %v267_v31 }
  0x10   :  { %v269_v40 = vpop.eup %268 }
  0x11   :  { %259 = vmatpush3.bf16.msra.mxu0 %v267_v31  ;;  %v271_v42 = vpop.eup %270  ;;  %v117_v45 = vadd.f32 1.0, %v269_v40 }
  0x12   :  { %v273_v46 = vpop.eup %272  ;;  %v118_v49 = vadd.f32 1.0, %v271_v42 }
  0x13   :  { %v275_v50 = vpop.eup %274  ;;  %v119_v55 = vadd.f32 1.0, %v273_v46 }
  0x14   :  { %v120_v57 = vadd.f32 1.0, %v275_v50 }
  0x90   :  { %v28_v8 = vpop.xlane.xlu0 %27  ;;  %v34_v9 = vpop.xlane.xlu1 %33 }
  0x91   :  { %v39_v10 = vmul.f32 0.015625, %v28_v8  ;;  %v41_v11 = vmul.f32 0.015625, %v34_v9 }
  0x93   :  { %v338_v12 = vsub.f32 %v21_v0, %v39_v10  ;;  %v340_v13 = vsub.f32 %v23_v1, %v41_v11 }
  0x94   :  { %v31_v14 = vpop.xlane.xlu0 %30  ;;  %v37_v15 = vpop.xlane.xlu1 %36 }
  0x95   :  { %v40_v16 = vmul.f32 0.015625, %v31_v14  ;;  %v42_v17 = vmul.f32 0.015625, %v37_v15  ;;  %v47_v18 = vmul.f32 %v338_v12, %v338_v12  ;;  %v49_v19 = vmul.f32 %v340_v13, %v340_v13 }
  0x97   :  { %v346_v20 = vsub.f32 %v22_v2, %v40_v16  ;;  %v348_v21 = vsub.f32 %v24_v5, %v42_v17  ;;  %v51_v22 = vsel %vm25_vm0, %v47_v18, 0.0  ;;  %v57_v23 = vsel %vm25_vm0, %v49_v19, 0.0 }
  0x98   :  { %52 = vadd.xlane.f32.xlu0 %v51_v22 }
  0x99   :  { %v48_v24 = vmul.f32 %v346_v20, %v346_v20  ;;  %v50_v25 = vmul.f32 %v348_v21, %v348_v21 }
  0x9b   :  { %v54_v26 = vsel %vm25_vm0, %v48_v24, 0.0  ;;  %v60_v27 = vsel %vm25_vm0, %v50_v25, 0.0 }
  0x9c   :  { %58 = vadd.xlane.f32.xlu0 %v57_v23  ;;  %55 = vadd.xlane.f32.xlu1 %v54_v26 }
  0xa0   :  { %61 = vadd.xlane.f32.xlu1 %v60_v27 }
 0x125   :  { %v53_v41 = vpop.xlane.xlu0 %52 }
 0x126   :  { %v63_v43 = vmul.f32 0.015625, %v53_v41 }
 0x128   :  { %v67_v44 = vadd.f32 1e-05, %v63_v43 }
 0x129   :  { %v56_v47 = vpop.xlane.xlu1 %55  ;;  %v59_v48 = vpop.xlane.xlu0 %58 }
 0x12a   :  { %276 = vrsqrt.f32 %v67_v44  ;;  %v64_v51 = vmul.f32 0.015625, %v56_v47  ;;  %v65_v52 = vmul.f32 0.015625, %v59_v48 }
 0x12b   :  { %278 = vrcp.f32 %v117_v45 }
 0x12c   :  { %v68_v53 = vadd.f32 1e-05, %v64_v51  ;;  %v69_v54 = vadd.f32 1e-05, %v65_v52  ;;  %280 = vrcp.f32 %v118_v49 }
 0x12d   :  { %v62_v56 = vpop.xlane.xlu1 %61 }
 0x12e   :  { %282 = vrsqrt.f32 %v68_v53  ;;  %v66_v58 = vmul.f32 0.015625, %v62_v56 }
 0x12f   :  { %284 = vrsqrt.f32 %v69_v54 }
 0x130   :  { %v70_v59 = vadd.f32 1e-05, %v66_v58  ;;  %286 = vrcp.f32 %v119_v55 }
 0x131   :  { %288 = vrcp.f32 %v120_v57 }
 0x132   :  { %290 = vrsqrt.f32 %v70_v59 }
 0x134   :  { %v277_v60 = vpop.eup %276 }
 0x135   :  { %v75_v62 = vmul.f32 %v277_v60, %v338_v12  ;;  %v279_v63 = vpop.eup %278 }
 0x136   :  { %v281_v0 = vpop.eup %280  ;;  %v129_v11 = vmul.f32 %v279_v63, %v101_v32 }
 0x137   :  { %v86_v1 = vmul.f32 %v234_v61, %v75_v62  ;;  %v130_v14 = vmul.f32 %v281_v0, %v102_v33 }
 0x138   :  { %v283_v2 = vpop.eup %282 }
 0x139   :  { %v285_v4 = vpop.eup %284  ;;  %v76_v5 = vmul.f32 %v283_v2, %v346_v20  ;;  %v97_v10 = vadd.f32 %v235_v3, %v86_v1 }
 0x13a   :  { %v287_v6 = vpop.eup %286  ;;  %v77_v7 = vmul.f32 %v285_v4, %v340_v13 }
 0x13b   :  { %v289_v8 = vpop.eup %288  ;;  %v87_v9 = vmul.f32 %v234_v61, %v76_v5  ;;  %v131_v18 = vmul.f32 %v287_v6, %v103_v36  ;;  %v133_v22 = vmul.f32 %v129_v11, %v97_v10 }
 0x13c   :  { %v291_v12 = vpop.eup %290  ;;  %v88_v15 = vmul.f32 %v234_v61, %v77_v7  ;;  %v132_v19 = vmul.f32 %v289_v8, %v104_v37 }
 0x13d   :  { %v78_v16 = vmul.f32 %v291_v12, %v348_v21  ;;  %v98_v17 = vadd.f32 %v235_v3, %v87_v9 }
 0x13e   :  { %v99_v25 = vadd.f32 %v235_v3, %v88_v15 }
 0x13f   :  { %v134_v23 = vmul.f32 %v130_v14, %v98_v17  ;;  %v89_v24 = vmul.f32 %v234_v61, %v78_v16 }
 0x140   :  { %v135_v13 = vmul.f32 %v131_v18, %v99_v25 }
 0x141   :  { %v137_v20 = vpack.c.bf16 %v134_v23, %v133_v22  ;;  %v100_v26 = vadd.f32 %v235_v3, %v89_v24 }
 0x143   :  { %260 = vmatprep.mubr.msk.bf16.mxu0 %vm25_vm0, %v137_v20  ;;  %v136_v27 = vmul.f32 %v132_v19, %v100_v26 }
 0x145   :  { %v138_v28 = vpack.c.bf16 %v136_v27, %v135_v13 }
 0x147   :  { %261 = vmatmul.mubr.msk.bf16.vlgmr.msra.gmra.mrb[0].mxu0 %vm25_vm0, %v138_v28 }
 0x21a   :  { %v262_v29 = vpop.f32.mrb[0].mxu0 }
 0x21b   :  { %228 = vst [vmem:[%s411_s5 + $0x10] sm:$0xff] %v262_v29  ;;  %v211_v21 = vpop.f32.mrb[1].mxu0 }
 0x21c   :  { %226 = vst [vmem:[%s411_s5] sm:$0xff] %v211_v21  ;;  %v263_v30 = vpop.f32.mrb[2].mxu0 }
 0x21d   :  { %229 = vst [vmem:[%s411_s5 + $0x18] sm:$0xff] %v263_v30  ;;  %v214_v31 = vpop.f32.mrb[3].mxu0 }
 0x21e   :  { %227 = vst [vmem:[%s411_s5 + $0x8] sm:$0xff] %v214_v31 }

// kernel: vmrnn_forward.87
= control target key start
LH: loop header
LB: loop body
LE: loop exit
PB: predicated region body
PF: predicated region fallthrough
CT: control target
= control target key end

     0   :  { %s237_s0 = inlined_call_operand.vmem [shape: f32[32,32], index: 0, kind: input, shape index: {}]   ;;  %s238_s1 = inlined_call_operand.vmem [shape: f32[32,32], index: 1, kind: input, shape index: {}]   ;;  %s239_s2 = inlined_call_operand.vmem [shape: f32[32,32], index: 2, kind: output, shape index: {0}]   ;;  %s240_s3 = inlined_call_operand.hbm [shape: f32[32,32], index: 3, kind: output, shape index: {1}]  }
   0x1   :  { %v14_v0 = vld [vmem:[%s237_s0] sm:$0xff]  ;;  %v15_v1 = vld [vmem:[%s237_s0 + $0x8] sm:$0xff]  ;;  %v16_v4 = vld [vmem:[%s237_s0 + $0x10] sm:$0xff] }
   0x2   :  { %v95_v2 = vmul.f32 -1.442695, %v14_v0  ;;  %v96_v3 = vmul.f32 -1.442695, %v15_v1  ;;  %v97_v5 = vmul.f32 -1.442695, %v16_v4 }
   0x3   :  { %v17_v6 = vld [vmem:[%s237_s0 + $0x18] sm:$0xff] }
   0x4   :  { %102 = vpow2.f32 %v95_v2  ;;  %v98_v7 = vmul.f32 -1.442695, %v17_v6 }
   0x5   :  { %9 = vsyncpa [#allocation3], 0  ;;  %104 = vpow2.f32 %v96_v3  ;;  %v18_v17 = vld [vmem:[%s238_s1] sm:$0xff]  ;;  %v19_v19 = vld [vmem:[%s238_s1 + $0x8] sm:$0xff]  ;;  %vm66_vm0 = vcmask 261120   ;;  %s158_s27 = smov [#allocation2]  }
   0x6   :  { %106 = vpow2.f32 %v97_v5  ;;  %v20_v21 = vld [vmem:[%s238_s1 + $0x10] sm:$0xff]  ;;  %v21_v25 = vld [vmem:[%s238_s1 + $0x18] sm:$0xff]  ;;  %s82_s28 = sshll.u32 %s158_s27, 4  ;;  %s83_s28 = int_to_ptr.vmem [resolvable:$true] %s82_s28 }
   0x7   :  { %108 = vpow2.f32 %v98_v7  ;;  %s134_s1 = scalar_lea.vmem %s83_s28, 512  ;;  %p139_p1 = scmp.lt.s32.totalorder %s83_s28, %s83_s28 }
   0x8   :  { %110 = vtanh.f32 %v14_v0  ;;  %p135_p0 = scmp.ne.s32.totalorder %s83_s28, %s134_s1  ;;  %p140_p2 = scmp.lt.s32.totalorder %s134_s1, %s134_s1 }
   0x9   :  { %112 = vtanh.f32 %v15_v1 }
   0xa   :  { %114 = vtanh.f32 %v16_v4  ;;  %p141_p3 = por %p140_p2, %p139_p1 }
   0xb   :  { %116 = vtanh.f32 %v17_v6 }
   0xc   :  { %p142_p4 = pnand %p141_p3, %p135_p0 }
   0xe   :  { %v103_v8 = vpop.eup %102 }
   0xf   :  { %v105_v9 = vpop.eup %104  ;;  %v34_v10 = vadd.f32 1.0, %v103_v8 }
  0x10   :  { %v107_v11 = vpop.eup %106  ;;  %v35_v12 = vadd.f32 1.0, %v105_v9 }
  0x11   :  { %118 = vrcp.f32 %v34_v10  ;;  %v36_v13 = vadd.f32 1.0, %v107_v11  ;;  %v109_v14 = vpop.eup %108 }
  0x12   :  { %120 = vrcp.f32 %v35_v12  ;;  %v37_v15 = vadd.f32 1.0, %v109_v14  ;;  %v111_v16 = vpop.eup %110 }
  0x13   :  { %122 = vrcp.f32 %v36_v13  ;;  %v113_v18 = vpop.eup %112  ;;  %v50_v22 = vadd.f32 %v111_v16, %v18_v17 }
  0x14   :  { %124 = vrcp.f32 %v37_v15  ;;  %v115_v20 = vpop.eup %114  ;;  %v51_v24 = vadd.f32 %v113_v18, %v19_v19 }
  0x15   :  { %v117_v23 = vpop.eup %116  ;;  %v52_v26 = vadd.f32 %v115_v20, %v20_v21 }
  0x16   :  { %v53_v30 = vadd.f32 %v117_v23, %v21_v25 }
  0x1b   :  { %v119_v27 = vpop.eup %118 }
  0x1c   :  { %v121_v28 = vpop.eup %120  ;;  %v54_v29 = vmul.f32 %v119_v27, %v50_v22 }
  0x1d   :  { %v123_v31 = vpop.eup %122  ;;  %v55_v32 = vmul.f32 %v121_v28, %v51_v24 }
  0x1e   :  { %126 = vtanh.f32 %v54_v29  ;;  %71 = vst.msk [vmem:[#allocation2] sm:$0xff] %vm66_vm0, %v54_v29  ;;  %v56_v33 = vmul.f32 %v123_v31, %v52_v26  ;;  %v125_v34 = vpop.eup %124 }
  0x1f   :  { %128 = vtanh.f32 %v55_v32  ;;  %72 = vst.msk [vmem:[#allocation2 + $0x8] sm:$0xff] %vm66_vm0, %v55_v32  ;;  %v57_v35 = vmul.f32 %v125_v34, %v53_v30 }
  0x20   :  { %130 = vtanh.f32 %v56_v33  ;;  %73 = vst.msk [vmem:[#allocation2 + $0x10] sm:$0xff] %vm66_vm0, %v56_v33 }
  0x21   :  { %132 = vtanh.f32 %v57_v35  ;;  %74 = vst.msk [vmem:[#allocation2 + $0x18] sm:$0xff] %vm66_vm0, %v57_v35 }
  0x22   :  { %145 = shalt.err (!%p142_p4)
}
  0x23   :  { %s146_s4 = scalar_lea.hbm %s240_s3, 512 }
  0x24   :  { %p147_p5 = scmp.ne.s32.totalorder %s240_s3, %s146_s4  ;;  %p150_p6 = scmp.lt.u32.totalorder %s146_s4, %s240_s3 }
  0x26   :  { %p152_p7 = pnand %p150_p6, %p147_p5 }
  0x28   :  { %155 = shalt.err (!%p152_p7)
}
  0x29   :  { %s159_s9 = smov 128   ;;  %s160_s10 = smov 8   ;;  %v127_v36 = vpop.eup %126 }
  0x2a   :  { %88 = dma.vmem_to_hbm [thread:$0]  %s83_s28, 512, %s240_s3, [#allocation3], %s159_s9, %s159_s9, %s160_s10   ;;  %v129_v37 = vpop.eup %128  ;;  %v62_v38 = vmul.f32 %v127_v36, %v119_v27 }
  0x2b   :  { %v131_v39 = vpop.eup %130  ;;  %v63_v40 = vmul.f32 %v129_v37, %v121_v28 }
  0x2c   :  { %67 = vst.msk [vmem:[%s239_s2] sm:$0xff] %vm66_vm0, %v62_v38  ;;  %v64_v41 = vmul.f32 %v131_v39, %v123_v31  ;;  %v133_v42 = vpop.eup %132 }
  0x2d   :  { %68 = vst.msk [vmem:[%s239_s2 + $0x8] sm:$0xff] %vm66_vm0, %v63_v40  ;;  %v65_v43 = vmul.f32 %v133_v42, %v125_v34 }
  0x2e   :  { %69 = vst.msk [vmem:[%s239_s2 + $0x10] sm:$0xff] %vm66_vm0, %v64_v41 }
  0x2f   :  { %70 = vst.msk [vmem:[%s239_s2 + $0x18] sm:$0xff] %vm66_vm0, %v65_v43 }
  0x30   :  { %156 = dma.done.wait [#allocation3], 512  }
  0x31   :  { %157 = vsyncadd [#allocation3], 4294966784 }
  0x32   :  { %94 = vsyncpa [#allocation3], 1 }

// kernel: vmrnn_forward.79
= control target key start
LH: loop header
LB: loop body
LE: loop exit
PB: predicated region body
PF: predicated region fallthrough
CT: control target
= control target key end

     0   :  { %s2124_s24 = smov 0   ;;  %s2126_s25 = smov 0   ;;  %s2777_s0 = inlined_call_operand.vmem [shape: f32[2,4,16,64], index: 0, kind: input, shape index: {}]   ;;  %s2778_s1 = inlined_call_operand.vmem [shape: f32[2,4,16,64], index: 1, kind: input, shape index: {}]   ;;  %s2779_s2 = inlined_call_operand.vmem [shape: f32[2,4,16,16], index: 2, kind: input, shape index: {}]   ;;  %s2780_s3 = inlined_call_operand.vmem [shape: f32[2,4,16,16], index: 3, kind: input, shape index: {}]   ;;  %s2781_s4 = inlined_call_operand.vmem [shape: f32[4,16,64], index: 4, kind: input, shape index: {}]   ;;  %s2782_s5 = inlined_call_operand.vmem [shape: f32[4,1,64], index: 5, kind: input, shape index: {}]   ;;  %s2783_s6 = inlined_call_operand.vmem [shape: f32[4,1,64], index: 6, kind: input, shape index: {}]   ;;  %s2784_s7 = inlined_call_operand.vmem [shape: f32[2,4,16,64], index: 7, kind: output, shape index: {}]  }
   0x1   :  { %s2128_s26 = smov 0   ;;  %s2130_s27 = smov 0  }
   0x2   :  { %s2132_s28 = smov 0  }
   0x3 LB: > { %s26_s29 = sadd.s32 1, %s2073_s26  ;;  %s29_s30 = sadd.s32 1, %s2077_s27  ;;  %s2081_s28 = sphi %s2132_s28, %s17_s28   ;;  %s2077_s27 = sphi %s2130_s27, %s2788_s27   ;;  %s2073_s26 = sphi %s2128_s26, %s2787_s26   ;;  %s2069_s25 = sphi %s2126_s25, %s2786_s25   ;;  %s2065_s24 = sphi %s2124_s24, %s2785_s24  }
   0x4   : > { %p27_p0 = scmp.ge.s32.totalorder %s26_s29, 4  ;;  %p1907_p1 = scmp.ge.s32.totalorder %s2081_s28, 1 }
   0x5   : > { %p331_p2 = scmp.lt.s32.totalorder %s2081_s28, 9 }
   0x6   : > { %s2790_s29 = smov (%p27_p0, %s26_s29), 0  ;;  %s2792_s30 = smov (!%p27_p0, %s29_s30), %s2077_s27 }
   0x7   : > { %p332_p3 = pnand %p1907_p1, %p331_p2  ;;  %p31_p4 = scmp.ge.s32.totalorder %s2792_s30, 2 }
   0x8   : > { %p409_p5 = scmp.lt.s32.totalorder (!%p332_p3), %s2069_s25, 1  ;;  %p411_p6 = scmp.lt.s32.totalorder (!%p332_p3), %s2065_s24, 3  ;;  %v527_v0 = vlaneseq (!%p332_p3)  ;;  %v2083_v41 = vmov (!%p332_p3), 1966171168   ;;  %vm1459_vm4 = vcmask (!%p332_p3), 523264   ;;  %vm1677_vm5 = vcmask (!%p332_p3), 1041409  }
   0x9   : > { %s2794_s30 = smov (%p31_p4, %s2792_s30), 0  ;;  %335 = sbr.rel (%p332_p3) target bundleno = 286 (0x11e), region = 48 }
   0xa   : > { %v2154_v1 = vshrl.u32 (!%p332_p3), %v527_v0, 7  ;;  %v525_v42 = vunpack.c.l.s4 (!%p332_p3), %v2083_v41  ;;  %vm1680_vm6 = vcmask (!%p332_p3), 1042434   ;;  %vm1683_vm7 = vcmask (!%p332_p3), 1043459  }
   0xb   : > { %vm1686_vm8 = vcmask (!%p332_p3), 1044484   ;;  %vm1689_vm9 = vcmask (!%p332_p3), 1045509   ;;  %vm1692_vm10 = vcmask (!%p332_p3), 1046534   ;;  %vm1695_vm11 = vcmask (!%p332_p3), 1047559  }
   0xc   : > { %v2160_v2 = vsub.s32 (!%p332_p3), 0, %v2154_v1  ;;  %v2163_v3 = vsub.s32 (!%p332_p3), 1, %v2154_v1  ;;  %v2185_v7 = vsub.s32 (!%p332_p3), 2, %v2154_v1  ;;  %v2189_v12 = vsub.s32 (!%p332_p3), 3, %v2154_v1 }
   0xd   : > { %v2198_v17 = vsub.s32 (!%p332_p3), 4, %v2154_v1  ;;  %v2203_v23 = vsub.s32 (!%p332_p3), 5, %v2154_v1  ;;  %v2207_v26 = vsub.s32 (!%p332_p3), 6, %v2154_v1  ;;  %v2211_v28 = vsub.s32 (!%p332_p3), 7, %v2154_v1 }
   0xe   : > { %v526_v48 = vunpack.c.0.s8 (!%p332_p3), %v525_v42 }
  0x10   : > { %s2796_s25 = smov (!%p409_p5, %s2069_s25), 1  ;;  %s2798_s24 = smov (!%p411_p6, %s2065_s24), 3  ;;  %v2242_v58 = vsub.s32 %v526_v48, %v2154_v1 }
  0x11   : > { %s1909_s8 = sshll.u32 %s2796_s25, 3  ;;  %s1908_s9 = sshll.u32 %s2798_s24, 1 }
  0x12   : > { %s415_s10 = sadd.s32 %s1909_s8, %s1908_s9  ;;  %s455_s17 = scalar_lea.vmem %s2783_s6, %s2798_s24 }
  0x13   : > { %s2165_s11 = sshll.u32 %s415_s10, 3  ;;  %v1925_v8 = vld [vmem:[%s455_s17] ss:$0 sm:$0xff]  ;;  %s452_s9 = scalar_lea.vmem %s2782_s5, %s2798_s24 }
  0x14   : > { %s2171_s14 = scalar_lea.vmem %s2779_s2, %s2165_s11  ;;  %s426_s20 = scalar_lea.vmem %s2778_s1, %s2165_s11  ;;  %v2223_v29 = vld [vmem:[%s452_s9] ss:$0 sm:$0xff] }
  0x15   : > { %v517_v4 = vld [vmem:[%s2171_s14] sm:$0xff]  ;;  %v472_v10 = vld [vmem:[%s426_s20 + $0x8] sm:$0xff]  ;;  %s2217_s23 = scalar_lea.vmem %s2777_s0, %s2165_s11  ;;  %s1929_s10 = sshll.u32 %s2798_s24, 4 }
  0x16   : > { %v811_v5 = vrot.slane %v517_v4, %v2163_v3  ;;  %v800_v6 = vrot.slane %v517_v4, %v2160_v2  ;;  %v471_v9 = vld [vmem:[%s426_s20] sm:$0xff]  ;;  %v822_v11 = vrot.slane %v517_v4, %v2185_v7  ;;  %v2193_v14 = vadd.f32 %v1925_v8, %v472_v10  ;;  %v2228_v35 = vld [vmem:[%s2171_s14 + $0x8] sm:$0xff]  ;;  %s449_s14 = scalar_lea.vmem %s2781_s4, %s1929_s10  ;;  %s444_s16 = scalar_lea.vmem %s2780_s3, %s2165_s11 }
  0x17   : > { %v2191_v13 = vadd.f32 %v1925_v8, %v471_v9  ;;  %v833_v16 = vrot.slane %v517_v4, %v2189_v12  ;;  %v844_v22 = vrot.slane %v517_v4, %v2198_v17  ;;  %v855_v25 = vrot.slane %v517_v4, %v2203_v23  ;;  %v469_v33 = vld [vmem:[%s2217_s23] sm:$0xff]  ;;  %s464_s19 = scalar_lea.vmem %s2784_s7, %s2165_s11 }
  0x18   : > { %813 = vbcast.lane.b32.xlu1 %v811_v5, 256  ;;  %802 = vbcast.lane.b32.xlu0 %v800_v6, 256  ;;  %v488_v18 = vand.u32 2147483647, %v2193_v14  ;;  %v866_v27 = vrot.slane %v517_v4, %v2207_v26  ;;  %v877_v32 = vrot.slane %v517_v4, %v2211_v28  ;;  %v2231_v37 = vmul.f32 %v2223_v29, %v469_v33 }
  0x19   : > { %v487_v15 = vand.u32 2147483647, %v2191_v13  ;;  %v888_v39 = vrot.slane %v2228_v35, %v2160_v2  ;;  %v899_v44 = vrot.slane %v2228_v35, %v2163_v3  ;;  %v910_v51 = vrot.slane %v2228_v35, %v2185_v7 }
  0x1a   : > { %v490_v20 = vsub.f32 0.0, %v488_v18  ;;  %v481_v52 = vmax.f32 %v2191_v13, 0.0  ;;  %v482_v56 = vmax.f32 %v2193_v14, 0.0  ;;  %v921_v59 = vrot.slane %v2228_v35, %v2189_v12 }
  0x1b   : > { %v489_v19 = vsub.f32 0.0, %v487_v15  ;;  %vm483_vm2 = vcmp.ne.f32.partialorder %v2191_v13, %v2191_v13  ;;  %vm484_vm3 = vcmp.ne.f32.partialorder %v2193_v14, %v2193_v14  ;;  %v932_v8 = vrot.slane %v2228_v35, %v2198_v17 }
  0x1c   : > { %817 = vbcast.lane.b32.xlu1 %v811_v5, 264  ;;  %806 = vbcast.lane.b32.xlu0 %v800_v6, 264  ;;  %v493_v24 = vmul.f32 1.442695, %v490_v20  ;;  %v943_v18 = vrot.slane %v2228_v35, %v2203_v23 }
  0x1d   : > { %v491_v21 = vmul.f32 1.442695, %v489_v19 }
  0x1f   : > { %1971 = vpow2.f32 %v491_v21 }
  0x20   : > { %828 = vbcast.lane.b32.xlu1 %v822_v11, 264  ;;  %824 = vbcast.lane.b32.xlu0 %v822_v11, 256  ;;  %1973 = vpow2.f32 %v493_v24 }
  0x24   : > { %839 = vbcast.lane.b32.xlu1 %v833_v16, 264  ;;  %835 = vbcast.lane.b32.xlu0 %v833_v16, 256  ;;  %v2270_v16 = vld [vmem:[%s449_s14] sm:$0xff] }
  0x28   : > { %850 = vbcast.lane.b32.xlu1 %v844_v22, 264  ;;  %846 = vbcast.lane.b32.xlu0 %v844_v22, 256  ;;  %v2281_v22 = vld [vmem:[%s449_s14 + $0x8] sm:$0xff] }
  0x29   : > { %v1972_v30 = vpop.eup %1971 }
  0x2a   : > { %v1974_v31 = vpop.eup %1973  ;;  %v495_v34 = vadd.f32 1.0, %v1972_v30  ;;  %v498_v38 = vmul.f32 -0.5, %v1972_v30  ;;  %v501_v45 = vand.u32 2147483647, %v1972_v30 }
  0x2b   : > { %v504_v36 = vadd.f32 1.0, %v1974_v31  ;;  %v507_v40 = vmul.f32 -0.5, %v1974_v31  ;;  %v510_v47 = vand.u32 2147483647, %v1974_v31 }
  0x2c   : > { %861 = vbcast.lane.b32.xlu1 %v855_v25, 264  ;;  %857 = vbcast.lane.b32.xlu0 %v855_v25, 256  ;;  %1975 = vlog2.f32 %v495_v34  ;;  %v499_v43 = vadd.f32 1.0, %v498_v38  ;;  %vm502_vm0 = vcmp.lt.f32.partialorder %v501_v45, 0.0004427343 }
  0x2d   : > { %1977 = vlog2.f32 %v504_v36  ;;  %v508_v46 = vadd.f32 1.0, %v507_v40  ;;  %vm511_vm1 = vcmp.lt.f32.partialorder %v510_v47, 0.0004427343  ;;  %v2319_v47 = vld [vmem:[%s444_s16] sm:$0xff] }
  0x2e   : > { %v500_v49 = vmul.f32 %v1972_v30, %v499_v43 }
  0x2f   : > { %v509_v53 = vmul.f32 %v1974_v31, %v508_v46 }
  0x30   : > { %872 = vbcast.lane.b32.xlu1 %v866_v27, 264  ;;  %868 = vbcast.lane.b32.xlu0 %v866_v27, 256 }
  0x34   : > { %883 = vbcast.lane.b32.xlu1 %v877_v32, 264  ;;  %879 = vbcast.lane.b32.xlu0 %v877_v32, 256 }
  0x36   : > { %v1976_v50 = vpop.eup %1975 }
  0x37   : > { %v1978_v54 = vpop.eup %1977  ;;  %v497_v55 = vmul.f32 0.6931472, %v1976_v50 }
  0x38   : > { %894 = vbcast.lane.b32.xlu1 %v888_v39, 264  ;;  %890 = vbcast.lane.b32.xlu0 %v888_v39, 256  ;;  %v506_v57 = vmul.f32 0.6931472, %v1978_v54 }
  0x39   : > { %v503_v60 = vsel %vm502_vm0, %v500_v49, %v497_v55  ;;  %v2334_v55 = vld [vmem:[%s444_s16 + $0x8] sm:$0xff] }
  0x3a   : > { %v513_v61 = vadd.f32 %v503_v60, %v481_v52  ;;  %v512_v62 = vsel %vm511_vm1, %v509_v53, %v506_v57  ;;  %v1265_v52 = vrot.slane %v2319_v47, %v2163_v3 }
  0x3b   : > { %v514_v63 = vadd.f32 %v512_v62, %v482_v56  ;;  %v1353_v62 = vrot.slane %v2334_v55, %v2163_v3 }
  0x3c   : > { %905 = vbcast.lane.b32.xlu1 %v899_v44, 264  ;;  %901 = vbcast.lane.b32.xlu0 %v899_v44, 256  ;;  %v515_v0 = vsel %vm483_vm2, %v2191_v13, %v513_v61  ;;  %v954_v44 = vrot.slane %v2228_v35, %v2207_v26 }
  0x3d   : > { %v973_v1 = vmul.f32 %v515_v0, %v469_v33  ;;  %v530_v4 = vrot.slane %v515_v0, %v2242_v58  ;;  %v523_v5 = vcombine.high %v515_v0, %v515_v0  ;;  %v2257_v6 = vsel %vm484_vm3, %v2193_v14, %v514_v63 }
  0x3e   : > { %v572_v9 = vcombine.high %v2257_v6, %v2257_v6  ;;  %v2265_v10 = vrot.slane %v2257_v6, %v2242_v58 }
  0x3f   : > { %v984_v11 = vrot.slane %v973_v1, %v2242_v58  ;;  %v538_v13 = vcombine.high %v530_v4, %v530_v4  ;;  %v546_v15 = vrot.slane %v530_v4, %v2242_v58  ;;  %v537_v14 = vrot.slane %v523_v5, %v2242_v58 }
  0x40   : > { %916 = vbcast.lane.b32.xlu1 %v910_v51, 264  ;;  %912 = vbcast.lane.b32.xlu0 %v910_v51, 256  ;;  %v977_v19 = vcombine.high %v973_v1, %v973_v1  ;;  %v2275_v20 = vrot.slane %v572_v9, %v2242_v58  ;;  %v2279_v21 = vrot.slane %v2265_v10, %v2242_v58 }
  0x41   : > { %v992_v24 = vcombine.high %v984_v11, %v984_v11  ;;  %v560_v25 = vrot.slane %v538_v13, %v2242_v58  ;;  %v624_v27 = vrot.slane %v546_v15, %v2160_v2  ;;  %v2286_v30 = vrot.slane %v984_v11, %v2242_v58  ;;  %v2364_v13 = vld [vmem:[%s2217_s23 + $0x8] sm:$0xff] }
  0x42   : > { %v568_v31 = vcombine.high %v546_v15, %v546_v15  ;;  %v553_v32 = vrot.slane %v537_v14, %v2242_v58  ;;  %v991_v33 = vrot.slane %v977_v19, %v2242_v58  ;;  %v539_v54 = vcombine.high %v537_v14, %v537_v14 }
  0x43   : > { %v2291_v34 = vrot.slane %v992_v24, %v2242_v58  ;;  %v628_v36 = vrot.slane %v560_v25, %v2160_v2  ;;  %v2295_v38 = vmul.f32 %v624_v27, %v2270_v16  ;;  %v2302_v39 = vmul.f32 %v624_v27, %v2281_v22 }
  0x44   : > { %927 = vbcast.lane.b32.xlu1 %v921_v59, 264  ;;  %923 = vbcast.lane.b32.xlu0 %v921_v59, 256  ;;  %v632_v40 = vrot.slane %v568_v31, %v2160_v2  ;;  %v570_v41 = vcombine.high %v560_v25, %v560_v25  ;;  %v640_v51 = vrot.slane %v553_v32, %v2160_v2 }
  0x45   : > { %v2306_v42 = vmul.f32 %v628_v36, %v2270_v16  ;;  %v2309_v43 = vmul.f32 %v628_v36, %v2281_v22  ;;  %v2332_v53 = vrot.slane %v991_v33, %v2242_v58  ;;  %v567_v59 = vrot.slane %v539_v54, %v2242_v58 }
  0x46   : > { %v2314_v45 = vmul.f32 %v632_v40, %v2281_v22  ;;  %v2317_v46 = vmul.f32 %v632_v40, %v2270_v16  ;;  %v636_v48 = vrot.slane %v570_v41, %v2160_v2  ;;  %v2337_v56 = vmul.f32 %v640_v51, %v2281_v22 }
  0x47   : > { %v2340_v57 = vmul.f32 %v640_v51, %v2270_v16  ;;  %v993_v60 = vcombine.high %v991_v33, %v991_v33  ;;  %v569_v61 = vcombine.high %v553_v32, %v553_v32  ;;  %v644_v63 = vrot.slane %v567_v59, %v2160_v2 }
  0x48   : > { %938 = vbcast.lane.b32.xlu1 %v932_v8, 264  ;;  %934 = vbcast.lane.b32.xlu0 %v932_v8, 256  ;;  %v2323_v49 = vmul.f32 %v636_v48, %v2281_v22  ;;  %v2326_v50 = vmul.f32 %v636_v48, %v2270_v16  ;;  %v571_v4 = vcombine.high %v567_v59, %v567_v59 }
  0x49   : > { %v2347_v0 = vrot.slane %v993_v60, %v2242_v58  ;;  %v648_v1 = vrot.slane %v569_v61, %v2160_v2  ;;  %v2351_v5 = vmul.f32 %v644_v63, %v2281_v22  ;;  %v2354_v8 = vmul.f32 %v644_v63, %v2270_v16 }
  0x4a   : > { %v652_v3 = vrot.slane %v571_v4, %v2160_v2  ;;  %v587_v15 = vcombine.high %v2265_v10, %v2265_v10  ;;  %v1276_v14 = vrot.slane %v2319_v47, %v2185_v7  ;;  %v974_v25 = vmul.f32 %v2257_v6, %v2364_v13 }
  0x4b   : > { %v2357_v9 = vmul.f32 %v648_v1, %v2281_v22  ;;  %v2360_v11 = vmul.f32 %v648_v1, %v2270_v16  ;;  %v602_v10 = vrot.slane %v2275_v20, %v2242_v58  ;;  %v1364_v31 = vrot.slane %v2334_v55, %v2185_v7 }
  0x4c   : > { %949 = vbcast.lane.b32.xlu1 %v943_v18, 264  ;;  %945 = vbcast.lane.b32.xlu0 %v943_v18, 256  ;;  %v588_v18 = vcombine.high %v2275_v20, %v2275_v20  ;;  %v2373_v19 = vmul.f32 %v652_v3, %v2281_v22  ;;  %v2376_v24 = vmul.f32 %v652_v3, %v2270_v16 }
  0x4d   : > { %v609_v27 = vrot.slane %v587_v15, %v2242_v58  ;;  %v656_v33 = vrot.slane %v2279_v21, %v2160_v2  ;;  %v1033_v36 = vrot.slane %v974_v25, %v2242_v58  ;;  %v1026_v40 = vcombine.high %v974_v25, %v974_v25 }
  0x4e   : > { %v616_v32 = vrot.slane %v588_v18, %v2242_v58  ;;  %v965_v6 = vrot.slane %v2228_v35, %v2211_v28  ;;  %v617_v54 = vcombine.high %v2279_v21, %v2279_v21  ;;  %v618_v4 = vcombine.high %v602_v10, %v602_v10 }
  0x4f   : > { %v2392_v20 = vmul.f32 %v656_v33, %v2281_v22  ;;  %v2395_v41 = vmul.f32 %v656_v33, %v2270_v16  ;;  %v2399_v7 = vrot.slane %v1033_v36, %v2242_v58  ;;  %v1041_v48 = vcombine.high %v1033_v36, %v1033_v36 }
  0x50   : > { %960 = vbcast.lane.b32.xlu1 %v954_v44, 264  ;;  %956 = vbcast.lane.b32.xlu0 %v954_v44, 256  ;;  %v660_v44 = vrot.slane %v609_v27, %v2160_v2  ;;  %v1040_v51 = vrot.slane %v1026_v40, %v2242_v58  ;;  %v619_v63 = vcombine.high %v609_v27, %v609_v27 }
  0x51   : > { %v2411_v59 = vrot.slane %v1041_v48, %v2242_v58  ;;  %v664_v3 = vrot.slane %v617_v54, %v2160_v2  ;;  %v1287_v21 = vrot.slane %v2319_v47, %v2189_v12  ;;  %v672_v25 = vrot.slane %v602_v10, %v2160_v2 }
  0x52   : > { %v2406_v35 = vmul.f32 %v660_v44, %v2270_v16  ;;  %v2414_v60 = vrot.slane %v1040_v51, %v2242_v58  ;;  %v1042_v61 = vcombine.high %v1040_v51, %v1040_v51  ;;  %v668_v18 = vrot.slane %v619_v63, %v2160_v2 }
  0x53   : > { %v2425_v15 = vmul.f32 %v664_v3, %v2281_v22  ;;  %v1342_v27 = vrot.slane %v2334_v55, %v2160_v2  ;;  %v620_v33 = vcombine.high %v616_v32, %v616_v32  ;;  %v1375_v54 = vrot.slane %v2334_v55, %v2189_v12 }
  0x54   : > { %1271 = vbcast.lane.b32.xlu1 %v1265_v52, 264  ;;  %1267 = vbcast.lane.b32.xlu0 %v1265_v52, 256  ;;  %v2403_v52 = vmul.f32 %v660_v44, %v2281_v22  ;;  %v2419_v1 = vrot.slane %v1042_v61, %v2242_v58  ;;  %v676_v58 = vrot.slane %v616_v32, %v2160_v2  ;;  %v733_v12 = vmul.f32 1.442695, %v2295_v38 }
  0x55   : > { %v2437_v36 = vmul.f32 %v668_v18, %v2281_v22  ;;  %v2440_v40 = vmul.f32 %v668_v18, %v2270_v16  ;;  %v2446_v44 = vmul.f32 %v672_v25, %v2270_v16  ;;  %v684_v61 = vrot.slane %v620_v33, %v2160_v2 }
  0x56   : > { %v2449_v10 = vmul.f32 %v676_v58, %v2281_v22  ;;  %v2452_v48 = vmul.f32 %v676_v58, %v2270_v16  ;;  %1979 = vpow2.f32 %v733_v12  ;;  %v1397_v18 = vrot.slane %v2334_v55, %v2203_v23 }
  0x57   : > { %v2467_v63 = vmul.f32 %v684_v61, %v2270_v16  ;;  %v741_v38 = vmul.f32 1.442695, %v2317_v46  ;;  %v745_v58 = vmul.f32 1.442695, %v2326_v50  ;;  %v1408_v46 = vrot.slane %v2334_v55, %v2207_v26 }
  0x58   : > { %1359 = vbcast.lane.b32.xlu1 %v1353_v62, 264  ;;  %1355 = vbcast.lane.b32.xlu0 %v1353_v62, 256  ;;  %v1254_v62 = vrot.slane %v2319_v47, %v2160_v2  ;;  %v749_v50 = vmul.f32 1.442695, %v2340_v57  ;;  %v1024_v57 = vcombine.high %v2291_v34, %v2291_v34 }
  0x5c   : > { %1282 = vbcast.lane.b32.xlu1 %v1276_v14, 264  ;;  %1278 = vbcast.lane.b32.xlu0 %v1276_v14, 256  ;;  %v2428_v14 = vmul.f32 %v664_v3, %v2270_v16  ;;  %v1386_v3 = vrot.slane %v2334_v55, %v2198_v17 }
  0x60   : > { %1370 = vbcast.lane.b32.xlu1 %v1364_v31, 264  ;;  %1366 = vbcast.lane.b32.xlu0 %v1364_v31, 256  ;;  %v680_v31 = vrot.slane %v618_v4, %v2160_v2  ;;  %v1298_v4 = vrot.slane %v2319_v47, %v2198_v17  ;;  %v739_v17 = vmul.f32 1.442695, %v2309_v43  ;;  %v1078_v43 = vrot.slane %v2286_v30, %v2160_v2 }
  0x62   : > { %v2455_v32 = vmul.f32 %v680_v31, %v2281_v22  ;;  %v2458_v51 = vmul.f32 %v680_v31, %v2270_v16  ;;  %v735_v16 = vmul.f32 1.442695, %v2302_v39  ;;  %v743_v39 = vmul.f32 1.442695, %v2314_v45 }
  0x63   : > { %v747_v31 = vmul.f32 1.442695, %v2323_v49 }
  0x64   : > { %971 = vbcast.lane.b32.xlu1 %v965_v6, 264  ;;  %967 = vbcast.lane.b32.xlu0 %v965_v6, 256  ;;  %v2443_v6 = vmul.f32 %v672_v25, %v2281_v22  ;;  %1981 = vpow2.f32 %v735_v16  ;;  %v1320_v25 = vrot.slane %v2319_v47, %v2207_v26  ;;  %v1331_v26 = vrot.slane %v2319_v47, %v2211_v28 }
  0x65   : > { %v751_v16 = vmul.f32 1.442695, %v2337_v56  ;;  %v1419_v56 = vrot.slane %v2334_v55, %v2211_v28 }
  0x68   : > { %1260 = vbcast.lane.b32.xlu1 %v1254_v62, 264  ;;  %1256 = vbcast.lane.b32.xlu0 %v1254_v62, 256  ;;  %v2464_v62 = vmul.f32 %v684_v61, %v2281_v22  ;;  %v1309_v22 = vrot.slane %v2319_v47, %v2203_v23  ;;  %v1082_v23 = vrot.slane %v2291_v34, %v2160_v2  ;;  %v755_v34 = vmul.f32 1.442695, %v2351_v5 }
  0x6c   : > { %1293 = vbcast.lane.b32.xlu1 %v1287_v21, 264  ;;  %1289 = vbcast.lane.b32.xlu0 %v1287_v21, 256  ;;  %v737_v21 = vmul.f32 1.442695, %v2306_v42  ;;  %v1980_v42 = vpop.eup %1979 }
  0x6e   : > { %1983 = vpow2.f32 %v737_v21  ;;  %v1982_v45 = vpop.eup %1981 }
  0x6f   : > { %1985 = vpow2.f32 %v739_v17  ;;  %v1188_v49 = vmul.f32 0.0, %v1982_v45 }
  0x70   : > { %1348 = vbcast.lane.b32.xlu1 %v1342_v27, 264  ;;  %1344 = vbcast.lane.b32.xlu0 %v1342_v27, 256  ;;  %1987 = vpow2.f32 %v741_v38  ;;  %v1187_v27 = vmul.f32 0.0, %v1980_v42 }
  0x71   : > { %1989 = vpow2.f32 %v743_v39 }
  0x72   : > { %1991 = vpow2.f32 %v745_v58 }
  0x73   : > { %1993 = vpow2.f32 %v747_v31 }
  0x74   : > { %1381 = vbcast.lane.b32.xlu1 %v1375_v54, 264  ;;  %1377 = vbcast.lane.b32.xlu0 %v1375_v54, 256  ;;  %1995 = vpow2.f32 %v749_v50 }
  0x75   : > { %1997 = vpow2.f32 %v751_v16 }
  0x78   : > { %1304 = vbcast.lane.b32.xlu1 %v1298_v4, 264  ;;  %1300 = vbcast.lane.b32.xlu0 %v1298_v4, 256  ;;  %v1984_v12 = vpop.eup %1983 }
  0x79   : > { %v1986_v17 = vpop.eup %1985 }
  0x7a   : > { %v1988_v39 = vpop.eup %1987 }
  0x7b   : > { %v1990_v31 = vpop.eup %1989 }
  0x7c   : > { %1392 = vbcast.lane.b32.xlu1 %v1386_v3, 264  ;;  %1388 = vbcast.lane.b32.xlu0 %v1386_v3, 256  ;;  %v1022_v3 = vcombine.high %v2286_v30, %v2286_v30  ;;  %v753_v30 = vmul.f32 1.442695, %v2354_v8  ;;  %v1992_v55 = vpop.eup %1991 }
  0x7e   : > { %v1086_v47 = vrot.slane %v1022_v3, %v2160_v2  ;;  %1999 = vpow2.f32 %v753_v30 }
  0x7f   : > { %2001 = vpow2.f32 %v755_v34 }
  0x80   : > { %1315 = vbcast.lane.b32.xlu1 %v1309_v22, 264  ;;  %1311 = vbcast.lane.b32.xlu0 %v1309_v22, 256 }
  0x84   : > { %1403 = vbcast.lane.b32.xlu1 %v1397_v18, 264  ;;  %1399 = vbcast.lane.b32.xlu0 %v1397_v18, 256 }
  0x88   : > { %1326 = vbcast.lane.b32.xlu1 %v1320_v25, 264  ;;  %1322 = vbcast.lane.b32.xlu0 %v1320_v25, 256 }
  0x8a   : > { %v814_v33 = vpop.permute.xlu1 %813  ;;  %v803_v54 = vpop.permute.xlu0 %802 }
  0x8b   : > { %v1157_v61 = vmul.f32 %v1082_v23, %v814_v33  ;;  %v1155_v4 = vmul.f32 %v1078_v43, %v803_v54 }
  0x8c   : > { %1414 = vbcast.lane.b32.xlu1 %v1408_v46, 264  ;;  %1410 = vbcast.lane.b32.xlu0 %v1408_v46, 256 }
  0x8d   : > { %v2498_v22 = vadd.f32 %v1187_v27, %v1155_v4  ;;  %v1090_v27 = vrot.slane %v1024_v57, %v2160_v2 }
  0x8e   : > { %v818_v21 = vpop.permute.xlu1 %817  ;;  %v807_v18 = vpop.permute.xlu0 %806 }
  0x8f   : > { %v1191_v38 = vmul.f32 %v1984_v12, %v2498_v22  ;;  %v1156_v25 = vmul.f32 %v1078_v43, %v807_v18  ;;  %v757_v43 = vmul.f32 1.442695, %v2360_v11  ;;  %v1158_v45 = vmul.f32 %v1082_v23, %v818_v21  ;;  %v1994_v12 = vpop.eup %1993 }
  0x90   : > { %1337 = vbcast.lane.b32.xlu1 %v1331_v26, 264  ;;  %1333 = vbcast.lane.b32.xlu0 %v1331_v26, 256  ;;  %v1094_v11 = vrot.slane %v2332_v53, %v2160_v2  ;;  %v761_v23 = vmul.f32 1.442695, %v2376_v24  ;;  %v1996_v18 = vpop.eup %1995  ;;  %v1098_v24 = vrot.slane %v2347_v0, %v2160_v2 }
  0x91   : > { %v2508_v42 = vadd.f32 %v1188_v49, %v1156_v25  ;;  %v2510_v58 = vadd.f32 %v1191_v38, %v1157_v61  ;;  %v759_v61 = vmul.f32 1.442695, %v2357_v9  ;;  %2003 = vpow2.f32 %v757_v43 }
  0x92   : > { %v829_v8 = vpop.permute.xlu1 %828  ;;  %v825_v46 = vpop.permute.xlu0 %824  ;;  %v763_v9 = vmul.f32 1.442695, %v2373_v19  ;;  %v1023_v25 = vcombine.high %v2332_v53, %v2332_v53 }
  0x93   : > { %v1192_v33 = vmul.f32 %v1986_v17, %v2508_v42  ;;  %v1159_v54 = vmul.f32 %v1086_v47, %v825_v46  ;;  %v1195_v28 = vmul.f32 %v1988_v39, %v2510_v58  ;;  %v1160_v26 = vmul.f32 %v1086_v47, %v829_v8  ;;  %v1998_v39 = vpop.eup %1997 }
  0x94   : > { %1425 = vbcast.lane.b32.xlu1 %v1419_v56, 264  ;;  %1421 = vbcast.lane.b32.xlu0 %v1419_v56, 256  ;;  %2005 = vpow2.f32 %v759_v61  ;;  %v765_v47 = vmul.f32 1.442695, %v2395_v41  ;;  %v2000_v43 = vpop.eup %1999  ;;  %v1025_v41 = vcombine.high %v2347_v0, %v2347_v0 }
  0x95   : > { %v2517_v50 = vadd.f32 %v1192_v33, %v1158_v45  ;;  %v2519_v5 = vadd.f32 %v1195_v28, %v1159_v54  ;;  %2007 = vpow2.f32 %v761_v23  ;;  %v767_v45 = vmul.f32 1.442695, %v2392_v20  ;;  %v2002_v28 = vpop.eup %2001 }
  0x96   : > { %v840_v4 = vpop.permute.xlu1 %839  ;;  %v836_v3 = vpop.permute.xlu0 %835  ;;  %2009 = vpow2.f32 %v763_v9  ;;  %v1102_v54 = vrot.slane %v1023_v25, %v2160_v2 }
  0x97   : > { %v1196_v49 = vmul.f32 %v1990_v31, %v2517_v50  ;;  %v1161_v16 = vmul.f32 %v1090_v27, %v836_v3  ;;  %v1199_v21 = vmul.f32 %v1992_v55, %v2519_v5  ;;  %v1162_v56 = vmul.f32 %v1090_v27, %v840_v4 }
  0x98   : > { %2011 = vpow2.f32 %v765_v47  ;;  %v769_v27 = vmul.f32 1.442695, %v2406_v35  ;;  %v773_v35 = vmul.f32 1.442695, %v2428_v14  ;;  %v1110_v14 = vrot.slane %v2399_v7, %v2160_v2 }
  0x99   : > { %v2527_v57 = vadd.f32 %v1196_v49, %v1160_v26  ;;  %v2529_v30 = vadd.f32 %v1199_v21, %v1161_v16  ;;  %2013 = vpow2.f32 %v767_v45  ;;  %v771_v26 = vmul.f32 1.442695, %v2403_v52 }
  0x9a   : > { %v851_v17 = vpop.permute.xlu1 %850  ;;  %v847_v38 = vpop.permute.xlu0 %846  ;;  %v1106_v16 = vrot.slane %v1025_v41, %v2160_v2  ;;  %2015 = vpow2.f32 %v769_v27  ;;  %v775_v52 = vmul.f32 1.442695, %v2425_v15  ;;  %v779_v15 = vmul.f32 1.442695, %v2437_v36 }
  0x9b   : > { %v1200_v34 = vmul.f32 %v1994_v12, %v2527_v57  ;;  %v1163_v8 = vmul.f32 %v1094_v11, %v847_v38  ;;  %v1203_v46 = vmul.f32 %v1996_v18, %v2529_v30  ;;  %v1164_v55 = vmul.f32 %v1094_v11, %v851_v17  ;;  %v2004_v23 = vpop.eup %2003 }
  0x9c   : > { %2017 = vpow2.f32 %v771_v26 }
  0x9d   : > { %v2539_v19 = vadd.f32 %v1200_v34, %v1162_v56  ;;  %v2541_v31 = vadd.f32 %v1203_v46, %v1163_v8  ;;  %2019 = vpow2.f32 %v773_v35  ;;  %v783_v35 = vmul.f32 1.442695, %v2443_v6 }
  0x9e   : > { %v862_v33 = vpop.permute.xlu1 %861  ;;  %v858_v53 = vpop.permute.xlu0 %857  ;;  %2021 = vpow2.f32 %v775_v52 }
  0x9f   : > { %v1204_v61 = vmul.f32 %v1998_v39, %v2539_v19  ;;  %v1165_v4 = vmul.f32 %v1098_v24, %v858_v53  ;;  %v1207_v3 = vmul.f32 %v2000_v43, %v2541_v31  ;;  %v2006_v11 = vpop.eup %2005  ;;  %v1166_v21 = vmul.f32 %v1098_v24, %v862_v33 }
  0xa0   : > { %v2008_v38 = vpop.eup %2007  ;;  %v777_v24 = vmul.f32 1.442695, %v2440_v40  ;;  %v1114_v40 = vrot.slane %v2411_v59, %v2160_v2 }
  0xa1   : > { %v2550_v12 = vadd.f32 %v1204_v61, %v1164_v55  ;;  %v2552_v20 = vadd.f32 %v1207_v3, %v1165_v4  ;;  %v2010_v34 = vpop.eup %2009  ;;  %v781_v55 = vmul.f32 1.442695, %v2446_v44  ;;  %v1073_v44 = vcombine.high %v2411_v59, %v2411_v59 }
  0xa2   : > { %v873_v49 = vpop.permute.xlu1 %872  ;;  %v869_v0 = vpop.permute.xlu0 %868  ;;  %2023 = vpow2.f32 %v777_v24  ;;  %v787_v24 = vmul.f32 1.442695, %v2449_v10  ;;  %v791_v10 = vmul.f32 1.442695, %v2455_v32 }
  0xa3   : > { %v1208_v18 = vmul.f32 %v2002_v28, %v2550_v12  ;;  %v1167_v9 = vmul.f32 %v1102_v54, %v869_v0  ;;  %v1211_v17 = vmul.f32 %v2004_v23, %v2552_v20  ;;  %v1168_v8 = vmul.f32 %v1102_v54, %v873_v49  ;;  %v2012_v33 = vpop.eup %2011 }
  0xa4   : > { %v1071_v54 = vcombine.high %v2399_v7, %v2399_v7  ;;  %v2014_v61 = vpop.eup %2013  ;;  %2025 = vpow2.f32 %v779_v15 }
  0xa5   : > { %v2559_v25 = vadd.f32 %v1208_v18, %v1166_v21  ;;  %v2561_v47 = vadd.f32 %v1211_v17, %v1167_v9  ;;  %v2016_v49 = vpop.eup %2015  ;;  %2027 = vpow2.f32 %v781_v55 }
  0xa6   : > { %v884_v39 = vpop.permute.xlu1 %883  ;;  %v880_v56 = vpop.permute.xlu0 %879  ;;  %v1118_v21 = vrot.slane %v1071_v54, %v2160_v2  ;;  %2029 = vpow2.f32 %v783_v35 }
  0xa7   : > { %v1212_v46 = vmul.f32 %v2006_v11, %v2559_v25  ;;  %v1169_v43 = vmul.f32 %v1106_v16, %v880_v56  ;;  %v1215_v45 = vmul.f32 %v2008_v38, %v2561_v47  ;;  %v1170_v4 = vmul.f32 %v1106_v16, %v884_v39  ;;  %v2018_v18 = vpop.eup %2017 }
  0xa8   : > { %v785_v16 = vmul.f32 1.442695, %v2452_v48  ;;  %v2020_v39 = vpop.eup %2019  ;;  %v789_v48 = vmul.f32 1.442695, %v2458_v51  ;;  %v1126_v51 = vrot.slane %v2414_v60, %v2160_v2 }
  0xa9   : > { %v2569_v53 = vadd.f32 %v1212_v46, %v1168_v8  ;;  %v2571_v41 = vadd.f32 %v1215_v45, %v1169_v43  ;;  %v1122_v8 = vrot.slane %v1073_v44, %v2160_v2  ;;  %v1130_v44 = vrot.slane %v2419_v1, %v2160_v2 }
  0xaa   : > { %v895_v27 = vpop.permute.xlu1 %894  ;;  %v891_v28 = vpop.permute.xlu0 %890  ;;  %2031 = vpow2.f32 %v785_v16 }
  0xab   : > { %v1216_v3 = vmul.f32 %v2010_v34, %v2569_v53  ;;  %v1171_v23 = vmul.f32 %v1110_v14, %v891_v28  ;;  %v1219_v26 = vmul.f32 %v2012_v33, %v2571_v41  ;;  %v1172_v9 = vmul.f32 %v1110_v14, %v895_v27  ;;  %v2022_v14 = vpop.eup %2021 }
  0xac   : > { %v2024_v15 = vpop.eup %2023  ;;  %2033 = vpow2.f32 %v787_v24 }
  0xad   : > { %v2581_v36 = vadd.f32 %v1216_v3, %v1170_v4  ;;  %v2583_v0 = vadd.f32 %v1219_v26, %v1171_v23  ;;  %2035 = vpow2.f32 %v789_v48 }
  0xae   : > { %v906_v11 = vpop.permute.xlu1 %905  ;;  %v902_v7 = vpop.permute.xlu0 %901  ;;  %2037 = vpow2.f32 %v791_v10 }
  0xaf   : > { %v1220_v17 = vmul.f32 %v2014_v61, %v2581_v36  ;;  %v1173_v38 = vmul.f32 %v1114_v40, %v902_v7  ;;  %v1223_v52 = vmul.f32 %v2016_v49, %v2583_v0  ;;  %v1174_v46 = vmul.f32 %v1114_v40, %v906_v11  ;;  %v2026_v61 = vpop.eup %2025 }
  0xb0   : > { %v793_v40 = vmul.f32 1.442695, %v2467_v63  ;;  %v2028_v49 = vpop.eup %2027  ;;  %v1072_v63 = vcombine.high %v2414_v60, %v2414_v60 }
  0xb1   : > { %v2592_v56 = vadd.f32 %v1220_v17, %v1172_v9  ;;  %v2594_v6 = vadd.f32 %v1223_v52, %v1173_v38  ;;  %v2030_v16 = vpop.eup %2029 }
  0xb2   : > { %v917_v34 = vpop.permute.xlu1 %916  ;;  %v913_v59 = vpop.permute.xlu0 %912  ;;  %2039 = vpow2.f32 %v793_v40  ;;  %v1134_v48 = vrot.slane %v1072_v63, %v2160_v2 }
  0xb3   : > { %v1175_v43 = vmul.f32 %v1118_v21, %v913_v59  ;;  %v1224_v45 = vmul.f32 %v2018_v18, %v2592_v56  ;;  %v1227_v33 = vmul.f32 %v2020_v39, %v2594_v6  ;;  %v1176_v4 = vmul.f32 %v1118_v21, %v917_v34 }
  0xb4   : > { %v795_v21 = vmul.f32 1.442695, %v2464_v62  ;;  %v2032_v52 = vpop.eup %2031 }
  0xb5   : > { %v2601_v27 = vadd.f32 %v1224_v45, %v1174_v46  ;;  %v2603_v28 = vadd.f32 %v1227_v33, %v1175_v43 }
  0xb6   : > { %v928_v54 = vpop.permute.xlu1 %927  ;;  %v924_v55 = vpop.permute.xlu0 %923  ;;  %2041 = vpow2.f32 %v795_v21 }
  0xb7   : > { %v1177_v3 = vmul.f32 %v1122_v8, %v924_v55  ;;  %v1228_v23 = vmul.f32 %v2022_v14, %v2601_v27  ;;  %v1231_v26 = vmul.f32 %v2024_v15, %v2603_v28  ;;  %v1178_v18 = vmul.f32 %v1122_v8, %v928_v54  ;;  %v2034_v60 = vpop.eup %2033 }
  0xb8   : > { %v2036_v43 = vpop.eup %2035 }
  0xb9   : > { %v2611_v35 = vadd.f32 %v1228_v23, %v1176_v4  ;;  %v2613_v11 = vadd.f32 %v1231_v26, %v1177_v3  ;;  %v2038_v54 = vpop.eup %2037 }
  0xba   : > { %v939_v32 = vpop.permute.xlu1 %938  ;;  %v935_v7 = vpop.permute.xlu0 %934 }
  0xbb   : > { %v1179_v9 = vmul.f32 %v1126_v51, %v935_v7  ;;  %v1232_v17 = vmul.f32 %v2026_v61, %v2611_v35  ;;  %v1235_v38 = vmul.f32 %v2028_v49, %v2613_v11  ;;  %v1180_v62 = vmul.f32 %v1126_v51, %v939_v32 }
  0xbc   : > { %v2040_v51 = vpop.eup %2039 }
  0xbd   : > { %v2622_v39 = vadd.f32 %v1232_v17, %v1178_v18  ;;  %v2624_v24 = vadd.f32 %v1235_v38, %v1179_v9 }
  0xbe   : > { %v950_v34 = vpop.permute.xlu1 %949  ;;  %v946_v59 = vpop.permute.xlu0 %945 }
  0xbf   : > { %v1181_v14 = vmul.f32 %v1130_v44, %v946_v59  ;;  %v1236_v8 = vmul.f32 %v2030_v16, %v2622_v39  ;;  %v1239_v46 = vmul.f32 %v2032_v52, %v2624_v24  ;;  %v1182_v55 = vmul.f32 %v1130_v44, %v950_v34 }
  0xc0   : > { %v2042_v16 = vpop.eup %2041 }
  0xc1   : > { %v2629_v45 = vadd.f32 %v1236_v8, %v1180_v62  ;;  %v2631_v33 = vadd.f32 %v1239_v46, %v1181_v14 }
  0xc2   : > { %v961_v15 = vpop.permute.xlu1 %960  ;;  %v957_v10 = vpop.permute.xlu0 %956 }
  0xc3   : > { %v1183_v40 = vmul.f32 %v1134_v48, %v957_v10  ;;  %v1240_v61 = vmul.f32 %v2034_v60, %v2629_v45  ;;  %v1243_v4 = vmul.f32 %v2036_v43, %v2631_v33  ;;  %v1184_v26 = vmul.f32 %v1134_v48, %v961_v15 }
  0xc5   : > { %v2635_v3 = vadd.f32 %v1240_v61, %v1182_v55  ;;  %v2637_v23 = vadd.f32 %v1243_v4, %v1183_v40 }
  0xc6   : > { %v1272_v49 = vpop.permute.xlu1 %1271  ;;  %v1268_v32 = vpop.permute.xlu0 %1267 }
  0xc7   : > { %v1430_v7 = vmul.f32 %v1272_v49, %v2517_v50  ;;  %v1429_v63 = vmul.f32 %v1268_v32, %v2510_v58  ;;  %v1244_v44 = vmul.f32 %v2038_v54, %v2635_v3  ;;  %v1247_v21 = vmul.f32 %v2040_v51, %v2637_v23 }
  0xc8   : > { %v2660_v32 = vmul.f32 %v2223_v29, %v2364_v13 }
  0xc9   : > { %v1470_v18 = vsel %vm1459_vm4, %v1430_v7, 0.0  ;;  %v1469_v9 = vsel %vm1459_vm4, %v1429_v63, 0.0  ;;  %v2645_v17 = vadd.f32 %v1244_v44, %v1184_v26  ;;  %v1614_v63 = vrot.slane %v2231_v37, 1 }
  0xca   : > { %v1471_v38 = vadd.f32 %v1470_v18, %v1469_v9  ;;  %v1360_v52 = vpop.permute.xlu1 %1359  ;;  %v1356_v34 = vpop.permute.xlu0 %1355 }
  0xcb   : > { %v1446_v59 = vmul.f32 %v1360_v52, %v2601_v27  ;;  %v1445_v50 = vmul.f32 %v1356_v34, %v2594_v6  ;;  %v1248_v58 = vmul.f32 %v2042_v16, %v2645_v17  ;;  %v1074_v27 = vcombine.high %v2419_v1, %v2419_v1 }
  0xcc   : > { %v1472_v48 = vrot.slane %v1471_v38, 4 }
  0xcd   : > { %v1542_v60 = vsel %vm1459_vm4, %v1446_v59, 0.0  ;;  %v1541_v62 = vsel %vm1459_vm4, %v1445_v50, 0.0  ;;  %v1138_v1 = vrot.slane %v1074_v27, %v2160_v2 }
  0xce   : > { %v1473_v14 = vadd.f32 %v1472_v48, %v1471_v38  ;;  %v1543_v8 = vadd.f32 %v1542_v60, %v1541_v62  ;;  %v1283_v46 = vpop.permute.xlu1 %1282  ;;  %v1279_v43 = vpop.permute.xlu0 %1278 }
  0xcf   : > { %v1432_v15 = vmul.f32 %v1283_v46, %v2527_v57  ;;  %v1431_v10 = vmul.f32 %v1279_v43, %v2519_v5 }
  0xd0   : > { %v1474_v54 = vrot.slane %v1473_v14, 2  ;;  %v1544_v6 = vrot.slane %v1543_v8, 4 }
  0xd1   : > { %v1479_v55 = vsel %vm1459_vm4, %v1432_v15, 0.0  ;;  %v1478_v40 = vsel %vm1459_vm4, %v1431_v10, 0.0 }
  0xd2   : > { %v1475_v61 = vadd.f32 %v1474_v54, %v1473_v14  ;;  %v1545_v4 = vadd.f32 %v1544_v6, %v1543_v8  ;;  %v1480_v51 = vadd.f32 %v1479_v55, %v1478_v40  ;;  %v1371_v26 = vpop.permute.xlu1 %1370  ;;  %v1367_v49 = vpop.permute.xlu0 %1366 }
  0xd3   : > { %v1448_v5 = vmul.f32 %v1371_v26, %v2611_v35  ;;  %v1447_v57 = vmul.f32 %v1367_v49, %v2603_v28  ;;  %v1621_v35 = vrot.slane %v2660_v32, 1 }
  0xd4   : > { %v1476_v7 = vrot.slane %v1475_v61, 1  ;;  %v1546_v44 = vrot.slane %v1545_v4, 2  ;;  %v1481_v16 = vrot.slane %v1480_v51, 4 }
  0xd5   : > { %v1551_v18 = vsel %vm1459_vm4, %v1448_v5, 0.0  ;;  %v1550_v9 = vsel %vm1459_vm4, %v1447_v57, 0.0 }
  0xd6   : > { %v1477_v38 = vadd.f32 %v1476_v7, %v1475_v61  ;;  %v1547_v52 = vadd.f32 %v1546_v44, %v1545_v4  ;;  %v1482_v34 = vadd.f32 %v1481_v16, %v1480_v51  ;;  %v1552_v29 = vadd.f32 %v1551_v18, %v1550_v9  ;;  %v972_v13 = vpop.permute.xlu1 %971  ;;  %v968_v59 = vpop.permute.xlu0 %967 }
  0xd7   : > { %v1186_v28 = vmul.f32 %v1138_v1, %v972_v13  ;;  %v1185_v50 = vmul.f32 %v1138_v1, %v968_v59  ;;  %v1615_v61 = vrot.slane %v2231_v37, 2 }
  0xd8   : > { %v2669_v2 = vadd.f32 %v1614_v63, %v1477_v38  ;;  %v1548_v48 = vrot.slane %v1547_v52, 1  ;;  %v1483_v60 = vrot.slane %v1482_v34, 2  ;;  %v1553_v62 = vrot.slane %v1552_v29, 4 }
  0xd9   : > { %v2671_v14 = vadd.f32 %v1248_v58, %v1186_v28  ;;  %v2673_v8 = vadd.f32 %v1247_v21, %v1185_v50  ;;  %v1622_v63 = vrot.slane %v2660_v32, 2 }
  0xda   : > { %v1549_v46 = vadd.f32 %v1548_v48, %v1547_v52  ;;  %v1484_v43 = vadd.f32 %v1483_v60, %v1482_v34  ;;  %v1554_v15 = vadd.f32 %v1553_v62, %v1552_v29  ;;  %v1261_v10 = vpop.permute.xlu1 %1260  ;;  %v1257_v27 = vpop.permute.xlu0 %1256 }
  0xdb   : > { %v1428_v54 = vmul.f32 %v1261_v10, %v2508_v42  ;;  %v1427_v6 = vmul.f32 %v1257_v27, %v2498_v22 }
  0xdc   : > { %v2677_v55 = vadd.f32 %v1621_v35, %v1549_v46  ;;  %v1485_v40 = vrot.slane %v1484_v43, 1  ;;  %v1555_v4 = vrot.slane %v1554_v15, 2 }
  0xdd   : > { %v1461_v58 = vsel %vm1459_vm4, %v1428_v54, 0.0  ;;  %v1460_v21 = vsel %vm1459_vm4, %v1427_v6, 0.0 }
  0xde   : > { %v1486_v51 = vadd.f32 %v1485_v40, %v1484_v43  ;;  %v1556_v26 = vadd.f32 %v1555_v4, %v1554_v15  ;;  %v1462_v49 = vadd.f32 %v1461_v58, %v1460_v21  ;;  %v1294_v5 = vpop.permute.xlu1 %1293  ;;  %v1290_v57 = vpop.permute.xlu0 %1289 }
  0xdf   : > { %v1434_v1 = vmul.f32 %v1294_v5, %v2539_v19  ;;  %v1433_v42 = vmul.f32 %v1290_v57, %v2529_v30 }
  0xe0   : > { %v1646_v22 = vadd.f32 %v1615_v61, %v1486_v51  ;;  %v1557_v7 = vrot.slane %v1556_v26, 1  ;;  %v1463_v44 = vrot.slane %v1462_v49, 4 }
  0xe1   : > { %v1488_v16 = vsel %vm1459_vm4, %v1434_v1, 0.0  ;;  %v1487_v18 = vsel %vm1459_vm4, %v1433_v42, 0.0 }
  0xe2   : > { %v1558_v9 = vadd.f32 %v1557_v7, %v1556_v26  ;;  %v1464_v38 = vadd.f32 %v1463_v44, %v1462_v49  ;;  %v1489_v52 = vadd.f32 %v1488_v16, %v1487_v18  ;;  %v1349_v34 = vpop.permute.xlu1 %1348  ;;  %v1345_v29 = vpop.permute.xlu0 %1344  ;;  %v1676_v26 = vrot.slane %v2669_v2, 7 }
  0xe3   : > { %v1444_v13 = vmul.f32 %v1349_v34, %v2592_v56  ;;  %v1443_v19 = vmul.f32 %v1345_v29, %v2583_v0  ;;  %v1679_v7 = vrot.slane %v1646_v22, 6 }
  0xe4   : > { %v2689_v59 = vadd.f32 %v1622_v63, %v1558_v9  ;;  %v1465_v30 = vrot.slane %v1464_v38, 2  ;;  %v1490_v35 = vrot.slane %v1489_v52, 4 }
  0xe5   : > { %v1533_v28 = vsel %vm1459_vm4, %v1444_v13, 0.0  ;;  %v1532_v50 = vsel %vm1459_vm4, %v1443_v19, 0.0 }
  0xe6   : > { %v1466_v48 = vadd.f32 %v1465_v30, %v1464_v38  ;;  %v1491_v60 = vadd.f32 %v1490_v35, %v1489_v52  ;;  %v1534_v62 = vadd.f32 %v1533_v28, %v1532_v50  ;;  %v1382_v46 = vpop.permute.xlu1 %1381  ;;  %v1378_v43 = vpop.permute.xlu0 %1377  ;;  %v1623_v30 = vrot.slane %v2660_v32, 3 }
  0xe7   : > { %v1450_v15 = vmul.f32 %v1382_v46, %v2622_v39  ;;  %v1449_v10 = vmul.f32 %v1378_v43, %v2613_v11  ;;  %v1616_v39 = vrot.slane %v2231_v37, 3 }
  0xe8   : > { %v1467_v56 = vrot.slane %v1466_v48, 1  ;;  %v1492_v27 = vrot.slane %v1491_v60, 2  ;;  %v1535_v0 = vrot.slane %v1534_v62, 4 }
  0xe9   : > { %v1560_v54 = vsel %vm1459_vm4, %v1450_v15, 0.0  ;;  %v1559_v6 = vsel %vm1459_vm4, %v1449_v10, 0.0 }
  0xea   : > { %v1468_v40 = vadd.f32 %v1467_v56, %v1466_v48  ;;  %v1493_v61 = vadd.f32 %v1492_v27, %v1491_v60  ;;  %v1536_v4 = vadd.f32 %v1535_v0, %v1534_v62  ;;  %v1561_v58 = vadd.f32 %v1560_v54, %v1559_v6  ;;  %v1305_v21 = vpop.permute.xlu1 %1304  ;;  %v1301_v51 = vpop.permute.xlu0 %1300 }
  0xeb   : > { %v1436_v11 = vmul.f32 %v1305_v21, %v2550_v12  ;;  %v1435_v49 = vmul.f32 %v1301_v51, %v2541_v31 }
  0xec   : > { %v1644_v5 = vadd.f32 %v2231_v37, %v1468_v40  ;;  %v1494_v57 = vrot.slane %v1493_v61, 1  ;;  %v1537_v1 = vrot.slane %v1536_v4, 2  ;;  %v1562_v42 = vrot.slane %v1561_v58, 4 }
  0xed   : > { %v1497_v63 = vsel %vm1459_vm4, %v1436_v11, 0.0  ;;  %v1496_v44 = vsel %vm1459_vm4, %v1435_v49, 0.0  ;;  %v1699_v40 = vrot.slane %v2689_v59, 6 }
  0xee   : > { %v1678_v16 = vsel %vm1677_vm5, %v1676_v26, %v1644_v5  ;;  %v1495_v18 = vadd.f32 %v1494_v57, %v1493_v61  ;;  %v1538_v2 = vadd.f32 %v1537_v1, %v1536_v4  ;;  %v1563_v9 = vadd.f32 %v1562_v42, %v1561_v58  ;;  %v1393_v38 = vpop.permute.xlu1 %1392  ;;  %v1389_v52 = vpop.permute.xlu0 %1388 }
  0xef   : > { %v1681_v12 = vsel %vm1680_vm6, %v1679_v7, %v1678_v16  ;;  %v1498_v31 = vadd.f32 %v1497_v63, %v1496_v44  ;;  %v1452_v34 = vmul.f32 %v1393_v38, %v2629_v45  ;;  %v1451_v29 = vmul.f32 %v1389_v52, %v2624_v24 }
  0xf0   : > { %v1647_v22 = vadd.f32 %v1616_v39, %v1495_v18  ;;  %v1539_v13 = vrot.slane %v1538_v2, 1  ;;  %v1564_v19 = vrot.slane %v1563_v9, 2  ;;  %v1697_v45 = vrot.slane %v2677_v55, 7 }
  0xf1   : > { %v1499_v35 = vrot.slane %v1498_v31, 4  ;;  %v1569_v28 = vsel %vm1459_vm4, %v1452_v34, 0.0  ;;  %v1568_v50 = vsel %vm1459_vm4, %v1451_v29, 0.0  ;;  %v1617_v7 = vrot.slane %v2231_v37, 4 }
  0xf2   : > { %v1682_v48 = vrot.slane %v1647_v22, 5  ;;  %v1540_v60 = vadd.f32 %v1539_v13, %v1538_v2  ;;  %v1565_v62 = vadd.f32 %v1564_v19, %v1563_v9  ;;  %v1570_v46 = vadd.f32 %v1569_v28, %v1568_v50  ;;  %v1316_v43 = vpop.permute.xlu1 %1315  ;;  %v1312_v15 = vpop.permute.xlu0 %1311 }
  0xf3   : > { %v1500_v24 = vadd.f32 %v1499_v35, %v1498_v31  ;;  %v1438_v10 = vmul.f32 %v1316_v43, %v2559_v25  ;;  %v1437_v56 = vmul.f32 %v1312_v15, %v2552_v20 }
  0xf4   : > { %v1684_v27 = vsel %vm1683_vm7, %v1682_v48, %v1681_v12  ;;  %v1652_v0 = vadd.f32 %v2660_v32, %v1540_v60  ;;  %v1566_v54 = vrot.slane %v1565_v62, 1  ;;  %v1571_v6 = vrot.slane %v1570_v46, 4 }
  0xf5   : > { %v1501_v61 = vrot.slane %v1500_v24, 2  ;;  %v1506_v4 = vsel %vm1459_vm4, %v1438_v10, 0.0  ;;  %v1505_v58 = vsel %vm1459_vm4, %v1437_v56, 0.0 }
  0xf6   : > { %v1698_v55 = vsel %vm1677_vm5, %v1697_v45, %v1652_v0  ;;  %v1567_v21 = vadd.f32 %v1566_v54, %v1565_v62  ;;  %v1572_v51 = vadd.f32 %v1571_v6, %v1570_v46  ;;  %v1507_v25 = vadd.f32 %v1506_v4, %v1505_v58  ;;  %v1404_v26 = vpop.permute.xlu1 %1403  ;;  %v1400_v20 = vpop.permute.xlu0 %1399 }
  0xf7   : > { %v1700_v39 = vsel %vm1680_vm6, %v1699_v40, %v1698_v55  ;;  %v1502_v11 = vadd.f32 %v1501_v61, %v1500_v24  ;;  %v1454_v49 = vmul.f32 %v1404_v26, %v2635_v3  ;;  %v1453_v5 = vmul.f32 %v1400_v20, %v2631_v33 }
  0xf8   : > { %v1655_v59 = vadd.f32 %v1623_v30, %v1567_v21  ;;  %v1573_v57 = vrot.slane %v1572_v51, 2  ;;  %v1508_v1 = vrot.slane %v1507_v25, 4  ;;  %v1624_v3 = vrot.slane %v2660_v32, 4 }
  0xf9   : > { %v1503_v42 = vrot.slane %v1502_v11, 1  ;;  %v1578_v63 = vsel %vm1459_vm4, %v1454_v49, 0.0  ;;  %v1577_v44 = vsel %vm1459_vm4, %v1453_v5, 0.0 }
  0xfa   : > { %v1701_v16 = vrot.slane %v1655_v59, 5  ;;  %v1574_v18 = vadd.f32 %v1573_v57, %v1572_v51  ;;  %v1509_v2 = vadd.f32 %v1508_v1, %v1507_v25  ;;  %v1579_v9 = vadd.f32 %v1578_v63, %v1577_v44  ;;  %v1327_v38 = vpop.permute.xlu1 %1326  ;;  %v1323_v52 = vpop.permute.xlu0 %1322 }
  0xfb   : > { %v1504_v12 = vadd.f32 %v1503_v42, %v1502_v11  ;;  %v1440_v33 = vmul.f32 %v1327_v38, %v2569_v53  ;;  %v1439_v31 = vmul.f32 %v1323_v52, %v2561_v47  ;;  %v1618_v47 = vrot.slane %v2231_v37, 5 }
  0xfc   : > { %v1702_v34 = vsel %vm1683_vm7, %v1701_v16, %v1700_v39  ;;  %v1575_v29 = vrot.slane %v1574_v18, 1  ;;  %v1510_v22 = vrot.slane %v1509_v2, 2  ;;  %v1580_v13 = vrot.slane %v1579_v9, 4 }
  0xfd   : > { %v1648_v19 = vadd.f32 %v1617_v7, %v1504_v12  ;;  %v1515_v30 = vsel %vm1459_vm4, %v1440_v33, 0.0  ;;  %v1514_v35 = vsel %vm1459_vm4, %v1439_v31, 0.0 }
  0xfe   : > { %v1576_v28 = vadd.f32 %v1575_v29, %v1574_v18  ;;  %v1511_v50 = vadd.f32 %v1510_v22, %v1509_v2  ;;  %v1581_v48 = vadd.f32 %v1580_v13, %v1579_v9  ;;  %v1516_v60 = vadd.f32 %v1515_v30, %v1514_v35  ;;  %v1415_v62 = vpop.permute.xlu1 %1414  ;;  %v1411_v46 = vpop.permute.xlu0 %1410 }
  0xff   : > { %v1685_v53 = vrot.slane %v1648_v19, 4  ;;  %v1456_v43 = vmul.f32 %v1415_v62, %v2645_v17  ;;  %v1455_v15 = vmul.f32 %v1411_v46, %v2637_v23  ;;  %v1625_v17 = vrot.slane %v2660_v32, 5 }
 0x100   : > { %v1656_v45 = vadd.f32 %v1624_v3, %v1576_v28  ;;  %v1512_v24 = vrot.slane %v1511_v50, 1  ;;  %v1582_v10 = vrot.slane %v1581_v48, 2  ;;  %v1517_v56 = vrot.slane %v1516_v60, 4 }
 0x101   : > { %v1687_v0 = vsel %vm1686_vm8, %v1685_v53, %v1684_v27  ;;  %v1587_v54 = vsel %vm1459_vm4, %v1456_v43, 0.0  ;;  %v1586_v6 = vsel %vm1459_vm4, %v1455_v15, 0.0  ;;  %v1626_v35 = vrot.slane %v2660_v32, 6 }
 0x102   : > { %v1703_v40 = vrot.slane %v1656_v45, 4  ;;  %v1513_v61 = vadd.f32 %v1512_v24, %v1511_v50  ;;  %v1583_v4 = vadd.f32 %v1582_v10, %v1581_v48  ;;  %v1518_v58 = vadd.f32 %v1517_v56, %v1516_v60  ;;  %v1338_v55 = vpop.permute.xlu1 %1337  ;;  %v1334_v21 = vpop.permute.xlu0 %1333 }
 0x103   : > { %v1588_v51 = vadd.f32 %v1587_v54, %v1586_v6  ;;  %v1442_v23 = vmul.f32 %v1338_v55, %v2581_v36  ;;  %v1441_v25 = vmul.f32 %v1334_v21, %v2571_v41  ;;  %v1619_v36 = vrot.slane %v2231_v37, 6 }
 0x104   : > { %v1704_v26 = vsel %vm1686_vm8, %v1703_v40, %v1702_v34  ;;  %v1649_v27 = vadd.f32 %v1618_v47, %v1513_v61  ;;  %v1584_v20 = vrot.slane %v1583_v4, 1  ;;  %v1519_v39 = vrot.slane %v1518_v58, 2 }
 0x105   : > { %v1589_v11 = vrot.slane %v1588_v51, 4  ;;  %v1524_v49 = vsel %vm1459_vm4, %v1442_v23, 0.0  ;;  %v1523_v5 = vsel %vm1459_vm4, %v1441_v25, 0.0  ;;  %v1620_v53 = vrot.slane %v2231_v37, 7 }
 0x106   : > { %v1688_v59 = vrot.slane %v1649_v27, 3  ;;  %v1585_v57 = vadd.f32 %v1584_v20, %v1583_v4  ;;  %v1520_v1 = vadd.f32 %v1519_v39, %v1518_v58  ;;  %v1525_v42 = vadd.f32 %v1524_v49, %v1523_v5  ;;  %v1426_v7 = vpop.permute.xlu1 %1425  ;;  %v1422_v63 = vpop.permute.xlu0 %1421 }
 0x107   : > { %v1590_v41 = vadd.f32 %v1589_v11, %v1588_v51  ;;  %v1458_v44 = vmul.f32 %v1426_v7, %v2671_v14  ;;  %v1457_v16 = vmul.f32 %v1422_v63, %v2673_v8 }
 0x108   : > { %v1690_v18 = vsel %vm1689_vm9, %v1688_v59, %v1687_v0  ;;  %v1657_v2 = vadd.f32 %v1625_v17, %v1585_v57  ;;  %v1521_v9 = vrot.slane %v1520_v1, 1  ;;  %v1526_v38 = vrot.slane %v1525_v42, 4 }
 0x109   : > { %v1591_v52 = vrot.slane %v1590_v41, 2  ;;  %v1596_v12 = vsel %vm1459_vm4, %v1458_v44, 0.0  ;;  %v1595_v3 = vsel %vm1459_vm4, %v1457_v16, 0.0  ;;  %v1627_v0 = vrot.slane %v2660_v32, 7 }
 0x10a   : > { %v1705_v33 = vrot.slane %v1657_v2, 3  ;;  %v1522_v31 = vadd.f32 %v1521_v9, %v1520_v1  ;;  %v1527_v34 = vadd.f32 %v1526_v38, %v1525_v42  ;;  %v1597_v29 = vadd.f32 %v1596_v12, %v1595_v3 }
 0x10b   : > { %v1592_v22 = vadd.f32 %v1591_v52, %v1590_v41 }
 0x10c   : > { %v1706_v13 = vsel %vm1689_vm9, %v1705_v33, %v1704_v26  ;;  %v1650_v14 = vadd.f32 %v1619_v36, %v1522_v31  ;;  %v1528_v19 = vrot.slane %v1527_v34, 2  ;;  %v1598_v8 = vrot.slane %v1597_v29, 4 }
 0x10d   : > { %v1593_v30 = vrot.slane %v1592_v22, 1 }
 0x10e   : > { %v1691_v28 = vrot.slane %v1650_v14, 2  ;;  %v1529_v50 = vadd.f32 %v1528_v19, %v1527_v34  ;;  %v1599_v48 = vadd.f32 %v1598_v8, %v1597_v29 }
 0x10f   : > { %v1594_v60 = vadd.f32 %v1593_v30, %v1592_v22 }
 0x110   : > { %v1693_v62 = vsel %vm1692_vm10, %v1691_v28, %v1690_v18  ;;  %v1530_v46 = vrot.slane %v1529_v50, 1  ;;  %v1600_v47 = vrot.slane %v1599_v48, 2 }
 0x111   : > { %v1658_v43 = vadd.f32 %v1626_v35, %v1594_v60 }
 0x112   : > { %v1531_v15 = vadd.f32 %v1530_v46, %v1529_v50  ;;  %v1601_v45 = vadd.f32 %v1600_v47, %v1599_v48 }
 0x113   : > { %v1707_v24 = vrot.slane %v1658_v43, 2 }
 0x114   : > { %v1651_v10 = vadd.f32 %v1620_v53, %v1531_v15  ;;  %v1602_v56 = vrot.slane %v1601_v45, 1 }
 0x115   : > { %v1708_v54 = vsel %vm1692_vm10, %v1707_v24, %v1706_v13 }
 0x116   : > { %v1694_v6 = vrot.slane %v1651_v10, 1  ;;  %v1603_v40 = vadd.f32 %v1602_v56, %v1601_v45 }
 0x118   : > { %v1696_v61 = vsel %vm1695_vm11, %v1694_v6, %v1693_v62  ;;  %v1659_v37 = vadd.f32 %v1627_v0, %v1603_v40 }
 0x119   : > { %1713 = vst.msk [vmem:[%s464_s19] sm:$0xff] %vm1459_vm4, %v1696_v61 }
 0x11a   : > { %v1709_v4 = vrot.slane %v1659_v37, 1 }
 0x11c   : > { %v1710_v58 = vsel %vm1695_vm11, %v1709_v4, %v1708_v54 }
 0x11d   : > { %1714 = vst.msk [vmem:[%s464_s19 + $0x8] sm:$0xff] %vm1459_vm4, %v1710_v58 }
 0x11e PF: > { %s17_s28 = sadd.s32 1, %s2081_s28   ;;  %s2785_s24 = smov %s2073_s26 }
 0x11f   : > { %p14_p7 = scmp.ge.s32.totalorder %s17_s28, 10   ;;  %s2786_s25 = smov %s2077_s27 }
 0x120   : > { %s2787_s26 = smov %s2790_s29  ;;  %s2788_s27 = smov %s2794_s30 }
 0x121   :  { %16 = sbr.rel (!%p14_p7) target bundleno = 3 (0x3), region = 96 }

// kernel: vmrnn_forward.90
= control target key start
LH: loop header
LB: loop body
LE: loop exit
PB: predicated region body
PF: predicated region fallthrough
CT: control target
= control target key end

     0   :  { %vm15_vm0 = vcmask 523264   ;;  %s90_s0 = inlined_call_operand.vmem [shape: f32[8,64], index: 0, kind: input, shape index: {}]   ;;  %s91_s1 = inlined_call_operand.vmem [shape: f32[1,64], index: 1, kind: input, shape index: {}]   ;;  %s92_s2 = inlined_call_operand.vmem [shape: f32[1,64], index: 2, kind: input, shape index: {}]   ;;  %s93_s3 = inlined_call_operand.vmem [shape: f32[8,64], index: 3, kind: output, shape index: {}]  }
   0x1   :  { %v14_v0 = vld [vmem:[%s90_s0] sm:$0xff] }
   0x2   :  { %v16_v1 = vsel %vm15_vm0, %v14_v0, 0.0  ;;  %v51_v11 = vld [vmem:[%s91_s1] ss:$0 sm:$0xff] }
   0x3   :  { %17 = vadd.xlane.f32.xlu0 %v16_v1  ;;  %v52_v13 = vld [vmem:[%s92_s2] ss:$0 sm:$0xff] }
  0x90   :  { %v18_v2 = vpop.xlane.xlu0 %17 }
  0x91   :  { %v20_v3 = vmul.f32 0.015625, %v18_v2 }
  0x93   :  { %v21_v4 = vsub.f32 %v14_v0, %v20_v3 }
  0x95   :  { %v22_v5 = vmul.f32 %v21_v4, %v21_v4 }
  0x97   :  { %v23_v6 = vsel %vm15_vm0, %v22_v5, 0.0 }
  0x98   :  { %24 = vadd.xlane.f32.xlu0 %v23_v6 }
 0x125   :  { %v25_v7 = vpop.xlane.xlu0 %24 }
 0x126   :  { %v26_v8 = vmul.f32 0.015625, %v25_v7 }
 0x128   :  { %v27_v9 = vadd.f32 1e-05, %v26_v8 }
 0x12a   :  { %53 = vrsqrt.f32 %v27_v9 }
 0x134   :  { %v54_v10 = vpop.eup %53 }
 0x135   :  { %v29_v12 = vmul.f32 %v54_v10, %v21_v4 }
 0x137   :  { %v37_v14 = vmul.f32 %v51_v11, %v29_v12 }
 0x139   :  { %v45_v15 = vadd.f32 %v52_v13, %v37_v14 }
 0x13b   :  { %46 = vst.msk [vmem:[%s93_s3] sm:$0xff] %vm15_vm0, %v45_v15 }

// kernel: vmrnn_forward.88
= control target key start
LH: loop header
LB: loop body
LE: loop exit
PB: predicated region body
PF: predicated region fallthrough
CT: control target
= control target key end

     0   :  { %s84_s0 = inlined_call_operand.vmem [shape: f32[8,128], index: 0, kind: input, shape index: {}]   ;;  %s85_s1 = inlined_call_operand.vmem [shape: f32[1,128], index: 1, kind: input, shape index: {}]   ;;  %s86_s2 = inlined_call_operand.vmem [shape: f32[1,128], index: 2, kind: input, shape index: {}]   ;;  %s87_s3 = inlined_call_operand.vmem [shape: f32[8,128], index: 3, kind: output, shape index: {}]  }
   0x1   :  { %v14_v0 = vld [vmem:[%s84_s0] sm:$0xff] }
   0x2   :  { %15 = vadd.xlane.f32.xlu0 %v14_v0  ;;  %v48_v9 = vld [vmem:[%s85_s1] ss:$0 sm:$0xff] }
   0x3   :  { %v49_v11 = vld [vmem:[%s86_s2] ss:$0 sm:$0xff] }
  0x8f   :  { %v16_v1 = vpop.xlane.xlu0 %15 }
  0x90   :  { %v18_v2 = vmul.f32 0.0078125, %v16_v1 }
  0x92   :  { %v19_v3 = vsub.f32 %v14_v0, %v18_v2 }
  0x94   :  { %v20_v4 = vmul.f32 %v19_v3, %v19_v3 }
  0x96   :  { %21 = vadd.xlane.f32.xlu0 %v20_v4 }
 0x123   :  { %v22_v5 = vpop.xlane.xlu0 %21 }
 0x124   :  { %v23_v6 = vmul.f32 0.0078125, %v22_v5 }
 0x126   :  { %v24_v7 = vadd.f32 1e-05, %v23_v6 }
 0x128   :  { %50 = vrsqrt.f32 %v24_v7 }
 0x132   :  { %v51_v8 = vpop.eup %50 }
 0x133   :  { %v26_v10 = vmul.f32 %v51_v8, %v19_v3 }
 0x135   :  { %v34_v12 = vmul.f32 %v48_v9, %v26_v10 }
 0x137   :  { %v42_v13 = vadd.f32 %v49_v11, %v34_v12 }
 0x139   :  { %43 = vst [vmem:[%s87_s3] sm:$0xff] %v42_v13 }

// kernel: vmrnn_forward.89
= control target key start
LH: loop header
LB: loop body
LE: loop exit
PB: predicated region body
PF: predicated region fallthrough
CT: control target
= control target key end

     0   :  { %v193_v0 = vmov 0.0   ;;  %vm194_vm0 = vmmov 0   ;;  %s248_s1 = inlined_call_operand.vmem [shape: bf16[128,128], index: 1, kind: input, shape index: {}]   ;;  %s249_s0 = inlined_call_operand.vmem [shape: bf16[8,128], index: 0, kind: input, shape index: {}]   ;;  %s250_s2 = inlined_call_operand.vmem [shape: f32[1,128], index: 2, kind: input, shape index: {}]   ;;  %s251_s3 = inlined_call_operand.vmem [shape: f32[8,128], index: 3, kind: output, shape index: {}]  }
   0x1   :  { %163 = vmatprep.subr.bf16.mxu0 %v193_v0  ;;  %v185_v1 = vld [vmem:[%s248_s1] sm:$0xff]   ;;  %179 = vmatprep.mubr.msk.bf16.mxu0 %vm194_vm0, %v193_v0  ;;  %v186_v2 = vld [vmem:[%s248_s1 + $0x8] sm:$0xff]   ;;  %v187_v3 = vld [vmem:[%s248_s1 + $0x10] sm:$0xff]  }
   0x2   :  { %164 = vmatpush3.bf16.msra.mxu0 %v185_v1  ;;  %v188_v4 = vld [vmem:[%s248_s1 + $0x18] sm:$0xff]   ;;  %v189_v5 = vld [vmem:[%s248_s1 + $0x20] sm:$0xff]   ;;  %v190_v6 = vld [vmem:[%s248_s1 + $0x28] sm:$0xff]  }
   0x3   :  { %165 = vmatprep.subr.bf16.mxu0 %v193_v0  ;;  %v191_v7 = vld [vmem:[%s248_s1 + $0x30] sm:$0xff]   ;;  %v192_v8 = vld [vmem:[%s248_s1 + $0x38] sm:$0xff]   ;;  %v21_v9 = vld [vmem:[%s249_s0] sm:$0xf] }
   0x4   :  { %v153_v10 = vld [vmem:[%s250_s2] ss:$0 sm:$0xff] }
   0x6   :  { %166 = vmatpush3.bf16.msra.mxu0 %v186_v2 }
   0x7   :  { %167 = vmatprep.subr.bf16.mxu0 %v193_v0 }
   0xa   :  { %168 = vmatpush3.bf16.msra.mxu0 %v187_v3 }
   0xb   :  { %169 = vmatprep.subr.bf16.mxu0 %v193_v0 }
   0xe   :  { %170 = vmatpush3.bf16.msra.mxu0 %v188_v4 }
   0xf   :  { %171 = vmatprep.subr.bf16.mxu0 %v193_v0 }
  0x12   :  { %172 = vmatpush3.bf16.msra.mxu0 %v189_v5 }
  0x13   :  { %173 = vmatprep.subr.bf16.mxu0 %v193_v0 }
  0x16   :  { %174 = vmatpush3.bf16.msra.mxu0 %v190_v6 }
  0x17   :  { %175 = vmatprep.subr.bf16.mxu0 %v193_v0 }
  0x1a   :  { %176 = vmatpush3.bf16.msra.mxu0 %v191_v7 }
  0x1b   :  { %177 = vmatprep.subr.bf16.mxu0 %v193_v0 }
  0x1e   :  { %178 = vmatpush3.bf16.msra.mxu0 %v192_v8 }
  0x21   :  { %180 = vmatmul.mubr.bf16.vlgmr.msra.gmra.mrb[0].mxu0 %v21_v9 }
  0xf4   :  { %v120_v11 = vpop.f32.mrb[0].mxu0 }
  0xf5   :  { %v139_v12 = vadd.f32 %v153_v10, %v120_v11  ;;  %v181_v13 = vpop.f32.mrb[1].mxu0 }
  0xf6   :  { %v123_v14 = vpop.f32.mrb[2].mxu0 }
  0xf7   :  { %140 = vst [vmem:[%s251_s3] sm:$0xff] %v139_v12  ;;  %v182_v15 = vpop.f32.mrb[3].mxu0 }

// kernel: vmrnn_forward.93
= control target key start
LH: loop header
LB: loop body
LE: loop exit
PB: predicated region body
PF: predicated region fallthrough
CT: control target
= control target key end

     0   :  { %v231_v1 = vmov 0   ;;  %v172_v18 = vlaneseq  ;;  %s312_s1 = inlined_call_operand.vmem [shape: bf16[128,256], index: 1, kind: input, shape index: {}]   ;;  %s313_s0 = inlined_call_operand.vmem [shape: bf16[8,128], index: 0, kind: input, shape index: {}]   ;;  %s314_s2 = inlined_call_operand.vmem [shape: f32[1,256], index: 2, kind: input, shape index: {}]   ;;  %s315_s3 = inlined_call_operand.vmem [shape: f32[8,256], index: 3, kind: output, shape index: {}]  }
   0x1   :  { %v207_v0 = vld [vmem:[%s312_s1 + $0x4] ss:$8 sps:$4 sm:$0xff]   ;;  %152 = vmatprep.mubr.bf16.mxu0 %v231_v1  ;;  %v209_v2 = vld [vmem:[%s312_s1] ss:$8 sps:$4 sm:$0xff]   ;;  %v210_v3 = vld [vmem:[%s312_s1 + $0x14] ss:$8 sps:$4 sm:$0xff]  }
   0x2   :  { %120 = vmatprep.subr.bf16.mxu0 %v207_v0  ;;  %v212_v4 = vld [vmem:[%s312_s1 + $0x10] ss:$8 sps:$4 sm:$0xff]   ;;  %v213_v5 = vld [vmem:[%s312_s1 + $0x24] ss:$8 sps:$4 sm:$0xff]   ;;  %v215_v6 = vld [vmem:[%s312_s1 + $0x20] ss:$8 sps:$4 sm:$0xff]  }
   0x3   :  { %121 = vmatpush1.bf16.msra.mxu0 %v209_v2  ;;  %v216_v7 = vld [vmem:[%s312_s1 + $0x34] ss:$8 sps:$4 sm:$0xff]   ;;  %v218_v8 = vld [vmem:[%s312_s1 + $0x30] ss:$8 sps:$4 sm:$0xff]   ;;  %v219_v9 = vld [vmem:[%s312_s1 + $0x44] ss:$8 sps:$4 sm:$0xff]  }
   0x4   :  { %122 = vmatprep.subr.bf16.mxu0 %v210_v3  ;;  %v221_v10 = vld [vmem:[%s312_s1 + $0x40] ss:$8 sps:$4 sm:$0xff]   ;;  %v222_v11 = vld [vmem:[%s312_s1 + $0x54] ss:$8 sps:$4 sm:$0xff]   ;;  %v224_v12 = vld [vmem:[%s312_s1 + $0x50] ss:$8 sps:$4 sm:$0xff]  }
   0x5   :  { %v225_v13 = vld [vmem:[%s312_s1 + $0x64] ss:$8 sps:$4 sm:$0xff]   ;;  %v227_v14 = vld [vmem:[%s312_s1 + $0x60] ss:$8 sps:$4 sm:$0xff]   ;;  %v228_v15 = vld [vmem:[%s312_s1 + $0x74] ss:$8 sps:$4 sm:$0xff]  }
   0x6   :  { %v230_v16 = vld [vmem:[%s312_s1 + $0x70] ss:$8 sps:$4 sm:$0xff]   ;;  %v23_v17 = vld [vmem:[%s313_s0] sm:$0xf]  ;;  %v173_v19 = vshrl.u32 %v172_v18, 7 }
   0x7   :  { %123 = vmatpush1.bf16.msra.mxu0 %v212_v4  ;;  %v170_v21 = vld [vmem:[%s314_s2] sm:$0x3] }
   0x8   :  { %124 = vmatprep.subr.bf16.mxu0 %v213_v5  ;;  %v174_v20 = vsub.s32 0, %v173_v19  ;;  %v178_v22 = vsub.s32 1, %v173_v19 }
   0xa   :  { %v175_v23 = vrot.slane %v170_v21, %v174_v20  ;;  %v179_v24 = vrot.slane %v170_v21, %v178_v22 }
   0xb   :  { %125 = vmatpush1.bf16.msra.mxu0 %v215_v6 }
   0xc   :  { %126 = vmatprep.subr.bf16.mxu0 %v216_v7 }
   0xf   :  { %127 = vmatpush1.bf16.msra.mxu0 %v218_v8 }
  0x10   :  { %128 = vmatprep.subr.bf16.mxu0 %v219_v9 }
  0x13   :  { %129 = vmatpush1.bf16.msra.mxu0 %v221_v10 }
  0x14   :  { %130 = vmatprep.subr.bf16.mxu0 %v222_v11 }
  0x17   :  { %131 = vmatpush1.bf16.msra.mxu0 %v224_v12 }
  0x18   :  { %132 = vmatprep.subr.bf16.mxu0 %v225_v13 }
  0x1b   :  { %133 = vmatpush1.bf16.msra.mxu0 %v227_v14 }
  0x1c   :  { %134 = vmatprep.subr.bf16.mxu0 %v228_v15 }
  0x1f   :  { %135 = vmatpush1.bf16.msra.mxu0 %v230_v16 }
  0x22   :  { %153 = vmatmul.mubr.bf16.vlgmr.msra.gmra.mrb[0].mxu0 %v23_v17 }
  0xf5   :  { %v154_v25 = vpop.f32.mrb[0].mxu0 }
  0xf6   :  { %v182_v26 = vadd.f32 %v175_v23, %v154_v25  ;;  %v156_v27 = vpop.f32.mrb[1].mxu0 }
  0xf7   :  { %v183_v28 = vadd.f32 %v179_v24, %v156_v27  ;;  %v158_v29 = vpop.f32.mrb[2].mxu0 }
  0xf8   :  { %184 = vst [vmem:[%s315_s3] sm:$0xff] %v182_v26  ;;  %v159_v30 = vpop.f32.mrb[3].mxu0 }
  0xf9   :  { %185 = vst [vmem:[%s315_s3 + $0x8] sm:$0xff] %v183_v28 }

// kernel: vmrnn_forward.94
= control target key start
LH: loop header
LB: loop body
LE: loop exit
PB: predicated region body
PF: predicated region fallthrough
CT: control target
= control target key end

     0   :  { %s432_s12 = smov 0   ;;  %s503_s0 = inlined_call_operand.vmem [shape: f32[2,4,4,128], index: 0, kind: input, shape index: {}]   ;;  %s504_s1 = inlined_call_operand.vmem [shape: f32[9,128], index: 1, kind: input, shape index: {}]   ;;  %s505_s2 = inlined_call_operand.vmem [shape: f32[1,128], index: 2, kind: input, shape index: {}]   ;;  %s506_s3 = inlined_call_operand.vmem [shape: f32[2,2,2,128], index: 3, kind: output, shape index: {}]  }
   0x1 LB: > { %s351_s13 = sadd.s32 4294967295, %s410_s12   ;;  %p355_p0 = scmp.ge.s32.totalorder %s410_s12, 1  ;;  %s410_s12 = sphi %s432_s12, %s13_s12  }
   0x2   : > { %p137_p1 = scmp.lt.s32.totalorder %s410_s12, 3 }
   0x4   : > { %p138_p2 = pnand %p355_p0, %p137_p1 }
   0x5   : > { %p161_p3 = scmp.lt.s32.totalorder (!%p138_p2), %s351_s13, 1  ;;  %v361_v0 = vld [vmem:[%s504_s1] ss:$0 sm:$0xff] (!%p138_p2)  ;;  %v362_v1 = vld [vmem:[%s504_s1 + $0x1] ss:$0 sm:$0xff] (!%p138_p2) }
   0x6   : > { %141 = sbr.rel (%p138_p2) target bundleno = 67 (0x43), region = 32  ;;  %v360_v2 = vld [vmem:[%s505_s2] ss:$0 sm:$0xff] (!%p138_p2)  ;;  %v363_v3 = vld [vmem:[%s504_s1 + $0x2] ss:$0 sm:$0xff] (!%p138_p2) }
   0x7   : > { %v366_v10 = vld [vmem:[%s504_s1 + $0x3] ss:$0 sm:$0xff] (!%p138_p2)  ;;  %v369_v17 = vld [vmem:[%s504_s1 + $0x4] ss:$0 sm:$0xff] (!%p138_p2)  ;;  %v372_v24 = vld [vmem:[%s504_s1 + $0x5] ss:$0 sm:$0xff] (!%p138_p2) }
   0x8   : > { %v375_v31 = vld [vmem:[%s504_s1 + $0x6] ss:$0 sm:$0xff] (!%p138_p2)  ;;  %v378_v38 = vld [vmem:[%s504_s1 + $0x7] ss:$0 sm:$0xff] (!%p138_p2)  ;;  %v381_v45 = vld [vmem:[%s504_s1 + $0x8] ss:$0 sm:$0xff] (!%p138_p2) }
   0xd   : > { %s508_s13 = smov (!%p161_p3, %s351_s13), 1 }
   0xe   : > { %s386_s14 = sshll.u32 %s508_s13, 4  ;;  %s387_s11 = sshll.u32 %s508_s13, 2 }
   0xf   : > { %s452_s21 = scalar_lea.vmem %s503_s0, %s386_s14  ;;  %s170_s16 = scalar_lea.vmem %s506_s3, %s387_s11 }
  0x10   : > { %v179_v4 = vld [vmem:[%s452_s21] sm:$0x3]  ;;  %v201_v6 = vld [vmem:[%s452_s21 + $0x2] sm:$0x3]  ;;  %v364_v9 = vld [vmem:[%s452_s21 + $0x4] sm:$0x3] }
  0x11   : > { %v190_v5 = vld [vmem:[%s452_s21 + $0x1] sm:$0x3]  ;;  %v186_v7 = vmul.f32 %v361_v0, %v179_v4  ;;  %v208_v12 = vmul.f32 %v363_v3, %v201_v6  ;;  %v180_v13 = vld [vmem:[%s452_s21 + $0x4] sm:$0x3]  ;;  %v202_v15 = vld [vmem:[%s452_s21 + $0x6] sm:$0x3]  ;;  %v220_v21 = vmul.f32 %v366_v10, %v364_v9 }
  0x12   : > { %v197_v8 = vmul.f32 %v362_v1, %v190_v5  ;;  %v191_v14 = vld [vmem:[%s452_s21 + $0x5] sm:$0x3]  ;;  %v187_v18 = vmul.f32 %v361_v0, %v180_v13  ;;  %v365_v22 = vld [vmem:[%s452_s21 + $0x8] sm:$0x3]  ;;  %v209_v26 = vmul.f32 %v363_v3, %v202_v15  ;;  %v371_v36 = vld [vmem:[%s452_s21 + $0xa] sm:$0x3] }
  0x13   : > { %v188_v11 = vadd.f32 %v360_v2, %v186_v7  ;;  %v367_v16 = vld [vmem:[%s452_s21 + $0x5] sm:$0x3]  ;;  %v198_v19 = vmul.f32 %v362_v1, %v191_v14  ;;  %v368_v29 = vld [vmem:[%s452_s21 + $0x9] sm:$0x3]  ;;  %v221_v33 = vmul.f32 %v366_v10, %v365_v22  ;;  %v374_v43 = vld [vmem:[%s452_s21 + $0xc] sm:$0x3]  ;;  %v243_v47 = vmul.f32 %v372_v24, %v371_v36 }
  0x14   : > { %v370_v23 = vld [vmem:[%s452_s21 + $0x6] sm:$0x3]  ;;  %v189_v25 = vadd.f32 %v360_v2, %v187_v18  ;;  %v231_v28 = vmul.f32 %v369_v17, %v367_v16  ;;  %v373_v30 = vld [vmem:[%s452_s21 + $0x8] sm:$0x3]  ;;  %v232_v40 = vmul.f32 %v369_v17, %v368_v29  ;;  %v379_v44 = vld [vmem:[%s452_s21 + $0xa] sm:$0x3]  ;;  %v255_v52 = vmul.f32 %v375_v31, %v374_v43 }
  0x15   : > { %v199_v20 = vadd.f32 %v197_v8, %v188_v11  ;;  %v242_v35 = vmul.f32 %v372_v24, %v370_v23  ;;  %v376_v37 = vld [vmem:[%s452_s21 + $0x9] sm:$0x3]  ;;  %v254_v42 = vmul.f32 %v375_v31, %v373_v30  ;;  %v377_v50 = vld [vmem:[%s452_s21 + $0xd] sm:$0x3]  ;;  %v276_v54 = vmul.f32 %v381_v45, %v379_v44 }
  0x16   : > { %v200_v32 = vadd.f32 %v198_v19, %v189_v25  ;;  %v265_v49 = vmul.f32 %v378_v38, %v376_v37  ;;  %v380_v55 = vld [vmem:[%s452_s21 + $0xe] sm:$0x3]  ;;  %v266_v57 = vmul.f32 %v378_v38, %v377_v50 }
  0x17   : > { %v210_v27 = vadd.f32 %v208_v12, %v199_v20  ;;  %v277_v60 = vmul.f32 %v381_v45, %v380_v55 }
  0x18   : > { %v211_v39 = vadd.f32 %v209_v26, %v200_v32 }
  0x19   : > { %v222_v34 = vadd.f32 %v220_v21, %v210_v27 }
  0x1a   : > { %v223_v46 = vadd.f32 %v221_v33, %v211_v39 }
  0x1b   : > { %v233_v41 = vadd.f32 %v231_v28, %v222_v34 }
  0x1c   : > { %v234_v51 = vadd.f32 %v232_v40, %v223_v46 }
  0x1d   : > { %v244_v48 = vadd.f32 %v242_v35, %v233_v41 }
  0x1e   : > { %v245_v56 = vadd.f32 %v243_v47, %v234_v51 }
  0x1f   : > { %v256_v53 = vadd.f32 %v254_v42, %v244_v48 }
  0x20   : > { %v257_v59 = vadd.f32 %v255_v52, %v245_v56 }
  0x21   : > { %v267_v58 = vadd.f32 %v265_v49, %v256_v53 }
  0x22   : > { %v268_v62 = vadd.f32 %v266_v57, %v257_v59 }
  0x23   : > { %v278_v61 = vadd.f32 %v276_v54, %v267_v58 }
  0x24   : > { %v279_v0 = vadd.f32 %v277_v60, %v268_v62 }
  0x25   : > { %v382_v63 = vmul.f32 -1.442695, %v278_v61 }
  0x26   : > { %v383_v1 = vmul.f32 -1.442695, %v279_v0 }
  0x27   : > { %396 = vpow2.f32 %v382_v63 }
  0x28   : > { %398 = vpow2.f32 %v383_v1 }
  0x31   : > { %v397_v2 = vpop.eup %396 }
  0x32   : > { %v286_v3 = vadd.f32 1.0, %v397_v2  ;;  %v399_v4 = vpop.eup %398 }
  0x33   : > { %v287_v5 = vadd.f32 1.0, %v399_v4 }
  0x34   : > { %400 = vrcp.f32 %v286_v3 }
  0x35   : > { %402 = vrcp.f32 %v287_v5 }
  0x3e   : > { %v401_v6 = vpop.eup %400 }
  0x3f   : > { %v292_v7 = vmul.f32 %v401_v6, %v278_v61  ;;  %v403_v8 = vpop.eup %402 }
  0x40   : > { %v293_v9 = vmul.f32 %v403_v8, %v279_v0 }
  0x41   : > { %294 = vst [vmem:[%s170_s16] sm:$0x3] %v292_v7 }
  0x42   : > { %295 = vst [vmem:[%s170_s16 + $0x2] sm:$0x3] %v293_v9 }
  0x43 PF: > { %s13_s12 = sadd.s32 1, %s410_s12  }
  0x44   : > { %p10_p4 = scmp.ge.s32.totalorder %s13_s12, 4  }
  0x46   :  { %12 = sbr.rel (!%p10_p4) target bundleno = 1 (0x1), region = 64 }

// kernel: vmrnn_forward.95
= control target key start
LH: loop header
LB: loop body
LE: loop exit
PB: predicated region body
PF: predicated region fallthrough
CT: control target
= control target key end

     0   :  { %s736_s18 = smov 0   ;;  %s771_s0 = inlined_call_operand.vmem [shape: bf16[4,8,128], index: 0, kind: input, shape index: {}]   ;;  %s772_s1 = inlined_call_operand.vmem [shape: bf16[4,128,36], index: 1, kind: input, shape index: {}]   ;;  %s773_s2 = inlined_call_operand.vmem [shape: bf16[4,4,128], index: 2, kind: input, shape index: {}]   ;;  %s774_s3 = inlined_call_operand.vmem [shape: f32[4,8,128], index: 3, kind: output, shape index: {0}]   ;;  %s775_s4 = inlined_call_operand.vmem [shape: f32[4,8,16], index: 4, kind: output, shape index: {1}]   ;;  %s776_s5 = inlined_call_operand.vmem [shape: f32[4,8,16], index: 5, kind: output, shape index: {2}]  }
   0x1 LB: > { %s613_s19 = sadd.s32 4294967295, %s700_s18   ;;  %p617_p0 = scmp.ge.s32.totalorder %s700_s18, 1  ;;  %s700_s18 = sphi %s736_s18, %s16_s18  }
   0x2   : > { %p210_p1 = scmp.lt.s32.totalorder %s700_s18, 5 }
   0x4   : > { %p211_p2 = pnand %p617_p0, %p210_p1 }
   0x5   : > { %p253_p3 = scmp.lt.s32.totalorder (!%p211_p2), %s613_s19, 3  ;;  %v702_v0 = vmov (!%p211_p2), 0.0   ;;  %vm703_vm0 = vmmov (!%p211_p2), 0   ;;  %vm390_vm1 = vcmask (!%p211_p2), 1043456   ;;  %vm386_vm2 = vcmask (!%p211_p2), 31744   ;;  %s704_s7 = smov (!%p211_p2), 124  }
   0x6   : > { %214 = sbr.rel (%p211_p2) target bundleno = 473 (0x1d9), region = 32  ;;  %649 = vmatprep.subr.bf16.mxu0 (!%p211_p2), %v702_v0  ;;  %665 = vmatprep.mubr.msk.bf16.mxu0 (!%p211_p2), %vm703_vm0, %v702_v0  ;;  %s705_s8 = smov (!%p211_p2), 108   ;;  %vm468_vm3 = vcmask (!%p211_p2), 130048  }
   0x7   : > { %669 = vmatprep.subr.mxu1 (!%p211_p2), %v702_v0  ;;  %671 = vmatprep.mubr.msk.f32.mxu1 (!%p211_p2), %vm703_vm0, %v702_v0 }
   0xd   : > { %s778_s19 = smov (!%p253_p3, %s613_s19), 3 }
   0xe   : > { %s637_s20 = sshll.u32 %s778_s19, 6  ;;  %s618_s24 = sshll.u32 %s778_s19, 2 }
   0xf   : > { %s261_s23 = scalar_lea.vmem %s772_s1, %s637_s20  ;;  %s256_s27 = scalar_lea.vmem %s771_s0, %s618_s24 }
  0x10   : > { %v686_v1 = vld [vmem:[%s261_s23] sm:$0xff]   ;;  %v687_v2 = vld [vmem:[%s261_s23 + $0x8] sm:$0xff]   ;;  %v688_v3 = vld [vmem:[%s261_s23 + $0x10] sm:$0xff]   ;;  %s621_s28 = sshll.u32 %s778_s19, 1  ;;  %s622_s9 = sshll.u32 %s778_s19, 3 }
  0x11   : > { %650 = vmatpush3.bf16.msra.mxu0 %v686_v1  ;;  %v689_v4 = vld [vmem:[%s261_s23 + $0x18] sm:$0xff]   ;;  %v690_v5 = vld [vmem:[%s261_s23 + $0x20] sm:$0xff]   ;;  %v691_v6 = vld [vmem:[%s261_s23 + $0x28] sm:$0xff]   ;;  %s265_s6 = scalar_lea.vmem %s773_s2, %s621_s28  ;;  %s273_s12 = scalar_lea.vmem %s775_s4, %s622_s9 }
  0x12   : > { %651 = vmatprep.subr.bf16.mxu0 %v702_v0  ;;  %v692_v7 = vld [vmem:[%s261_s23 + $0x30] sm:$0xff]   ;;  %v693_v8 = vld [vmem:[%s261_s23 + $0x38] sm:$0xff]   ;;  %v279_v9 = vld [vmem:[%s256_s27] sm:$0xf]  ;;  %s277_s15 = scalar_lea.vmem %s776_s5, %s622_s9  ;;  %s269_s20 = scalar_lea.vmem %s774_s3, %s622_s9 }
  0x13   : > { %v384_v10 = vld [vmem:[%s265_s6] sm:$0x3] }
  0x14   : > { %v385_v11 = vunpack.c.l.bf16 %v384_v10 }
  0x15   : > { %652 = vmatpush3.bf16.msra.mxu0 %v687_v2 }
  0x16   : > { %653 = vmatprep.subr.bf16.mxu0 %v702_v0  ;;  %670 = vmatpush3.msk.msra.mxu1 %vm390_vm1, %v385_v11 }
  0x19   : > { %654 = vmatpush3.bf16.msra.mxu0 %v688_v3 }
  0x1a   : > { %655 = vmatprep.subr.bf16.mxu0 %v702_v0 }
  0x1d   : > { %656 = vmatpush3.bf16.msra.mxu0 %v689_v4 }
  0x1e   : > { %657 = vmatprep.subr.bf16.mxu0 %v702_v0 }
  0x21   : > { %658 = vmatpush3.bf16.msra.mxu0 %v690_v5 }
  0x22   : > { %659 = vmatprep.subr.bf16.mxu0 %v702_v0 }
  0x25   : > { %660 = vmatpush3.bf16.msra.mxu0 %v691_v6 }
  0x26   : > { %661 = vmatprep.subr.bf16.mxu0 %v702_v0 }
  0x29   : > { %662 = vmatpush3.bf16.msra.mxu0 %v692_v7 }
  0x2a   : > { %663 = vmatprep.subr.bf16.mxu0 %v702_v0 }
  0x2d   : > { %664 = vmatpush3.bf16.msra.mxu0 %v693_v8 }
  0x30   : > { %666 = vmatmul.mubr.bf16.vlgmr.msra.gmra.mrb[0].mxu0 %v279_v9 }
 0x103   : > { %v378_v12 = vpop.f32.mrb[0].mxu0 }
 0x104   : > { %465 = vrot.lane.b32.xlu0 %v378_v12, %s704_s7  ;;  %v667_v13 = vpop.f32.mrb[1].mxu0  ;;  %672 = vmatmul.mubr.msk.f32.vlgmr.msra.gmra.mrb[0].mxu1 %vm386_vm2, %v378_v12 }
 0x105   : > { %v381_v14 = vpop.f32.mrb[2].mxu0 }
 0x106   : > { %v668_v15 = vpop.f32.mrb[3].mxu0 }
 0x108   : > { %470 = vrot.lane.b32.xlu0 %v378_v12, %s705_s8 }
 0x176   : > { %v466_v16 = vpop.permute.xlu0 %465 }
 0x177   : > { %469 = vst.msk [vmem:[%s273_s12] sm:$0xff] %vm468_vm3, %v466_v16 }
 0x17a   : > { %v471_v17 = vpop.permute.xlu0 %470 }
 0x17b   : > { %473 = vst.msk [vmem:[%s277_s15] sm:$0xff] %vm468_vm3, %v471_v17 }
 0x1d7   : > { %v460_v18 = vpop.f32.mrb[0].mxu1 }
 0x1d8   : > { %464 = vst [vmem:[%s269_s20] sm:$0xff] %v460_v18  ;;  %v673_v19 = vpop.f32.mrb[1].mxu1 }
 0x1d9 PF: > { %s16_s18 = sadd.s32 1, %s700_s18  }
 0x1da   : > { %p13_p4 = scmp.ge.s32.totalorder %s16_s18, 6  }
 0x1dc   :  { %15 = sbr.rel (!%p13_p4) target bundleno = 1 (0x1), region = 92 }

// kernel: vmrnn_forward.96
= control target key start
LH: loop header
LB: loop body
LE: loop exit
PB: predicated region body
PF: predicated region fallthrough
CT: control target
= control target key end

     0   :  { %s1115_s24 = smov 0   ;;  %s1117_s25 = smov 0   ;;  %s1222_s0 = inlined_call_operand.vmem [shape: f32[2,4,4,128], index: 0, kind: input, shape index: {}]   ;;  %s1223_s1 = inlined_call_operand.vmem [shape: f32[2,4,4,128], index: 1, kind: input, shape index: {}]   ;;  %s1224_s2 = inlined_call_operand.vmem [shape: f32[2,4,4,16], index: 2, kind: input, shape index: {}]   ;;  %s1225_s3 = inlined_call_operand.vmem [shape: f32[2,4,4,16], index: 3, kind: input, shape index: {}]   ;;  %s1226_s4 = inlined_call_operand.vmem [shape: f32[4,16,128], index: 4, kind: input, shape index: {}]   ;;  %s1227_s5 = inlined_call_operand.vmem [shape: f32[4,1,128], index: 5, kind: input, shape index: {}]   ;;  %s1228_s6 = inlined_call_operand.vmem [shape: f32[4,1,128], index: 6, kind: input, shape index: {}]   ;;  %s1229_s7 = inlined_call_operand.vmem [shape: f32[2,4,4,128], index: 7, kind: output, shape index: {}]  }
   0x1   :  { %s1119_s26 = smov 0   ;;  %s1121_s27 = smov 0  }
   0x2   :  { %s1123_s28 = smov 0  }
   0x3 LB: > { %s26_s29 = sadd.s32 1, %s1064_s26  ;;  %s29_s30 = sadd.s32 1, %s1068_s27  ;;  %s1072_s28 = sphi %s1123_s28, %s17_s28   ;;  %s1068_s27 = sphi %s1121_s27, %s1233_s27   ;;  %s1064_s26 = sphi %s1119_s26, %s1232_s26   ;;  %s1060_s25 = sphi %s1117_s25, %s1231_s25   ;;  %s1056_s24 = sphi %s1115_s24, %s1230_s24  }
   0x4   : > { %p27_p0 = scmp.ge.s32.totalorder %s26_s29, 4  ;;  %p955_p1 = scmp.ge.s32.totalorder %s1072_s28, 1 }
   0x5   : > { %p327_p2 = scmp.lt.s32.totalorder %s1072_s28, 9 }
   0x6   : > { %s1235_s29 = smov (%p27_p0, %s26_s29), 0  ;;  %s1237_s30 = smov (!%p27_p0, %s29_s30), %s1068_s27 }
   0x7   : > { %p328_p3 = pnand %p955_p1, %p327_p2  ;;  %p31_p4 = scmp.ge.s32.totalorder %s1237_s30, 2 }
   0x8   : > { %p400_p5 = scmp.lt.s32.totalorder (!%p328_p3), %s1060_s25, 1  ;;  %p402_p6 = scmp.lt.s32.totalorder (!%p328_p3), %s1056_s24, 3  ;;  %v488_v0 = vlaneseq (!%p328_p3)  ;;  %v1074_v28 = vmov (!%p328_p3), 1966171168   ;;  %vm771_vm2 = vcmask (!%p328_p3), 1041409   ;;  %vm774_vm3 = vcmask (!%p328_p3), 1042434  }
   0x9   : > { %s1239_s30 = smov (%p31_p4, %s1237_s30), 0  ;;  %331 = sbr.rel (%p328_p3) target bundleno = 190 (0xbe), region = 48 }
   0xa   : > { %v1145_v1 = vshrl.u32 (!%p328_p3), %v488_v0, 7  ;;  %v486_v29 = vunpack.c.l.s4 (!%p328_p3), %v1074_v28  ;;  %vm777_vm4 = vcmask (!%p328_p3), 1043459  }
   0xc   : > { %v1151_v2 = vsub.s32 (!%p328_p3), 0, %v1145_v1  ;;  %v566_v3 = vsub.s32 (!%p328_p3), 1, %v1145_v1  ;;  %v577_v11 = vsub.s32 (!%p328_p3), 2, %v1145_v1  ;;  %v588_v16 = vsub.s32 (!%p328_p3), 3, %v1145_v1 }
   0xd   : > { %v487_v32 = vunpack.c.0.s8 (!%p328_p3), %v486_v29 }
   0xf   : > { %v490_v37 = vsub.s32 (!%p328_p3), %v487_v32, %v1145_v1 }
  0x10   : > { %s1241_s25 = smov (!%p400_p5, %s1060_s25), 1  ;;  %s1243_s24 = smov (!%p402_p6, %s1056_s24), 3 }
  0x11   : > { %s956_s8 = sshll.u32 %s1241_s25, 2  ;;  %s439_s12 = scalar_lea.vmem %s1227_s5, %s1243_s24 }
  0x12   : > { %s405_s9 = sadd.s32 %s956_s8, %s1243_s24  ;;  %s442_s16 = scalar_lea.vmem %s1228_s6, %s1243_s24  ;;  %v969_v4 = vld [vmem:[%s439_s12] ss:$0 sm:$0xff] }
  0x13   : > { %s1158_s13 = sshll.u32 %s405_s9, 2  ;;  %v968_v7 = vld [vmem:[%s442_s16] ss:$0 sm:$0xff]  ;;  %s972_s12 = sshll.u32 %s1243_s24, 4 }
  0x14   : > { %s423_s19 = scalar_lea.vmem %s1224_s2, %s1158_s13  ;;  %s415_s22 = scalar_lea.vmem %s1223_s1, %s1158_s13 }
  0x15   : > { %v482_v5 = vld [vmem:[%s423_s19] sm:$0xf]  ;;  %s407_s8 = scalar_lea.vmem %s1222_s0, %s1158_s13  ;;  %s431_s11 = scalar_lea.vmem %s1225_s3, %s1158_s13 }
  0x16   : > { %v456_v6 = vld [vmem:[%s415_s22] sm:$0xf]  ;;  %v567_v8 = vrot.slane %v482_v5, %v566_v3  ;;  %v556_v9 = vrot.slane %v482_v5, %v1151_v2  ;;  %v578_v15 = vrot.slane %v482_v5, %v577_v11  ;;  %v589_v19 = vrot.slane %v482_v5, %v588_v16  ;;  %s436_s16 = scalar_lea.vmem %s1226_s4, %s972_s12  ;;  %s450_s18 = scalar_lea.vmem %s1229_s7, %s1158_s13 }
  0x17   : > { %v455_v10 = vld [vmem:[%s407_s8] sm:$0xf]  ;;  %v463_v12 = vadd.f32 %v968_v7, %v456_v6  ;;  %v452_v51 = vld [vmem:[%s436_s16 + $0x8] sm:$0xff] }
  0x18   : > { %569 = vbcast.lane.b32.xlu1 %v567_v8, 256  ;;  %558 = vbcast.lane.b32.xlu0 %v556_v9, 256  ;;  %v1178_v13 = vmul.f32 %v969_v4, %v455_v10  ;;  %v483_v20 = vld [vmem:[%s431_s11] sm:$0xf] }
  0x19   : > { %v467_v14 = vand.u32 2147483647, %v463_v12  ;;  %v681_v21 = vrot.slane %v483_v20, %v566_v3  ;;  %v692_v22 = vrot.slane %v483_v20, %v577_v11  ;;  %v670_v25 = vrot.slane %v483_v20, %v1151_v2  ;;  %v451_v48 = vld [vmem:[%s436_s16] sm:$0xff] }
  0x1a   : > { %v703_v27 = vrot.slane %v483_v20, %v588_v16  ;;  %v464_v35 = vmax.f32 %v463_v12, 0.0  ;;  %vm465_vm1 = vcmp.ne.f32.partialorder %v463_v12, %v463_v12 }
  0x1b   : > { %v468_v17 = vsub.f32 0.0, %v467_v14 }
  0x1c   : > { %573 = vbcast.lane.b32.xlu1 %v567_v8, 264  ;;  %562 = vbcast.lane.b32.xlu0 %v556_v9, 264 }
  0x1d   : > { %v469_v18 = vmul.f32 1.442695, %v468_v17 }
  0x1f   : > { %1014 = vpow2.f32 %v469_v18 }
  0x20   : > { %584 = vbcast.lane.b32.xlu1 %v578_v15, 264  ;;  %580 = vbcast.lane.b32.xlu0 %v578_v15, 256 }
  0x24   : > { %595 = vbcast.lane.b32.xlu1 %v589_v19, 264  ;;  %591 = vbcast.lane.b32.xlu0 %v589_v19, 256 }
  0x28   : > { %687 = vbcast.lane.b32.xlu1 %v681_v21, 264  ;;  %683 = vbcast.lane.b32.xlu0 %v681_v21, 256 }
  0x29   : > { %v1015_v23 = vpop.eup %1014 }
  0x2a   : > { %v471_v24 = vadd.f32 1.0, %v1015_v23  ;;  %v474_v26 = vmul.f32 -0.5, %v1015_v23  ;;  %v477_v31 = vand.u32 2147483647, %v1015_v23 }
  0x2c   : > { %698 = vbcast.lane.b32.xlu1 %v692_v22, 264  ;;  %694 = vbcast.lane.b32.xlu0 %v692_v22, 256  ;;  %1016 = vlog2.f32 %v471_v24  ;;  %v475_v30 = vadd.f32 1.0, %v474_v26  ;;  %vm478_vm0 = vcmp.lt.f32.partialorder %v477_v31, 0.0004427343 }
  0x2e   : > { %v476_v33 = vmul.f32 %v1015_v23, %v475_v30 }
  0x30   : > { %676 = vbcast.lane.b32.xlu1 %v670_v25, 264  ;;  %672 = vbcast.lane.b32.xlu0 %v670_v25, 256 }
  0x34   : > { %709 = vbcast.lane.b32.xlu1 %v703_v27, 264  ;;  %705 = vbcast.lane.b32.xlu0 %v703_v27, 256 }
  0x36   : > { %v1017_v34 = vpop.eup %1016 }
  0x37   : > { %v473_v36 = vmul.f32 0.6931472, %v1017_v34 }
  0x39   : > { %v479_v38 = vsel %vm478_vm0, %v476_v33, %v473_v36 }
  0x3a   : > { %v480_v39 = vadd.f32 %v479_v38, %v464_v35 }
  0x3c   : > { %v481_v40 = vsel %vm465_vm1, %v463_v12, %v480_v39 }
  0x3d   : > { %v491_v41 = vrot.slane %v481_v40, %v490_v37  ;;  %v597_v42 = vmul.f32 %v481_v40, %v455_v10 }
  0x3f   : > { %v492_v43 = vcombine.high %v491_v41, %v491_v41  ;;  %v605_v44 = vrot.slane %v597_v42, %v490_v37  ;;  %v499_v45 = vrot.slane %v491_v41, %v490_v37 }
  0x41   : > { %v506_v46 = vrot.slane %v492_v43, %v490_v37  ;;  %v606_v47 = vcombine.high %v605_v44, %v605_v44  ;;  %v507_v49 = vcombine.high %v499_v45, %v499_v45  ;;  %v512_v50 = vrot.slane %v499_v45, %v1151_v2 }
  0x42   : > { %v613_v52 = vrot.slane %v605_v44, %v490_v37 }
  0x43   : > { %v508_v53 = vcombine.high %v506_v46, %v506_v46  ;;  %v620_v54 = vrot.slane %v606_v47, %v490_v37  ;;  %v516_v55 = vrot.slane %v506_v46, %v1151_v2  ;;  %v520_v56 = vrot.slane %v507_v49, %v1151_v2 }
  0x44   : > { %v529_v57 = vmul.f32 %v512_v50, %v451_v48  ;;  %v626_v58 = vrot.slane %v613_v52, %v1151_v2  ;;  %v530_v59 = vmul.f32 %v512_v50, %v452_v51  ;;  %v621_v60 = vcombine.high %v613_v52, %v613_v52 }
  0x45   : > { %v630_v61 = vrot.slane %v620_v54, %v1151_v2  ;;  %v524_v62 = vrot.slane %v508_v53, %v1151_v2  ;;  %v531_v63 = vmul.f32 %v516_v55, %v451_v48  ;;  %v533_v0 = vmul.f32 %v520_v56, %v451_v48 }
  0x46   : > { %v532_v1 = vmul.f32 %v516_v55, %v452_v51  ;;  %v534_v3 = vmul.f32 %v520_v56, %v452_v51  ;;  %v634_v6 = vrot.slane %v621_v60, %v1151_v2  ;;  %v622_v7 = vcombine.high %v620_v54, %v620_v54 }
  0x47   : > { %v535_v4 = vmul.f32 %v524_v62, %v451_v48  ;;  %v536_v5 = vmul.f32 %v524_v62, %v452_v51  ;;  %v537_v9 = vmul.f32 1.442695, %v529_v57  ;;  %v539_v10 = vmul.f32 1.442695, %v530_v59 }
  0x48   : > { %v638_v8 = vrot.slane %v622_v7, %v1151_v2  ;;  %v541_v11 = vmul.f32 1.442695, %v531_v63  ;;  %v543_v12 = vmul.f32 1.442695, %v532_v1  ;;  %v545_v14 = vmul.f32 1.442695, %v533_v0 }
  0x49   : > { %1018 = vpow2.f32 %v537_v9  ;;  %v547_v15 = vmul.f32 1.442695, %v534_v3  ;;  %v549_v17 = vmul.f32 1.442695, %v535_v4  ;;  %v551_v22 = vmul.f32 1.442695, %v536_v5 }
  0x4a   : > { %1020 = vpow2.f32 %v539_v10 }
  0x4b   : > { %1022 = vpow2.f32 %v541_v11 }
  0x4c   : > { %1024 = vpow2.f32 %v543_v12 }
  0x4d   : > { %1026 = vpow2.f32 %v545_v14 }
  0x4e   : > { %1028 = vpow2.f32 %v547_v15 }
  0x4f   : > { %1030 = vpow2.f32 %v549_v17 }
  0x50   : > { %1032 = vpow2.f32 %v551_v22 }
  0x53   : > { %v1019_v16 = vpop.eup %1018 }
  0x54   : > { %v651_v18 = vmul.f32 0.0, %v1019_v16  ;;  %v1021_v19 = vpop.eup %1020  ;;  %v755_v16 = vrot.slane %v1178_v13, 1 }
  0x55   : > { %v1023_v23 = vpop.eup %1022  ;;  %v652_v25 = vmul.f32 0.0, %v1021_v19 }
  0x56   : > { %v1025_v28 = vpop.eup %1024 }
  0x57   : > { %v1027_v32 = vpop.eup %1026 }
  0x58   : > { %v1029_v37 = vpop.eup %1028 }
  0x59   : > { %v1031_v42 = vpop.eup %1030 }
  0x5a   : > { %v1033_v51 = vpop.eup %1032 }
  0x8a   : > { %v570_v20 = vpop.permute.xlu1 %569  ;;  %v559_v21 = vpop.permute.xlu0 %558 }
  0x8b   : > { %v643_v2 = vmul.f32 %v626_v58, %v559_v21  ;;  %v645_v29 = vmul.f32 %v630_v61, %v570_v20 }
  0x8d   : > { %v653_v24 = vadd.f32 %v651_v18, %v643_v2 }
  0x8e   : > { %v574_v26 = vpop.permute.xlu1 %573  ;;  %v563_v27 = vpop.permute.xlu0 %562 }
  0x8f   : > { %v644_v30 = vmul.f32 %v626_v58, %v563_v27  ;;  %v655_v31 = vmul.f32 %v1023_v23, %v653_v24  ;;  %v646_v38 = vmul.f32 %v630_v61, %v574_v26 }
  0x91   : > { %v654_v33 = vadd.f32 %v652_v25, %v644_v30  ;;  %v657_v34 = vadd.f32 %v655_v31, %v645_v29 }
  0x92   : > { %v585_v35 = vpop.permute.xlu1 %584  ;;  %v581_v36 = vpop.permute.xlu0 %580 }
  0x93   : > { %v647_v39 = vmul.f32 %v634_v6, %v581_v36  ;;  %v656_v40 = vmul.f32 %v1025_v28, %v654_v33  ;;  %v659_v41 = vmul.f32 %v1027_v32, %v657_v34  ;;  %v648_v47 = vmul.f32 %v634_v6, %v585_v35 }
  0x95   : > { %v658_v43 = vadd.f32 %v656_v40, %v646_v38  ;;  %v661_v44 = vadd.f32 %v659_v41, %v647_v39 }
  0x96   : > { %v596_v45 = vpop.permute.xlu1 %595  ;;  %v592_v46 = vpop.permute.xlu0 %591 }
  0x97   : > { %v649_v48 = vmul.f32 %v638_v8, %v592_v46  ;;  %v660_v49 = vmul.f32 %v1029_v37, %v658_v43  ;;  %v663_v50 = vmul.f32 %v1031_v42, %v661_v44  ;;  %v650_v56 = vmul.f32 %v638_v8, %v596_v45 }
  0x99   : > { %v662_v52 = vadd.f32 %v660_v49, %v648_v47  ;;  %v665_v53 = vadd.f32 %v663_v50, %v649_v48 }
  0x9a   : > { %v688_v54 = vpop.permute.xlu1 %687  ;;  %v684_v55 = vpop.permute.xlu0 %683 }
  0x9b   : > { %v714_v57 = vmul.f32 %v688_v54, %v658_v43  ;;  %v713_v58 = vmul.f32 %v684_v55, %v657_v34  ;;  %v664_v59 = vmul.f32 %v1033_v51, %v662_v52 }
  0x9d   : > { %v726_v60 = vadd.f32 %v714_v57, %v713_v58  ;;  %v666_v61 = vadd.f32 %v664_v59, %v650_v56 }
  0x9e   : > { %v699_v62 = vpop.permute.xlu1 %698  ;;  %v695_v63 = vpop.permute.xlu0 %694 }
  0x9f   : > { %v727_v0 = vrot.slane %v726_v60, 4  ;;  %v716_v1 = vmul.f32 %v699_v62, %v662_v52  ;;  %v715_v3 = vmul.f32 %v695_v63, %v661_v44  ;;  %v757_v44 = vrot.slane %v1178_v13, 3 }
  0xa1   : > { %v728_v4 = vadd.f32 %v727_v0, %v726_v60  ;;  %v733_v5 = vadd.f32 %v716_v1, %v715_v3 }
  0xa2   : > { %v677_v6 = vpop.permute.xlu1 %676  ;;  %v673_v7 = vpop.permute.xlu0 %672 }
  0xa3   : > { %v729_v9 = vrot.slane %v728_v4, 2  ;;  %v734_v10 = vrot.slane %v733_v5, 4  ;;  %v712_v11 = vmul.f32 %v677_v6, %v654_v33  ;;  %v711_v12 = vmul.f32 %v673_v7, %v653_v24 }
  0xa4   : > { %v756_v24 = vrot.slane %v1178_v13, 2 }
  0xa5   : > { %v730_v14 = vadd.f32 %v729_v9, %v728_v4  ;;  %v735_v8 = vadd.f32 %v734_v10, %v733_v5  ;;  %v719_v15 = vadd.f32 %v712_v11, %v711_v12 }
  0xa6   : > { %v710_v17 = vpop.permute.xlu1 %709  ;;  %v706_v18 = vpop.permute.xlu0 %705 }
  0xa7   : > { %v731_v19 = vrot.slane %v730_v14, 1  ;;  %v736_v20 = vrot.slane %v735_v8, 2  ;;  %v720_v21 = vrot.slane %v719_v15, 4  ;;  %v718_v22 = vmul.f32 %v710_v17, %v666_v61 }
  0xa8   : > { %v717_v2 = vmul.f32 %v706_v18, %v665_v53 }
  0xa9   : > { %v732_v23 = vadd.f32 %v731_v19, %v730_v14  ;;  %v737_v25 = vadd.f32 %v736_v20, %v735_v8  ;;  %v721_v26 = vadd.f32 %v720_v21, %v719_v15 }
  0xaa   : > { %v740_v27 = vadd.f32 %v718_v22, %v717_v2 }
  0xab   : > { %v763_v28 = vadd.f32 %v755_v16, %v732_v23  ;;  %v738_v29 = vrot.slane %v737_v25, 1  ;;  %v722_v30 = vrot.slane %v721_v26, 2 }
  0xac   : > { %v741_v31 = vrot.slane %v740_v27, 4 }
  0xad   : > { %v739_v32 = vadd.f32 %v738_v29, %v737_v25  ;;  %v723_v33 = vadd.f32 %v722_v30, %v721_v26  ;;  %v770_v40 = vrot.slane %v763_v28, 7 }
  0xae   : > { %v742_v34 = vadd.f32 %v741_v31, %v740_v27 }
  0xaf   : > { %v764_v35 = vadd.f32 %v756_v24, %v739_v32  ;;  %v724_v36 = vrot.slane %v723_v33, 1 }
  0xb0   : > { %v743_v37 = vrot.slane %v742_v34, 2 }
  0xb1   : > { %v725_v38 = vadd.f32 %v724_v36, %v723_v33  ;;  %v773_v42 = vrot.slane %v764_v35, 6 }
  0xb2   : > { %v744_v39 = vadd.f32 %v743_v37, %v742_v34 }
  0xb3   : > { %v762_v41 = vadd.f32 %v1178_v13, %v725_v38 }
  0xb4   : > { %v745_v43 = vrot.slane %v744_v39, 1 }
  0xb5   : > { %v772_v45 = vsel %vm771_vm2, %v770_v40, %v762_v41 }
  0xb6   : > { %v775_v46 = vsel %vm774_vm3, %v773_v42, %v772_v45  ;;  %v746_v47 = vadd.f32 %v745_v43, %v744_v39 }
  0xb8   : > { %v765_v48 = vadd.f32 %v757_v44, %v746_v47 }
  0xba   : > { %v776_v49 = vrot.slane %v765_v48, 5 }
  0xbc   : > { %v778_v50 = vsel %vm777_vm4, %v776_v49, %v775_v46 }
  0xbd   : > { %780 = vst [vmem:[%s450_s18] sm:$0xf] %v778_v50 }
  0xbe PF: > { %s17_s28 = sadd.s32 1, %s1072_s28   ;;  %s1230_s24 = smov %s1064_s26 }
  0xbf   : > { %p14_p7 = scmp.ge.s32.totalorder %s17_s28, 10   ;;  %s1231_s25 = smov %s1068_s27 }
  0xc0   : > { %s1232_s26 = smov %s1235_s29  ;;  %s1233_s27 = smov %s1239_s30 }
  0xc1   :  { %16 = sbr.rel (!%p14_p7) target bundleno = 3 (0x3), region = 96 }

// kernel: vmrnn_forward.97
= control target key start
LH: loop header
LB: loop body
LE: loop exit
PB: predicated region body
PF: predicated region fallthrough
CT: control target
= control target key end

     0   :  { %v225_v1 = vmov 0.0   ;;  %vm226_vm0 = vmmov 0   ;;  %s296_s0 = inlined_call_operand.vmem [shape: f32[8,128], index: 0, kind: input, shape index: {}]   ;;  %s297_s4 = inlined_call_operand.vmem [shape: bf16[128,128], index: 4, kind: input, shape index: {}]   ;;  %s298_s1 = inlined_call_operand.vmem [shape: f32[8,128], index: 1, kind: input, shape index: {}]   ;;  %s299_s2 = inlined_call_operand.vmem [shape: f32[1,128], index: 2, kind: input, shape index: {}]   ;;  %s300_s3 = inlined_call_operand.vmem [shape: f32[1,128], index: 3, kind: input, shape index: {}]   ;;  %s301_s5 = inlined_call_operand.vmem [shape: f32[8,128], index: 5, kind: output, shape index: {}]  }
   0x1   :  { %v21_v0 = vld [vmem:[%s296_s0] sm:$0xff]  ;;  %189 = vmatprep.subr.bf16.mxu0 %v225_v1  ;;  %v212_v3 = vld [vmem:[%s297_s4 + $0x8] sm:$0xff]   ;;  %v213_v8 = vld [vmem:[%s297_s4 + $0x10] sm:$0xff]   ;;  %205 = vmatprep.mubr.msk.bf16.mxu0 %vm226_vm0, %v225_v1 }
   0x2   :  { %22 = vadd.xlane.f32.xlu0 %v21_v0  ;;  %v211_v2 = vld [vmem:[%s297_s4] sm:$0xff]   ;;  %v214_v9 = vld [vmem:[%s297_s4 + $0x18] sm:$0xff]   ;;  %v216_v11 = vld [vmem:[%s297_s4 + $0x28] sm:$0xff]  }
   0x3   :  { %190 = vmatpush3.bf16.msra.mxu0 %v211_v2  ;;  %v215_v10 = vld [vmem:[%s297_s4 + $0x20] sm:$0xff]   ;;  %v217_v12 = vld [vmem:[%s297_s4 + $0x30] sm:$0xff]   ;;  %v218_v13 = vld [vmem:[%s297_s4 + $0x38] sm:$0xff]  }
   0x4   :  { %191 = vmatprep.subr.bf16.mxu0 %v225_v1  ;;  %v50_v14 = vld [vmem:[%s298_s1] sm:$0xff] }
   0x5   :  { %v171_v15 = vmul.f32 -1.442695, %v50_v14  ;;  %v169_v23 = vld [vmem:[%s299_s2] ss:$0 sm:$0xff] }
   0x6   :  { %v170_v25 = vld [vmem:[%s300_s3] ss:$0 sm:$0xff] }
   0x7   :  { %192 = vmatpush3.bf16.msra.mxu0 %v212_v3  ;;  %219 = vpow2.f32 %v171_v15 }
   0x8   :  { %193 = vmatprep.subr.bf16.mxu0 %v225_v1 }
   0xb   :  { %194 = vmatpush3.bf16.msra.mxu0 %v213_v8 }
   0xc   :  { %195 = vmatprep.subr.bf16.mxu0 %v225_v1 }
   0xf   :  { %196 = vmatpush3.bf16.msra.mxu0 %v214_v9 }
  0x10   :  { %197 = vmatprep.subr.bf16.mxu0 %v225_v1 }
  0x11   :  { %v220_v16 = vpop.eup %219 }
  0x12   :  { %v54_v18 = vadd.f32 1.0, %v220_v16 }
  0x13   :  { %198 = vmatpush3.bf16.msra.mxu0 %v215_v10 }
  0x14   :  { %199 = vmatprep.subr.bf16.mxu0 %v225_v1  ;;  %221 = vrcp.f32 %v54_v18 }
  0x17   :  { %200 = vmatpush3.bf16.msra.mxu0 %v216_v11 }
  0x18   :  { %201 = vmatprep.subr.bf16.mxu0 %v225_v1 }
  0x1b   :  { %202 = vmatpush3.bf16.msra.mxu0 %v217_v12 }
  0x1c   :  { %203 = vmatprep.subr.bf16.mxu0 %v225_v1 }
  0x1e   :  { %v222_v21 = vpop.eup %221 }
  0x1f   :  { %204 = vmatpush3.bf16.msra.mxu0 %v218_v13  ;;  %v57_v27 = vmul.f32 %v222_v21, %v50_v14 }
  0x8f   :  { %v23_v4 = vpop.xlane.xlu0 %22 }
  0x90   :  { %v25_v5 = vmul.f32 0.0078125, %v23_v4 }
  0x92   :  { %v26_v6 = vsub.f32 %v21_v0, %v25_v5 }
  0x94   :  { %v27_v7 = vmul.f32 %v26_v6, %v26_v6 }
  0x96   :  { %28 = vadd.xlane.f32.xlu0 %v27_v7 }
 0x123   :  { %v29_v17 = vpop.xlane.xlu0 %28 }
 0x124   :  { %v30_v19 = vmul.f32 0.0078125, %v29_v17 }
 0x126   :  { %v31_v20 = vadd.f32 1e-05, %v30_v19 }
 0x128   :  { %223 = vrsqrt.f32 %v31_v20 }
 0x132   :  { %v224_v22 = vpop.eup %223 }
 0x133   :  { %v33_v24 = vmul.f32 %v224_v22, %v26_v6 }
 0x135   :  { %v41_v26 = vmul.f32 %v169_v23, %v33_v24 }
 0x137   :  { %v49_v28 = vadd.f32 %v170_v25, %v41_v26 }
 0x139   :  { %v58_v29 = vmul.f32 %v57_v27, %v49_v28 }
 0x13b   :  { %v59_v30 = vpack.c.bf16 %v58_v29, %v58_v29 }
 0x13d   :  { %206 = vmatmul.mubr.bf16.vlgmr.msra.gmra.mrb[0].mxu0 %v59_v30 }
 0x210   :  { %v158_v31 = vpop.f32.mrb[0].mxu0 }
 0x211   :  { %164 = vst [vmem:[%s301_s5] sm:$0xff] %v158_v31  ;;  %v207_v32 = vpop.f32.mrb[1].mxu0 }
 0x212   :  { %v161_v33 = vpop.f32.mrb[2].mxu0 }
 0x213   :  { %v208_v34 = vpop.f32.mrb[3].mxu0 }

// kernel: vmrnn_forward.104
= control target key start
LH: loop header
LB: loop body
LE: loop exit
PB: predicated region body
PF: predicated region fallthrough
CT: control target
= control target key end

     0   :  { %s126_s0 = inlined_call_operand.vmem [shape: f32[8,64], index: 0, kind: input, shape index: {}]   ;;  %s127_s1 = inlined_call_operand.vmem [shape: f32[8,64], index: 1, kind: input, shape index: {}]   ;;  %s128_s2 = inlined_call_operand.vmem [shape: f32[8,64], index: 2, kind: output, shape index: {0}]   ;;  %s129_s3 = inlined_call_operand.hbm [shape: f32[8,64], index: 3, kind: output, shape index: {1}]  }
   0x1   :  { %v14_v0 = vld [vmem:[%s126_s0] sm:$0xff] }
   0x2   :  { %9 = vsyncpa [#allocation3], 0  ;;  %v48_v1 = vmul.f32 -1.442695, %v14_v0  ;;  %v15_v5 = vld [vmem:[%s127_s1] sm:$0xff]  ;;  %s82_s16 = smov [#allocation2]  }
   0x3   :  { %s38_s17 = sshll.u32 %s82_s16, 4  ;;  %vm27_vm0 = vcmask 523264   ;;  %s39_s17 = int_to_ptr.vmem [resolvable:$true] %s38_s17 }
   0x4   :  { %50 = vpow2.f32 %v48_v1  ;;  %s58_s0 = scalar_lea.vmem %s39_s17, 128  ;;  %p63_p1 = scmp.lt.s32.totalorder %s39_s17, %s39_s17 }
   0x5   :  { %52 = vtanh.f32 %v14_v0  ;;  %p59_p0 = scmp.ne.s32.totalorder %s39_s17, %s58_s0  ;;  %p64_p2 = scmp.lt.s32.totalorder %s58_s0, %s58_s0 }
   0x7   :  { %p65_p3 = por %p64_p2, %p63_p1 }
   0x9   :  { %p66_p4 = pnand %p65_p3, %p59_p0 }
   0xe   :  { %v51_v2 = vpop.eup %50 }
   0xf   :  { %v19_v3 = vadd.f32 1.0, %v51_v2  ;;  %v53_v4 = vpop.eup %52 }
  0x10   :  { %v23_v6 = vadd.f32 %v53_v4, %v15_v5 }
  0x11   :  { %54 = vrcp.f32 %v19_v3 }
  0x1b   :  { %v55_v7 = vpop.eup %54 }
  0x1c   :  { %v24_v8 = vmul.f32 %v55_v7, %v23_v6 }
  0x1e   :  { %56 = vtanh.f32 %v24_v8  ;;  %29 = vst.msk [vmem:[#allocation2] sm:$0xff] %vm27_vm0, %v24_v8 }
  0x1f   :  { %69 = shalt.err (!%p66_p4)
}
  0x20   :  { %s70_s1 = scalar_lea.hbm %s129_s3, 128 }
  0x21   :  { %p71_p5 = scmp.ne.s32.totalorder %s129_s3, %s70_s1  ;;  %p74_p6 = scmp.lt.u32.totalorder %s70_s1, %s129_s3 }
  0x23   :  { %p76_p7 = pnand %p74_p6, %p71_p5 }
  0x25   :  { %79 = shalt.err (!%p76_p7)
}
  0x26   :  { %41 = dma.vmem_to_hbm [thread:$0]  %s39_s17, 128, %s129_s3, [#allocation3]  }
  0x28   :  { %v57_v9 = vpop.eup %56 }
  0x29   :  { %v26_v10 = vmul.f32 %v57_v9, %v55_v7 }
  0x2b   :  { %28 = vst.msk [vmem:[%s128_s2] sm:$0xff] %vm27_vm0, %v26_v10 }
  0x2c   :  { %80 = dma.done.wait [#allocation3], 128  }
  0x2d   :  { %81 = vsyncadd [#allocation3], 4294967168 }
  0x2e   :  { %47 = vsyncpa [#allocation3], 1 }

// kernel: vmrnn_forward.105
= control target key start
LH: loop header
LB: loop body
LE: loop exit
PB: predicated region body
PF: predicated region fallthrough
CT: control target
= control target key end

     0   :  { %v35_v12 = vlaneseq  ;;  %s107_s0 = inlined_call_operand.vmem [shape: f32[8,256], index: 0, kind: input, shape index: {}]   ;;  %s108_s1 = inlined_call_operand.vmem [shape: f32[1,256], index: 1, kind: input, shape index: {}]   ;;  %s109_s2 = inlined_call_operand.vmem [shape: f32[1,256], index: 2, kind: input, shape index: {}]   ;;  %s110_s3 = inlined_call_operand.vmem [shape: f32[8,256], index: 3, kind: output, shape index: {}]  }
   0x1   :  { %v14_v0 = vld [vmem:[%s107_s0] sm:$0xff]  ;;  %v15_v1 = vld [vmem:[%s107_s0 + $0x8] sm:$0xff] }
   0x2   :  { %v16_v2 = vadd.f32 %v15_v1, %v14_v0  ;;  %v36_v14 = vshrl.u32 %v35_v12, 7  ;;  %v33_v17 = vld [vmem:[%s108_s1] sm:$0x3] }
   0x3   :  { %v47_v18 = vld [vmem:[%s109_s2] sm:$0x3] }
   0x4   :  { %17 = vadd.xlane.f32.xlu0 %v16_v2  ;;  %v37_v15 = vsub.s32 0, %v36_v14  ;;  %v41_v16 = vsub.s32 1, %v36_v14 }
   0x6   :  { %v38_v19 = vrot.slane %v33_v17, %v37_v15  ;;  %v42_v20 = vrot.slane %v33_v17, %v41_v16  ;;  %v52_v22 = vrot.slane %v47_v18, %v37_v15  ;;  %v56_v23 = vrot.slane %v47_v18, %v41_v16 }
  0x91   :  { %v18_v3 = vpop.xlane.xlu0 %17 }
  0x92   :  { %v20_v4 = vmul.f32 0.00390625, %v18_v3 }
  0x94   :  { %v21_v5 = vsub.f32 %v14_v0, %v20_v4  ;;  %v22_v6 = vsub.f32 %v15_v1, %v20_v4 }
  0x96   :  { %v23_v7 = vmul.f32 %v21_v5, %v21_v5  ;;  %v24_v8 = vmul.f32 %v22_v6, %v22_v6 }
  0x98   :  { %v25_v9 = vadd.f32 %v24_v8, %v23_v7 }
  0x9a   :  { %26 = vadd.xlane.f32.xlu0 %v25_v9 }
 0x127   :  { %v27_v10 = vpop.xlane.xlu0 %26 }
 0x128   :  { %v28_v11 = vmul.f32 0.00390625, %v27_v10 }
 0x12a   :  { %v29_v13 = vadd.f32 1e-05, %v28_v11 }
 0x12c   :  { %67 = vrsqrt.f32 %v29_v13 }
 0x136   :  { %v68_v21 = vpop.eup %67 }
 0x137   :  { %v31_v24 = vmul.f32 %v68_v21, %v21_v5  ;;  %v32_v25 = vmul.f32 %v68_v21, %v22_v6 }
 0x139   :  { %v45_v26 = vmul.f32 %v38_v19, %v31_v24  ;;  %v46_v27 = vmul.f32 %v42_v20, %v32_v25 }
 0x13b   :  { %v59_v28 = vadd.f32 %v52_v22, %v45_v26  ;;  %v60_v29 = vadd.f32 %v56_v23, %v46_v27 }
 0x13d   :  { %61 = vst [vmem:[%s110_s3] sm:$0xff] %v59_v28  ;;  %62 = vst [vmem:[%s110_s3 + $0x8] sm:$0xff] %v60_v29 }

// kernel: vmrnn_forward.110
= control target key start
LH: loop header
LB: loop body
LE: loop exit
PB: predicated region body
PF: predicated region fallthrough
CT: control target
= control target key end

     0   :  { %s800_s12 = smov 0   ;;  %s802_s13 = smov 0   ;;  %s889_s0 = inlined_call_operand.vmem [shape: bf16[8,128], index: 0, kind: input, shape index: {}]   ;;  %s890_s1 = inlined_call_operand.vmem [shape: bf16[128,512], index: 1, kind: input, shape index: {}]   ;;  %s891_s2 = inlined_call_operand.vmem [shape: f32[1,512], index: 2, kind: input, shape index: {}]   ;;  %s892_s3 = inlined_call_operand.vmem [shape: f32[8,512], index: 3, kind: output, shape index: {}]  }
   0x1   :  { %s804_s14 = smov 0   ;;  %s806_s15 = smov 0  }
   0x2   :  { %s808_s16 = smov 0  }
   0x3 LB: > { %s28_s17 = sadd.s32 1, %s773_s15  ;;  %p76_p1 = scmp.ne.s32.totalorder %s765_s13, %s761_s12  ;;  %s777_s16 = sphi %s808_s16, %s13_s16   ;;  %s773_s15 = sphi %s806_s15, %s896_s15   ;;  %s769_s14 = sphi %s804_s14, %s895_s14   ;;  %s765_s13 = sphi %s802_s13, %s894_s13   ;;  %s761_s12 = sphi %s800_s12, %s893_s12  }
   0x4   : > { %p30_p0 = scmp.ge.s32.totalorder %s28_s17, 2  ;;  %p77_p2 = scmp.eq.s32.totalorder %s777_s16, 0 }
   0x5   : > { %s69_s19 = sadd.s32 1, %s765_s13  ;;  %p646_p5 = scmp.ge.s32.totalorder %s777_s16, 2 }
   0x6   : > { %s898_s17 = smov (%p30_p0, %s28_s17), 0  ;;  %p78_p3 = por %p77_p2, %p76_p1 }
   0x7   : > { %s65_s18 = ssub.s32 %s773_s15, %s898_s17  ;;  %166 = sbr.rel (%p646_p5) target bundleno = 26 (0x1a), region = 20 }
   0x8   : > { %p67_p4 = scmp.eq.s32.totalorder %s65_s18, 0 }
   0xa   : > { %s835_s20 = scalar_select %p67_p4, %s765_s13, %s69_s19  }
   0xe   : > { %169 = sbr.rel (!%p78_p3) target bundleno = 26 (0x1a), region = 24  ;;  %s171_s21 = sand.u32 (%p78_p3), 1, %s765_s13  }
   0xf   : > { %s673_s22 = sshll.u32 (%p78_p3), %s773_s15, 3  ;;  %s647_s23 = sshll.u32 (%p78_p3), %s171_s21, 7 }
  0x10   : > { %s843_s26 = scalar_lea.vmem (%p78_p3), %s890_s1, %s673_s22  ;;  %s173_s27 = scalar_lea.vmem (%p78_p3), [#allocation3], %s647_s23 }
  0x11   : > { %v237_v0 = vld [vmem:[%s843_s26] sm:$0xff] (%p78_p3)  ;;  %v239_v1 = vld [vmem:[%s843_s26 + $0x10] sm:$0xff] (%p78_p3) }
  0x12   : > { %v241_v2 = vld [vmem:[%s843_s26 + $0x20] sm:$0xff] (%p78_p3)  ;;  %238 = vst [vmem:[%s173_s27] sm:$0xff] (%p78_p3), %v237_v0  ;;  %240 = vst [vmem:[%s173_s27 + $0x8] sm:$0xff] (%p78_p3), %v239_v1  ;;  %v243_v3 = vld [vmem:[%s843_s26 + $0x30] sm:$0xff] (%p78_p3) }
  0x13   : > { %242 = vst [vmem:[%s173_s27 + $0x10] sm:$0xff] (%p78_p3), %v241_v2  ;;  %v245_v4 = vld [vmem:[%s843_s26 + $0x40] sm:$0xff] (%p78_p3)  ;;  %v247_v5 = vld [vmem:[%s843_s26 + $0x50] sm:$0xff] (%p78_p3)  ;;  %244 = vst [vmem:[%s173_s27 + $0x18] sm:$0xff] (%p78_p3), %v243_v3 }
  0x14   : > { %246 = vst [vmem:[%s173_s27 + $0x20] sm:$0xff] (%p78_p3), %v245_v4  ;;  %248 = vst [vmem:[%s173_s27 + $0x28] sm:$0xff] (%p78_p3), %v247_v5  ;;  %v249_v6 = vld [vmem:[%s843_s26 + $0x60] sm:$0xff] (%p78_p3)  ;;  %v251_v7 = vld [vmem:[%s843_s26 + $0x70] sm:$0xff] (%p78_p3) }
  0x15   : > { %v253_v8 = vld [vmem:[%s843_s26 + $0x80] sm:$0xff]  ;;  %250 = vst [vmem:[%s173_s27 + $0x30] sm:$0xff] %v249_v6  ;;  %252 = vst [vmem:[%s173_s27 + $0x38] sm:$0xff] %v251_v7  ;;  %v255_v9 = vld [vmem:[%s843_s26 + $0x90] sm:$0xff] }
  0x16   : > { %254 = vst [vmem:[%s173_s27 + $0x40] sm:$0xff] %v253_v8  ;;  %v257_v10 = vld [vmem:[%s843_s26 + $0xa0] sm:$0xff]  ;;  %v259_v11 = vld [vmem:[%s843_s26 + $0xb0] sm:$0xff]  ;;  %256 = vst [vmem:[%s173_s27 + $0x48] sm:$0xff] %v255_v9 }
  0x17   : > { %258 = vst [vmem:[%s173_s27 + $0x50] sm:$0xff] %v257_v10  ;;  %260 = vst [vmem:[%s173_s27 + $0x58] sm:$0xff] %v259_v11  ;;  %v261_v12 = vld [vmem:[%s843_s26 + $0xc0] sm:$0xff]  ;;  %v263_v13 = vld [vmem:[%s843_s26 + $0xd0] sm:$0xff] }
  0x18   : > { %v265_v14 = vld [vmem:[%s843_s26 + $0xe0] sm:$0xff]  ;;  %262 = vst [vmem:[%s173_s27 + $0x60] sm:$0xff] %v261_v12  ;;  %264 = vst [vmem:[%s173_s27 + $0x68] sm:$0xff] %v263_v13  ;;  %v267_v15 = vld [vmem:[%s843_s26 + $0xf0] sm:$0xff] }
  0x19   : > { %266 = vst [vmem:[%s173_s27 + $0x70] sm:$0xff] %v265_v14  ;;  %268 = vst [vmem:[%s173_s27 + $0x78] sm:$0xff] %v267_v15 }
  0x1a PF: > { %p650_p6 = scmp.ge.s32.totalorder %s777_s16, 1  ;;  %p281_p7 = scmp.lt.s32.totalorder %s777_s16, 3 }
  0x1c   : > { %p282_p8 = pnand %p650_p6, %p281_p7 }
  0x1d   : > { %s288_s28 = sand.u32 (!%p282_p8), 1, %s761_s12   ;;  %v779_v16 = vmov (!%p282_p8), 0   ;;  %v359_v33 = vld [vmem:[%s889_s0] sm:$0xf] (!%p282_p8)  ;;  %s652_s6 = sshll.u32 (!%p282_p8), %s769_s14, 1  ;;  %v508_v34 = vlaneseq (!%p282_p8) }
  0x1e   : > { %285 = sbr.rel (%p282_p8) target bundleno = 281 (0x119), region = 66  ;;  %s651_s29 = sshll.u32 (!%p282_p8), %s288_s28, 7  ;;  %488 = vmatprep.mubr.bf16.mxu0 (!%p282_p8), %v779_v16 }
  0x1f   : > { %s290_s30 = scalar_lea.vmem (!%p282_p8), [#allocation3], %s651_s29  ;;  %p336_p9 = scmp.lt.s32.totalorder (!%p282_p8), %s652_s6, 3  ;;  %v509_v35 = vshrl.u32 (!%p282_p8), %v508_v34, 7 }
  0x20   : > { %v715_v17 = vld [vmem:[%s290_s30 + $0x4] ss:$8 sps:$4 sm:$0xff] (!%p282_p8)   ;;  %v717_v18 = vld [vmem:[%s290_s30] ss:$8 sps:$4 sm:$0xff] (!%p282_p8)   ;;  %v718_v19 = vld [vmem:[%s290_s30 + $0x14] ss:$8 sps:$4 sm:$0xff] (!%p282_p8)  }
  0x21   : > { %456 = vmatprep.subr.bf16.mxu0 (!%p282_p8), %v715_v17  ;;  %v720_v20 = vld [vmem:[%s290_s30 + $0x10] ss:$8 sps:$4 sm:$0xff] (!%p282_p8)   ;;  %v721_v21 = vld [vmem:[%s290_s30 + $0x24] ss:$8 sps:$4 sm:$0xff] (!%p282_p8)   ;;  %v723_v22 = vld [vmem:[%s290_s30 + $0x20] ss:$8 sps:$4 sm:$0xff] (!%p282_p8)  }
  0x22   : > { %457 = vmatpush1.bf16.msra.mxu0 (!%p282_p8), %v717_v18  ;;  %v724_v23 = vld [vmem:[%s290_s30 + $0x34] ss:$8 sps:$4 sm:$0xff] (!%p282_p8)   ;;  %v726_v24 = vld [vmem:[%s290_s30 + $0x30] ss:$8 sps:$4 sm:$0xff] (!%p282_p8)   ;;  %v727_v25 = vld [vmem:[%s290_s30 + $0x44] ss:$8 sps:$4 sm:$0xff] (!%p282_p8)  }
  0x23   : > { %458 = vmatprep.subr.bf16.mxu0 (!%p282_p8), %v718_v19  ;;  %v729_v26 = vld [vmem:[%s290_s30 + $0x40] ss:$8 sps:$4 sm:$0xff] (!%p282_p8)   ;;  %v730_v27 = vld [vmem:[%s290_s30 + $0x54] ss:$8 sps:$4 sm:$0xff] (!%p282_p8)   ;;  %v732_v28 = vld [vmem:[%s290_s30 + $0x50] ss:$8 sps:$4 sm:$0xff] (!%p282_p8)  }
  0x24   : > { %v733_v29 = vld [vmem:[%s290_s30 + $0x64] ss:$8 sps:$4 sm:$0xff] (!%p282_p8)   ;;  %v735_v30 = vld [vmem:[%s290_s30 + $0x60] ss:$8 sps:$4 sm:$0xff] (!%p282_p8)   ;;  %v736_v31 = vld [vmem:[%s290_s30 + $0x74] ss:$8 sps:$4 sm:$0xff] (!%p282_p8)  }
  0x25   : > { %v738_v32 = vld [vmem:[%s290_s30 + $0x70] ss:$8 sps:$4 sm:$0xff]   ;;  %s900_s6 = smov (!%p336_p9, %s652_s6), 3  ;;  %v510_v36 = vsub.s32 0, %v509_v35  ;;  %v514_v38 = vsub.s32 1, %v509_v35 }
  0x26   : > { %459 = vmatpush1.bf16.msra.mxu0 %v720_v20  ;;  %s338_s9 = scalar_lea.vmem %s891_s2, %s900_s6  ;;  %s654_s10 = sshll.u32 %s900_s6, 3 }
  0x27   : > { %460 = vmatprep.subr.bf16.mxu0 %v721_v21  ;;  %v506_v37 = vld [vmem:[%s338_s9] sm:$0x3]  ;;  %s348_s18 = scalar_lea.vmem %s892_s3, %s654_s10 }
  0x28   : > { %v511_v39 = vrot.slane %v506_v37, %v510_v36  ;;  %v515_v40 = vrot.slane %v506_v37, %v514_v38 }
  0x2a   : > { %461 = vmatpush1.bf16.msra.mxu0 %v723_v22 }
  0x2b   : > { %462 = vmatprep.subr.bf16.mxu0 %v724_v23 }
  0x2e   : > { %463 = vmatpush1.bf16.msra.mxu0 %v726_v24 }
  0x2f   : > { %464 = vmatprep.subr.bf16.mxu0 %v727_v25 }
  0x32   : > { %465 = vmatpush1.bf16.msra.mxu0 %v729_v26 }
  0x33   : > { %466 = vmatprep.subr.bf16.mxu0 %v730_v27 }
  0x36   : > { %467 = vmatpush1.bf16.msra.mxu0 %v732_v28 }
  0x37   : > { %468 = vmatprep.subr.bf16.mxu0 %v733_v29 }
  0x3a   : > { %469 = vmatpush1.bf16.msra.mxu0 %v735_v30 }
  0x3b   : > { %470 = vmatprep.subr.bf16.mxu0 %v736_v31 }
  0x3e   : > { %471 = vmatpush1.bf16.msra.mxu0 %v738_v32 }
  0x41   : > { %489 = vmatmul.mubr.bf16.vlgmr.msra.gmra.mrb[0].mxu0 %v359_v33 }
 0x114   : > { %v490_v41 = vpop.f32.mrb[0].mxu0 }
 0x115   : > { %v518_v42 = vadd.f32 %v511_v39, %v490_v41  ;;  %v492_v43 = vpop.f32.mrb[1].mxu0 }
 0x116   : > { %v519_v44 = vadd.f32 %v515_v40, %v492_v43  ;;  %v494_v45 = vpop.f32.mrb[2].mxu0 }
 0x117   : > { %520 = vst [vmem:[%s348_s18] sm:$0xff] %v518_v42  ;;  %v495_v46 = vpop.f32.mrb[3].mxu0 }
 0x118   : > { %521 = vst [vmem:[%s348_s18 + $0x8] sm:$0xff] %v519_v44 }
 0x119 PF: > { %s13_s16 = sadd.s32 1, %s777_s16   ;;  %s893_s12 = smov %s765_s13 }
 0x11a   : > { %p10_p10 = scmp.ge.s32.totalorder %s13_s16, 4   ;;  %s894_s13 = smov %s835_s20 }
 0x11b   : > { %s895_s14 = smov %s773_s15  ;;  %s896_s15 = smov %s898_s17 }
 0x11c   :  { %12 = sbr.rel (!%p10_p10) target bundleno = 3 (0x3), region = 119 }

// kernel: vmrnn_forward.106
= control target key start
LH: loop header
LB: loop body
LE: loop exit
PB: predicated region body
PF: predicated region fallthrough
CT: control target
= control target key end

     0   :  { %s352_s1 = inlined_call_operand.vmem [shape: bf16[256,128], index: 1, kind: input, shape index: {}]   ;;  %s353_s0 = inlined_call_operand.vmem [shape: bf16[8,256], index: 0, kind: input, shape index: {}]   ;;  %s354_s2 = inlined_call_operand.vmem [shape: f32[1,128], index: 2, kind: input, shape index: {}]   ;;  %s355_s3 = inlined_call_operand.vmem [shape: f32[8,128], index: 3, kind: output, shape index: {}]  }
   0x1   :  { %v257_v0 = vld [vmem:[%s352_s1 + $0x40] sm:$0xff]   ;;  %v259_v2 = vld [vmem:[%s352_s1 + $0x48] sm:$0xff]   ;;  %v261_v4 = vld [vmem:[%s352_s1 + $0x50] sm:$0xff]  }
   0x2   :  { %v258_v1 = vld [vmem:[%s352_s1] sm:$0xff]   ;;  %235 = vmatprep.subr.bf16.mxu0 %v257_v0  ;;  %v260_v3 = vld [vmem:[%s352_s1 + $0x8] sm:$0xff]   ;;  %v262_v5 = vld [vmem:[%s352_s1 + $0x10] sm:$0xff]  }
   0x3   :  { %236 = vmatpush3.bf16.msra.mxu0 %v258_v1  ;;  %v263_v6 = vld [vmem:[%s352_s1 + $0x58] sm:$0xff]   ;;  %v265_v8 = vld [vmem:[%s352_s1 + $0x60] sm:$0xff]   ;;  %v267_v10 = vld [vmem:[%s352_s1 + $0x68] sm:$0xff]  }
   0x4   :  { %237 = vmatprep.subr.bf16.mxu0 %v259_v2  ;;  %v264_v7 = vld [vmem:[%s352_s1 + $0x18] sm:$0xff]   ;;  %v266_v9 = vld [vmem:[%s352_s1 + $0x20] sm:$0xff]   ;;  %v268_v13 = vld [vmem:[%s352_s1 + $0x28] sm:$0xff]  }
   0x5   :  { %v21_v11 = vld [vmem:[%s353_s0] sm:$0xff]  ;;  %v269_v14 = vld [vmem:[%s352_s1 + $0x70] sm:$0xff]   ;;  %v271_v16 = vld [vmem:[%s352_s1 + $0x78] sm:$0xff]  }
   0x6   :  { %v217_v12 = vcombine.high %v21_v11, %v21_v11  ;;  %v270_v15 = vld [vmem:[%s352_s1 + $0x30] sm:$0xff]   ;;  %v272_v17 = vld [vmem:[%s352_s1 + $0x38] sm:$0xff]   ;;  %v216_v18 = vcombine.low %v21_v11, %v21_v11  ;;  %v234_v21 = vld [vmem:[%s354_s2] ss:$0 sm:$0xff] }
   0x7   :  { %238 = vmatpush3.bf16.msra.mxu0 %v260_v3 }
   0x8   :  { %239 = vmatprep.subr.bf16.mxu0 %v261_v4  ;;  %189 = vmatprep.mubr.bf16.mxu0 %v217_v12 }
   0xb   :  { %240 = vmatpush3.bf16.msra.mxu0 %v262_v5 }
   0xc   :  { %241 = vmatprep.subr.bf16.mxu0 %v263_v6 }
   0xf   :  { %242 = vmatpush3.bf16.msra.mxu0 %v264_v7 }
  0x10   :  { %243 = vmatprep.subr.bf16.mxu0 %v265_v8 }
  0x13   :  { %244 = vmatpush3.bf16.msra.mxu0 %v266_v9 }
  0x14   :  { %245 = vmatprep.subr.bf16.mxu0 %v267_v10 }
  0x17   :  { %246 = vmatpush3.bf16.msra.mxu0 %v268_v13 }
  0x18   :  { %247 = vmatprep.subr.bf16.mxu0 %v269_v14 }
  0x1b   :  { %248 = vmatpush3.bf16.msra.mxu0 %v270_v15 }
  0x1c   :  { %249 = vmatprep.subr.bf16.mxu0 %v271_v16 }
  0x1f   :  { %250 = vmatpush3.bf16.msra.mxu0 %v272_v17 }
  0x22   :  { %190 = vmatmul.mubr.bf16.vlgmr.msra.gmra.mrb[0].mxu0 %v216_v18 }
  0xf5   :  { %v251_v19 = vpop.f32.mrb[0].mxu0 }
  0xf6   :  { %v252_v20 = vpop.f32.mrb[1].mxu0 }
  0xf7   :  { %v253_v22 = vadd.f32 %v252_v20, %v251_v19  ;;  %v254_v23 = vpop.f32.mrb[2].mxu0 }
  0xf8   :  { %v255_v24 = vpop.f32.mrb[3].mxu0 }
  0xf9   :  { %v210_v25 = vadd.f32 %v253_v22, %v234_v21 }
  0xfb   :  { %211 = vst [vmem:[%s355_s3] sm:$0xff] %v210_v25 }

// kernel: vmrnn_forward.111
= control target key start
LH: loop header
LB: loop body
LE: loop exit
PB: predicated region body
PF: predicated region fallthrough
CT: control target
= control target key end

     0   :  { %s359_s12 = smov 0   ;;  %s410_s0 = inlined_call_operand.vmem [shape: f32[2,3,3,256], index: 0, kind: input, shape index: {}]   ;;  %s411_s1 = inlined_call_operand.vmem [shape: f32[9,256], index: 1, kind: input, shape index: {}]   ;;  %s412_s2 = inlined_call_operand.vmem [shape: f32[1,256], index: 2, kind: input, shape index: {}]   ;;  %s413_s3 = inlined_call_operand.vmem [shape: f32[2,1,1,256], index: 3, kind: output, shape index: {}]  }
   0x1 LB: > { %s292_s13 = sadd.s32 4294967295, %s337_s12   ;;  %p296_p0 = scmp.ge.s32.totalorder %s337_s12, 1  ;;  %s337_s12 = sphi %s359_s12, %s13_s12  }
   0x2   : > { %p137_p1 = scmp.lt.s32.totalorder %s337_s12, 3 }
   0x4   : > { %p138_p2 = pnand %p296_p0, %p137_p1 }
   0x5   : > { %p160_p3 = scmp.lt.s32.totalorder (!%p138_p2), %s292_s13, 1  ;;  %v172_v0 = vld [vmem:[%s411_s1] ss:$8 sm:$0x3] (!%p138_p2)  ;;  %v230_v40 = vlaneseq (!%p138_p2) }
   0x6   : > { %141 = sbr.rel (%p138_p2) target bundleno = 67 (0x43), region = 32  ;;  %v300_v1 = vld [vmem:[%s411_s1 + $0x1] ss:$8 sm:$0x3] (!%p138_p2) }
   0x7   : > { %v169_v2 = vld [vmem:[%s412_s2] sm:$0x3] (!%p138_p2)  ;;  %v302_v3 = vld [vmem:[%s411_s1 + $0x2] ss:$8 sm:$0x3] (!%p138_p2)  ;;  %vm232_vm0 = vcmp.lt.s32.totalorder (!%p138_p2), %v230_v40, 256 }
   0x8   : > { %v304_v10 = vld [vmem:[%s411_s1 + $0x3] ss:$8 sm:$0x3] (!%p138_p2)  ;;  %v306_v14 = vld [vmem:[%s411_s1 + $0x4] ss:$8 sm:$0x3] (!%p138_p2) }
   0x9   : > { %v308_v18 = vld [vmem:[%s411_s1 + $0x5] ss:$8 sm:$0x3] (!%p138_p2)  ;;  %v310_v22 = vld [vmem:[%s411_s1 + $0x6] ss:$8 sm:$0x3] (!%p138_p2) }
   0xa   : > { %v312_v26 = vld [vmem:[%s411_s1 + $0x7] ss:$8 sm:$0x3] (!%p138_p2)  ;;  %v314_v30 = vld [vmem:[%s411_s1 + $0x10] ss:$8 sm:$0x3] (!%p138_p2) }
   0xd   : > { %s415_s13 = smov (!%p160_p3, %s292_s13), 1 }
   0xe   : > { %s318_s14 = smul.u32 24, %s415_s13  ;;  %s298_s11 = sshll.u32 %s415_s13, 1 }
   0xf   : > { %s168_s16 = scalar_lea.vmem %s413_s3, %s298_s11 }
  0x10   : > { %s164_s21 = scalar_lea.vmem %s410_s0, %s318_s14 }
  0x11   : > { %v171_v4 = vld [vmem:[%s164_s21] ss:$4 sm:$0x3]  ;;  %v299_v5 = vld [vmem:[%s164_s21 + $0x1] ss:$4 sm:$0x3] }
  0x12   : > { %v173_v6 = vmul.f32 %v172_v0, %v171_v4  ;;  %v179_v7 = vmul.f32 %v300_v1, %v299_v5  ;;  %v301_v8 = vld [vmem:[%s164_s21 + $0x2] ss:$4 sm:$0x3]  ;;  %v303_v9 = vld [vmem:[%s164_s21 + $0x8] ss:$4 sm:$0x3] }
  0x13   : > { %v185_v12 = vmul.f32 %v302_v3, %v301_v8  ;;  %v305_v13 = vld [vmem:[%s164_s21 + $0x9] ss:$4 sm:$0x3]  ;;  %v191_v16 = vmul.f32 %v304_v10, %v303_v9  ;;  %v307_v17 = vld [vmem:[%s164_s21 + $0xa] ss:$4 sm:$0x3] }
  0x14   : > { %v174_v11 = vadd.f32 %v173_v6, %v169_v2  ;;  %v197_v20 = vmul.f32 %v306_v14, %v305_v13  ;;  %v309_v21 = vld [vmem:[%s164_s21 + $0x10] ss:$4 sm:$0x3]  ;;  %v203_v24 = vmul.f32 %v308_v18, %v307_v17  ;;  %v311_v25 = vld [vmem:[%s164_s21 + $0x11] ss:$4 sm:$0x3] }
  0x15   : > { %v209_v28 = vmul.f32 %v310_v22, %v309_v21  ;;  %v313_v29 = vld [vmem:[%s164_s21 + $0x12] ss:$4 sm:$0x3]  ;;  %v215_v32 = vmul.f32 %v312_v26, %v311_v25 }
  0x16   : > { %v180_v15 = vadd.f32 %v179_v7, %v174_v11  ;;  %v221_v34 = vmul.f32 %v314_v30, %v313_v29 }
  0x18   : > { %v186_v19 = vadd.f32 %v185_v12, %v180_v15 }
  0x1a   : > { %v192_v23 = vadd.f32 %v191_v16, %v186_v19 }
  0x1c   : > { %v198_v27 = vadd.f32 %v197_v20, %v192_v23 }
  0x1e   : > { %v204_v31 = vadd.f32 %v203_v24, %v198_v27 }
  0x20   : > { %v210_v33 = vadd.f32 %v209_v28, %v204_v31 }
  0x22   : > { %v216_v35 = vadd.f32 %v215_v32, %v210_v33 }
  0x24   : > { %v222_v36 = vadd.f32 %v221_v34, %v216_v35 }
  0x26   : > { %v315_v37 = vmul.f32 -1.442695, %v222_v36 }
  0x28   : > { %327 = vpow2.f32 %v315_v37 }
  0x32   : > { %v328_v38 = vpop.eup %327 }
  0x33   : > { %v226_v39 = vadd.f32 1.0, %v328_v38 }
  0x35   : > { %329 = vrcp.f32 %v226_v39 }
  0x3f   : > { %v330_v41 = vpop.eup %329 }
  0x40   : > { %v229_v42 = vmul.f32 %v330_v41, %v222_v36 }
  0x42   : > { %234 = vst.msk [vmem:[%s168_s16] sm:$0x3] %vm232_vm0, %v229_v42 }
  0x43 PF: > { %s13_s12 = sadd.s32 1, %s337_s12  }
  0x44   : > { %p10_p4 = scmp.ge.s32.totalorder %s13_s12, 4  }
  0x46   :  { %12 = sbr.rel (!%p10_p4) target bundleno = 1 (0x1), region = 78 }

// kernel: vmrnn_forward.112
= control target key start
LH: loop header
LB: loop body
LE: loop exit
PB: predicated region body
PF: predicated region fallthrough
CT: control target
= control target key end

     0   :  { %s848_s18 = smov 0   ;;  %s906_s0 = inlined_call_operand.vmem [shape: bf16[4,2,256], index: 0, kind: input, shape index: {}]   ;;  %s907_s1 = inlined_call_operand.vmem [shape: bf16[4,256,40], index: 1, kind: input, shape index: {}]   ;;  %s908_s2 = inlined_call_operand.vmem [shape: bf16[4,8,256], index: 2, kind: input, shape index: {}]   ;;  %s909_s3 = inlined_call_operand.vmem [shape: f32[4,2,256], index: 3, kind: output, shape index: {0}]   ;;  %s910_s4 = inlined_call_operand.vmem [shape: f32[4,2,16], index: 4, kind: output, shape index: {1}]   ;;  %s911_s5 = inlined_call_operand.vmem [shape: f32[4,2,16], index: 5, kind: output, shape index: {2}]  }
   0x1 LB: > { %s718_s19 = sadd.s32 4294967295, %s812_s18   ;;  %p722_p0 = scmp.ge.s32.totalorder %s812_s18, 1  ;;  %s812_s18 = sphi %s848_s18, %s16_s18  }
   0x2   : > { %p211_p1 = scmp.lt.s32.totalorder %s812_s18, 5 }
   0x4   : > { %p212_p2 = pnand %p722_p0, %p211_p1 }
   0x5   : > { %p256_p3 = scmp.lt.s32.totalorder (!%p212_p2), %s718_s19, 3  ;;  %v814_v6 = vmov (!%p212_p2), 1966171168   ;;  %v329_v8 = vlaneseq (!%p212_p2)  ;;  %v815_v29 = vmov (!%p212_p2), 0.0   ;;  %vm481_vm0 = vcmask (!%p212_p2), 64512   ;;  %s816_s7 = smov (!%p212_p2), 120  }
   0x6   : > { %215 = sbr.rel (%p212_p2) target bundleno = 480 (0x1e0), region = 32  ;;  %v327_v7 = vunpack.c.l.s4 (!%p212_p2), %v814_v6  ;;  %549 = vmatprep.mubr.f32.mxu1 (!%p212_p2), %v815_v29  ;;  %s817_s8 = smov (!%p212_p2), 104   ;;  %vm571_vm1 = vcmask (!%p212_p2), 123904  }
   0x7   : > { %v330_v12 = vshrl.u32 (!%p212_p2), %v329_v8, 7 }
   0x8   : > { %v328_v11 = vunpack.c.0.s8 (!%p212_p2), %v327_v7 }
   0xa   : > { %v331_v15 = vsub.s32 (!%p212_p2), %v328_v11, %v330_v12 }
   0xd   : > { %s913_s19 = smov (!%p256_p3, %s718_s19), 3 }
   0xe   : > { %s753_s20 = sshll.u32 %s913_s19, 7  ;;  %s872_s24 = sshll.u32 %s913_s19, 1 }
   0xf   : > { %s862_s23 = scalar_lea.vmem %s907_s1, %s753_s20  ;;  %s259_s27 = scalar_lea.vmem %s906_s0, %s872_s24 }
  0x10   : > { %v790_v0 = vld [vmem:[%s862_s23 + $0x40] sm:$0xff]   ;;  %v792_v2 = vld [vmem:[%s862_s23 + $0x48] sm:$0xff]   ;;  %v794_v4 = vld [vmem:[%s862_s23 + $0x50] sm:$0xff]   ;;  %s754_s28 = sshll.u32 %s913_s19, 3  ;;  %s278_s11 = scalar_lea.vmem %s910_s4, %s872_s24 }
  0x11   : > { %v791_v1 = vld [vmem:[%s862_s23] sm:$0xff]   ;;  %756 = vmatprep.subr.bf16.mxu0 %v790_v0  ;;  %v793_v3 = vld [vmem:[%s862_s23 + $0x8] sm:$0xff]   ;;  %v795_v5 = vld [vmem:[%s862_s23 + $0x10] sm:$0xff]   ;;  %s269_s6 = scalar_lea.vmem %s908_s2, %s754_s28  ;;  %s282_s14 = scalar_lea.vmem %s911_s5, %s872_s24 }
  0x12   : > { %757 = vmatpush3.bf16.msra.mxu0 %v791_v1  ;;  %v796_v9 = vld [vmem:[%s862_s23 + $0x58] sm:$0xff]   ;;  %v798_v13 = vld [vmem:[%s862_s23 + $0x60] sm:$0xff]   ;;  %v800_v16 = vld [vmem:[%s862_s23 + $0x68] sm:$0xff]   ;;  %s755_s15 = sshll.u32 %s913_s19, 2 }
  0x13   : > { %758 = vmatprep.subr.bf16.mxu0 %v792_v2  ;;  %v797_v10 = vld [vmem:[%s862_s23 + $0x18] sm:$0xff]   ;;  %v799_v14 = vld [vmem:[%s862_s23 + $0x20] sm:$0xff]   ;;  %v801_v19 = vld [vmem:[%s862_s23 + $0x28] sm:$0xff]   ;;  %s274_s20 = scalar_lea.vmem %s909_s3, %s755_s15 }
  0x14   : > { %v732_v17 = vld.sshfl [vmem:[%s259_s27] sm:$0x11 pattern:$0x75316420]  ;;  %v802_v21 = vld [vmem:[%s862_s23 + $0x70] sm:$0xff]   ;;  %v804_v23 = vld [vmem:[%s862_s23 + $0x78] sm:$0xff]  }
  0x15   : > { %v325_v18 = vcombine.high %v732_v17, %v732_v17  ;;  %v803_v22 = vld [vmem:[%s862_s23 + $0x30] sm:$0xff]   ;;  %v805_v24 = vld [vmem:[%s862_s23 + $0x38] sm:$0xff]   ;;  %v332_v25 = vrot.slane %v732_v17, %v331_v15  ;;  %v478_v26 = vld [vmem:[%s269_s6] sm:$0xff] }
  0x16   : > { %759 = vmatpush3.bf16.msra.mxu0 %v793_v3  ;;  %v480_v27 = vunpack.c.h.bf16 %v478_v26  ;;  %v479_v28 = vunpack.c.l.bf16 %v478_v26 }
  0x17   : > { %760 = vmatprep.subr.bf16.mxu0 %v794_v4  ;;  %v339_v20 = vrot.slane %v325_v18, %v331_v15 }
  0x18   : > { %485 = vmatprep.subr.mxu1 %v480_v27 }
  0x19   : > { %470 = vmatprep.mubr.bf16.mxu0 %v339_v20  ;;  %486 = vmatpush1.msra.mxu1 %v479_v28 }
  0x1a   : > { %761 = vmatpush3.bf16.msra.mxu0 %v795_v5 }
  0x1b   : > { %762 = vmatprep.subr.bf16.mxu0 %v796_v9 }
  0x1e   : > { %763 = vmatpush3.bf16.msra.mxu0 %v797_v10 }
  0x1f   : > { %764 = vmatprep.subr.bf16.mxu0 %v798_v13 }
  0x22   : > { %765 = vmatpush3.bf16.msra.mxu0 %v799_v14 }
  0x23   : > { %766 = vmatprep.subr.bf16.mxu0 %v800_v16 }
  0x26   : > { %767 = vmatpush3.bf16.msra.mxu0 %v801_v19 }
  0x27   : > { %768 = vmatprep.subr.bf16.mxu0 %v802_v21 }
  0x2a   : > { %769 = vmatpush3.bf16.msra.mxu0 %v803_v22 }
  0x2b   : > { %770 = vmatprep.subr.bf16.mxu0 %v804_v23 }
  0x2e   : > { %771 = vmatpush3.bf16.msra.mxu0 %v805_v24 }
  0x31   : > { %471 = vmatmul.mubr.bf16.vlgmr.msra.gmra.mrb[0].mxu0 %v332_v25 }
 0x104   : > { %v772_v30 = vpop.f32.mrb[0].mxu0 }
 0x105   : > { %v773_v31 = vpop.f32.mrb[1].mxu0 }
 0x106   : > { %v774_v32 = vadd.f32 %v773_v31, %v772_v30  ;;  %v775_v33 = vpop.f32.mrb[2].mxu0 }
 0x107   : > { %v776_v34 = vpop.f32.mrb[3].mxu0 }
 0x108   : > { %568 = vrot.lane.b32.xlu0 %v774_v32, %s816_s7  ;;  %749 = vmatmul.mubr.msk.f32.vlgmr.msra.gmra.mrb[0].mxu1 %vm481_vm0, %v774_v32 }
 0x10c   : > { %573 = vrot.lane.b32.xlu0 %v774_v32, %s817_s8 }
 0x17a   : > { %v569_v35 = vpop.permute.xlu0 %568 }
 0x17b   : > { %572 = vst.msk [vmem:[%s278_s11] sm:$0x3] %vm571_vm1, %v569_v35 }
 0x17e   : > { %v574_v36 = vpop.permute.xlu0 %573 }
 0x17f   : > { %576 = vst.msk [vmem:[%s282_s14] sm:$0x3] %vm571_vm1, %v574_v36 }
 0x1db   : > { %v551_v37 = vpop.f32.mrb[0].mxu1 }
 0x1dc   : > { %v553_v38 = vpop.f32.mrb[1].mxu1 }
 0x1dd   : > { %v558_v39 = vcombine.low %v551_v37, %v553_v38 }
 0x1df   : > { %750 = vst.sshfl [vmem:[%s274_s20] sm:$0x33 pattern:$0x76325410] %v558_v39 }
 0x1e0 PF: > { %s16_s18 = sadd.s32 1, %s812_s18  }
 0x1e1   : > { %p13_p4 = scmp.ge.s32.totalorder %s16_s18, 6  }
 0x1e3   :  { %15 = sbr.rel (!%p13_p4) target bundleno = 1 (0x1), region = 92 }

// kernel: vmrnn_forward.121
= control target key start
LH: loop header
LB: loop body
LE: loop exit
PB: predicated region body
PF: predicated region fallthrough
CT: control target
= control target key end

     0   :  { %s77_s0 = inlined_call_operand.vmem [shape: f32[8,128], index: 0, kind: input, shape index: {}]   ;;  %s78_s1 = inlined_call_operand.vmem [shape: f32[8,128], index: 1, kind: input, shape index: {}]   ;;  %s79_s3 = inlined_call_operand.vmem [shape: f32[8,128], index: 3, kind: output, shape index: {1}]   ;;  %s80_s2 = inlined_call_operand.vmem [shape: f32[8,128], index: 2, kind: output, shape index: {0}]  }
   0x1   :  { %v13_v0 = vld [vmem:[%s77_s0] sm:$0xff] }
   0x2   :  { %v36_v1 = vmul.f32 -1.442695, %v13_v0  ;;  %v14_v5 = vld [vmem:[%s78_s1] sm:$0xff] }
   0x4   :  { %37 = vpow2.f32 %v36_v1 }
   0x5   :  { %39 = vtanh.f32 %v13_v0 }
   0xe   :  { %v38_v2 = vpop.eup %37 }
   0xf   :  { %v18_v3 = vadd.f32 1.0, %v38_v2  ;;  %v40_v4 = vpop.eup %39 }
  0x10   :  { %v22_v6 = vadd.f32 %v40_v4, %v14_v5 }
  0x11   :  { %41 = vrcp.f32 %v18_v3 }
  0x1b   :  { %v42_v7 = vpop.eup %41 }
  0x1c   :  { %v23_v8 = vmul.f32 %v42_v7, %v22_v6 }
  0x1e   :  { %43 = vtanh.f32 %v23_v8  ;;  %27 = vst [vmem:[%s79_s3] sm:$0xff] %v23_v8 }
  0x28   :  { %v44_v9 = vpop.eup %43 }
  0x29   :  { %v25_v10 = vmul.f32 %v44_v9, %v42_v7 }
  0x2b   :  { %26 = vst [vmem:[%s80_s2] sm:$0xff] %v25_v10 }

// kernel: vmrnn_forward.114
= control target key start
LH: loop header
LB: loop body
LE: loop exit
PB: predicated region body
PF: predicated region fallthrough
CT: control target
= control target key end

     0   :  { %v42_v36 = vlaneseq  ;;  %s431_s0 = inlined_call_operand.vmem [shape: f32[8,256], index: 0, kind: input, shape index: {}]   ;;  %s432_s4 = inlined_call_operand.vmem [shape: bf16[256,128], index: 4, kind: input, shape index: {}]   ;;  %s433_s1 = inlined_call_operand.vmem [shape: f32[8,256], index: 1, kind: input, shape index: {}]   ;;  %s434_s2 = inlined_call_operand.vmem [shape: f32[1,256], index: 2, kind: input, shape index: {}]   ;;  %s435_s3 = inlined_call_operand.vmem [shape: f32[1,256], index: 3, kind: input, shape index: {}]   ;;  %s436_s5 = inlined_call_operand.vmem [shape: f32[8,128], index: 5, kind: output, shape index: {}]  }
   0x1   :  { %v21_v0 = vld [vmem:[%s431_s0] sm:$0xff]  ;;  %v22_v1 = vld [vmem:[%s431_s0 + $0x8] sm:$0xff]  ;;  %v305_v14 = vld [vmem:[%s432_s4 + $0x50] sm:$0xff]  }
   0x2   :  { %v23_v2 = vadd.f32 %v22_v1, %v21_v0  ;;  %v301_v3 = vld [vmem:[%s432_s4 + $0x40] sm:$0xff]   ;;  %v303_v5 = vld [vmem:[%s432_s4 + $0x48] sm:$0xff]   ;;  %v306_v15 = vld [vmem:[%s432_s4 + $0x10] sm:$0xff]   ;;  %v43_v38 = vshrl.u32 %v42_v36, 7 }
   0x3   :  { %v302_v4 = vld [vmem:[%s432_s4] sm:$0xff]   ;;  %279 = vmatprep.subr.bf16.mxu0 %v301_v3  ;;  %v304_v6 = vld [vmem:[%s432_s4 + $0x8] sm:$0xff]   ;;  %v307_v16 = vld [vmem:[%s432_s4 + $0x58] sm:$0xff]  }
   0x4   :  { %24 = vadd.xlane.f32.xlu0 %v23_v2  ;;  %280 = vmatpush3.bf16.msra.mxu0 %v302_v4  ;;  %v308_v17 = vld [vmem:[%s432_s4 + $0x18] sm:$0xff]   ;;  %v309_v18 = vld [vmem:[%s432_s4 + $0x60] sm:$0xff]   ;;  %v311_v20 = vld [vmem:[%s432_s4 + $0x68] sm:$0xff]   ;;  %v44_v39 = vsub.s32 0, %v43_v38  ;;  %v48_v40 = vsub.s32 1, %v43_v38 }
   0x5   :  { %281 = vmatprep.subr.bf16.mxu0 %v303_v5  ;;  %v310_v19 = vld [vmem:[%s432_s4 + $0x20] sm:$0xff]   ;;  %v312_v21 = vld [vmem:[%s432_s4 + $0x28] sm:$0xff]   ;;  %v313_v22 = vld [vmem:[%s432_s4 + $0x70] sm:$0xff]  }
   0x6   :  { %v314_v23 = vld [vmem:[%s432_s4 + $0x30] sm:$0xff]   ;;  %v315_v24 = vld [vmem:[%s432_s4 + $0x78] sm:$0xff]   ;;  %v68_v26 = vld [vmem:[%s433_s1] sm:$0xff] }
   0x7   :  { %v316_v25 = vld [vmem:[%s432_s4 + $0x38] sm:$0xff]   ;;  %v69_v27 = vld [vmem:[%s433_s1 + $0x8] sm:$0xff]  ;;  %v261_v28 = vmul.f32 -1.442695, %v68_v26  ;;  %v40_v41 = vld [vmem:[%s434_s2] sm:$0x3] }
   0x8   :  { %282 = vmatpush3.bf16.msra.mxu0 %v304_v6  ;;  %v262_v29 = vmul.f32 -1.442695, %v69_v27  ;;  %v54_v43 = vld [vmem:[%s435_s3] sm:$0x3]  ;;  %v45_v45 = vrot.slane %v40_v41, %v44_v39  ;;  %v49_v46 = vrot.slane %v40_v41, %v48_v40 }
   0x9   :  { %283 = vmatprep.subr.bf16.mxu0 %v305_v14  ;;  %317 = vpow2.f32 %v261_v28  ;;  %v59_v49 = vrot.slane %v54_v43, %v44_v39  ;;  %v63_v50 = vrot.slane %v54_v43, %v48_v40 }
   0xa   :  { %319 = vpow2.f32 %v262_v29 }
   0xc   :  { %284 = vmatpush3.bf16.msra.mxu0 %v306_v15 }
   0xd   :  { %285 = vmatprep.subr.bf16.mxu0 %v307_v16 }
  0x10   :  { %286 = vmatpush3.bf16.msra.mxu0 %v308_v17 }
  0x11   :  { %287 = vmatprep.subr.bf16.mxu0 %v309_v18 }
  0x13   :  { %v318_v30 = vpop.eup %317 }
  0x14   :  { %288 = vmatpush3.bf16.msra.mxu0 %v310_v19  ;;  %v320_v31 = vpop.eup %319  ;;  %v76_v32 = vadd.f32 1.0, %v318_v30 }
  0x15   :  { %289 = vmatprep.subr.bf16.mxu0 %v311_v20  ;;  %v77_v34 = vadd.f32 1.0, %v320_v31 }
  0x16   :  { %321 = vrcp.f32 %v76_v32 }
  0x17   :  { %323 = vrcp.f32 %v77_v34 }
  0x18   :  { %290 = vmatpush3.bf16.msra.mxu0 %v312_v21 }
  0x19   :  { %291 = vmatprep.subr.bf16.mxu0 %v313_v22 }
  0x1c   :  { %292 = vmatpush3.bf16.msra.mxu0 %v314_v23 }
  0x1d   :  { %293 = vmatprep.subr.bf16.mxu0 %v315_v24 }
  0x20   :  { %294 = vmatpush3.bf16.msra.mxu0 %v316_v25  ;;  %v322_v42 = vpop.eup %321 }
  0x21   :  { %v324_v44 = vpop.eup %323  ;;  %v82_v55 = vmul.f32 %v322_v42, %v68_v26 }
  0x22   :  { %v83_v53 = vmul.f32 %v324_v44, %v69_v27 }
  0x91   :  { %v25_v7 = vpop.xlane.xlu0 %24 }
  0x92   :  { %v27_v8 = vmul.f32 0.00390625, %v25_v7 }
  0x94   :  { %v375_v9 = vsub.f32 %v21_v0, %v27_v8  ;;  %v29_v10 = vsub.f32 %v22_v1, %v27_v8 }
  0x96   :  { %v30_v11 = vmul.f32 %v375_v9, %v375_v9  ;;  %v31_v12 = vmul.f32 %v29_v10, %v29_v10 }
  0x98   :  { %v32_v13 = vadd.f32 %v31_v12, %v30_v11 }
  0x9a   :  { %33 = vadd.xlane.f32.xlu0 %v32_v13 }
 0x127   :  { %v34_v33 = vpop.xlane.xlu0 %33 }
 0x128   :  { %v35_v35 = vmul.f32 0.00390625, %v34_v33 }
 0x12a   :  { %v36_v37 = vadd.f32 1e-05, %v35_v35 }
 0x12c   :  { %325 = vrsqrt.f32 %v36_v37 }
 0x136   :  { %v326_v47 = vpop.eup %325 }
 0x137   :  { %v39_v48 = vmul.f32 %v326_v47, %v29_v10  ;;  %v38_v51 = vmul.f32 %v326_v47, %v375_v9 }
 0x139   :  { %v53_v52 = vmul.f32 %v49_v46, %v39_v48  ;;  %v52_v54 = vmul.f32 %v45_v45, %v38_v51 }
 0x13b   :  { %v67_v56 = vadd.f32 %v63_v50, %v53_v52  ;;  %v66_v57 = vadd.f32 %v59_v49, %v52_v54 }
 0x13d   :  { %v85_v58 = vmul.f32 %v83_v53, %v67_v56  ;;  %v84_v59 = vmul.f32 %v82_v55, %v66_v57 }
 0x13f   :  { %v87_v60 = vpack.c.bf16 %v85_v58, %v85_v58  ;;  %v86_v61 = vpack.c.bf16 %v84_v59, %v84_v59 }
 0x141   :  { %248 = vmatprep.mubr.bf16.mxu0 %v87_v60 }
 0x142   :  { %249 = vmatmul.mubr.bf16.vlgmr.msra.gmra.mrb[0].mxu0 %v86_v61 }
 0x215   :  { %v295_v62 = vpop.f32.mrb[0].mxu0 }
 0x216   :  { %v296_v63 = vpop.f32.mrb[1].mxu0 }
 0x217   :  { %v297_v0 = vadd.f32 %v296_v63, %v295_v62  ;;  %v298_v1 = vpop.f32.mrb[2].mxu0 }
 0x218   :  { %v299_v2 = vpop.f32.mrb[3].mxu0 }
 0x219   :  { %256 = vst [vmem:[%s436_s5] sm:$0xff] %v297_v0 }

// kernel: vmrnn_forward.113
= control target key start
LH: loop header
LB: loop body
LE: loop exit
PB: predicated region body
PF: predicated region fallthrough
CT: control target
= control target key end

     0   :  { %s934_s24 = smov 0   ;;  %s936_s25 = smov 0   ;;  %s1034_s0 = inlined_call_operand.vmem [shape: f32[2,4,1,256], index: 0, kind: input, shape index: {}]   ;;  %s1035_s1 = inlined_call_operand.vmem [shape: f32[2,4,1,256], index: 1, kind: input, shape index: {}]   ;;  %s1036_s2 = inlined_call_operand.vmem [shape: f32[2,4,1,16], index: 2, kind: input, shape index: {}]   ;;  %s1037_s3 = inlined_call_operand.vmem [shape: f32[2,4,1,16], index: 3, kind: input, shape index: {}]   ;;  %s1038_s4 = inlined_call_operand.vmem [shape: f32[4,16,256], index: 4, kind: input, shape index: {}]   ;;  %s1039_s5 = inlined_call_operand.vmem [shape: f32[4,1,256], index: 5, kind: input, shape index: {}]   ;;  %s1040_s6 = inlined_call_operand.vmem [shape: f32[4,1,256], index: 6, kind: input, shape index: {}]   ;;  %s1041_s7 = inlined_call_operand.vmem [shape: f32[2,4,1,256], index: 7, kind: output, shape index: {}]  }
   0x1   :  { %s938_s26 = smov 0   ;;  %s940_s27 = smov 0  }
   0x2   :  { %s942_s28 = smov 0  }
   0x3 LB: > { %s26_s29 = sadd.s32 1, %s883_s26  ;;  %s29_s30 = sadd.s32 1, %s887_s27  ;;  %s891_s28 = sphi %s942_s28, %s17_s28   ;;  %s887_s27 = sphi %s940_s27, %s1045_s27   ;;  %s883_s26 = sphi %s938_s26, %s1044_s26   ;;  %s879_s25 = sphi %s936_s25, %s1043_s25   ;;  %s875_s24 = sphi %s934_s24, %s1042_s24  }
   0x4   : > { %p27_p0 = scmp.ge.s32.totalorder %s26_s29, 4  ;;  %p782_p1 = scmp.ge.s32.totalorder %s891_s28, 1 }
   0x5   : > { %p327_p2 = scmp.lt.s32.totalorder %s891_s28, 9 }
   0x6   : > { %s1047_s29 = smov (%p27_p0, %s26_s29), 0  ;;  %s1049_s30 = smov (!%p27_p0, %s29_s30), %s887_s27 }
   0x7   : > { %p328_p3 = pnand %p782_p1, %p327_p2  ;;  %p31_p4 = scmp.ge.s32.totalorder %s1049_s30, 2 }
   0x8   : > { %p400_p5 = scmp.lt.s32.totalorder (!%p328_p3), %s879_s25, 1  ;;  %p402_p6 = scmp.lt.s32.totalorder (!%p328_p3), %s875_s24, 3  ;;  %v484_v14 = vlaneseq (!%p328_p3) }
   0x9   : > { %s1051_s30 = smov (%p31_p4, %s1049_s30), 0  ;;  %331 = sbr.rel (%p328_p3) target bundleno = 169 (0xa9), region = 48 }
   0xa   : > { %v993_v17 = vshrl.u32 (!%p328_p3), %v484_v14, 7  ;;  %vm605_vm2 = vcmp.lt.s32.totalorder (!%p328_p3), %v484_v14, 256 }
   0xc   : > { %v1000_v22 = vsub.s32 (!%p328_p3), 0, %v993_v17  ;;  %v1003_v23 = vsub.s32 (!%p328_p3), 1, %v993_v17 }
  0x10   : > { %s1053_s25 = smov (!%p400_p5, %s879_s25), 1  ;;  %s1055_s24 = smov (!%p402_p6, %s875_s24), 3 }
  0x11   : > { %s787_s8 = sshll.u32 %s1053_s25, 2  ;;  %s784_s9 = sshll.u32 %s1053_s25, 3 }
  0x12   : > { %s783_s10 = sshll.u32 %s1055_s24, 1  ;;  %s421_s11 = sadd.s32 %s787_s8, %s1055_s24 }
  0x13   : > { %s422_s14 = scalar_lea.vmem %s1036_s2, %s421_s11  ;;  %s442_s17 = scalar_lea.vmem %s1040_s6, %s783_s10 }
  0x14   : > { %v795_v0 = vld [vmem:[%s422_s14] ss:$0 sm:$0xff]  ;;  %s974_s18 = sadd.s32 %s784_s9, %s783_s10  ;;  %s429_s21 = scalar_lea.vmem %s1037_s3, %s421_s11 }
  0x15   : > { %v456_v1 = vld [vmem:[%s442_s17] sm:$0x3]  ;;  %511 = vbcast.lane.b32.xlu0 %v795_v0, 256  ;;  %s415_s25 = scalar_lea.vmem %s1035_s1, %s974_s18  ;;  %s438_s13 = scalar_lea.vmem %s1039_s5, %s783_s10 }
  0x16   : > { %v796_v2 = vld [vmem:[%s429_s21] ss:$0 sm:$0xff]  ;;  %s407_s15 = scalar_lea.vmem %s1034_s0, %s974_s18  ;;  %s799_s10 = sshll.u32 %s1055_s24, 5 }
  0x17   : > { %v461_v3 = vld [vmem:[%s415_s25] sm:$0x3]  ;;  %546 = vbcast.lane.b32.xlu1 %v796_v2, 256  ;;  %s434_s17 = scalar_lea.vmem %s1038_s4, %s799_s10  ;;  %s450_s20 = scalar_lea.vmem %s1041_s7, %s974_s18 }
  0x18   : > { %v462_v4 = vadd.f32 %v461_v3, %v456_v1  ;;  %v455_v5 = vld [vmem:[%s438_s13] sm:$0x3]  ;;  %v452_v28 = vld [vmem:[%s434_s17 + $0x8] sm:$0xff]  ;;  %v453_v32 = vld [vmem:[%s434_s17 + $0x10] sm:$0xff] }
  0x19   : > { %v459_v6 = vld [vmem:[%s407_s15] sm:$0x3]  ;;  %515 = vbcast.lane.b32.xlu0 %v795_v0, 264  ;;  %v454_v33 = vld [vmem:[%s434_s17 + $0x18] sm:$0xff] }
  0x1a   : > { %v990_v7 = vmul.f32 %v459_v6, %v455_v5  ;;  %v466_v8 = vand.u32 2147483647, %v462_v4  ;;  %v463_v20 = vmax.f32 %v462_v4, 0.0  ;;  %vm464_vm1 = vcmp.ne.f32.partialorder %v462_v4, %v462_v4  ;;  %v451_v27 = vld [vmem:[%s434_s17] sm:$0xff] }
  0x1b   : > { %550 = vbcast.lane.b32.xlu1 %v796_v2, 264 }
  0x1c   : > { %v467_v9 = vsub.f32 0.0, %v466_v8 }
  0x1e   : > { %v468_v10 = vmul.f32 1.442695, %v467_v9 }
  0x20   : > { %841 = vpow2.f32 %v468_v10 }
  0x2a   : > { %v842_v11 = vpop.eup %841 }
  0x2b   : > { %v470_v12 = vadd.f32 1.0, %v842_v11  ;;  %v473_v13 = vmul.f32 -0.5, %v842_v11  ;;  %v476_v16 = vand.u32 2147483647, %v842_v11 }
  0x2d   : > { %843 = vlog2.f32 %v470_v12  ;;  %v474_v15 = vadd.f32 1.0, %v473_v13  ;;  %vm477_vm0 = vcmp.lt.f32.partialorder %v476_v16, 0.0004427343 }
  0x2f   : > { %v475_v18 = vmul.f32 %v842_v11, %v474_v15  ;;  %v893_v11 = vmov 1966171168  }
  0x30   : > { %v588_v12 = vunpack.c.l.s4 %v893_v11 }
  0x37   : > { %v844_v19 = vpop.eup %843 }
  0x38   : > { %v472_v21 = vmul.f32 0.6931472, %v844_v19  ;;  %v589_v19 = vunpack.c.0.s8 %v588_v12 }
  0x3a   : > { %v478_v24 = vsel %vm477_vm0, %v475_v18, %v472_v21  ;;  %v579_v21 = vrot.slane %v990_v7, %v1003_v23 }
  0x3b   : > { %v479_v25 = vadd.f32 %v478_v24, %v463_v20  ;;  %v575_v20 = vrot.slane %v990_v7, %v1000_v22 }
  0x3d   : > { %v480_v26 = vsel %vm464_vm1, %v462_v4, %v479_v25 }
  0x3e   : > { %v487_v29 = vrot.slane %v480_v26, %v1000_v22  ;;  %v491_v30 = vrot.slane %v480_v26, %v1003_v23  ;;  %v517_v31 = vmul.f32 %v480_v26, %v459_v6 }
  0x40   : > { %v494_v34 = vmul.f32 %v487_v29, %v451_v27  ;;  %v495_v35 = vmul.f32 %v491_v30, %v452_v28  ;;  %v496_v36 = vmul.f32 %v487_v29, %v453_v32  ;;  %v497_v37 = vmul.f32 %v491_v30, %v454_v33 }
  0x41   : > { %v522_v44 = vrot.slane %v517_v31, %v1000_v22  ;;  %v526_v45 = vrot.slane %v517_v31, %v1003_v23  ;;  %v592_v28 = vsub.s32 %v589_v19, %v993_v17 }
  0x42   : > { %v498_v38 = vmul.f32 1.442695, %v494_v34  ;;  %v500_v39 = vmul.f32 1.442695, %v495_v35  ;;  %v502_v40 = vmul.f32 1.442695, %v496_v36 }
  0x43   : > { %v504_v41 = vmul.f32 1.442695, %v497_v37 }
  0x44   : > { %845 = vpow2.f32 %v498_v38 }
  0x45   : > { %847 = vpow2.f32 %v500_v39 }
  0x46   : > { %849 = vpow2.f32 %v502_v40 }
  0x47   : > { %851 = vpow2.f32 %v504_v41 }
  0x4e   : > { %v846_v42 = vpop.eup %845 }
  0x4f   : > { %v848_v43 = vpop.eup %847  ;;  %v533_v47 = vmul.f32 0.0, %v846_v42 }
  0x50   : > { %v850_v46 = vpop.eup %849  ;;  %v534_v48 = vmul.f32 0.0, %v848_v43 }
  0x51   : > { %v852_v49 = vpop.eup %851  ;;  %v535_v56 = vmul.f32 0.0, %v850_v46 }
  0x52   : > { %v536_v57 = vmul.f32 0.0, %v852_v49 }
  0x87   : > { %v512_v50 = vpop.permute.xlu0 %511 }
  0x88   : > { %v529_v51 = vmul.f32 %v522_v44, %v512_v50  ;;  %v530_v52 = vmul.f32 %v526_v45, %v512_v50 }
  0x89   : > { %v547_v53 = vpop.permute.xlu1 %546 }
  0x8a   : > { %v537_v54 = vadd.f32 %v533_v47, %v529_v51  ;;  %v538_v55 = vadd.f32 %v534_v48, %v530_v52 }
  0x8b   : > { %v516_v58 = vpop.permute.xlu0 %515 }
  0x8c   : > { %v531_v59 = vmul.f32 %v522_v44, %v516_v58  ;;  %v532_v60 = vmul.f32 %v526_v45, %v516_v58  ;;  %v552_v0 = vmul.f32 %v547_v53, %v537_v54  ;;  %v553_v1 = vmul.f32 %v547_v53, %v538_v55 }
  0x8d   : > { %v551_v61 = vpop.permute.xlu1 %550 }
  0x8e   : > { %v539_v62 = vadd.f32 %v535_v56, %v531_v59  ;;  %v540_v63 = vadd.f32 %v536_v57, %v532_v60 }
  0x90   : > { %v554_v2 = vmul.f32 %v551_v61, %v539_v62  ;;  %v555_v3 = vmul.f32 %v551_v61, %v540_v63 }
  0x92   : > { %v556_v4 = vadd.f32 %v554_v2, %v552_v0  ;;  %v563_v5 = vadd.f32 %v555_v3, %v553_v1 }
  0x94   : > { %v557_v6 = vrot.slane %v556_v4, 4  ;;  %v564_v8 = vrot.slane %v563_v5, 4 }
  0x96   : > { %v558_v9 = vadd.f32 %v557_v6, %v556_v4  ;;  %v565_v10 = vadd.f32 %v564_v8, %v563_v5 }
  0x98   : > { %v559_v13 = vrot.slane %v558_v9, 2  ;;  %v566_v15 = vrot.slane %v565_v10, 2 }
  0x9a   : > { %v560_v16 = vadd.f32 %v559_v13, %v558_v9  ;;  %v567_v18 = vadd.f32 %v566_v15, %v565_v10 }
  0x9c   : > { %v561_v24 = vrot.slane %v560_v16, 1  ;;  %v568_v25 = vrot.slane %v567_v18, 1 }
  0x9e   : > { %v562_v26 = vadd.f32 %v561_v24, %v560_v16  ;;  %v569_v27 = vadd.f32 %v568_v25, %v567_v18 }
  0xa0   : > { %v582_v29 = vadd.f32 %v575_v20, %v562_v26  ;;  %v583_v30 = vadd.f32 %v579_v21, %v569_v27 }
  0xa2   : > { %v586_v31 = vcombine.low %v582_v29, %v583_v30 }
  0xa4   : > { %v593_v32 = vrot.slane %v586_v31, %v592_v28 }
  0xa6   : > { %v600_v22 = vrot.slane %v593_v32, %v592_v28 }
  0xa8   : > { %607 = vst.msk [vmem:[%s450_s20] sm:$0x3] %vm605_vm2, %v600_v22 }
  0xa9 PF: > { %s17_s28 = sadd.s32 1, %s891_s28   ;;  %s1042_s24 = smov %s883_s26 }
  0xaa   : > { %p14_p7 = scmp.ge.s32.totalorder %s17_s28, 10   ;;  %s1043_s25 = smov %s887_s27 }
  0xab   : > { %s1044_s26 = smov %s1047_s29  ;;  %s1045_s27 = smov %s1051_s30 }
  0xac   :  { %16 = sbr.rel (!%p14_p7) target bundleno = 3 (0x3), region = 99 }

// kernel: vmrnn_forward.141
= control target key start
LH: loop header
LB: loop body
LE: loop exit
PB: predicated region body
PF: predicated region fallthrough
CT: control target
= control target key end

     0   :  { %s1335_s1 = inlined_call_operand.vmem [shape: bf16[384,128], index: 1, kind: input, shape index: {}]   ;;  %s1336_s0 = inlined_call_operand.vmem [shape: bf16[128,384], index: 0, kind: input, shape index: {}]   ;;  %s1337_s2 = inlined_call_operand.vmem [shape: f32[1,128], index: 2, kind: input, shape index: {}]   ;;  %s1338_s3 = inlined_call_operand.vmem [shape: f32[128,128], index: 3, kind: output, shape index: {}]  }
   0x1   :  { %v964_v0 = vld [vmem:[%s1335_s1 + $0x40] sm:$0xff]   ;;  %v967_v3 = vld [vmem:[%s1335_s1 + $0x48] sm:$0xff]   ;;  %v970_v6 = vld [vmem:[%s1335_s1 + $0x50] sm:$0xff]  }
   0x2   :  { %v965_v1 = vld [vmem:[%s1335_s1] sm:$0xff]   ;;  %852 = vmatprep.subr.bf16.mxu0 %v964_v0  ;;  %v968_v4 = vld [vmem:[%s1335_s1 + $0x8] sm:$0xff]   ;;  %v971_v7 = vld [vmem:[%s1335_s1 + $0x10] sm:$0xff]  }
   0x3   :  { %v966_v2 = vld [vmem:[%s1335_s1 + $0x80] sm:$0xff]   ;;  %853 = vmatpush3.bf16.msra.mxu0 %v965_v1  ;;  %v969_v5 = vld [vmem:[%s1335_s1 + $0x88] sm:$0xff]   ;;  %v972_v8 = vld [vmem:[%s1335_s1 + $0x90] sm:$0xff]  }
   0x4   :  { %932 = vmatprep.subr.bf16.mxu1 %v966_v2  ;;  %854 = vmatprep.subr.bf16.mxu0 %v967_v3  ;;  %v973_v9 = vld [vmem:[%s1335_s1 + $0x58] sm:$0xff]   ;;  %v976_v12 = vld [vmem:[%s1335_s1 + $0x60] sm:$0xff]   ;;  %v979_v15 = vld [vmem:[%s1335_s1 + $0x68] sm:$0xff]  }
   0x5   :  { %933 = vmatpush3.bf16.msra.mxu1 %v966_v2  ;;  %v974_v10 = vld [vmem:[%s1335_s1 + $0x18] sm:$0xff]   ;;  %v978_v13 = vld [vmem:[%s1335_s1 + $0xa0] sm:$0xff]   ;;  %v981_v16 = vld [vmem:[%s1335_s1 + $0xa8] sm:$0xff]  }
   0x6   :  { %934 = vmatprep.subr.bf16.mxu1 %v969_v5  ;;  %v975_v11 = vld [vmem:[%s1335_s1 + $0x98] sm:$0xff]   ;;  %v977_v14 = vld [vmem:[%s1335_s1 + $0x20] sm:$0xff]   ;;  %v980_v17 = vld [vmem:[%s1335_s1 + $0x28] sm:$0xff]  }
   0x7   :  { %855 = vmatpush3.bf16.msra.mxu0 %v968_v4  ;;  %v982_v18 = vld [vmem:[%s1335_s1 + $0x70] sm:$0xff]   ;;  %v985_v21 = vld [vmem:[%s1335_s1 + $0x78] sm:$0xff]   ;;  %v988_v26 = vld [vmem:[%s1336_s0] ss:$12 sps:$4 sm:$0xff]  }
   0x8   :  { %856 = vmatprep.subr.bf16.mxu0 %v970_v6  ;;  %v983_v19 = vld [vmem:[%s1335_s1 + $0x30] sm:$0xff]   ;;  %v987_v22 = vld [vmem:[%s1335_s1 + $0xb8] sm:$0xff]   ;;  %v992_v28 = vld [vmem:[%s1336_s0 + $0x20] ss:$12 sps:$4 sm:$0xff]  }
   0x9   :  { %935 = vmatpush3.bf16.msra.mxu1 %v969_v5  ;;  %v984_v20 = vld [vmem:[%s1335_s1 + $0xb0] sm:$0xff]   ;;  %v986_v25 = vld [vmem:[%s1335_s1 + $0x38] sm:$0xff]   ;;  %v1008_v36 = vld [vmem:[%s1336_s0 + $0x80] ss:$12 sps:$4 sm:$0xff]  }
   0xa   :  { %936 = vmatprep.subr.bf16.mxu1 %v972_v8  ;;  %v990_v23 = vld [vmem:[%s1336_s0 + $0x4] ss:$12 sps:$4 sm:$0xff]   ;;  %v991_v24 = vld [vmem:[%s1336_s0 + $0x8] ss:$12 sps:$4 sm:$0xff]   ;;  %v1001_v35 = vld [vmem:[%s1336_s0 + $0x4c] ss:$12 sps:$4 sm:$0xff]  }
   0xb   :  { %857 = vmatpush3.bf16.msra.mxu0 %v971_v7  ;;  %435 = vmatprep.mubr.bf16.mxu0 %v990_v23  ;;  %v993_v27 = vld [vmem:[%s1336_s0 + $0x1c] ss:$12 sps:$4 sm:$0xff]   ;;  %v999_v29 = vld [vmem:[%s1336_s0 + $0x38] ss:$12 sps:$4 sm:$0xff]   ;;  %v996_v31 = vld [vmem:[%s1336_s0 + $0x34] ss:$12 sps:$4 sm:$0xff]  }
   0xc   :  { %858 = vmatprep.subr.bf16.mxu0 %v973_v9  ;;  %948 = vmatprep.mubr.bf16.mxu1 %v991_v24  ;;  %v995_v30 = vld [vmem:[%s1336_s0 + $0x18] ss:$12 sps:$4 sm:$0xff]   ;;  %v1000_v32 = vld [vmem:[%s1336_s0 + $0x50] ss:$12 sps:$4 sm:$0xff]   ;;  %v1007_v33 = vld [vmem:[%s1336_s0 + $0x68] ss:$12 sps:$4 sm:$0xff]  }
   0xd   :  { %937 = vmatpush3.bf16.msra.mxu1 %v972_v8  ;;  %v998_v34 = vld [vmem:[%s1336_s0 + $0x30] ss:$12 sps:$4 sm:$0xff]   ;;  %v1015_v37 = vld [vmem:[%s1336_s0 + $0x98] ss:$12 sps:$4 sm:$0xff]   ;;  %v1003_v38 = vld [vmem:[%s1336_s0 + $0x48] ss:$12 sps:$4 sm:$0xff]  }
   0xe   :  { %938 = vmatprep.subr.bf16.mxu1 %v975_v11  ;;  %v1004_v39 = vld [vmem:[%s1336_s0 + $0x64] ss:$12 sps:$4 sm:$0xff]   ;;  %v1006_v41 = vld [vmem:[%s1336_s0 + $0x60] ss:$12 sps:$4 sm:$0xff]   ;;  %v1009_v42 = vld [vmem:[%s1336_s0 + $0x7c] ss:$12 sps:$4 sm:$0xff]  }
   0xf   :  { %859 = vmatpush3.bf16.msra.mxu0 %v974_v10  ;;  %v1016_v40 = vld [vmem:[%s1336_s0 + $0xb0] ss:$12 sps:$4 sm:$0xff]   ;;  %v1011_v43 = vld [vmem:[%s1336_s0 + $0x78] ss:$12 sps:$4 sm:$0xff]   ;;  %v1012_v44 = vld [vmem:[%s1336_s0 + $0x94] ss:$12 sps:$4 sm:$0xff]  }
  0x10   :  { %860 = vmatprep.subr.bf16.mxu0 %v976_v12  ;;  %v1014_v45 = vld [vmem:[%s1336_s0 + $0x90] ss:$12 sps:$4 sm:$0xff]   ;;  %v1017_v46 = vld [vmem:[%s1336_s0 + $0xac] ss:$12 sps:$4 sm:$0xff]   ;;  %v1019_v47 = vld [vmem:[%s1336_s0 + $0xa8] ss:$12 sps:$4 sm:$0xff]  }
  0x11   :  { %939 = vmatpush3.bf16.msra.mxu1 %v975_v11  ;;  %v1251_v55 = vld [vmem:[%s1337_s2] ss:$0 sm:$0xff] }
  0x12   :  { %940 = vmatprep.subr.bf16.mxu1 %v978_v13 }
  0x13   :  { %861 = vmatpush3.bf16.msra.mxu0 %v977_v14 }
  0x14   :  { %862 = vmatprep.subr.bf16.mxu0 %v979_v15 }
  0x15   :  { %941 = vmatpush3.bf16.msra.mxu1 %v978_v13 }
  0x16   :  { %942 = vmatprep.subr.bf16.mxu1 %v981_v16 }
  0x17   :  { %863 = vmatpush3.bf16.msra.mxu0 %v980_v17 }
  0x18   :  { %864 = vmatprep.subr.bf16.mxu0 %v982_v18 }
  0x19   :  { %943 = vmatpush3.bf16.msra.mxu1 %v981_v16 }
  0x1a   :  { %944 = vmatprep.subr.bf16.mxu1 %v984_v20 }
  0x1b   :  { %865 = vmatpush3.bf16.msra.mxu0 %v983_v19 }
  0x1c   :  { %866 = vmatprep.subr.bf16.mxu0 %v985_v21 }
  0x1d   :  { %945 = vmatpush3.bf16.msra.mxu1 %v984_v20 }
  0x1e   :  { %946 = vmatprep.subr.bf16.mxu1 %v987_v22 }
  0x1f   :  { %867 = vmatpush3.bf16.msra.mxu0 %v986_v25 }
  0x21   :  { %947 = vmatpush3.bf16.msra.mxu1 %v987_v22 }
  0x22   :  { %436 = vmatmul.mubr.bf16.vlgmr.msra.gmra.mrb[0].mxu0 %v988_v26 }
  0x23   :  { %443 = vmatprep.mubr.bf16.mxu0 %v993_v27 }
  0x24   :  { %949 = vmatmul.mubr.bf16.vlgmr.msra.gmra.mrb[0].mxu1 %v992_v28 }
  0x25   :  { %952 = vmatprep.mubr.bf16.mxu1 %v999_v29 }
  0x2a   :  { %444 = vmatmul.mubr.bf16.gmra.mrb[4].mxu0 %v995_v30 }
  0x2b   :  { %451 = vmatprep.mubr.bf16.mxu0 %v996_v31 }
  0x2c   :  { %953 = vmatmul.mubr.bf16.gmra.mrb[4].mxu1 %v1000_v32 }
  0x2d   :  { %956 = vmatprep.mubr.bf16.mxu1 %v1007_v33 }
  0x32   :  { %452 = vmatmul.mubr.bf16.gmra.mrb[8].mxu0 %v998_v34 }
  0x33   :  { %459 = vmatprep.mubr.bf16.mxu0 %v1001_v35 }
  0x34   :  { %957 = vmatmul.mubr.bf16.gmra.mrb[8].mxu1 %v1008_v36 }
  0x35   :  { %960 = vmatprep.mubr.bf16.mxu1 %v1015_v37 }
  0x3a   :  { %460 = vmatmul.mubr.bf16.gmra.mrb[12].mxu0 %v1003_v38 }
  0x3b   :  { %467 = vmatprep.mubr.bf16.mxu0 %v1004_v39 }
  0x3c   :  { %961 = vmatmul.mubr.bf16.gmra.mrb[12].mxu1 %v1016_v40 }
  0x42   :  { %468 = vmatmul.mubr.bf16.gmra.mrb[16].mxu0 %v1006_v41 }
  0x43   :  { %475 = vmatprep.mubr.bf16.mxu0 %v1009_v42 }
  0x4a   :  { %476 = vmatmul.mubr.bf16.gmra.mrb[20].mxu0 %v1011_v43 }
  0x4b   :  { %483 = vmatprep.mubr.bf16.mxu0 %v1012_v44 }
  0x52   :  { %484 = vmatmul.mubr.bf16.gmra.mrb[24].mxu0 %v1014_v45 }
  0x53   :  { %491 = vmatprep.mubr.bf16.mxu0 %v1017_v46 }
  0x5a   :  { %492 = vmatmul.mubr.bf16.gmra.mrb[28].mxu0 %v1019_v47 }
  0xf5   :  { %v868_v48 = vpop.f32.mrb[0].mxu0 }
  0xf6   :  { %v869_v49 = vpop.f32.mrb[1].mxu0 }
  0xf7   :  { %v870_v50 = vadd.f32 %v869_v49, %v868_v48  ;;  %v871_v51 = vpop.f32.mrb[2].mxu0  ;;  %v950_v52 = vpop.f32.mrb[0].mxu1 }
  0xf8   :  { %v872_v53 = vpop.f32.mrb[3].mxu0  ;;  %v534_v54 = vpop.f32.mrb[1].mxu1 }
  0xf9   :  { %v873_v56 = vadd.f32 %v872_v53, %v871_v51  ;;  %v535_v57 = vadd.f32 %v870_v50, %v534_v54  ;;  %v951_v58 = vpop.f32.mrb[2].mxu1 }
  0xfa   :  { %v537_v59 = vpop.f32.mrb[3].mxu1 }
  0xfb   :  { %v655_v60 = vadd.f32 %v1251_v55, %v535_v57  ;;  %v538_v61 = vadd.f32 %v873_v56, %v537_v59 }
  0xfd   :  { %v836_v62 = vmul.f32 -1.442695, %v655_v60  ;;  %v656_v63 = vadd.f32 %v1251_v55, %v538_v61  ;;  %v874_v0 = vpop.f32.mrb[4].mxu0 }
  0xfe   :  { %v875_v1 = vpop.f32.mrb[5].mxu0 }
  0xff   :  { %1020 = vpow2.f32 %v836_v62  ;;  %v837_v2 = vmul.f32 -1.442695, %v656_v63  ;;  %v876_v3 = vadd.f32 %v875_v1, %v874_v0  ;;  %v877_v4 = vpop.f32.mrb[6].mxu0  ;;  %v954_v5 = vpop.f32.mrb[4].mxu1 }
 0x100   :  { %v878_v6 = vpop.f32.mrb[7].mxu0  ;;  %v550_v7 = vpop.f32.mrb[5].mxu1 }
 0x101   :  { %1022 = vpow2.f32 %v837_v2  ;;  %v543_v8 = vadd.f32 %v950_v52, %v876_v3  ;;  %v879_v9 = vadd.f32 %v878_v6, %v877_v4  ;;  %v955_v10 = vpop.f32.mrb[6].mxu1 }
 0x102   :  { %v553_v11 = vpop.f32.mrb[7].mxu1 }
 0x103   :  { %v657_v12 = vadd.f32 %v1251_v55, %v543_v8  ;;  %v546_v13 = vadd.f32 %v951_v58, %v879_v9 }
 0x105   :  { %v838_v14 = vmul.f32 -1.442695, %v657_v12  ;;  %v658_v15 = vadd.f32 %v1251_v55, %v546_v13  ;;  %v880_v16 = vpop.f32.mrb[8].mxu0 }
 0x106   :  { %v881_v17 = vpop.f32.mrb[9].mxu0 }
 0x107   :  { %1024 = vpow2.f32 %v838_v14  ;;  %v839_v18 = vmul.f32 -1.442695, %v658_v15  ;;  %v882_v19 = vadd.f32 %v881_v17, %v880_v16  ;;  %v883_v20 = vpop.f32.mrb[10].mxu0  ;;  %v1257_v21 = vpop.f32.mrb[8].mxu1 }
 0x108   :  { %v884_v22 = vpop.f32.mrb[11].mxu0  ;;  %v566_v23 = vpop.f32.mrb[9].mxu1 }
 0x109   :  { %v1021_v24 = vpop.eup %1020  ;;  %1026 = vpow2.f32 %v839_v18  ;;  %v885_v25 = vadd.f32 %v884_v22, %v883_v20  ;;  %v551_v26 = vadd.f32 %v882_v19, %v550_v7  ;;  %v1259_v27 = vpop.f32.mrb[10].mxu1 }
 0x10a   :  { %v719_v28 = vadd.f32 1.0, %v1021_v24  ;;  %v569_v29 = vpop.f32.mrb[11].mxu1 }
 0x10b   :  { %v1023_v30 = vpop.eup %1022  ;;  %v659_v31 = vadd.f32 %v1251_v55, %v551_v26  ;;  %v554_v32 = vadd.f32 %v885_v25, %v553_v11 }
 0x10c   :  { %1028 = vrcp.f32 %v719_v28  ;;  %v720_v33 = vadd.f32 1.0, %v1023_v30 }
 0x10d   :  { %v840_v34 = vmul.f32 -1.442695, %v659_v31  ;;  %v660_v35 = vadd.f32 %v1251_v55, %v554_v32  ;;  %v886_v36 = vpop.f32.mrb[12].mxu0 }
 0x10e   :  { %1030 = vrcp.f32 %v720_v33  ;;  %v887_v37 = vpop.f32.mrb[13].mxu0 }
 0x10f   :  { %1032 = vpow2.f32 %v840_v34  ;;  %v841_v38 = vmul.f32 -1.442695, %v660_v35  ;;  %v888_v39 = vadd.f32 %v887_v37, %v886_v36  ;;  %v889_v40 = vpop.f32.mrb[14].mxu0  ;;  %v1263_v41 = vpop.f32.mrb[12].mxu1 }
 0x110   :  { %v890_v42 = vpop.f32.mrb[15].mxu0  ;;  %v1265_v43 = vpop.f32.mrb[13].mxu1 }
 0x111   :  { %v1025_v44 = vpop.eup %1024  ;;  %1034 = vpow2.f32 %v841_v38  ;;  %v559_v45 = vadd.f32 %v954_v5, %v888_v39  ;;  %v891_v46 = vadd.f32 %v890_v42, %v889_v40  ;;  %v1267_v47 = vpop.f32.mrb[14].mxu1 }
 0x112   :  { %v721_v48 = vadd.f32 1.0, %v1025_v44  ;;  %v1269_v49 = vpop.f32.mrb[15].mxu1 }
 0x113   :  { %v1027_v50 = vpop.eup %1026  ;;  %v661_v51 = vadd.f32 %v1251_v55, %v559_v45  ;;  %v562_v52 = vadd.f32 %v955_v10, %v891_v46 }
 0x114   :  { %1036 = vrcp.f32 %v721_v48  ;;  %v722_v53 = vadd.f32 1.0, %v1027_v50 }
 0x115   :  { %v842_v54 = vmul.f32 -1.442695, %v661_v51  ;;  %v662_v56 = vadd.f32 %v1251_v55, %v562_v52  ;;  %v892_v57 = vpop.f32.mrb[16].mxu0 }
 0x116   :  { %v1029_v58 = vpop.eup %1028  ;;  %1038 = vrcp.f32 %v722_v53  ;;  %v893_v59 = vpop.f32.mrb[17].mxu0 }
 0x117   :  { %767 = vst [vmem:[%s1338_s3] sm:$0xff] %v1029_v58  ;;  %1040 = vpow2.f32 %v842_v54  ;;  %v843_v60 = vmul.f32 -1.442695, %v662_v56  ;;  %v894_v61 = vadd.f32 %v893_v59, %v892_v57  ;;  %v895_v62 = vpop.f32.mrb[18].mxu0 }
 0x118   :  { %v1031_v63 = vpop.eup %1030  ;;  %v896_v0 = vpop.f32.mrb[19].mxu0 }
 0x119   :  { %v1033_v1 = vpop.eup %1032  ;;  %768 = vst [vmem:[%s1338_s3 + $0x8] sm:$0xff] %v1031_v63  ;;  %1042 = vpow2.f32 %v843_v60  ;;  %v897_v2 = vadd.f32 %v896_v0, %v895_v62  ;;  %v567_v3 = vadd.f32 %v894_v61, %v566_v23 }
 0x11a   :  { %v723_v4 = vadd.f32 1.0, %v1033_v1 }
 0x11b   :  { %v1035_v5 = vpop.eup %1034  ;;  %v663_v6 = vadd.f32 %v1251_v55, %v567_v3  ;;  %v570_v7 = vadd.f32 %v897_v2, %v569_v29 }
 0x11c   :  { %1044 = vrcp.f32 %v723_v4  ;;  %v724_v8 = vadd.f32 1.0, %v1035_v5 }
 0x11d   :  { %v844_v9 = vmul.f32 -1.442695, %v663_v6  ;;  %v664_v10 = vadd.f32 %v1251_v55, %v570_v7  ;;  %v898_v11 = vpop.f32.mrb[20].mxu0 }
 0x11e   :  { %v1037_v12 = vpop.eup %1036  ;;  %1046 = vrcp.f32 %v724_v8  ;;  %v899_v13 = vpop.f32.mrb[21].mxu0 }
 0x11f   :  { %769 = vst [vmem:[%s1338_s3 + $0x10] sm:$0xff] %v1037_v12  ;;  %1048 = vpow2.f32 %v844_v9  ;;  %v845_v14 = vmul.f32 -1.442695, %v664_v10  ;;  %v900_v15 = vadd.f32 %v899_v13, %v898_v11  ;;  %v901_v16 = vpop.f32.mrb[22].mxu0 }
 0x120   :  { %v1039_v17 = vpop.eup %1038  ;;  %v902_v18 = vpop.f32.mrb[23].mxu0 }
 0x121   :  { %v1041_v19 = vpop.eup %1040  ;;  %770 = vst [vmem:[%s1338_s3 + $0x18] sm:$0xff] %v1039_v17  ;;  %1050 = vpow2.f32 %v845_v14  ;;  %v575_v20 = vadd.f32 %v1257_v21, %v900_v15  ;;  %v903_v22 = vadd.f32 %v902_v18, %v901_v16 }
 0x122   :  { %v725_v23 = vadd.f32 1.0, %v1041_v19 }
 0x123   :  { %v1043_v24 = vpop.eup %1042  ;;  %v665_v25 = vadd.f32 %v1251_v55, %v575_v20  ;;  %v578_v26 = vadd.f32 %v1259_v27, %v903_v22 }
 0x124   :  { %1052 = vrcp.f32 %v725_v23  ;;  %v726_v28 = vadd.f32 1.0, %v1043_v24 }
 0x125   :  { %v846_v29 = vmul.f32 -1.442695, %v665_v25  ;;  %v666_v30 = vadd.f32 %v1251_v55, %v578_v26  ;;  %v904_v31 = vpop.f32.mrb[24].mxu0 }
 0x126   :  { %v1045_v32 = vpop.eup %1044  ;;  %1054 = vrcp.f32 %v726_v28  ;;  %v905_v33 = vpop.f32.mrb[25].mxu0 }
 0x127   :  { %771 = vst [vmem:[%s1338_s3 + $0x20] sm:$0xff] %v1045_v32  ;;  %1056 = vpow2.f32 %v846_v29  ;;  %v847_v21 = vmul.f32 -1.442695, %v666_v30  ;;  %v906_v34 = vadd.f32 %v905_v33, %v904_v31  ;;  %v907_v35 = vpop.f32.mrb[26].mxu0 }
 0x128   :  { %v1047_v36 = vpop.eup %1046  ;;  %v908_v37 = vpop.f32.mrb[27].mxu0 }
 0x129   :  { %v1049_v27 = vpop.eup %1048  ;;  %772 = vst [vmem:[%s1338_s3 + $0x28] sm:$0xff] %v1047_v36  ;;  %1058 = vpow2.f32 %v847_v21  ;;  %v909_v38 = vadd.f32 %v908_v37, %v907_v35  ;;  %v583_v39 = vadd.f32 %v906_v34, %v1265_v43 }
 0x12a   :  { %v727_v40 = vadd.f32 1.0, %v1049_v27 }
 0x12b   :  { %v1051_v42 = vpop.eup %1050  ;;  %v667_v44 = vadd.f32 %v1251_v55, %v583_v39  ;;  %v586_v45 = vadd.f32 %v909_v38, %v1269_v49 }
 0x12c   :  { %1060 = vrcp.f32 %v727_v40  ;;  %v728_v46 = vadd.f32 1.0, %v1051_v42 }
 0x12d   :  { %v848_v48 = vmul.f32 -1.442695, %v667_v44  ;;  %v668_v50 = vadd.f32 %v1251_v55, %v586_v45  ;;  %v910_v51 = vpop.f32.mrb[28].mxu0 }
 0x12e   :  { %v1053_v52 = vpop.eup %1052  ;;  %1062 = vrcp.f32 %v728_v46  ;;  %v911_v53 = vpop.f32.mrb[29].mxu0 }
 0x12f   :  { %773 = vst [vmem:[%s1338_s3 + $0x30] sm:$0xff] %v1053_v52  ;;  %1064 = vpow2.f32 %v848_v48  ;;  %v849_v43 = vmul.f32 -1.442695, %v668_v50  ;;  %v912_v54 = vadd.f32 %v911_v53, %v910_v51  ;;  %v913_v56 = vpop.f32.mrb[30].mxu0 }
 0x130   :  { %v1055_v57 = vpop.eup %1054  ;;  %v914_v58 = vpop.f32.mrb[31].mxu0 }
 0x131   :  { %v1057_v49 = vpop.eup %1056  ;;  %774 = vst [vmem:[%s1338_s3 + $0x38] sm:$0xff] %v1055_v57  ;;  %1066 = vpow2.f32 %v849_v43  ;;  %v591_v59 = vadd.f32 %v1263_v41, %v912_v54  ;;  %v915_v60 = vadd.f32 %v914_v58, %v913_v56 }
 0x132   :  { %v729_v61 = vadd.f32 1.0, %v1057_v49 }
 0x133   :  { %v1059_v62 = vpop.eup %1058  ;;  %v669_v63 = vadd.f32 %v1251_v55, %v591_v59  ;;  %v594_v0 = vadd.f32 %v1267_v47, %v915_v60 }
 0x134   :  { %1068 = vrcp.f32 %v729_v61  ;;  %v730_v1 = vadd.f32 1.0, %v1059_v62 }
 0x135   :  { %v850_v2 = vmul.f32 -1.442695, %v669_v63  ;;  %v670_v3 = vadd.f32 %v1251_v55, %v594_v0 }
 0x136   :  { %v1061_v4 = vpop.eup %1060  ;;  %1070 = vrcp.f32 %v730_v1 }
 0x137   :  { %775 = vst [vmem:[%s1338_s3 + $0x40] sm:$0xff] %v1061_v4  ;;  %1072 = vpow2.f32 %v850_v2  ;;  %v851_v41 = vmul.f32 -1.442695, %v670_v3 }
 0x138   :  { %v1063_v5 = vpop.eup %1062 }
 0x139   :  { %v1065_v6 = vpop.eup %1064  ;;  %776 = vst [vmem:[%s1338_s3 + $0x48] sm:$0xff] %v1063_v5  ;;  %1074 = vpow2.f32 %v851_v41 }
 0x13a   :  { %v731_v47 = vadd.f32 1.0, %v1065_v6 }
 0x13b   :  { %v1067_v7 = vpop.eup %1066 }
 0x13c   :  { %1076 = vrcp.f32 %v731_v47  ;;  %v732_v8 = vadd.f32 1.0, %v1067_v7 }
 0x13e   :  { %v1069_v55 = vpop.eup %1068  ;;  %1078 = vrcp.f32 %v732_v8 }
 0x13f   :  { %777 = vst [vmem:[%s1338_s3 + $0x50] sm:$0xff] %v1069_v55 }
 0x140   :  { %v1071_v9 = vpop.eup %1070 }
 0x141   :  { %v1073_v10 = vpop.eup %1072  ;;  %778 = vst [vmem:[%s1338_s3 + $0x58] sm:$0xff] %v1071_v9 }
 0x142   :  { %v733_v11 = vadd.f32 1.0, %v1073_v10 }
 0x143   :  { %v1075_v12 = vpop.eup %1074 }
 0x144   :  { %1080 = vrcp.f32 %v733_v11  ;;  %v734_v13 = vadd.f32 1.0, %v1075_v12 }
 0x146   :  { %v1077_v14 = vpop.eup %1076  ;;  %1082 = vrcp.f32 %v734_v13 }
 0x147   :  { %779 = vst [vmem:[%s1338_s3 + $0x60] sm:$0xff] %v1077_v14 }
 0x148   :  { %v1079_v15 = vpop.eup %1078 }
 0x149   :  { %780 = vst [vmem:[%s1338_s3 + $0x68] sm:$0xff] %v1079_v15 }
 0x14e   :  { %v1081_v16 = vpop.eup %1080 }
 0x14f   :  { %781 = vst [vmem:[%s1338_s3 + $0x70] sm:$0xff] %v1081_v16 }
 0x150   :  { %v1083_v17 = vpop.eup %1082 }
 0x151   :  { %782 = vst [vmem:[%s1338_s3 + $0x78] sm:$0xff] %v1083_v17 }

</bundles_post_ra>
